<compile_context>
chip_gen: v7x
topology: tpu7x:2x2x1
jax: 0.10.0
libtpu: 0.0.40
codegen_flags: <defaults>
</compile_context>

<pallas_src>
import functools

import numpy as np
import jax
import jax.numpy as jnp
from jax.experimental import pallas as pl
from jax.experimental.pallas import tpu as pltpu


# 27 spatial shift combos (sd, sh, sw) in {-1,0,1}^3; index = (sd+1)*9+(sh+1)*3+(sw+1)
SHIFTS27 = [(sd, sh, sw) for sd in (-1, 0, 1) for sh in (-1, 0, 1) for sw in (-1, 0, 1)]


# ----------------------------------------------------------------------------
# Small helpers (compile-time constants / wrapper-side layout plumbing)
# ----------------------------------------------------------------------------
def _shift_masks_np(m):
    """(27, m^3) f32 masks: 1 where (jd+sd, jh+sh, jw+sw) stays inside [0, m)^3."""
    j = np.arange(m ** 3)
    jd, jh, jw = j // (m * m), (j // m) % m, j % m
    masks = np.zeros((27, m ** 3), np.float32)
    for s_idx, (sd, sh, sw) in enumerate(SHIFTS27):
        ok = ((jd + sd >= 0) & (jd + sd < m) & (jh + sh >= 0) & (jh + sh < m)
              & (jw + sw >= 0) & (jw + sw < m))
        masks[s_idx] = ok.astype(np.float32)
    return masks


def _to_phase_major(feat, m):
    """(B, C, 2m, 2m, 2m) -> (B, C, 8, m^3): stride-2 phase-major spatial layout.
    (Pure permutation; valid because the channel compressor is pointwise in space.)"""
    B, C = feat.shape[0], feat.shape[1]
    v = feat.reshape(B, C, m, 2, m, 2, m, 2)
    v = jnp.transpose(v, (0, 1, 3, 5, 7, 2, 4, 6))   # (B, C, pd, ph, pw, jd, jh, jw)
    return v.reshape(B, C, 8, m ** 3)


def _pad_lanes(x, pad):
    """Pad the lane axis with `pad` zeros on both sides (pad is 128-aligned)."""
    z = jnp.zeros((x.shape[0], pad), x.dtype)
    return jnp.concatenate([z, x, z], axis=1)


def _smem_spec(arr):
    nd = arr.ndim
    return pl.BlockSpec(arr.shape, lambda b: (0,) * nd,
                        memory_space=pltpu.MemorySpace.SMEM)


# ----------------------------------------------------------------------------
# Kernel 1: compress every level + one stride-2 downsample round + branch add
# ----------------------------------------------------------------------------
def _make_align_kernel(level_cfg, n_branches, m):
    m3 = m ** 3
    pad = -(-(m * m + m + 1) // 128) * 128
    n_down = sum(1 for c in level_cfg if c["down"])
    L = len(level_cfg)

    def kernel(*refs):
        it = iter(refs)
        masks_ref = next(it)
        feat_refs = [next(it) for _ in range(L)]
        wdown_refs = [next(it) for _ in range(n_down)]
        ccw_refs = [next(it) for _ in range(L)]          # SMEM
        ccb_ref = next(it)                               # SMEM (L,)
        bdown_ref = next(it)                             # SMEM (n_down, n_br)
        out_ref = next(it)
        patch = next(it)                                 # VMEM (27*8, m^3) scratch

        masks = masks_ref[...]                           # (27, m^3)

        for i, cfg in enumerate(level_cfg):
            C = cfg["C"]
            feat = feat_refs[i][...][0]                  # (C, R, m^3)
            # ChannelCompressor: 1x1x1 conv (C->1) + folded BN + ReLU6 (VPU only,
            # per-channel scalar weights broadcast from SMEM).
            z = ccw_refs[i][0] * feat[0]
            for c in range(1, C):
                z = z + ccw_refs[i][c] * feat[c]
            z = jnp.clip(z + ccb_ref[i], 0.0, 6.0)       # (R, m^3)

            if not cfg["down"]:
                out_ref[0, i:i + 1, :] = z
            else:
                di = cfg["down_idx"]
                # In-kernel im2col: each stride-2 tap == a static lane shift of one
                # of the 8 phase rows.  Build (27 shifts x 8 phases, m^3) patches.
                zp = _pad_lanes(z, pad)                  # (8, pad + m^3 + pad)
                for s_idx, (sd, sh, sw) in enumerate(SHIFTS27):
                    off = sd * m * m + sh * m + sw
                    sl = zp[:, pad + off: pad + off + m3]
                    patch[s_idx * 8:(s_idx + 1) * 8, :] = sl * masks[s_idx]
                # All branches of this level in ONE MXU matmul.
                y = jnp.dot(wdown_refs[di][...], patch[...],
                            preferred_element_type=jnp.float32)   # (n_br, m^3)
                acc = jnp.maximum(y[0:1, :] + bdown_ref[di, 0], 0.0)   # ReLU
                for j in range(1, n_branches):
                    acc = acc + jnp.maximum(y[j:j + 1, :] + bdown_ref[di, j], 0.0)
                out_ref[0, i:i + 1, :] = acc             # 'add' FeatureFuser

    return kernel


def _fused_align(feats_in, masks, params, level_cfg, n_branches, m, B):
    L = len(level_cfg)
    m3 = m ** 3
    n_down = sum(1 for c in level_cfg if c["down"])
    kernel = _make_align_kernel(level_cfg, n_branches, m)

    in_specs = [pl.BlockSpec((27, m3), lambda b: (0, 0))]
    args = [masks]
    for i, cfg in enumerate(level_cfg):
        in_specs.append(pl.BlockSpec((1, cfg["C"], cfg["R"], m3),
                                     lambda b: (b, 0, 0, 0)))
        args.append(feats_in[i])
    for di in range(n_down):
        w = params["down_w"][di]
        in_specs.append(pl.BlockSpec(w.shape, lambda b: (0, 0)))
        args.append(w)
    for i in range(L):
        in_specs.append(_smem_spec(params["cc_w"][i])); args.append(params["cc_w"][i])
    in_specs.append(_smem_spec(params["cc_b"])); args.append(params["cc_b"])
    in_specs.append(_smem_spec(params["down_b"])); args.append(params["down_b"])

    return pl.pallas_call(
        kernel,
        out_shape=jax.ShapeDtypeStruct((B, L, m3), jnp.float32),
        grid=(B,),
        in_specs=in_specs,
        out_specs=pl.BlockSpec((1, L, m3), lambda b: (b, 0, 0)),
        scratch_shapes=[pltpu.VMEM((27 * 8, m3), jnp.float32)],
        compiler_params=pltpu.CompilerParams(dimension_semantics=("parallel",)),
    )(*args)


# ----------------------------------------------------------------------------
# Kernel 2: CrossLevelFuser (depthwise 3^3 + pointwise LxL + BN + ReLU6, folded)
#           with in-kernel im2col, then AttentionGenerator (1x1x1 + sigmoid) * x
# ----------------------------------------------------------------------------
def _make_fuse_kernel(L, Lp, m):
    m3 = m ** 3
    pad = -(-(m * m + m + 1) // 128) * 128

    def kernel(masks_ref, sc_ref, x_ref, wf_ref, bf_ref, wa_ref, ba_ref, o_ref, patch):
        masks = masks_ref[...]                            # (27, m^3)
        st = sc_ref[0]                                    # (Lp, m^3), GRN-scaled
        stp = _pad_lanes(st, pad)
        for s_idx, (sd, sh, sw) in enumerate(SHIFTS27):
            off = sd * m * m + sh * m + sw
            sl = stp[:, pad + off: pad + off + m3]
            patch[s_idx * Lp:(s_idx + 1) * Lp, :] = sl * masks[s_idx]
        # depthwise(3^3) + pointwise(LxL) + BN folded into one MXU matmul.
        fused = jnp.dot(wf_ref[...], patch[...],
                        preferred_element_type=jnp.float32)        # (L, m^3)
        logit = jnp.zeros((1, m3), jnp.float32) + ba_ref[0]
        for l in range(L):
            row = jnp.clip(fused[l:l + 1, :] + bf_ref[l], 0.0, 6.0)  # BN+ReLU6
            logit = logit + wa_ref[l] * row                          # 1x1x1 attn conv
        o_ref[0] = jax.nn.sigmoid(logit) * x_ref[0]                  # attn * x

    return kernel


def _fused_fuse_attend(scaled_p, x_flat, masks, params, L, Lp, Cx, m, B):
    m3 = m ** 3
    kernel = _make_fuse_kernel(L, Lp, m)
    return pl.pallas_call(
        kernel,
        out_shape=jax.ShapeDtypeStruct((B, Cx, m3), jnp.float32),
        grid=(B,),
        in_specs=[pl.BlockSpec((27, m3), lambda b: (0, 0)),
                  pl.BlockSpec((1, Lp, m3), lambda b: (b, 0, 0)),
                  pl.BlockSpec((1, Cx, m3), lambda b: (b, 0, 0)),
                  pl.BlockSpec(params["fuser_w"].shape, lambda b: (0, 0)),
                  _smem_spec(params["fuser_b"]),
                  _smem_spec(params["attn_w"]),
                  _smem_spec(params["attn_b"])],
        out_specs=pl.BlockSpec((1, Cx, m3), lambda b: (b, 0, 0)),
        scratch_shapes=[pltpu.VMEM((27 * Lp, m3), jnp.float32)],
        compiler_params=pltpu.CompilerParams(dimension_semantics=("parallel",)),
    )(masks, scaled_p, x_flat, params["fuser_w"], params["fuser_b"],
      params["attn_w"], params["attn_b"])


# ----------------------------------------------------------------------------
# GRN statistics + LxL MLP (XLA glue; O(B*L^2) scalars between the two kernels)
# ----------------------------------------------------------------------------
def _grn_alpha(stacked, p, eps=1e-6):
    """stacked: (B, L, m^3) -> per-(b, c) multiplier gamma*sigmoid(z)+beta+1."""
    # TODO(synk): exact erf-GELU has no guaranteed Mosaic lowering, so the tiny
    # GRN MLP stays in XLA glue rather than being fused into kernel 2.
    gx = jnp.sqrt(jnp.sum(stacked * stacked, axis=2))                 # (B, L)
    nx = gx / (jnp.mean(gx, axis=1, keepdims=True) + eps)
    z = nx @ p["fc1_w"].T + p["fc1_b"]
    z = jax.nn.gelu(z, approximate=False)
    z = z @ p["fc2_w"].T + p["fc2_b"]
    return p["gamma"][None, :] * jax.nn.sigmoid(z) + p["beta"][None, :] + 1.0


# ----------------------------------------------------------------------------
# Full forward (mirrors DynamicCrossLevelAttentionv2.forward)
# ----------------------------------------------------------------------------
def dcla_forward(encoder_feats, x, params, min_size, down_kernel):
    B, Cx = x.shape[0], x.shape[1]
    L = len(encoder_feats)
    m = min_size
    m3 = m ** 3
    Lp = ((L + 7) // 8) * 8
    n_br = len(down_kernel)
    masks = jnp.asarray(_shift_masks_np(m))

    level_cfg, feats_in = [], []
    n_down = 0
    for f in encoder_feats:
        C, S = int(f.shape[1]), int(f.shape[2])
        if S == m:
            level_cfg.append(dict(C=C, R=1, down=False, down_idx=None))
            feats_in.append(f.reshape(B, C, 1, m3))
        else:
            # TODO(synk): only a single stride-2 round (S == 2*min_size) is fused
            # in-kernel; deeper pyramids would need per-round phase re-decomposition.
            assert S == 2 * m, "fused kernel supports one downsample round per level"
            level_cfg.append(dict(C=C, R=8, down=True, down_idx=n_down))
            n_down += 1
            feats_in.append(_to_phase_major(f, m))

    # Kernel 1: compress + downsample + branch-add, all in VMEM.
    stacked = _fused_align(feats_in, masks, params, level_cfg, n_br, m, B)  # (B,L,m^3)

    # GRN alpha applied BEFORE patch extraction (27x less scaling work).
    alpha = _grn_alpha(stacked, params["grn"])                              # (B, L)
    scaled = stacked * alpha[:, :, None]
    scaled_p = jnp.concatenate(
        [scaled, jnp.zeros((B, Lp - L, m3), jnp.float32)], axis=1)          # (B,Lp,m^3)

    # Kernel 2: fuser + attention + apply.
    out = _fused_fuse_attend(scaled_p, x.reshape(B, Cx, m3), masks, params,
                             L, Lp, Cx, m, B)
    return out.reshape(x.shape)


# ----------------------------------------------------------------------------
# Deterministic parameter construction (shapes follow the module's __init__)
# ----------------------------------------------------------------------------
def _scatter_down_weight(w_taps, k):
    """Fold a (k,k,k) stride-2 conv weight into the (shift, phase) matmul row."""
    p = k // 2
    row = np.zeros((27 * 8,), np.float32)
    for td in range(k):
        for th in range(k):
            for tw in range(k):
                ss, pp = [], []
                for t in (td, th, tw):
                    d = t - p
                    s = d // 2
                    ss.append(s)
                    pp.append(d - 2 * s)
                if not all(-1 <= s <= 1 for s in ss):
                    raise NotImplementedError("down_kernel sizes > 5 not supported")
                s_idx = (ss[0] + 1) * 9 + (ss[1] + 1) * 3 + (ss[2] + 1)
                ph = pp[0] * 4 + pp[1] * 2 + pp[2]
                row[s_idx * 8 + ph] = w_taps[td, th, tw]
    return row


def build_params(ch_list, feats_size, min_size, down_kernel, key):
    keys = iter(jax.random.split(key, 256))

    def rnd(shape, scale=0.2):
        return np.asarray(scale * jax.random.normal(next(keys), shape), np.float32)

    def bn_fold(n):
        k1, k2, k3, k4 = jax.random.split(next(keys), 4)
        weight = 1.0 + 0.1 * jax.random.normal(k1, (n,))
        bias = 0.1 * jax.random.normal(k2, (n,))
        rmean = 0.1 * jax.random.normal(k3, (n,))
        rvar = 0.5 + jax.random.uniform(k4, (n,))
        scale = weight / jnp.sqrt(rvar + 1e-5)
        shift = bias - rmean * scale
        return np.asarray(scale, np.float32), np.asarray(shift, np.float32)

    L = len(ch_list)
    Lp = ((L + 7) // 8) * 8
    n_br = len(down_kernel)
    params = {}

    # ChannelCompressor per level: Conv3d(ch,1,1) + BN(1) + ReLU6 (BN folded).
    cc_w, cc_b = [], []
    for ch in ch_list:
        w, b = rnd((ch,)), rnd(())
        sc, sh = bn_fold(1)
        cc_w.append(jnp.asarray(w * sc[0], jnp.float32))
        cc_b.append(float(b * sc[0] + sh[0]))
    params["cc_w"] = cc_w
    params["cc_b"] = jnp.asarray(np.array(cc_b, np.float32))

    # Downsampler branches: Conv3d(1,1,k,stride=2,pad=k//2) + BN(1) + ReLU, folded
    # and scattered into the (shift, phase) matmul layout.
    down_w, down_b = [], []
    for size in feats_size:
        if size == min_size:
            continue
        wmat = np.zeros((n_br, 27 * 8), np.float32)
        bvec = np.zeros((n_br,), np.float32)
        for j, k in enumerate(down_kernel):
            w, b = rnd((k, k, k)), rnd(())
            sc, sh = bn_fold(1)
            wmat[j] = _scatter_down_weight(w * float(sc[0]), k)
            bvec[j] = float(b * sc[0] + sh[0])
        down_w.append(jnp.asarray(wmat))
        down_b.append(bvec)
    params["down_w"] = down_w
    db = np.zeros((max(len(down_b), 1), n_br), np.float32)
    for i, bv in enumerate(down_b):
        db[i] = bv
    params["down_b"] = jnp.asarray(db)

    # GRN (torch init is zeros -> identity; non-zero here to exercise the path).
    params["grn"] = dict(gamma=jnp.asarray(rnd((L,))), beta=jnp.asarray(rnd((L,))),
                         fc1_w=jnp.asarray(rnd((L, L))), fc1_b=jnp.asarray(rnd((L,))),
                         fc2_w=jnp.asarray(rnd((L, L))), fc2_b=jnp.asarray(rnd((L,))))

    # CrossLevelFuser: depthwise 3x3x3 + pointwise LxL + BN(L) + ReLU6, folded:
    #   W[o, s*Lp + c] = bn_scale[o] * pw[o, c] * dw[c, tap(s)]
    #   bias            = (pw_b + pw @ dw_b) * bn_scale + bn_shift
    dw_w, dw_b = rnd((L, 27)), rnd((L,))
    pw_w, pw_b = rnd((L, L)), rnd((L,))
    sc, sh = bn_fold(L)
    wf = np.zeros((L, 27 * Lp), np.float32)
    for o in range(L):
        for c in range(L):
            for s_idx in range(27):
                wf[o, s_idx * Lp + c] = sc[o] * pw_w[o, c] * dw_w[c, s_idx]
    bf = ((pw_b + pw_w @ dw_b) * sc + sh).astype(np.float32)
    params["fuser_w"] = jnp.asarray(wf)
    params["fuser_b"] = jnp.asarray(bf)

    # AttentionGenerator: Conv3d(L, 1, 1) + Sigmoid.
    params["attn_w"] = jnp.asarray(rnd((L,)))
    params["attn_b"] = jnp.asarray(rnd((1,)))
    return params


# ----------------------------------------------------------------------------
if __name__ == "__main__":
    B = 2
    ch_list = [4, 8, 16]
    feats_size = [16, 16, 8]
    min_size = 8
    down_kernel = [3, 5]
    Cx = 16

    params = build_params(ch_list, feats_size, min_size, down_kernel,
                          jax.random.PRNGKey(0))

    dkeys = jax.random.split(jax.random.PRNGKey(1), len(ch_list) + 1)
    encoder_feats = [
        0.5 * jax.random.normal(dkeys[i], (B, ch, s, s, s), dtype=jnp.float32)
        for i, (ch, s) in enumerate(zip(ch_list, feats_size))
    ]
    x = jax.random.normal(dkeys[-1], (B, Cx, min_size, min_size, min_size),
                          dtype=jnp.float32)

    fwd = jax.jit(functools.partial(dcla_forward, min_size=min_size,
                                    down_kernel=down_kernel))
    out = fwd(encoder_feats, x, params)
    out = jax.block_until_ready(out)
    assert out.shape == x.shape and out.dtype == jnp.float32
    print("KERNEL_OK")
</pallas_src>

<mosaic_0001>
module attributes {stable_mosaic.version = 11 : i64} {
  func.func @kernel(%arg0: i32, %arg1: memref<27x512xf32, #tpu.memory_space<vmem>>, %arg2: memref<1x4x8x512xf32, #tpu.memory_space<vmem>>, %arg3: memref<1x8x8x512xf32, #tpu.memory_space<vmem>>, %arg4: memref<1x16x1x512xf32, #tpu.memory_space<vmem>>, %arg5: memref<2x216xf32, #tpu.memory_space<vmem>>, %arg6: memref<2x216xf32, #tpu.memory_space<vmem>>, %arg7: memref<4xf32, #tpu.memory_space<smem>>, %arg8: memref<8xf32, #tpu.memory_space<smem>>, %arg9: memref<16xf32, #tpu.memory_space<smem>>, %arg10: memref<3xf32, #tpu.memory_space<smem>>, %arg11: memref<2x2xf32, #tpu.memory_space<smem>>, %arg12: memref<1x3x512xf32, #tpu.memory_space<vmem>>, %arg13: memref<216x512xf32, #tpu.memory_space<vmem>>) attributes {dimension_semantics = [#tpu.dimension_semantics<parallel>], iteration_bounds = array<i64: 2>, scalar_prefetch = 0 : i64, scratch_operands = 1 : i64, tpu.core_type = #tpu.core_type<tc>, window_params = [{pipeline_mode = #tpu.pipeline_mode<synchronous>, transform_indices = @transform_0, window_bounds = array<i64: 27, 512>}, {transform_indices = @transform_1, window_bounds = array<i64: 1, 4, 8, 512>}, {transform_indices = @transform_2, window_bounds = array<i64: 1, 8, 8, 512>}, {transform_indices = @transform_3, window_bounds = array<i64: 1, 16, 1, 512>}, {pipeline_mode = #tpu.pipeline_mode<synchronous>, transform_indices = @transform_4, window_bounds = array<i64: 2, 216>}, {pipeline_mode = #tpu.pipeline_mode<synchronous>, transform_indices = @transform_5, window_bounds = array<i64: 2, 216>}, {transform_indices = @transform_6, window_bounds = array<i64: 4>}, {transform_indices = @transform_7, window_bounds = array<i64: 8>}, {transform_indices = @transform_8, window_bounds = array<i64: 16>}, {transform_indices = @transform_9, window_bounds = array<i64: 3>}, {transform_indices = @transform_10, window_bounds = array<i64: 2, 2>}, {transform_indices = @transform_11, window_bounds = array<i64: 1, 3, 512>}]} {
    %c0 = arith.constant 0 : index
    %c0_0 = arith.constant 0 : index
    %0 = vector.load %arg1[%c0, %c0_0] : memref<27x512xf32, #tpu.memory_space<vmem>>, vector<27x512xf32>
    %c0_1 = arith.constant 0 : index
    %c0_2 = arith.constant 0 : index
    %c0_3 = arith.constant 0 : index
    %c0_4 = arith.constant 0 : index
    %1 = vector.load %arg2[%c0_1, %c0_2, %c0_3, %c0_4] : memref<1x4x8x512xf32, #tpu.memory_space<vmem>>, vector<1x4x8x512xf32>
    %2 = vector.shape_cast %1 : vector<1x4x8x512xf32> to vector<4x8x512xf32>
    %c0_5 = arith.constant 0 : index
    %3 = memref.load %arg7[%c0_5] : memref<4xf32, #tpu.memory_space<smem>>
    %4 = vector.extract_strided_slice %2 {offsets = [0, 0, 0], sizes = [1, 8, 512], strides = [1, 1, 1]} : vector<4x8x512xf32> to vector<1x8x512xf32>
    %5 = vector.shape_cast %4 : vector<1x8x512xf32> to vector<8x512xf32>
    %6 = vector.broadcast %3 : f32 to vector<8x512xf32>
    %7 = arith.mulf %6, %5 : vector<8x512xf32>
    %c1 = arith.constant 1 : index
    %8 = memref.load %arg7[%c1] : memref<4xf32, #tpu.memory_space<smem>>
    %9 = vector.extract_strided_slice %2 {offsets = [1, 0, 0], sizes = [1, 8, 512], strides = [1, 1, 1]} : vector<4x8x512xf32> to vector<1x8x512xf32>
    %10 = vector.shape_cast %9 : vector<1x8x512xf32> to vector<8x512xf32>
    %11 = vector.broadcast %8 : f32 to vector<8x512xf32>
    %12 = arith.mulf %11, %10 : vector<8x512xf32>
    %13 = arith.addf %7, %12 : vector<8x512xf32>
    %c2 = arith.constant 2 : index
    %14 = memref.load %arg7[%c2] : memref<4xf32, #tpu.memory_space<smem>>
    %15 = vector.extract_strided_slice %2 {offsets = [2, 0, 0], sizes = [1, 8, 512], strides = [1, 1, 1]} : vector<4x8x512xf32> to vector<1x8x512xf32>
    %16 = vector.shape_cast %15 : vector<1x8x512xf32> to vector<8x512xf32>
    %17 = vector.broadcast %14 : f32 to vector<8x512xf32>
    %18 = arith.mulf %17, %16 : vector<8x512xf32>
    %19 = arith.addf %13, %18 : vector<8x512xf32>
    %c3 = arith.constant 3 : index
    %20 = memref.load %arg7[%c3] : memref<4xf32, #tpu.memory_space<smem>>
    %21 = vector.extract_strided_slice %2 {offsets = [3, 0, 0], sizes = [1, 8, 512], strides = [1, 1, 1]} : vector<4x8x512xf32> to vector<1x8x512xf32>
    %22 = vector.shape_cast %21 : vector<1x8x512xf32> to vector<8x512xf32>
    %23 = vector.broadcast %20 : f32 to vector<8x512xf32>
    %24 = arith.mulf %23, %22 : vector<8x512xf32>
    %25 = arith.addf %19, %24 : vector<8x512xf32>
    %c0_6 = arith.constant 0 : index
    %26 = memref.load %arg10[%c0_6] : memref<3xf32, #tpu.memory_space<smem>>
    %27 = vector.broadcast %26 : f32 to vector<8x512xf32>
    %28 = arith.addf %25, %27 : vector<8x512xf32>
    %cst = arith.constant 0.000000e+00 : f32
    %cst_7 = arith.constant 6.000000e+00 : f32
    %29 = vector.broadcast %cst : f32 to vector<8x512xf32>
    %30 = arith.maximumf %29, %28 : vector<8x512xf32>
    %31 = vector.broadcast %cst_7 : f32 to vector<8x512xf32>
    %32 = arith.minimumf %31, %30 : vector<8x512xf32>
    %cst_8 = arith.constant 0.000000e+00 : f32
    %33 = vector.broadcast %cst_8 : f32 to vector<8x128xf32>
    %34 = tpu.concatenate %33, %32, %33 in 1 : vector<8x128xf32>, vector<8x512xf32>, vector<8x128xf32> -> vector<8x768xf32>
    %35 = vector.extract_strided_slice %34 {offsets = [0, 55], sizes = [8, 512], strides = [1, 1]} : vector<8x768xf32> to vector<8x512xf32>
    %36 = vector.extract_strided_slice %0 {offsets = [0, 0], sizes = [1, 512], strides = [1, 1]} : vector<27x512xf32> to vector<1x512xf32>
    %37 = vector.shape_cast %36 : vector<1x512xf32> to vector<512xf32>
    %38 = vector.shape_cast %37 : vector<512xf32> to vector<1x512xf32>
    %39 = vector.broadcast %38 : vector<1x512xf32> to vector<8x512xf32>
    %40 = arith.mulf %35, %39 : vector<8x512xf32>
    %c0_9 = arith.constant 0 : index
    %c0_10 = arith.constant 0 : index
    %41 = vector.load %arg13[%c0_9, %c0_10] : memref<216x512xf32, #tpu.memory_space<vmem>>, vector<8x512xf32>
    tpu.vector_store %arg13[%c0_9, %c0_10], %40 {strides = array<i32>} : memref<216x512xf32, #tpu.memory_space<vmem>>, vector<8x512xf32>,
    %42 = vector.extract_strided_slice %34 {offsets = [0, 56], sizes = [8, 512], strides = [1, 1]} : vector<8x768xf32> to vector<8x512xf32>
    %43 = vector.extract_strided_slice %0 {offsets = [1, 0], sizes = [1, 512], strides = [1, 1]} : vector<27x512xf32> to vector<1x512xf32>
    %44 = vector.shape_cast %43 : vector<1x512xf32> to vector<512xf32>
    %45 = vector.shape_cast %44 : vector<512xf32> to vector<1x512xf32>
    %46 = vector.broadcast %45 : vector<1x512xf32> to vector<8x512xf32>
    %47 = arith.mulf %42, %46 : vector<8x512xf32>
    %c8 = arith.constant 8 : index
    %c0_11 = arith.constant 0 : index
    %48 = vector.load %arg13[%c8, %c0_11] : memref<216x512xf32, #tpu.memory_space<vmem>>, vector<8x512xf32>
    tpu.vector_store %arg13[%c8, %c0_11], %47 {strides = array<i32>} : memref<216x512xf32, #tpu.memory_space<vmem>>, vector<8x512xf32>,
    %49 = vector.extract_strided_slice %34 {offsets = [0, 57], sizes = [8, 512], strides = [1, 1]} : vector<8x768xf32> to vector<8x512xf32>
    %50 = vector.extract_strided_slice %0 {offsets = [2, 0], sizes = [1, 512], strides = [1, 1]} : vector<27x512xf32> to vector<1x512xf32>
    %51 = vector.shape_cast %50 : vector<1x512xf32> to vector<512xf32>
    %52 = vector.shape_cast %51 : vector<512xf32> to vector<1x512xf32>
    %53 = vector.broadcast %52 : vector<1x512xf32> to vector<8x512xf32>
    %54 = arith.mulf %49, %53 : vector<8x512xf32>
    %c16 = arith.constant 16 : index
    %c0_12 = arith.constant 0 : index
    %55 = vector.load %arg13[%c16, %c0_12] : memref<216x512xf32, #tpu.memory_space<vmem>>, vector<8x512xf32>
    tpu.vector_store %arg13[%c16, %c0_12], %54 {strides = array<i32>} : memref<216x512xf32, #tpu.memory_space<vmem>>, vector<8x512xf32>,
    %56 = vector.extract_strided_slice %34 {offsets = [0, 63], sizes = [8, 512], strides = [1, 1]} : vector<8x768xf32> to vector<8x512xf32>
    %57 = vector.extract_strided_slice %0 {offsets = [3, 0], sizes = [1, 512], strides = [1, 1]} : vector<27x512xf32> to vector<1x512xf32>
    %58 = vector.shape_cast %57 : vector<1x512xf32> to vector<512xf32>
    %59 = vector.shape_cast %58 : vector<512xf32> to vector<1x512xf32>
    %60 = vector.broadcast %59 : vector<1x512xf32> to vector<8x512xf32>
    %61 = arith.mulf %56, %60 : vector<8x512xf32>
    %c24 = arith.constant 24 : index
    %c0_13 = arith.constant 0 : index
    %62 = vector.load %arg13[%c24, %c0_13] : memref<216x512xf32, #tpu.memory_space<vmem>>, vector<8x512xf32>
    tpu.vector_store %arg13[%c24, %c0_13], %61 {strides = array<i32>} : memref<216x512xf32, #tpu.memory_space<vmem>>, vector<8x512xf32>,
    %63 = vector.extract_strided_slice %34 {offsets = [0, 64], sizes = [8, 512], strides = [1, 1]} : vector<8x768xf32> to vector<8x512xf32>
    %64 = vector.extract_strided_slice %0 {offsets = [4, 0], sizes = [1, 512], strides = [1, 1]} : vector<27x512xf32> to vector<1x512xf32>
    %65 = vector.shape_cast %64 : vector<1x512xf32> to vector<512xf32>
    %66 = vector.shape_cast %65 : vector<512xf32> to vector<1x512xf32>
    %67 = vector.broadcast %66 : vector<1x512xf32> to vector<8x512xf32>
    %68 = arith.mulf %63, %67 : vector<8x512xf32>
    %c32 = arith.constant 32 : index
    %c0_14 = arith.constant 0 : index
    %69 = vector.load %arg13[%c32, %c0_14] : memref<216x512xf32, #tpu.memory_space<vmem>>, vector<8x512xf32>
    tpu.vector_store %arg13[%c32, %c0_14], %68 {strides = array<i32>} : memref<216x512xf32, #tpu.memory_space<vmem>>, vector<8x512xf32>,
    %70 = vector.extract_strided_slice %34 {offsets = [0, 65], sizes = [8, 512], strides = [1, 1]} : vector<8x768xf32> to vector<8x512xf32>
    %71 = vector.extract_strided_slice %0 {offsets = [5, 0], sizes = [1, 512], strides = [1, 1]} : vector<27x512xf32> to vector<1x512xf32>
    %72 = vector.shape_cast %71 : vector<1x512xf32> to vector<512xf32>
    %73 = vector.shape_cast %72 : vector<512xf32> to vector<1x512xf32>
    %74 = vector.broadcast %73 : vector<1x512xf32> to vector<8x512xf32>
    %75 = arith.mulf %70, %74 : vector<8x512xf32>
    %c40 = arith.constant 40 : index
    %c0_15 = arith.constant 0 : index
    %76 = vector.load %arg13[%c40, %c0_15] : memref<216x512xf32, #tpu.memory_space<vmem>>, vector<8x512xf32>
    tpu.vector_store %arg13[%c40, %c0_15], %75 {strides = array<i32>} : memref<216x512xf32, #tpu.memory_space<vmem>>, vector<8x512xf32>,
    %77 = vector.extract_strided_slice %34 {offsets = [0, 71], sizes = [8, 512], strides = [1, 1]} : vector<8x768xf32> to vector<8x512xf32>
    %78 = vector.extract_strided_slice %0 {offsets = [6, 0], sizes = [1, 512], strides = [1, 1]} : vector<27x512xf32> to vector<1x512xf32>
    %79 = vector.shape_cast %78 : vector<1x512xf32> to vector<512xf32>
    %80 = vector.shape_cast %79 : vector<512xf32> to vector<1x512xf32>
    %81 = vector.broadcast %80 : vector<1x512xf32> to vector<8x512xf32>
    %82 = arith.mulf %77, %81 : vector<8x512xf32>
    %c48 = arith.constant 48 : index
    %c0_16 = arith.constant 0 : index
    %83 = vector.load %arg13[%c48, %c0_16] : memref<216x512xf32, #tpu.memory_space<vmem>>, vector<8x512xf32>
    tpu.vector_store %arg13[%c48, %c0_16], %82 {strides = array<i32>} : memref<216x512xf32, #tpu.memory_space<vmem>>, vector<8x512xf32>,
    %84 = vector.extract_strided_slice %34 {offsets = [0, 72], sizes = [8, 512], strides = [1, 1]} : vector<8x768xf32> to vector<8x512xf32>
    %85 = vector.extract_strided_slice %0 {offsets = [7, 0], sizes = [1, 512], strides = [1, 1]} : vector<27x512xf32> to vector<1x512xf32>
    %86 = vector.shape_cast %85 : vector<1x512xf32> to vector<512xf32>
    %87 = vector.shape_cast %86 : vector<512xf32> to vector<1x512xf32>
    %88 = vector.broadcast %87 : vector<1x512xf32> to vector<8x512xf32>
    %89 = arith.mulf %84, %88 : vector<8x512xf32>
    %c56 = arith.constant 56 : index
    %c0_17 = arith.constant 0 : index
    %90 = vector.load %arg13[%c56, %c0_17] : memref<216x512xf32, #tpu.memory_space<vmem>>, vector<8x512xf32>
    tpu.vector_store %arg13[%c56, %c0_17], %89 {strides = array<i32>} : memref<216x512xf32, #tpu.memory_space<vmem>>, vector<8x512xf32>,
    %91 = vector.extract_strided_slice %34 {offsets = [0, 73], sizes = [8, 512], strides = [1, 1]} : vector<8x768xf32> to vector<8x512xf32>
    %92 = vector.extract_strided_slice %0 {offsets = [8, 0], sizes = [1, 512], strides = [1, 1]} : vector<27x512xf32> to vector<1x512xf32>
    %93 = vector.shape_cast %92 : vector<1x512xf32> to vector<512xf32>
    %94 = vector.shape_cast %93 : vector<512xf32> to vector<1x512xf32>
    %95 = vector.broadcast %94 : vector<1x512xf32> to vector<8x512xf32>
    %96 = arith.mulf %91, %95 : vector<8x512xf32>
    %c64 = arith.constant 64 : index
    %c0_18 = arith.constant 0 : index
    %97 = vector.load %arg13[%c64, %c0_18] : memref<216x512xf32, #tpu.memory_space<vmem>>, vector<8x512xf32>
    tpu.vector_store %arg13[%c64, %c0_18], %96 {strides = array<i32>} : memref<216x512xf32, #tpu.memory_space<vmem>>, vector<8x512xf32>,
    %98 = vector.extract_strided_slice %34 {offsets = [0, 119], sizes = [8, 512], strides = [1, 1]} : vector<8x768xf32> to vector<8x512xf32>
    %99 = vector.extract_strided_slice %0 {offsets = [9, 0], sizes = [1, 512], strides = [1, 1]} : vector<27x512xf32> to vector<1x512xf32>
    %100 = vector.shape_cast %99 : vector<1x512xf32> to vector<512xf32>
    %101 = vector.shape_cast %100 : vector<512xf32> to vector<1x512xf32>
    %102 = vector.broadcast %101 : vector<1x512xf32> to vector<8x512xf32>
    %103 = arith.mulf %98, %102 : vector<8x512xf32>
    %c72 = arith.constant 72 : index
    %c0_19 = arith.constant 0 : index
    %104 = vector.load %arg13[%c72, %c0_19] : memref<216x512xf32, #tpu.memory_space<vmem>>, vector<8x512xf32>
    tpu.vector_store %arg13[%c72, %c0_19], %103 {strides = array<i32>} : memref<216x512xf32, #tpu.memory_space<vmem>>, vector<8x512xf32>,
    %105 = vector.extract_strided_slice %34 {offsets = [0, 120], sizes = [8, 512], strides = [1, 1]} : vector<8x768xf32> to vector<8x512xf32>
    %106 = vector.extract_strided_slice %0 {offsets = [10, 0], sizes = [1, 512], strides = [1, 1]} : vector<27x512xf32> to vector<1x512xf32>
    %107 = vector.shape_cast %106 : vector<1x512xf32> to vector<512xf32>
    %108 = vector.shape_cast %107 : vector<512xf32> to vector<1x512xf32>
    %109 = vector.broadcast %108 : vector<1x512xf32> to vector<8x512xf32>
    %110 = arith.mulf %105, %109 : vector<8x512xf32>
    %c80 = arith.constant 80 : index
    %c0_20 = arith.constant 0 : index
    %111 = vector.load %arg13[%c80, %c0_20] : memref<216x512xf32, #tpu.memory_space<vmem>>, vector<8x512xf32>
    tpu.vector_store %arg13[%c80, %c0_20], %110 {strides = array<i32>} : memref<216x512xf32, #tpu.memory_space<vmem>>, vector<8x512xf32>,
    %112 = vector.extract_strided_slice %34 {offsets = [0, 121], sizes = [8, 512], strides = [1, 1]} : vector<8x768xf32> to vector<8x512xf32>
    %113 = vector.extract_strided_slice %0 {offsets = [11, 0], sizes = [1, 512], strides = [1, 1]} : vector<27x512xf32> to vector<1x512xf32>
    %114 = vector.shape_cast %113 : vector<1x512xf32> to vector<512xf32>
    %115 = vector.shape_cast %114 : vector<512xf32> to vector<1x512xf32>
    %116 = vector.broadcast %115 : vector<1x512xf32> to vector<8x512xf32>
    %117 = arith.mulf %112, %116 : vector<8x512xf32>
    %c88 = arith.constant 88 : index
    %c0_21 = arith.constant 0 : index
    %118 = vector.load %arg13[%c88, %c0_21] : memref<216x512xf32, #tpu.memory_space<vmem>>, vector<8x512xf32>
    tpu.vector_store %arg13[%c88, %c0_21], %117 {strides = array<i32>} : memref<216x512xf32, #tpu.memory_space<vmem>>, vector<8x512xf32>,
    %119 = vector.extract_strided_slice %34 {offsets = [0, 127], sizes = [8, 512], strides = [1, 1]} : vector<8x768xf32> to vector<8x512xf32>
    %120 = vector.extract_strided_slice %0 {offsets = [12, 0], sizes = [1, 512], strides = [1, 1]} : vector<27x512xf32> to vector<1x512xf32>
    %121 = vector.shape_cast %120 : vector<1x512xf32> to vector<512xf32>
    %122 = vector.shape_cast %121 : vector<512xf32> to vector<1x512xf32>
    %123 = vector.broadcast %122 : vector<1x512xf32> to vector<8x512xf32>
    %124 = arith.mulf %119, %123 : vector<8x512xf32>
    %c96 = arith.constant 96 : index
    %c0_22 = arith.constant 0 : index
    %125 = vector.load %arg13[%c96, %c0_22] : memref<216x512xf32, #tpu.memory_space<vmem>>, vector<8x512xf32>
    tpu.vector_store %arg13[%c96, %c0_22], %124 {strides = array<i32>} : memref<216x512xf32, #tpu.memory_space<vmem>>, vector<8x512xf32>,
    %126 = vector.extract_strided_slice %34 {offsets = [0, 128], sizes = [8, 512], strides = [1, 1]} : vector<8x768xf32> to vector<8x512xf32>
    %127 = vector.extract_strided_slice %0 {offsets = [13, 0], sizes = [1, 512], strides = [1, 1]} : vector<27x512xf32> to vector<1x512xf32>
    %128 = vector.shape_cast %127 : vector<1x512xf32> to vector<512xf32>
    %129 = vector.shape_cast %128 : vector<512xf32> to vector<1x512xf32>
    %130 = vector.broadcast %129 : vector<1x512xf32> to vector<8x512xf32>
    %131 = arith.mulf %126, %130 : vector<8x512xf32>
    %c104 = arith.constant 104 : index
    %c0_23 = arith.constant 0 : index
    %132 = vector.load %arg13[%c104, %c0_23] : memref<216x512xf32, #tpu.memory_space<vmem>>, vector<8x512xf32>
    tpu.vector_store %arg13[%c104, %c0_23], %131 {strides = array<i32>} : memref<216x512xf32, #tpu.memory_space<vmem>>, vector<8x512xf32>,
    %133 = vector.extract_strided_slice %34 {offsets = [0, 129], sizes = [8, 512], strides = [1, 1]} : vector<8x768xf32> to vector<8x512xf32>
    %134 = vector.extract_strided_slice %0 {offsets = [14, 0], sizes = [1, 512], strides = [1, 1]} : vector<27x512xf32> to vector<1x512xf32>
    %135 = vector.shape_cast %134 : vector<1x512xf32> to vector<512xf32>
    %136 = vector.shape_cast %135 : vector<512xf32> to vector<1x512xf32>
    %137 = vector.broadcast %136 : vector<1x512xf32> to vector<8x512xf32>
    %138 = arith.mulf %133, %137 : vector<8x512xf32>
    %c112 = arith.constant 112 : index
    %c0_24 = arith.constant 0 : index
    %139 = vector.load %arg13[%c112, %c0_24] : memref<216x512xf32, #tpu.memory_space<vmem>>, vector<8x512xf32>
    tpu.vector_store %arg13[%c112, %c0_24], %138 {strides = array<i32>} : memref<216x512xf32, #tpu.memory_space<vmem>>, vector<8x512xf32>,
    %140 = vector.extract_strided_slice %34 {offsets = [0, 135], sizes = [8, 512], strides = [1, 1]} : vector<8x768xf32> to vector<8x512xf32>
    %141 = vector.extract_strided_slice %0 {offsets = [15, 0], sizes = [1, 512], strides = [1, 1]} : vector<27x512xf32> to vector<1x512xf32>
    %142 = vector.shape_cast %141 : vector<1x512xf32> to vector<512xf32>
    %143 = vector.shape_cast %142 : vector<512xf32> to vector<1x512xf32>
    %144 = vector.broadcast %143 : vector<1x512xf32> to vector<8x512xf32>
    %145 = arith.mulf %140, %144 : vector<8x512xf32>
    %c120 = arith.constant 120 : index
    %c0_25 = arith.constant 0 : index
    %146 = vector.load %arg13[%c120, %c0_25] : memref<216x512xf32, #tpu.memory_space<vmem>>, vector<8x512xf32>
    tpu.vector_store %arg13[%c120, %c0_25], %145 {strides = array<i32>} : memref<216x512xf32, #tpu.memory_space<vmem>>, vector<8x512xf32>,
    %147 = vector.extract_strided_slice %34 {offsets = [0, 136], sizes = [8, 512], strides = [1, 1]} : vector<8x768xf32> to vector<8x512xf32>
    %148 = vector.extract_strided_slice %0 {offsets = [16, 0], sizes = [1, 512], strides = [1, 1]} : vector<27x512xf32> to vector<1x512xf32>
    %149 = vector.shape_cast %148 : vector<1x512xf32> to vector<512xf32>
    %150 = vector.shape_cast %149 : vector<512xf32> to vector<1x512xf32>
    %151 = vector.broadcast %150 : vector<1x512xf32> to vector<8x512xf32>
    %152 = arith.mulf %147, %151 : vector<8x512xf32>
    %c128 = arith.constant 128 : index
    %c0_26 = arith.constant 0 : index
    %153 = vector.load %arg13[%c128, %c0_26] : memref<216x512xf32, #tpu.memory_space<vmem>>, vector<8x512xf32>
    tpu.vector_store %arg13[%c128, %c0_26], %152 {strides = array<i32>} : memref<216x512xf32, #tpu.memory_space<vmem>>, vector<8x512xf32>,
    %154 = vector.extract_strided_slice %34 {offsets = [0, 137], sizes = [8, 512], strides = [1, 1]} : vector<8x768xf32> to vector<8x512xf32>
    %155 = vector.extract_strided_slice %0 {offsets = [17, 0], sizes = [1, 512], strides = [1, 1]} : vector<27x512xf32> to vector<1x512xf32>
    %156 = vector.shape_cast %155 : vector<1x512xf32> to vector<512xf32>
    %157 = vector.shape_cast %156 : vector<512xf32> to vector<1x512xf32>
    %158 = vector.broadcast %157 : vector<1x512xf32> to vector<8x512xf32>
    %159 = arith.mulf %154, %158 : vector<8x512xf32>
    %c136 = arith.constant 136 : index
    %c0_27 = arith.constant 0 : index
    %160 = vector.load %arg13[%c136, %c0_27] : memref<216x512xf32, #tpu.memory_space<vmem>>, vector<8x512xf32>
    tpu.vector_store %arg13[%c136, %c0_27], %159 {strides = array<i32>} : memref<216x512xf32, #tpu.memory_space<vmem>>, vector<8x512xf32>,
    %161 = vector.extract_strided_slice %34 {offsets = [0, 183], sizes = [8, 512], strides = [1, 1]} : vector<8x768xf32> to vector<8x512xf32>
    %162 = vector.extract_strided_slice %0 {offsets = [18, 0], sizes = [1, 512], strides = [1, 1]} : vector<27x512xf32> to vector<1x512xf32>
    %163 = vector.shape_cast %162 : vector<1x512xf32> to vector<512xf32>
    %164 = vector.shape_cast %163 : vector<512xf32> to vector<1x512xf32>
    %165 = vector.broadcast %164 : vector<1x512xf32> to vector<8x512xf32>
    %166 = arith.mulf %161, %165 : vector<8x512xf32>
    %c144 = arith.constant 144 : index
    %c0_28 = arith.constant 0 : index
    %167 = vector.load %arg13[%c144, %c0_28] : memref<216x512xf32, #tpu.memory_space<vmem>>, vector<8x512xf32>
    tpu.vector_store %arg13[%c144, %c0_28], %166 {strides = array<i32>} : memref<216x512xf32, #tpu.memory_space<vmem>>, vector<8x512xf32>,
    %168 = vector.extract_strided_slice %34 {offsets = [0, 184], sizes = [8, 512], strides = [1, 1]} : vector<8x768xf32> to vector<8x512xf32>
    %169 = vector.extract_strided_slice %0 {offsets = [19, 0], sizes = [1, 512], strides = [1, 1]} : vector<27x512xf32> to vector<1x512xf32>
    %170 = vector.shape_cast %169 : vector<1x512xf32> to vector<512xf32>
    %171 = vector.shape_cast %170 : vector<512xf32> to vector<1x512xf32>
    %172 = vector.broadcast %171 : vector<1x512xf32> to vector<8x512xf32>
    %173 = arith.mulf %168, %172 : vector<8x512xf32>
    %c152 = arith.constant 152 : index
    %c0_29 = arith.constant 0 : index
    %174 = vector.load %arg13[%c152, %c0_29] : memref<216x512xf32, #tpu.memory_space<vmem>>, vector<8x512xf32>
    tpu.vector_store %arg13[%c152, %c0_29], %173 {strides = array<i32>} : memref<216x512xf32, #tpu.memory_space<vmem>>, vector<8x512xf32>,
    %175 = vector.extract_strided_slice %34 {offsets = [0, 185], sizes = [8, 512], strides = [1, 1]} : vector<8x768xf32> to vector<8x512xf32>
    %176 = vector.extract_strided_slice %0 {offsets = [20, 0], sizes = [1, 512], strides = [1, 1]} : vector<27x512xf32> to vector<1x512xf32>
    %177 = vector.shape_cast %176 : vector<1x512xf32> to vector<512xf32>
    %178 = vector.shape_cast %177 : vector<512xf32> to vector<1x512xf32>
    %179 = vector.broadcast %178 : vector<1x512xf32> to vector<8x512xf32>
    %180 = arith.mulf %175, %179 : vector<8x512xf32>
    %c160 = arith.constant 160 : index
    %c0_30 = arith.constant 0 : index
    %181 = vector.load %arg13[%c160, %c0_30] : memref<216x512xf32, #tpu.memory_space<vmem>>, vector<8x512xf32>
    tpu.vector_store %arg13[%c160, %c0_30], %180 {strides = array<i32>} : memref<216x512xf32, #tpu.memory_space<vmem>>, vector<8x512xf32>,
    %182 = vector.extract_strided_slice %34 {offsets = [0, 191], sizes = [8, 512], strides = [1, 1]} : vector<8x768xf32> to vector<8x512xf32>
    %183 = vector.extract_strided_slice %0 {offsets = [21, 0], sizes = [1, 512], strides = [1, 1]} : vector<27x512xf32> to vector<1x512xf32>
    %184 = vector.shape_cast %183 : vector<1x512xf32> to vector<512xf32>
    %185 = vector.shape_cast %184 : vector<512xf32> to vector<1x512xf32>
    %186 = vector.broadcast %185 : vector<1x512xf32> to vector<8x512xf32>
    %187 = arith.mulf %182, %186 : vector<8x512xf32>
    %c168 = arith.constant 168 : index
    %c0_31 = arith.constant 0 : index
    %188 = vector.load %arg13[%c168, %c0_31] : memref<216x512xf32, #tpu.memory_space<vmem>>, vector<8x512xf32>
    tpu.vector_store %arg13[%c168, %c0_31], %187 {strides = array<i32>} : memref<216x512xf32, #tpu.memory_space<vmem>>, vector<8x512xf32>,
    %189 = vector.extract_strided_slice %34 {offsets = [0, 192], sizes = [8, 512], strides = [1, 1]} : vector<8x768xf32> to vector<8x512xf32>
    %190 = vector.extract_strided_slice %0 {offsets = [22, 0], sizes = [1, 512], strides = [1, 1]} : vector<27x512xf32> to vector<1x512xf32>
    %191 = vector.shape_cast %190 : vector<1x512xf32> to vector<512xf32>
    %192 = vector.shape_cast %191 : vector<512xf32> to vector<1x512xf32>
    %193 = vector.broadcast %192 : vector<1x512xf32> to vector<8x512xf32>
    %194 = arith.mulf %189, %193 : vector<8x512xf32>
    %c176 = arith.constant 176 : index
    %c0_32 = arith.constant 0 : index
    %195 = vector.load %arg13[%c176, %c0_32] : memref<216x512xf32, #tpu.memory_space<vmem>>, vector<8x512xf32>
    tpu.vector_store %arg13[%c176, %c0_32], %194 {strides = array<i32>} : memref<216x512xf32, #tpu.memory_space<vmem>>, vector<8x512xf32>,
    %196 = vector.extract_strided_slice %34 {offsets = [0, 193], sizes = [8, 512], strides = [1, 1]} : vector<8x768xf32> to vector<8x512xf32>
    %197 = vector.extract_strided_slice %0 {offsets = [23, 0], sizes = [1, 512], strides = [1, 1]} : vector<27x512xf32> to vector<1x512xf32>
    %198 = vector.shape_cast %197 : vector<1x512xf32> to vector<512xf32>
    %199 = vector.shape_cast %198 : vector<512xf32> to vector<1x512xf32>
    %200 = vector.broadcast %199 : vector<1x512xf32> to vector<8x512xf32>
    %201 = arith.mulf %196, %200 : vector<8x512xf32>
    %c184 = arith.constant 184 : index
    %c0_33 = arith.constant 0 : index
    %202 = vector.load %arg13[%c184, %c0_33] : memref<216x512xf32, #tpu.memory_space<vmem>>, vector<8x512xf32>
    tpu.vector_store %arg13[%c184, %c0_33], %201 {strides = array<i32>} : memref<216x512xf32, #tpu.memory_space<vmem>>, vector<8x512xf32>,
    %203 = vector.extract_strided_slice %34 {offsets = [0, 199], sizes = [8, 512], strides = [1, 1]} : vector<8x768xf32> to vector<8x512xf32>
    %204 = vector.extract_strided_slice %0 {offsets = [24, 0], sizes = [1, 512], strides = [1, 1]} : vector<27x512xf32> to vector<1x512xf32>
    %205 = vector.shape_cast %204 : vector<1x512xf32> to vector<512xf32>
    %206 = vector.shape_cast %205 : vector<512xf32> to vector<1x512xf32>
    %207 = vector.broadcast %206 : vector<1x512xf32> to vector<8x512xf32>
    %208 = arith.mulf %203, %207 : vector<8x512xf32>
    %c192 = arith.constant 192 : index
    %c0_34 = arith.constant 0 : index
    %209 = vector.load %arg13[%c192, %c0_34] : memref<216x512xf32, #tpu.memory_space<vmem>>, vector<8x512xf32>
    tpu.vector_store %arg13[%c192, %c0_34], %208 {strides = array<i32>} : memref<216x512xf32, #tpu.memory_space<vmem>>, vector<8x512xf32>,
    %210 = vector.extract_strided_slice %34 {offsets = [0, 200], sizes = [8, 512], strides = [1, 1]} : vector<8x768xf32> to vector<8x512xf32>
    %211 = vector.extract_strided_slice %0 {offsets = [25, 0], sizes = [1, 512], strides = [1, 1]} : vector<27x512xf32> to vector<1x512xf32>
    %212 = vector.shape_cast %211 : vector<1x512xf32> to vector<512xf32>
    %213 = vector.shape_cast %212 : vector<512xf32> to vector<1x512xf32>
    %214 = vector.broadcast %213 : vector<1x512xf32> to vector<8x512xf32>
    %215 = arith.mulf %210, %214 : vector<8x512xf32>
    %c200 = arith.constant 200 : index
    %c0_35 = arith.constant 0 : index
    %216 = vector.load %arg13[%c200, %c0_35] : memref<216x512xf32, #tpu.memory_space<vmem>>, vector<8x512xf32>
    tpu.vector_store %arg13[%c200, %c0_35], %215 {strides = array<i32>} : memref<216x512xf32, #tpu.memory_space<vmem>>, vector<8x512xf32>,
    %217 = vector.extract_strided_slice %34 {offsets = [0, 201], sizes = [8, 512], strides = [1, 1]} : vector<8x768xf32> to vector<8x512xf32>
    %218 = vector.extract_strided_slice %0 {offsets = [26, 0], sizes = [1, 512], strides = [1, 1]} : vector<27x512xf32> to vector<1x512xf32>
    %219 = vector.shape_cast %218 : vector<1x512xf32> to vector<512xf32>
    %220 = vector.shape_cast %219 : vector<512xf32> to vector<1x512xf32>
    %221 = vector.broadcast %220 : vector<1x512xf32> to vector<8x512xf32>
    %222 = arith.mulf %217, %221 : vector<8x512xf32>
    %c208 = arith.constant 208 : index
    %c0_36 = arith.constant 0 : index
    %223 = vector.load %arg13[%c208, %c0_36] : memref<216x512xf32, #tpu.memory_space<vmem>>, vector<8x512xf32>
    tpu.vector_store %arg13[%c208, %c0_36], %222 {strides = array<i32>} : memref<216x512xf32, #tpu.memory_space<vmem>>, vector<8x512xf32>,
    %c0_37 = arith.constant 0 : index
    %c0_38 = arith.constant 0 : index
    %224 = vector.load %arg5[%c0_37, %c0_38] : memref<2x216xf32, #tpu.memory_space<vmem>>, vector<2x216xf32>
    %c0_39 = arith.constant 0 : index
    %c0_40 = arith.constant 0 : index
    %225 = vector.load %arg13[%c0_39, %c0_40] : memref<216x512xf32, #tpu.memory_space<vmem>>, vector<216x512xf32>
    %cst_41 = arith.constant dense<0.000000e+00> : vector<2x512xf32>
    %226 = tpu.matmul %224, %225, %cst_41 {dimension_numbers = #tpu.dot_dimension_numbers<[1], [0], [0], [1], [0, 0, 1, 1], [], []>} : vector<2x216xf32>, vector<216x512xf32>, vector<2x512xf32> -> vector<2x512xf32>
    %227 = vector.extract_strided_slice %226 {offsets = [0, 0], sizes = [1, 512], strides = [1, 1]} : vector<2x512xf32> to vector<1x512xf32>
    %c0_42 = arith.constant 0 : index
    %c0_43 = arith.constant 0 : index
    %228 = memref.load %arg11[%c0_42, %c0_43] : memref<2x2xf32, #tpu.memory_space<smem>>
    %229 = vector.broadcast %228 : f32 to vector<1x512xf32>
    %230 = arith.addf %227, %229 : vector<1x512xf32>
    %cst_44 = arith.constant 0.000000e+00 : f32
    %231 = vector.broadcast %cst_44 : f32 to vector<1x512xf32>
    %232 = arith.maximumf %230, %231 : vector<1x512xf32>
    %233 = vector.extract_strided_slice %226 {offsets = [1, 0], sizes = [1, 512], strides = [1, 1]} : vector<2x512xf32> to vector<1x512xf32>
    %c0_45 = arith.constant 0 : index
    %c1_46 = arith.constant 1 : index
    %234 = memref.load %arg11[%c0_45, %c1_46] : memref<2x2xf32, #tpu.memory_space<smem>>
    %235 = vector.broadcast %234 : f32 to vector<1x512xf32>
    %236 = arith.addf %233, %235 : vector<1x512xf32>
    %cst_47 = arith.constant 0.000000e+00 : f32
    %237 = vector.broadcast %cst_47 : f32 to vector<1x512xf32>
    %238 = arith.maximumf %236, %237 : vector<1x512xf32>
    %239 = arith.addf %232, %238 : vector<1x512xf32>
    %c0_48 = arith.constant 0 : index
    %c0_49 = arith.constant 0 : index
    %c0_50 = arith.constant 0 : index
    %240 = vector.load %arg12[%c0_48, %c0_49, %c0_50] : memref<1x3x512xf32, #tpu.memory_space<vmem>>, vector<1x1x512xf32>
    %241 = vector.shape_cast %240 : vector<1x1x512xf32> to vector<1x512xf32>
    %242 = vector.shape_cast %239 : vector<1x512xf32> to vector<1x1x512xf32>
    tpu.vector_store %arg12[%c0_48, %c0_49, %c0_50], %242 {strides = array<i32>} : memref<1x3x512xf32, #tpu.memory_space<vmem>>, vector<1x1x512xf32>,
    %c0_51 = arith.constant 0 : index
    %c0_52 = arith.constant 0 : index
    %c0_53 = arith.constant 0 : index
    %c0_54 = arith.constant 0 : index
    %243 = vector.load %arg3[%c0_51, %c0_52, %c0_53, %c0_54] : memref<1x8x8x512xf32, #tpu.memory_space<vmem>>, vector<1x8x8x512xf32>
    %244 = vector.shape_cast %243 : vector<1x8x8x512xf32> to vector<8x8x512xf32>
    %c0_55 = arith.constant 0 : index
    %245 = memref.load %arg8[%c0_55] : memref<8xf32, #tpu.memory_space<smem>>
    %246 = vector.extract_strided_slice %244 {offsets = [0, 0, 0], sizes = [1, 8, 512], strides = [1, 1, 1]} : vector<8x8x512xf32> to vector<1x8x512xf32>
    %247 = vector.shape_cast %246 : vector<1x8x512xf32> to vector<8x512xf32>
    %248 = vector.broadcast %245 : f32 to vector<8x512xf32>
    %249 = arith.mulf %248, %247 : vector<8x512xf32>
    %c1_56 = arith.constant 1 : index
    %250 = memref.load %arg8[%c1_56] : memref<8xf32, #tpu.memory_space<smem>>
    %251 = vector.extract_strided_slice %244 {offsets = [1, 0, 0], sizes = [1, 8, 512], strides = [1, 1, 1]} : vector<8x8x512xf32> to vector<1x8x512xf32>
    %252 = vector.shape_cast %251 : vector<1x8x512xf32> to vector<8x512xf32>
    %253 = vector.broadcast %250 : f32 to vector<8x512xf32>
    %254 = arith.mulf %253, %252 : vector<8x512xf32>
    %255 = arith.addf %249, %254 : vector<8x512xf32>
    %c2_57 = arith.constant 2 : index
    %256 = memref.load %arg8[%c2_57] : memref<8xf32, #tpu.memory_space<smem>>
    %257 = vector.extract_strided_slice %244 {offsets = [2, 0, 0], sizes = [1, 8, 512], strides = [1, 1, 1]} : vector<8x8x512xf32> to vector<1x8x512xf32>
    %258 = vector.shape_cast %257 : vector<1x8x512xf32> to vector<8x512xf32>
    %259 = vector.broadcast %256 : f32 to vector<8x512xf32>
    %260 = arith.mulf %259, %258 : vector<8x512xf32>
    %261 = arith.addf %255, %260 : vector<8x512xf32>
    %c3_58 = arith.constant 3 : index
    %262 = memref.load %arg8[%c3_58] : memref<8xf32, #tpu.memory_space<smem>>
    %263 = vector.extract_strided_slice %244 {offsets = [3, 0, 0], sizes = [1, 8, 512], strides = [1, 1, 1]} : vector<8x8x512xf32> to vector<1x8x512xf32>
    %264 = vector.shape_cast %263 : vector<1x8x512xf32> to vector<8x512xf32>
    %265 = vector.broadcast %262 : f32 to vector<8x512xf32>
    %266 = arith.mulf %265, %264 : vector<8x512xf32>
    %267 = arith.addf %261, %266 : vector<8x512xf32>
    %c4 = arith.constant 4 : index
    %268 = memref.load %arg8[%c4] : memref<8xf32, #tpu.memory_space<smem>>
    %269 = vector.extract_strided_slice %244 {offsets = [4, 0, 0], sizes = [1, 8, 512], strides = [1, 1, 1]} : vector<8x8x512xf32> to vector<1x8x512xf32>
    %270 = vector.shape_cast %269 : vector<1x8x512xf32> to vector<8x512xf32>
    %271 = vector.broadcast %268 : f32 to vector<8x512xf32>
    %272 = arith.mulf %271, %270 : vector<8x512xf32>
    %273 = arith.addf %267, %272 : vector<8x512xf32>
    %c5 = arith.constant 5 : index
    %274 = memref.load %arg8[%c5] : memref<8xf32, #tpu.memory_space<smem>>
    %275 = vector.extract_strided_slice %244 {offsets = [5, 0, 0], sizes = [1, 8, 512], strides = [1, 1, 1]} : vector<8x8x512xf32> to vector<1x8x512xf32>
    %276 = vector.shape_cast %275 : vector<1x8x512xf32> to vector<8x512xf32>
    %277 = vector.broadcast %274 : f32 to vector<8x512xf32>
    %278 = arith.mulf %277, %276 : vector<8x512xf32>
    %279 = arith.addf %273, %278 : vector<8x512xf32>
    %c6 = arith.constant 6 : index
    %280 = memref.load %arg8[%c6] : memref<8xf32, #tpu.memory_space<smem>>
    %281 = vector.extract_strided_slice %244 {offsets = [6, 0, 0], sizes = [1, 8, 512], strides = [1, 1, 1]} : vector<8x8x512xf32> to vector<1x8x512xf32>
    %282 = vector.shape_cast %281 : vector<1x8x512xf32> to vector<8x512xf32>
    %283 = vector.broadcast %280 : f32 to vector<8x512xf32>
    %284 = arith.mulf %283, %282 : vector<8x512xf32>
    %285 = arith.addf %279, %284 : vector<8x512xf32>
    %c7 = arith.constant 7 : index
    %286 = memref.load %arg8[%c7] : memref<8xf32, #tpu.memory_space<smem>>
    %287 = vector.extract_strided_slice %244 {offsets = [7, 0, 0], sizes = [1, 8, 512], strides = [1, 1, 1]} : vector<8x8x512xf32> to vector<1x8x512xf32>
    %288 = vector.shape_cast %287 : vector<1x8x512xf32> to vector<8x512xf32>
    %289 = vector.broadcast %286 : f32 to vector<8x512xf32>
    %290 = arith.mulf %289, %288 : vector<8x512xf32>
    %291 = arith.addf %285, %290 : vector<8x512xf32>
    %c1_59 = arith.constant 1 : index
    %292 = memref.load %arg10[%c1_59] : memref<3xf32, #tpu.memory_space<smem>>
    %293 = vector.broadcast %292 : f32 to vector<8x512xf32>
    %294 = arith.addf %291, %293 : vector<8x512xf32>
    %cst_60 = arith.constant 0.000000e+00 : f32
    %cst_61 = arith.constant 6.000000e+00 : f32
    %295 = vector.broadcast %cst_60 : f32 to vector<8x512xf32>
    %296 = arith.maximumf %295, %294 : vector<8x512xf32>
    %297 = vector.broadcast %cst_61 : f32 to vector<8x512xf32>
    %298 = arith.minimumf %297, %296 : vector<8x512xf32>
    %cst_62 = arith.constant 0.000000e+00 : f32
    %299 = vector.broadcast %cst_62 : f32 to vector<8x128xf32>
    %300 = tpu.concatenate %299, %298, %299 in 1 : vector<8x128xf32>, vector<8x512xf32>, vector<8x128xf32> -> vector<8x768xf32>
    %301 = vector.extract_strided_slice %300 {offsets = [0, 55], sizes = [8, 512], strides = [1, 1]} : vector<8x768xf32> to vector<8x512xf32>
    %302 = vector.extract_strided_slice %0 {offsets = [0, 0], sizes = [1, 512], strides = [1, 1]} : vector<27x512xf32> to vector<1x512xf32>
    %303 = vector.shape_cast %302 : vector<1x512xf32> to vector<512xf32>
    %304 = vector.shape_cast %303 : vector<512xf32> to vector<1x512xf32>
    %305 = vector.broadcast %304 : vector<1x512xf32> to vector<8x512xf32>
    %306 = arith.mulf %301, %305 : vector<8x512xf32>
    %c0_63 = arith.constant 0 : index
    %c0_64 = arith.constant 0 : index
    %307 = vector.load %arg13[%c0_63, %c0_64] : memref<216x512xf32, #tpu.memory_space<vmem>>, vector<8x512xf32>
    tpu.vector_store %arg13[%c0_63, %c0_64], %306 {strides = array<i32>} : memref<216x512xf32, #tpu.memory_space<vmem>>, vector<8x512xf32>,
    %308 = vector.extract_strided_slice %300 {offsets = [0, 56], sizes = [8, 512], strides = [1, 1]} : vector<8x768xf32> to vector<8x512xf32>
    %309 = vector.extract_strided_slice %0 {offsets = [1, 0], sizes = [1, 512], strides = [1, 1]} : vector<27x512xf32> to vector<1x512xf32>
    %310 = vector.shape_cast %309 : vector<1x512xf32> to vector<512xf32>
    %311 = vector.shape_cast %310 : vector<512xf32> to vector<1x512xf32>
    %312 = vector.broadcast %311 : vector<1x512xf32> to vector<8x512xf32>
    %313 = arith.mulf %308, %312 : vector<8x512xf32>
    %c8_65 = arith.constant 8 : index
    %c0_66 = arith.constant 0 : index
    %314 = vector.load %arg13[%c8_65, %c0_66] : memref<216x512xf32, #tpu.memory_space<vmem>>, vector<8x512xf32>
    tpu.vector_store %arg13[%c8_65, %c0_66], %313 {strides = array<i32>} : memref<216x512xf32, #tpu.memory_space<vmem>>, vector<8x512xf32>,
    %315 = vector.extract_strided_slice %300 {offsets = [0, 57], sizes = [8, 512], strides = [1, 1]} : vector<8x768xf32> to vector<8x512xf32>
    %316 = vector.extract_strided_slice %0 {offsets = [2, 0], sizes = [1, 512], strides = [1, 1]} : vector<27x512xf32> to vector<1x512xf32>
    %317 = vector.shape_cast %316 : vector<1x512xf32> to vector<512xf32>
    %318 = vector.shape_cast %317 : vector<512xf32> to vector<1x512xf32>
    %319 = vector.broadcast %318 : vector<1x512xf32> to vector<8x512xf32>
    %320 = arith.mulf %315, %319 : vector<8x512xf32>
    %c16_67 = arith.constant 16 : index
    %c0_68 = arith.constant 0 : index
    %321 = vector.load %arg13[%c16_67, %c0_68] : memref<216x512xf32, #tpu.memory_space<vmem>>, vector<8x512xf32>
    tpu.vector_store %arg13[%c16_67, %c0_68], %320 {strides = array<i32>} : memref<216x512xf32, #tpu.memory_space<vmem>>, vector<8x512xf32>,
    %322 = vector.extract_strided_slice %300 {offsets = [0, 63], sizes = [8, 512], strides = [1, 1]} : vector<8x768xf32> to vector<8x512xf32>
    %323 = vector.extract_strided_slice %0 {offsets = [3, 0], sizes = [1, 512], strides = [1, 1]} : vector<27x512xf32> to vector<1x512xf32>
    %324 = vector.shape_cast %323 : vector<1x512xf32> to vector<512xf32>
    %325 = vector.shape_cast %324 : vector<512xf32> to vector<1x512xf32>
    %326 = vector.broadcast %325 : vector<1x512xf32> to vector<8x512xf32>
    %327 = arith.mulf %322, %326 : vector<8x512xf32>
    %c24_69 = arith.constant 24 : index
    %c0_70 = arith.constant 0 : index
    %328 = vector.load %arg13[%c24_69, %c0_70] : memref<216x512xf32, #tpu.memory_space<vmem>>, vector<8x512xf32>
    tpu.vector_store %arg13[%c24_69, %c0_70], %327 {strides = array<i32>} : memref<216x512xf32, #tpu.memory_space<vmem>>, vector<8x512xf32>,
    %329 = vector.extract_strided_slice %300 {offsets = [0, 64], sizes = [8, 512], strides = [1, 1]} : vector<8x768xf32> to vector<8x512xf32>
    %330 = vector.extract_strided_slice %0 {offsets = [4, 0], sizes = [1, 512], strides = [1, 1]} : vector<27x512xf32> to vector<1x512xf32>
    %331 = vector.shape_cast %330 : vector<1x512xf32> to vector<512xf32>
    %332 = vector.shape_cast %331 : vector<512xf32> to vector<1x512xf32>
    %333 = vector.broadcast %332 : vector<1x512xf32> to vector<8x512xf32>
    %334 = arith.mulf %329, %333 : vector<8x512xf32>
    %c32_71 = arith.constant 32 : index
    %c0_72 = arith.constant 0 : index
    %335 = vector.load %arg13[%c32_71, %c0_72] : memref<216x512xf32, #tpu.memory_space<vmem>>, vector<8x512xf32>
    tpu.vector_store %arg13[%c32_71, %c0_72], %334 {strides = array<i32>} : memref<216x512xf32, #tpu.memory_space<vmem>>, vector<8x512xf32>,
    %336 = vector.extract_strided_slice %300 {offsets = [0, 65], sizes = [8, 512], strides = [1, 1]} : vector<8x768xf32> to vector<8x512xf32>
    %337 = vector.extract_strided_slice %0 {offsets = [5, 0], sizes = [1, 512], strides = [1, 1]} : vector<27x512xf32> to vector<1x512xf32>
    %338 = vector.shape_cast %337 : vector<1x512xf32> to vector<512xf32>
    %339 = vector.shape_cast %338 : vector<512xf32> to vector<1x512xf32>
    %340 = vector.broadcast %339 : vector<1x512xf32> to vector<8x512xf32>
    %341 = arith.mulf %336, %340 : vector<8x512xf32>
    %c40_73 = arith.constant 40 : index
    %c0_74 = arith.constant 0 : index
    %342 = vector.load %arg13[%c40_73, %c0_74] : memref<216x512xf32, #tpu.memory_space<vmem>>, vector<8x512xf32>
    tpu.vector_store %arg13[%c40_73, %c0_74], %341 {strides = array<i32>} : memref<216x512xf32, #tpu.memory_space<vmem>>, vector<8x512xf32>,
    %343 = vector.extract_strided_slice %300 {offsets = [0, 71], sizes = [8, 512], strides = [1, 1]} : vector<8x768xf32> to vector<8x512xf32>
    %344 = vector.extract_strided_slice %0 {offsets = [6, 0], sizes = [1, 512], strides = [1, 1]} : vector<27x512xf32> to vector<1x512xf32>
    %345 = vector.shape_cast %344 : vector<1x512xf32> to vector<512xf32>
    %346 = vector.shape_cast %345 : vector<512xf32> to vector<1x512xf32>
    %347 = vector.broadcast %346 : vector<1x512xf32> to vector<8x512xf32>
    %348 = arith.mulf %343, %347 : vector<8x512xf32>
    %c48_75 = arith.constant 48 : index
    %c0_76 = arith.constant 0 : index
    %349 = vector.load %arg13[%c48_75, %c0_76] : memref<216x512xf32, #tpu.memory_space<vmem>>, vector<8x512xf32>
    tpu.vector_store %arg13[%c48_75, %c0_76], %348 {strides = array<i32>} : memref<216x512xf32, #tpu.memory_space<vmem>>, vector<8x512xf32>,
    %350 = vector.extract_strided_slice %300 {offsets = [0, 72], sizes = [8, 512], strides = [1, 1]} : vector<8x768xf32> to vector<8x512xf32>
    %351 = vector.extract_strided_slice %0 {offsets = [7, 0], sizes = [1, 512], strides = [1, 1]} : vector<27x512xf32> to vector<1x512xf32>
    %352 = vector.shape_cast %351 : vector<1x512xf32> to vector<512xf32>
    %353 = vector.shape_cast %352 : vector<512xf32> to vector<1x512xf32>
    %354 = vector.broadcast %353 : vector<1x512xf32> to vector<8x512xf32>
    %355 = arith.mulf %350, %354 : vector<8x512xf32>
    %c56_77 = arith.constant 56 : index
    %c0_78 = arith.constant 0 : index
    %356 = vector.load %arg13[%c56_77, %c0_78] : memref<216x512xf32, #tpu.memory_space<vmem>>, vector<8x512xf32>
    tpu.vector_store %arg13[%c56_77, %c0_78], %355 {strides = array<i32>} : memref<216x512xf32, #tpu.memory_space<vmem>>, vector<8x512xf32>,
    %357 = vector.extract_strided_slice %300 {offsets = [0, 73], sizes = [8, 512], strides = [1, 1]} : vector<8x768xf32> to vector<8x512xf32>
    %358 = vector.extract_strided_slice %0 {offsets = [8, 0], sizes = [1, 512], strides = [1, 1]} : vector<27x512xf32> to vector<1x512xf32>
    %359 = vector.shape_cast %358 : vector<1x512xf32> to vector<512xf32>
    %360 = vector.shape_cast %359 : vector<512xf32> to vector<1x512xf32>
    %361 = vector.broadcast %360 : vector<1x512xf32> to vector<8x512xf32>
    %362 = arith.mulf %357, %361 : vector<8x512xf32>
    %c64_79 = arith.constant 64 : index
    %c0_80 = arith.constant 0 : index
    %363 = vector.load %arg13[%c64_79, %c0_80] : memref<216x512xf32, #tpu.memory_space<vmem>>, vector<8x512xf32>
    tpu.vector_store %arg13[%c64_79, %c0_80], %362 {strides = array<i32>} : memref<216x512xf32, #tpu.memory_space<vmem>>, vector<8x512xf32>,
    %364 = vector.extract_strided_slice %300 {offsets = [0, 119], sizes = [8, 512], strides = [1, 1]} : vector<8x768xf32> to vector<8x512xf32>
    %365 = vector.extract_strided_slice %0 {offsets = [9, 0], sizes = [1, 512], strides = [1, 1]} : vector<27x512xf32> to vector<1x512xf32>
    %366 = vector.shape_cast %365 : vector<1x512xf32> to vector<512xf32>
    %367 = vector.shape_cast %366 : vector<512xf32> to vector<1x512xf32>
    %368 = vector.broadcast %367 : vector<1x512xf32> to vector<8x512xf32>
    %369 = arith.mulf %364, %368 : vector<8x512xf32>
    %c72_81 = arith.constant 72 : index
    %c0_82 = arith.constant 0 : index
    %370 = vector.load %arg13[%c72_81, %c0_82] : memref<216x512xf32, #tpu.memory_space<vmem>>, vector<8x512xf32>
    tpu.vector_store %arg13[%c72_81, %c0_82], %369 {strides = array<i32>} : memref<216x512xf32, #tpu.memory_space<vmem>>, vector<8x512xf32>,
    %371 = vector.extract_strided_slice %300 {offsets = [0, 120], sizes = [8, 512], strides = [1, 1]} : vector<8x768xf32> to vector<8x512xf32>
    %372 = vector.extract_strided_slice %0 {offsets = [10, 0], sizes = [1, 512], strides = [1, 1]} : vector<27x512xf32> to vector<1x512xf32>
    %373 = vector.shape_cast %372 : vector<1x512xf32> to vector<512xf32>
    %374 = vector.shape_cast %373 : vector<512xf32> to vector<1x512xf32>
    %375 = vector.broadcast %374 : vector<1x512xf32> to vector<8x512xf32>
    %376 = arith.mulf %371, %375 : vector<8x512xf32>
    %c80_83 = arith.constant 80 : index
    %c0_84 = arith.constant 0 : index
    %377 = vector.load %arg13[%c80_83, %c0_84] : memref<216x512xf32, #tpu.memory_space<vmem>>, vector<8x512xf32>
    tpu.vector_store %arg13[%c80_83, %c0_84], %376 {strides = array<i32>} : memref<216x512xf32, #tpu.memory_space<vmem>>, vector<8x512xf32>,
    %378 = vector.extract_strided_slice %300 {offsets = [0, 121], sizes = [8, 512], strides = [1, 1]} : vector<8x768xf32> to vector<8x512xf32>
    %379 = vector.extract_strided_slice %0 {offsets = [11, 0], sizes = [1, 512], strides = [1, 1]} : vector<27x512xf32> to vector<1x512xf32>
    %380 = vector.shape_cast %379 : vector<1x512xf32> to vector<512xf32>
    %381 = vector.shape_cast %380 : vector<512xf32> to vector<1x512xf32>
    %382 = vector.broadcast %381 : vector<1x512xf32> to vector<8x512xf32>
    %383 = arith.mulf %378, %382 : vector<8x512xf32>
    %c88_85 = arith.constant 88 : index
    %c0_86 = arith.constant 0 : index
    %384 = vector.load %arg13[%c88_85, %c0_86] : memref<216x512xf32, #tpu.memory_space<vmem>>, vector<8x512xf32>
    tpu.vector_store %arg13[%c88_85, %c0_86], %383 {strides = array<i32>} : memref<216x512xf32, #tpu.memory_space<vmem>>, vector<8x512xf32>,
    %385 = vector.extract_strided_slice %300 {offsets = [0, 127], sizes = [8, 512], strides = [1, 1]} : vector<8x768xf32> to vector<8x512xf32>
    %386 = vector.extract_strided_slice %0 {offsets = [12, 0], sizes = [1, 512], strides = [1, 1]} : vector<27x512xf32> to vector<1x512xf32>
    %387 = vector.shape_cast %386 : vector<1x512xf32> to vector<512xf32>
    %388 = vector.shape_cast %387 : vector<512xf32> to vector<1x512xf32>
    %389 = vector.broadcast %388 : vector<1x512xf32> to vector<8x512xf32>
    %390 = arith.mulf %385, %389 : vector<8x512xf32>
    %c96_87 = arith.constant 96 : index
    %c0_88 = arith.constant 0 : index
    %391 = vector.load %arg13[%c96_87, %c0_88] : memref<216x512xf32, #tpu.memory_space<vmem>>, vector<8x512xf32>
    tpu.vector_store %arg13[%c96_87, %c0_88], %390 {strides = array<i32>} : memref<216x512xf32, #tpu.memory_space<vmem>>, vector<8x512xf32>,
    %392 = vector.extract_strided_slice %300 {offsets = [0, 128], sizes = [8, 512], strides = [1, 1]} : vector<8x768xf32> to vector<8x512xf32>
    %393 = vector.extract_strided_slice %0 {offsets = [13, 0], sizes = [1, 512], strides = [1, 1]} : vector<27x512xf32> to vector<1x512xf32>
    %394 = vector.shape_cast %393 : vector<1x512xf32> to vector<512xf32>
    %395 = vector.shape_cast %394 : vector<512xf32> to vector<1x512xf32>
    %396 = vector.broadcast %395 : vector<1x512xf32> to vector<8x512xf32>
    %397 = arith.mulf %392, %396 : vector<8x512xf32>
    %c104_89 = arith.constant 104 : index
    %c0_90 = arith.constant 0 : index
    %398 = vector.load %arg13[%c104_89, %c0_90] : memref<216x512xf32, #tpu.memory_space<vmem>>, vector<8x512xf32>
    tpu.vector_store %arg13[%c104_89, %c0_90], %397 {strides = array<i32>} : memref<216x512xf32, #tpu.memory_space<vmem>>, vector<8x512xf32>,
    %399 = vector.extract_strided_slice %300 {offsets = [0, 129], sizes = [8, 512], strides = [1, 1]} : vector<8x768xf32> to vector<8x512xf32>
    %400 = vector.extract_strided_slice %0 {offsets = [14, 0], sizes = [1, 512], strides = [1, 1]} : vector<27x512xf32> to vector<1x512xf32>
    %401 = vector.shape_cast %400 : vector<1x512xf32> to vector<512xf32>
    %402 = vector.shape_cast %401 : vector<512xf32> to vector<1x512xf32>
    %403 = vector.broadcast %402 : vector<1x512xf32> to vector<8x512xf32>
    %404 = arith.mulf %399, %403 : vector<8x512xf32>
    %c112_91 = arith.constant 112 : index
    %c0_92 = arith.constant 0 : index
    %405 = vector.load %arg13[%c112_91, %c0_92] : memref<216x512xf32, #tpu.memory_space<vmem>>, vector<8x512xf32>
    tpu.vector_store %arg13[%c112_91, %c0_92], %404 {strides = array<i32>} : memref<216x512xf32, #tpu.memory_space<vmem>>, vector<8x512xf32>,
    %406 = vector.extract_strided_slice %300 {offsets = [0, 135], sizes = [8, 512], strides = [1, 1]} : vector<8x768xf32> to vector<8x512xf32>
    %407 = vector.extract_strided_slice %0 {offsets = [15, 0], sizes = [1, 512], strides = [1, 1]} : vector<27x512xf32> to vector<1x512xf32>
    %408 = vector.shape_cast %407 : vector<1x512xf32> to vector<512xf32>
    %409 = vector.shape_cast %408 : vector<512xf32> to vector<1x512xf32>
    %410 = vector.broadcast %409 : vector<1x512xf32> to vector<8x512xf32>
    %411 = arith.mulf %406, %410 : vector<8x512xf32>
    %c120_93 = arith.constant 120 : index
    %c0_94 = arith.constant 0 : index
    %412 = vector.load %arg13[%c120_93, %c0_94] : memref<216x512xf32, #tpu.memory_space<vmem>>, vector<8x512xf32>
    tpu.vector_store %arg13[%c120_93, %c0_94], %411 {strides = array<i32>} : memref<216x512xf32, #tpu.memory_space<vmem>>, vector<8x512xf32>,
    %413 = vector.extract_strided_slice %300 {offsets = [0, 136], sizes = [8, 512], strides = [1, 1]} : vector<8x768xf32> to vector<8x512xf32>
    %414 = vector.extract_strided_slice %0 {offsets = [16, 0], sizes = [1, 512], strides = [1, 1]} : vector<27x512xf32> to vector<1x512xf32>
    %415 = vector.shape_cast %414 : vector<1x512xf32> to vector<512xf32>
    %416 = vector.shape_cast %415 : vector<512xf32> to vector<1x512xf32>
    %417 = vector.broadcast %416 : vector<1x512xf32> to vector<8x512xf32>
    %418 = arith.mulf %413, %417 : vector<8x512xf32>
    %c128_95 = arith.constant 128 : index
    %c0_96 = arith.constant 0 : index
    %419 = vector.load %arg13[%c128_95, %c0_96] : memref<216x512xf32, #tpu.memory_space<vmem>>, vector<8x512xf32>
    tpu.vector_store %arg13[%c128_95, %c0_96], %418 {strides = array<i32>} : memref<216x512xf32, #tpu.memory_space<vmem>>, vector<8x512xf32>,
    %420 = vector.extract_strided_slice %300 {offsets = [0, 137], sizes = [8, 512], strides = [1, 1]} : vector<8x768xf32> to vector<8x512xf32>
    %421 = vector.extract_strided_slice %0 {offsets = [17, 0], sizes = [1, 512], strides = [1, 1]} : vector<27x512xf32> to vector<1x512xf32>
    %422 = vector.shape_cast %421 : vector<1x512xf32> to vector<512xf32>
    %423 = vector.shape_cast %422 : vector<512xf32> to vector<1x512xf32>
    %424 = vector.broadcast %423 : vector<1x512xf32> to vector<8x512xf32>
    %425 = arith.mulf %420, %424 : vector<8x512xf32>
    %c136_97 = arith.constant 136 : index
    %c0_98 = arith.constant 0 : index
    %426 = vector.load %arg13[%c136_97, %c0_98] : memref<216x512xf32, #tpu.memory_space<vmem>>, vector<8x512xf32>
    tpu.vector_store %arg13[%c136_97, %c0_98], %425 {strides = array<i32>} : memref<216x512xf32, #tpu.memory_space<vmem>>, vector<8x512xf32>,
    %427 = vector.extract_strided_slice %300 {offsets = [0, 183], sizes = [8, 512], strides = [1, 1]} : vector<8x768xf32> to vector<8x512xf32>
    %428 = vector.extract_strided_slice %0 {offsets = [18, 0], sizes = [1, 512], strides = [1, 1]} : vector<27x512xf32> to vector<1x512xf32>
    %429 = vector.shape_cast %428 : vector<1x512xf32> to vector<512xf32>
    %430 = vector.shape_cast %429 : vector<512xf32> to vector<1x512xf32>
    %431 = vector.broadcast %430 : vector<1x512xf32> to vector<8x512xf32>
    %432 = arith.mulf %427, %431 : vector<8x512xf32>
    %c144_99 = arith.constant 144 : index
    %c0_100 = arith.constant 0 : index
    %433 = vector.load %arg13[%c144_99, %c0_100] : memref<216x512xf32, #tpu.memory_space<vmem>>, vector<8x512xf32>
    tpu.vector_store %arg13[%c144_99, %c0_100], %432 {strides = array<i32>} : memref<216x512xf32, #tpu.memory_space<vmem>>, vector<8x512xf32>,
    %434 = vector.extract_strided_slice %300 {offsets = [0, 184], sizes = [8, 512], strides = [1, 1]} : vector<8x768xf32> to vector<8x512xf32>
    %435 = vector.extract_strided_slice %0 {offsets = [19, 0], sizes = [1, 512], strides = [1, 1]} : vector<27x512xf32> to vector<1x512xf32>
    %436 = vector.shape_cast %435 : vector<1x512xf32> to vector<512xf32>
    %437 = vector.shape_cast %436 : vector<512xf32> to vector<1x512xf32>
    %438 = vector.broadcast %437 : vector<1x512xf32> to vector<8x512xf32>
    %439 = arith.mulf %434, %438 : vector<8x512xf32>
    %c152_101 = arith.constant 152 : index
    %c0_102 = arith.constant 0 : index
    %440 = vector.load %arg13[%c152_101, %c0_102] : memref<216x512xf32, #tpu.memory_space<vmem>>, vector<8x512xf32>
    tpu.vector_store %arg13[%c152_101, %c0_102], %439 {strides = array<i32>} : memref<216x512xf32, #tpu.memory_space<vmem>>, vector<8x512xf32>,
    %441 = vector.extract_strided_slice %300 {offsets = [0, 185], sizes = [8, 512], strides = [1, 1]} : vector<8x768xf32> to vector<8x512xf32>
    %442 = vector.extract_strided_slice %0 {offsets = [20, 0], sizes = [1, 512], strides = [1, 1]} : vector<27x512xf32> to vector<1x512xf32>
    %443 = vector.shape_cast %442 : vector<1x512xf32> to vector<512xf32>
    %444 = vector.shape_cast %443 : vector<512xf32> to vector<1x512xf32>
    %445 = vector.broadcast %444 : vector<1x512xf32> to vector<8x512xf32>
    %446 = arith.mulf %441, %445 : vector<8x512xf32>
    %c160_103 = arith.constant 160 : index
    %c0_104 = arith.constant 0 : index
    %447 = vector.load %arg13[%c160_103, %c0_104] : memref<216x512xf32, #tpu.memory_space<vmem>>, vector<8x512xf32>
    tpu.vector_store %arg13[%c160_103, %c0_104], %446 {strides = array<i32>} : memref<216x512xf32, #tpu.memory_space<vmem>>, vector<8x512xf32>,
    %448 = vector.extract_strided_slice %300 {offsets = [0, 191], sizes = [8, 512], strides = [1, 1]} : vector<8x768xf32> to vector<8x512xf32>
    %449 = vector.extract_strided_slice %0 {offsets = [21, 0], sizes = [1, 512], strides = [1, 1]} : vector<27x512xf32> to vector<1x512xf32>
    %450 = vector.shape_cast %449 : vector<1x512xf32> to vector<512xf32>
    %451 = vector.shape_cast %450 : vector<512xf32> to vector<1x512xf32>
    %452 = vector.broadcast %451 : vector<1x512xf32> to vector<8x512xf32>
    %453 = arith.mulf %448, %452 : vector<8x512xf32>
    %c168_105 = arith.constant 168 : index
    %c0_106 = arith.constant 0 : index
    %454 = vector.load %arg13[%c168_105, %c0_106] : memref<216x512xf32, #tpu.memory_space<vmem>>, vector<8x512xf32>
    tpu.vector_store %arg13[%c168_105, %c0_106], %453 {strides = array<i32>} : memref<216x512xf32, #tpu.memory_space<vmem>>, vector<8x512xf32>,
    %455 = vector.extract_strided_slice %300 {offsets = [0, 192], sizes = [8, 512], strides = [1, 1]} : vector<8x768xf32> to vector<8x512xf32>
    %456 = vector.extract_strided_slice %0 {offsets = [22, 0], sizes = [1, 512], strides = [1, 1]} : vector<27x512xf32> to vector<1x512xf32>
    %457 = vector.shape_cast %456 : vector<1x512xf32> to vector<512xf32>
    %458 = vector.shape_cast %457 : vector<512xf32> to vector<1x512xf32>
    %459 = vector.broadcast %458 : vector<1x512xf32> to vector<8x512xf32>
    %460 = arith.mulf %455, %459 : vector<8x512xf32>
    %c176_107 = arith.constant 176 : index
    %c0_108 = arith.constant 0 : index
    %461 = vector.load %arg13[%c176_107, %c0_108] : memref<216x512xf32, #tpu.memory_space<vmem>>, vector<8x512xf32>
    tpu.vector_store %arg13[%c176_107, %c0_108], %460 {strides = array<i32>} : memref<216x512xf32, #tpu.memory_space<vmem>>, vector<8x512xf32>,
    %462 = vector.extract_strided_slice %300 {offsets = [0, 193], sizes = [8, 512], strides = [1, 1]} : vector<8x768xf32> to vector<8x512xf32>
    %463 = vector.extract_strided_slice %0 {offsets = [23, 0], sizes = [1, 512], strides = [1, 1]} : vector<27x512xf32> to vector<1x512xf32>
    %464 = vector.shape_cast %463 : vector<1x512xf32> to vector<512xf32>
    %465 = vector.shape_cast %464 : vector<512xf32> to vector<1x512xf32>
    %466 = vector.broadcast %465 : vector<1x512xf32> to vector<8x512xf32>
    %467 = arith.mulf %462, %466 : vector<8x512xf32>
    %c184_109 = arith.constant 184 : index
    %c0_110 = arith.constant 0 : index
    %468 = vector.load %arg13[%c184_109, %c0_110] : memref<216x512xf32, #tpu.memory_space<vmem>>, vector<8x512xf32>
    tpu.vector_store %arg13[%c184_109, %c0_110], %467 {strides = array<i32>} : memref<216x512xf32, #tpu.memory_space<vmem>>, vector<8x512xf32>,
    %469 = vector.extract_strided_slice %300 {offsets = [0, 199], sizes = [8, 512], strides = [1, 1]} : vector<8x768xf32> to vector<8x512xf32>
    %470 = vector.extract_strided_slice %0 {offsets = [24, 0], sizes = [1, 512], strides = [1, 1]} : vector<27x512xf32> to vector<1x512xf32>
    %471 = vector.shape_cast %470 : vector<1x512xf32> to vector<512xf32>
    %472 = vector.shape_cast %471 : vector<512xf32> to vector<1x512xf32>
    %473 = vector.broadcast %472 : vector<1x512xf32> to vector<8x512xf32>
    %474 = arith.mulf %469, %473 : vector<8x512xf32>
    %c192_111 = arith.constant 192 : index
    %c0_112 = arith.constant 0 : index
    %475 = vector.load %arg13[%c192_111, %c0_112] : memref<216x512xf32, #tpu.memory_space<vmem>>, vector<8x512xf32>
    tpu.vector_store %arg13[%c192_111, %c0_112], %474 {strides = array<i32>} : memref<216x512xf32, #tpu.memory_space<vmem>>, vector<8x512xf32>,
    %476 = vector.extract_strided_slice %300 {offsets = [0, 200], sizes = [8, 512], strides = [1, 1]} : vector<8x768xf32> to vector<8x512xf32>
    %477 = vector.extract_strided_slice %0 {offsets = [25, 0], sizes = [1, 512], strides = [1, 1]} : vector<27x512xf32> to vector<1x512xf32>
    %478 = vector.shape_cast %477 : vector<1x512xf32> to vector<512xf32>
    %479 = vector.shape_cast %478 : vector<512xf32> to vector<1x512xf32>
    %480 = vector.broadcast %479 : vector<1x512xf32> to vector<8x512xf32>
    %481 = arith.mulf %476, %480 : vector<8x512xf32>
    %c200_113 = arith.constant 200 : index
    %c0_114 = arith.constant 0 : index
    %482 = vector.load %arg13[%c200_113, %c0_114] : memref<216x512xf32, #tpu.memory_space<vmem>>, vector<8x512xf32>
    tpu.vector_store %arg13[%c200_113, %c0_114], %481 {strides = array<i32>} : memref<216x512xf32, #tpu.memory_space<vmem>>, vector<8x512xf32>,
    %483 = vector.extract_strided_slice %300 {offsets = [0, 201], sizes = [8, 512], strides = [1, 1]} : vector<8x768xf32> to vector<8x512xf32>
    %484 = vector.extract_strided_slice %0 {offsets = [26, 0], sizes = [1, 512], strides = [1, 1]} : vector<27x512xf32> to vector<1x512xf32>
    %485 = vector.shape_cast %484 : vector<1x512xf32> to vector<512xf32>
    %486 = vector.shape_cast %485 : vector<512xf32> to vector<1x512xf32>
    %487 = vector.broadcast %486 : vector<1x512xf32> to vector<8x512xf32>
    %488 = arith.mulf %483, %487 : vector<8x512xf32>
    %c208_115 = arith.constant 208 : index
    %c0_116 = arith.constant 0 : index
    %489 = vector.load %arg13[%c208_115, %c0_116] : memref<216x512xf32, #tpu.memory_space<vmem>>, vector<8x512xf32>
    tpu.vector_store %arg13[%c208_115, %c0_116], %488 {strides = array<i32>} : memref<216x512xf32, #tpu.memory_space<vmem>>, vector<8x512xf32>,
    %c0_117 = arith.constant 0 : index
    %c0_118 = arith.constant 0 : index
    %490 = vector.load %arg6[%c0_117, %c0_118] : memref<2x216xf32, #tpu.memory_space<vmem>>, vector<2x216xf32>
    %c0_119 = arith.constant 0 : index
    %c0_120 = arith.constant 0 : index
    %491 = vector.load %arg13[%c0_119, %c0_120] : memref<216x512xf32, #tpu.memory_space<vmem>>, vector<216x512xf32>
    %cst_121 = arith.constant dense<0.000000e+00> : vector<2x512xf32>
    %492 = tpu.matmul %490, %491, %cst_121 {dimension_numbers = #tpu.dot_dimension_numbers<[1], [0], [0], [1], [0, 0, 1, 1], [], []>} : vector<2x216xf32>, vector<216x512xf32>, vector<2x512xf32> -> vector<2x512xf32>
    %493 = vector.extract_strided_slice %492 {offsets = [0, 0], sizes = [1, 512], strides = [1, 1]} : vector<2x512xf32> to vector<1x512xf32>
    %c1_122 = arith.constant 1 : index
    %c0_123 = arith.constant 0 : index
    %494 = memref.load %arg11[%c1_122, %c0_123] : memref<2x2xf32, #tpu.memory_space<smem>>
    %495 = vector.broadcast %494 : f32 to vector<1x512xf32>
    %496 = arith.addf %493, %495 : vector<1x512xf32>
    %cst_124 = arith.constant 0.000000e+00 : f32
    %497 = vector.broadcast %cst_124 : f32 to vector<1x512xf32>
    %498 = arith.maximumf %496, %497 : vector<1x512xf32>
    %499 = vector.extract_strided_slice %492 {offsets = [1, 0], sizes = [1, 512], strides = [1, 1]} : vector<2x512xf32> to vector<1x512xf32>
    %c1_125 = arith.constant 1 : index
    %c1_126 = arith.constant 1 : index
    %500 = memref.load %arg11[%c1_125, %c1_126] : memref<2x2xf32, #tpu.memory_space<smem>>
    %501 = vector.broadcast %500 : f32 to vector<1x512xf32>
    %502 = arith.addf %499, %501 : vector<1x512xf32>
    %cst_127 = arith.constant 0.000000e+00 : f32
    %503 = vector.broadcast %cst_127 : f32 to vector<1x512xf32>
    %504 = arith.maximumf %502, %503 : vector<1x512xf32>
    %505 = arith.addf %498, %504 : vector<1x512xf32>
    %c0_128 = arith.constant 0 : index
    %c1_129 = arith.constant 1 : index
    %c0_130 = arith.constant 0 : index
    %506 = vector.load %arg12[%c0_128, %c1_129, %c0_130] : memref<1x3x512xf32, #tpu.memory_space<vmem>>, vector<1x1x512xf32>
    %507 = vector.shape_cast %506 : vector<1x1x512xf32> to vector<1x512xf32>
    %508 = vector.shape_cast %505 : vector<1x512xf32> to vector<1x1x512xf32>
    tpu.vector_store %arg12[%c0_128, %c1_129, %c0_130], %508 {strides = array<i32>} : memref<1x3x512xf32, #tpu.memory_space<vmem>>, vector<1x1x512xf32>,
    %c0_131 = arith.constant 0 : index
    %c0_132 = arith.constant 0 : index
    %c0_133 = arith.constant 0 : index
    %c0_134 = arith.constant 0 : index
    %509 = vector.load %arg4[%c0_131, %c0_132, %c0_133, %c0_134] : memref<1x16x1x512xf32, #tpu.memory_space<vmem>>, vector<1x16x1x512xf32>
    %510 = vector.shape_cast %509 : vector<1x16x1x512xf32> to vector<16x1x512xf32>
    %c0_135 = arith.constant 0 : index
    %511 = memref.load %arg9[%c0_135] : memref<16xf32, #tpu.memory_space<smem>>
    %512 = vector.extract_strided_slice %510 {offsets = [0, 0, 0], sizes = [1, 1, 512], strides = [1, 1, 1]} : vector<16x1x512xf32> to vector<1x1x512xf32>
    %513 = vector.shape_cast %512 : vector<1x1x512xf32> to vector<1x512xf32>
    %514 = vector.broadcast %511 : f32 to vector<1x512xf32>
    %515 = arith.mulf %514, %513 : vector<1x512xf32>
    %c1_136 = arith.constant 1 : index
    %516 = memref.load %arg9[%c1_136] : memref<16xf32, #tpu.memory_space<smem>>
    %517 = vector.extract_strided_slice %510 {offsets = [1, 0, 0], sizes = [1, 1, 512], strides = [1, 1, 1]} : vector<16x1x512xf32> to vector<1x1x512xf32>
    %518 = vector.shape_cast %517 : vector<1x1x512xf32> to vector<1x512xf32>
    %519 = vector.broadcast %516 : f32 to vector<1x512xf32>
    %520 = arith.mulf %519, %518 : vector<1x512xf32>
    %521 = arith.addf %515, %520 : vector<1x512xf32>
    %c2_137 = arith.constant 2 : index
    %522 = memref.load %arg9[%c2_137] : memref<16xf32, #tpu.memory_space<smem>>
    %523 = vector.extract_strided_slice %510 {offsets = [2, 0, 0], sizes = [1, 1, 512], strides = [1, 1, 1]} : vector<16x1x512xf32> to vector<1x1x512xf32>
    %524 = vector.shape_cast %523 : vector<1x1x512xf32> to vector<1x512xf32>
    %525 = vector.broadcast %522 : f32 to vector<1x512xf32>
    %526 = arith.mulf %525, %524 : vector<1x512xf32>
    %527 = arith.addf %521, %526 : vector<1x512xf32>
    %c3_138 = arith.constant 3 : index
    %528 = memref.load %arg9[%c3_138] : memref<16xf32, #tpu.memory_space<smem>>
    %529 = vector.extract_strided_slice %510 {offsets = [3, 0, 0], sizes = [1, 1, 512], strides = [1, 1, 1]} : vector<16x1x512xf32> to vector<1x1x512xf32>
    %530 = vector.shape_cast %529 : vector<1x1x512xf32> to vector<1x512xf32>
    %531 = vector.broadcast %528 : f32 to vector<1x512xf32>
    %532 = arith.mulf %531, %530 : vector<1x512xf32>
    %533 = arith.addf %527, %532 : vector<1x512xf32>
    %c4_139 = arith.constant 4 : index
    %534 = memref.load %arg9[%c4_139] : memref<16xf32, #tpu.memory_space<smem>>
    %535 = vector.extract_strided_slice %510 {offsets = [4, 0, 0], sizes = [1, 1, 512], strides = [1, 1, 1]} : vector<16x1x512xf32> to vector<1x1x512xf32>
    %536 = vector.shape_cast %535 : vector<1x1x512xf32> to vector<1x512xf32>
    %537 = vector.broadcast %534 : f32 to vector<1x512xf32>
    %538 = arith.mulf %537, %536 : vector<1x512xf32>
    %539 = arith.addf %533, %538 : vector<1x512xf32>
    %c5_140 = arith.constant 5 : index
    %540 = memref.load %arg9[%c5_140] : memref<16xf32, #tpu.memory_space<smem>>
    %541 = vector.extract_strided_slice %510 {offsets = [5, 0, 0], sizes = [1, 1, 512], strides = [1, 1, 1]} : vector<16x1x512xf32> to vector<1x1x512xf32>
    %542 = vector.shape_cast %541 : vector<1x1x512xf32> to vector<1x512xf32>
    %543 = vector.broadcast %540 : f32 to vector<1x512xf32>
    %544 = arith.mulf %543, %542 : vector<1x512xf32>
    %545 = arith.addf %539, %544 : vector<1x512xf32>
    %c6_141 = arith.constant 6 : index
    %546 = memref.load %arg9[%c6_141] : memref<16xf32, #tpu.memory_space<smem>>
    %547 = vector.extract_strided_slice %510 {offsets = [6, 0, 0], sizes = [1, 1, 512], strides = [1, 1, 1]} : vector<16x1x512xf32> to vector<1x1x512xf32>
    %548 = vector.shape_cast %547 : vector<1x1x512xf32> to vector<1x512xf32>
    %549 = vector.broadcast %546 : f32 to vector<1x512xf32>
    %550 = arith.mulf %549, %548 : vector<1x512xf32>
    %551 = arith.addf %545, %550 : vector<1x512xf32>
    %c7_142 = arith.constant 7 : index
    %552 = memref.load %arg9[%c7_142] : memref<16xf32, #tpu.memory_space<smem>>
    %553 = vector.extract_strided_slice %510 {offsets = [7, 0, 0], sizes = [1, 1, 512], strides = [1, 1, 1]} : vector<16x1x512xf32> to vector<1x1x512xf32>
    %554 = vector.shape_cast %553 : vector<1x1x512xf32> to vector<1x512xf32>
    %555 = vector.broadcast %552 : f32 to vector<1x512xf32>
    %556 = arith.mulf %555, %554 : vector<1x512xf32>
    %557 = arith.addf %551, %556 : vector<1x512xf32>
    %c8_143 = arith.constant 8 : index
    %558 = memref.load %arg9[%c8_143] : memref<16xf32, #tpu.memory_space<smem>>
    %559 = vector.extract_strided_slice %510 {offsets = [8, 0, 0], sizes = [1, 1, 512], strides = [1, 1, 1]} : vector<16x1x512xf32> to vector<1x1x512xf32>
    %560 = vector.shape_cast %559 : vector<1x1x512xf32> to vector<1x512xf32>
    %561 = vector.broadcast %558 : f32 to vector<1x512xf32>
    %562 = arith.mulf %561, %560 : vector<1x512xf32>
    %563 = arith.addf %557, %562 : vector<1x512xf32>
    %c9 = arith.constant 9 : index
    %564 = memref.load %arg9[%c9] : memref<16xf32, #tpu.memory_space<smem>>
    %565 = vector.extract_strided_slice %510 {offsets = [9, 0, 0], sizes = [1, 1, 512], strides = [1, 1, 1]} : vector<16x1x512xf32> to vector<1x1x512xf32>
    %566 = vector.shape_cast %565 : vector<1x1x512xf32> to vector<1x512xf32>
    %567 = vector.broadcast %564 : f32 to vector<1x512xf32>
    %568 = arith.mulf %567, %566 : vector<1x512xf32>
    %569 = arith.addf %563, %568 : vector<1x512xf32>
    %c10 = arith.constant 10 : index
    %570 = memref.load %arg9[%c10] : memref<16xf32, #tpu.memory_space<smem>>
    %571 = vector.extract_strided_slice %510 {offsets = [10, 0, 0], sizes = [1, 1, 512], strides = [1, 1, 1]} : vector<16x1x512xf32> to vector<1x1x512xf32>
    %572 = vector.shape_cast %571 : vector<1x1x512xf32> to vector<1x512xf32>
    %573 = vector.broadcast %570 : f32 to vector<1x512xf32>
    %574 = arith.mulf %573, %572 : vector<1x512xf32>
    %575 = arith.addf %569, %574 : vector<1x512xf32>
    %c11 = arith.constant 11 : index
    %576 = memref.load %arg9[%c11] : memref<16xf32, #tpu.memory_space<smem>>
    %577 = vector.extract_strided_slice %510 {offsets = [11, 0, 0], sizes = [1, 1, 512], strides = [1, 1, 1]} : vector<16x1x512xf32> to vector<1x1x512xf32>
    %578 = vector.shape_cast %577 : vector<1x1x512xf32> to vector<1x512xf32>
    %579 = vector.broadcast %576 : f32 to vector<1x512xf32>
    %580 = arith.mulf %579, %578 : vector<1x512xf32>
    %581 = arith.addf %575, %580 : vector<1x512xf32>
    %c12 = arith.constant 12 : index
    %582 = memref.load %arg9[%c12] : memref<16xf32, #tpu.memory_space<smem>>
    %583 = vector.extract_strided_slice %510 {offsets = [12, 0, 0], sizes = [1, 1, 512], strides = [1, 1, 1]} : vector<16x1x512xf32> to vector<1x1x512xf32>
    %584 = vector.shape_cast %583 : vector<1x1x512xf32> to vector<1x512xf32>
    %585 = vector.broadcast %582 : f32 to vector<1x512xf32>
    %586 = arith.mulf %585, %584 : vector<1x512xf32>
    %587 = arith.addf %581, %586 : vector<1x512xf32>
    %c13 = arith.constant 13 : index
    %588 = memref.load %arg9[%c13] : memref<16xf32, #tpu.memory_space<smem>>
    %589 = vector.extract_strided_slice %510 {offsets = [13, 0, 0], sizes = [1, 1, 512], strides = [1, 1, 1]} : vector<16x1x512xf32> to vector<1x1x512xf32>
    %590 = vector.shape_cast %589 : vector<1x1x512xf32> to vector<1x512xf32>
    %591 = vector.broadcast %588 : f32 to vector<1x512xf32>
    %592 = arith.mulf %591, %590 : vector<1x512xf32>
    %593 = arith.addf %587, %592 : vector<1x512xf32>
    %c14 = arith.constant 14 : index
    %594 = memref.load %arg9[%c14] : memref<16xf32, #tpu.memory_space<smem>>
    %595 = vector.extract_strided_slice %510 {offsets = [14, 0, 0], sizes = [1, 1, 512], strides = [1, 1, 1]} : vector<16x1x512xf32> to vector<1x1x512xf32>
    %596 = vector.shape_cast %595 : vector<1x1x512xf32> to vector<1x512xf32>
    %597 = vector.broadcast %594 : f32 to vector<1x512xf32>
    %598 = arith.mulf %597, %596 : vector<1x512xf32>
    %599 = arith.addf %593, %598 : vector<1x512xf32>
    %c15 = arith.constant 15 : index
    %600 = memref.load %arg9[%c15] : memref<16xf32, #tpu.memory_space<smem>>
    %601 = vector.extract_strided_slice %510 {offsets = [15, 0, 0], sizes = [1, 1, 512], strides = [1, 1, 1]} : vector<16x1x512xf32> to vector<1x1x512xf32>
    %602 = vector.shape_cast %601 : vector<1x1x512xf32> to vector<1x512xf32>
    %603 = vector.broadcast %600 : f32 to vector<1x512xf32>
    %604 = arith.mulf %603, %602 : vector<1x512xf32>
    %605 = arith.addf %599, %604 : vector<1x512xf32>
    %c2_144 = arith.constant 2 : index
    %606 = memref.load %arg10[%c2_144] : memref<3xf32, #tpu.memory_space<smem>>
    %607 = vector.broadcast %606 : f32 to vector<1x512xf32>
    %608 = arith.addf %605, %607 : vector<1x512xf32>
    %cst_145 = arith.constant 0.000000e+00 : f32
    %cst_146 = arith.constant 6.000000e+00 : f32
    %609 = vector.broadcast %cst_145 : f32 to vector<1x512xf32>
    %610 = arith.maximumf %609, %608 : vector<1x512xf32>
    %611 = vector.broadcast %cst_146 : f32 to vector<1x512xf32>
    %612 = arith.minimumf %611, %610 : vector<1x512xf32>
    %c0_147 = arith.constant 0 : index
    %c2_148 = arith.constant 2 : index
    %c0_149 = arith.constant 0 : index
    %613 = vector.load %arg12[%c0_147, %c2_148, %c0_149] : memref<1x3x512xf32, #tpu.memory_space<vmem>>, vector<1x1x512xf32>
    %614 = vector.shape_cast %613 : vector<1x1x512xf32> to vector<1x512xf32>
    %615 = vector.shape_cast %612 : vector<1x512xf32> to vector<1x1x512xf32>
    tpu.vector_store %arg12[%c0_147, %c2_148, %c0_149], %615 {strides = array<i32>} : memref<1x3x512xf32, #tpu.memory_space<vmem>>, vector<1x1x512xf32>,
    return
  }
  func.func @transform_0(%arg0: i32) -> (i32, i32) {
    %c0_i32 = arith.constant 0 : i32
    %c0_i32_0 = arith.constant 0 : i32
    %c0_i32_1 = arith.constant 0 : i32
    return %c0_i32, %c0_i32_0 : i32, i32
  }
  func.func @transform_1(%arg0: i32) -> (i32, i32, i32, i32) {
    %c0_i32 = arith.constant 0 : i32
    %c0_i32_0 = arith.constant 0 : i32
    %c0_i32_1 = arith.constant 0 : i32
    %c0_i32_2 = arith.constant 0 : i32
    return %arg0, %c0_i32, %c0_i32_0, %c0_i32_1 : i32, i32, i32, i32
  }
  func.func @transform_2(%arg0: i32) -> (i32, i32, i32, i32) {
    %c0_i32 = arith.constant 0 : i32
    %c0_i32_0 = arith.constant 0 : i32
    %c0_i32_1 = arith.constant 0 : i32
    %c0_i32_2 = arith.constant 0 : i32
    return %arg0, %c0_i32, %c0_i32_0, %c0_i32_1 : i32, i32, i32, i32
  }
  func.func @transform_3(%arg0: i32) -> (i32, i32, i32, i32) {
    %c0_i32 = arith.constant 0 : i32
    %c0_i32_0 = arith.constant 0 : i32
    %c0_i32_1 = arith.constant 0 : i32
    %c0_i32_2 = arith.constant 0 : i32
    return %arg0, %c0_i32, %c0_i32_0, %c0_i32_1 : i32, i32, i32, i32
  }
  func.func @transform_4(%arg0: i32) -> (i32, i32) {
    %c0_i32 = arith.constant 0 : i32
    %c0_i32_0 = arith.constant 0 : i32
    %c0_i32_1 = arith.constant 0 : i32
    return %c0_i32, %c0_i32_0 : i32, i32
  }
  func.func @transform_5(%arg0: i32) -> (i32, i32) {
    %c0_i32 = arith.constant 0 : i32
    %c0_i32_0 = arith.constant 0 : i32
    %c0_i32_1 = arith.constant 0 : i32
    return %c0_i32, %c0_i32_0 : i32, i32
  }
  func.func @transform_6(%arg0: i32) -> i32 {
    %c0_i32 = arith.constant 0 : i32
    %c0_i32_0 = arith.constant 0 : i32
    return %c0_i32 : i32
  }
  func.func @transform_7(%arg0: i32) -> i32 {
    %c0_i32 = arith.constant 0 : i32
    %c0_i32_0 = arith.constant 0 : i32
    return %c0_i32 : i32
  }
  func.func @transform_8(%arg0: i32) -> i32 {
    %c0_i32 = arith.constant 0 : i32
    %c0_i32_0 = arith.constant 0 : i32
    return %c0_i32 : i32
  }
  func.func @transform_9(%arg0: i32) -> i32 {
    %c0_i32 = arith.constant 0 : i32
    %c0_i32_0 = arith.constant 0 : i32
    return %c0_i32 : i32
  }
  func.func @transform_10(%arg0: i32) -> (i32, i32) {
    %c0_i32 = arith.constant 0 : i32
    %c0_i32_0 = arith.constant 0 : i32
    %c0_i32_1 = arith.constant 0 : i32
    return %c0_i32, %c0_i32_0 : i32, i32
  }
  func.func @transform_11(%arg0: i32) -> (i32, i32, i32) {
    %c0_i32 = arith.constant 0 : i32
    %c0_i32_0 = arith.constant 0 : i32
    %c0_i32_1 = arith.constant 0 : i32
    return %arg0, %c0_i32, %c0_i32_0 : i32, i32, i32
  }
}

module attributes {stable_mosaic.version = 11 : i64} {
  func.func @kernel(%arg0: i32, %arg1: memref<27x512xf32, #tpu.memory_space<vmem>>, %arg2: memref<1x8x512xf32, #tpu.memory_space<vmem>>, %arg3: memref<1x16x512xf32, #tpu.memory_space<vmem>>, %arg4: memref<3x216xf32, #tpu.memory_space<vmem>>, %arg5: memref<3xf32, #tpu.memory_space<smem>>, %arg6: memref<3xf32, #tpu.memory_space<smem>>, %arg7: memref<1xf32, #tpu.memory_space<smem>>, %arg8: memref<1x16x512xf32, #tpu.memory_space<vmem>>, %arg9: memref<216x512xf32, #tpu.memory_space<vmem>>) attributes {dimension_semantics = [#tpu.dimension_semantics<parallel>], iteration_bounds = array<i64: 2>, scalar_prefetch = 0 : i64, scratch_operands = 1 : i64, tpu.core_type = #tpu.core_type<tc>, window_params = [{pipeline_mode = #tpu.pipeline_mode<synchronous>, transform_indices = @transform_0, window_bounds = array<i64: 27, 512>}, {transform_indices = @transform_1, window_bounds = array<i64: 1, 8, 512>}, {transform_indices = @transform_2, window_bounds = array<i64: 1, 16, 512>}, {pipeline_mode = #tpu.pipeline_mode<synchronous>, transform_indices = @transform_3, window_bounds = array<i64: 3, 216>}, {transform_indices = @transform_4, window_bounds = array<i64: 3>}, {transform_indices = @transform_5, window_bounds = array<i64: 3>}, {transform_indices = @transform_6, window_bounds = array<i64: 1>}, {transform_indices = @transform_7, window_bounds = array<i64: 1, 16, 512>}]} {
    %c0 = arith.constant 0 : index
    %c0_0 = arith.constant 0 : index
    %0 = vector.load %arg1[%c0, %c0_0] : memref<27x512xf32, #tpu.memory_space<vmem>>, vector<27x512xf32>
    %c0_1 = arith.constant 0 : index
    %c0_2 = arith.constant 0 : index
    %c0_3 = arith.constant 0 : index
    %1 = vector.load %arg2[%c0_1, %c0_2, %c0_3] : memref<1x8x512xf32, #tpu.memory_space<vmem>>, vector<1x8x512xf32>
    %2 = vector.shape_cast %1 : vector<1x8x512xf32> to vector<8x512xf32>
    %cst = arith.constant 0.000000e+00 : f32
    %3 = vector.broadcast %cst : f32 to vector<8x128xf32>
    %4 = tpu.concatenate %3, %2, %3 in 1 : vector<8x128xf32>, vector<8x512xf32>, vector<8x128xf32> -> vector<8x768xf32>
    %5 = vector.extract_strided_slice %4 {offsets = [0, 55], sizes = [8, 512], strides = [1, 1]} : vector<8x768xf32> to vector<8x512xf32>
    %6 = vector.extract_strided_slice %0 {offsets = [0, 0], sizes = [1, 512], strides = [1, 1]} : vector<27x512xf32> to vector<1x512xf32>
    %7 = vector.shape_cast %6 : vector<1x512xf32> to vector<512xf32>
    %8 = vector.shape_cast %7 : vector<512xf32> to vector<1x512xf32>
    %9 = vector.broadcast %8 : vector<1x512xf32> to vector<8x512xf32>
    %10 = arith.mulf %5, %9 : vector<8x512xf32>
    %c0_4 = arith.constant 0 : index
    %c0_5 = arith.constant 0 : index
    %11 = vector.load %arg9[%c0_4, %c0_5] : memref<216x512xf32, #tpu.memory_space<vmem>>, vector<8x512xf32>
    tpu.vector_store %arg9[%c0_4, %c0_5], %10 {strides = array<i32>} : memref<216x512xf32, #tpu.memory_space<vmem>>, vector<8x512xf32>,
    %12 = vector.extract_strided_slice %4 {offsets = [0, 56], sizes = [8, 512], strides = [1, 1]} : vector<8x768xf32> to vector<8x512xf32>
    %13 = vector.extract_strided_slice %0 {offsets = [1, 0], sizes = [1, 512], strides = [1, 1]} : vector<27x512xf32> to vector<1x512xf32>
    %14 = vector.shape_cast %13 : vector<1x512xf32> to vector<512xf32>
    %15 = vector.shape_cast %14 : vector<512xf32> to vector<1x512xf32>
    %16 = vector.broadcast %15 : vector<1x512xf32> to vector<8x512xf32>
    %17 = arith.mulf %12, %16 : vector<8x512xf32>
    %c8 = arith.constant 8 : index
    %c0_6 = arith.constant 0 : index
    %18 = vector.load %arg9[%c8, %c0_6] : memref<216x512xf32, #tpu.memory_space<vmem>>, vector<8x512xf32>
    tpu.vector_store %arg9[%c8, %c0_6], %17 {strides = array<i32>} : memref<216x512xf32, #tpu.memory_space<vmem>>, vector<8x512xf32>,
    %19 = vector.extract_strided_slice %4 {offsets = [0, 57], sizes = [8, 512], strides = [1, 1]} : vector<8x768xf32> to vector<8x512xf32>
    %20 = vector.extract_strided_slice %0 {offsets = [2, 0], sizes = [1, 512], strides = [1, 1]} : vector<27x512xf32> to vector<1x512xf32>
    %21 = vector.shape_cast %20 : vector<1x512xf32> to vector<512xf32>
    %22 = vector.shape_cast %21 : vector<512xf32> to vector<1x512xf32>
    %23 = vector.broadcast %22 : vector<1x512xf32> to vector<8x512xf32>
    %24 = arith.mulf %19, %23 : vector<8x512xf32>
    %c16 = arith.constant 16 : index
    %c0_7 = arith.constant 0 : index
    %25 = vector.load %arg9[%c16, %c0_7] : memref<216x512xf32, #tpu.memory_space<vmem>>, vector<8x512xf32>
    tpu.vector_store %arg9[%c16, %c0_7], %24 {strides = array<i32>} : memref<216x512xf32, #tpu.memory_space<vmem>>, vector<8x512xf32>,
    %26 = vector.extract_strided_slice %4 {offsets = [0, 63], sizes = [8, 512], strides = [1, 1]} : vector<8x768xf32> to vector<8x512xf32>
    %27 = vector.extract_strided_slice %0 {offsets = [3, 0], sizes = [1, 512], strides = [1, 1]} : vector<27x512xf32> to vector<1x512xf32>
    %28 = vector.shape_cast %27 : vector<1x512xf32> to vector<512xf32>
    %29 = vector.shape_cast %28 : vector<512xf32> to vector<1x512xf32>
    %30 = vector.broadcast %29 : vector<1x512xf32> to vector<8x512xf32>
    %31 = arith.mulf %26, %30 : vector<8x512xf32>
    %c24 = arith.constant 24 : index
    %c0_8 = arith.constant 0 : index
    %32 = vector.load %arg9[%c24, %c0_8] : memref<216x512xf32, #tpu.memory_space<vmem>>, vector<8x512xf32>
    tpu.vector_store %arg9[%c24, %c0_8], %31 {strides = array<i32>} : memref<216x512xf32, #tpu.memory_space<vmem>>, vector<8x512xf32>,
    %33 = vector.extract_strided_slice %4 {offsets = [0, 64], sizes = [8, 512], strides = [1, 1]} : vector<8x768xf32> to vector<8x512xf32>
    %34 = vector.extract_strided_slice %0 {offsets = [4, 0], sizes = [1, 512], strides = [1, 1]} : vector<27x512xf32> to vector<1x512xf32>
    %35 = vector.shape_cast %34 : vector<1x512xf32> to vector<512xf32>
    %36 = vector.shape_cast %35 : vector<512xf32> to vector<1x512xf32>
    %37 = vector.broadcast %36 : vector<1x512xf32> to vector<8x512xf32>
    %38 = arith.mulf %33, %37 : vector<8x512xf32>
    %c32 = arith.constant 32 : index
    %c0_9 = arith.constant 0 : index
    %39 = vector.load %arg9[%c32, %c0_9] : memref<216x512xf32, #tpu.memory_space<vmem>>, vector<8x512xf32>
    tpu.vector_store %arg9[%c32, %c0_9], %38 {strides = array<i32>} : memref<216x512xf32, #tpu.memory_space<vmem>>, vector<8x512xf32>,
    %40 = vector.extract_strided_slice %4 {offsets = [0, 65], sizes = [8, 512], strides = [1, 1]} : vector<8x768xf32> to vector<8x512xf32>
    %41 = vector.extract_strided_slice %0 {offsets = [5, 0], sizes = [1, 512], strides = [1, 1]} : vector<27x512xf32> to vector<1x512xf32>
    %42 = vector.shape_cast %41 : vector<1x512xf32> to vector<512xf32>
    %43 = vector.shape_cast %42 : vector<512xf32> to vector<1x512xf32>
    %44 = vector.broadcast %43 : vector<1x512xf32> to vector<8x512xf32>
    %45 = arith.mulf %40, %44 : vector<8x512xf32>
    %c40 = arith.constant 40 : index
    %c0_10 = arith.constant 0 : index
    %46 = vector.load %arg9[%c40, %c0_10] : memref<216x512xf32, #tpu.memory_space<vmem>>, vector<8x512xf32>
    tpu.vector_store %arg9[%c40, %c0_10], %45 {strides = array<i32>} : memref<216x512xf32, #tpu.memory_space<vmem>>, vector<8x512xf32>,
    %47 = vector.extract_strided_slice %4 {offsets = [0, 71], sizes = [8, 512], strides = [1, 1]} : vector<8x768xf32> to vector<8x512xf32>
    %48 = vector.extract_strided_slice %0 {offsets = [6, 0], sizes = [1, 512], strides = [1, 1]} : vector<27x512xf32> to vector<1x512xf32>
    %49 = vector.shape_cast %48 : vector<1x512xf32> to vector<512xf32>
    %50 = vector.shape_cast %49 : vector<512xf32> to vector<1x512xf32>
    %51 = vector.broadcast %50 : vector<1x512xf32> to vector<8x512xf32>
    %52 = arith.mulf %47, %51 : vector<8x512xf32>
    %c48 = arith.constant 48 : index
    %c0_11 = arith.constant 0 : index
    %53 = vector.load %arg9[%c48, %c0_11] : memref<216x512xf32, #tpu.memory_space<vmem>>, vector<8x512xf32>
    tpu.vector_store %arg9[%c48, %c0_11], %52 {strides = array<i32>} : memref<216x512xf32, #tpu.memory_space<vmem>>, vector<8x512xf32>,
    %54 = vector.extract_strided_slice %4 {offsets = [0, 72], sizes = [8, 512], strides = [1, 1]} : vector<8x768xf32> to vector<8x512xf32>
    %55 = vector.extract_strided_slice %0 {offsets = [7, 0], sizes = [1, 512], strides = [1, 1]} : vector<27x512xf32> to vector<1x512xf32>
    %56 = vector.shape_cast %55 : vector<1x512xf32> to vector<512xf32>
    %57 = vector.shape_cast %56 : vector<512xf32> to vector<1x512xf32>
    %58 = vector.broadcast %57 : vector<1x512xf32> to vector<8x512xf32>
    %59 = arith.mulf %54, %58 : vector<8x512xf32>
    %c56 = arith.constant 56 : index
    %c0_12 = arith.constant 0 : index
    %60 = vector.load %arg9[%c56, %c0_12] : memref<216x512xf32, #tpu.memory_space<vmem>>, vector<8x512xf32>
    tpu.vector_store %arg9[%c56, %c0_12], %59 {strides = array<i32>} : memref<216x512xf32, #tpu.memory_space<vmem>>, vector<8x512xf32>,
    %61 = vector.extract_strided_slice %4 {offsets = [0, 73], sizes = [8, 512], strides = [1, 1]} : vector<8x768xf32> to vector<8x512xf32>
    %62 = vector.extract_strided_slice %0 {offsets = [8, 0], sizes = [1, 512], strides = [1, 1]} : vector<27x512xf32> to vector<1x512xf32>
    %63 = vector.shape_cast %62 : vector<1x512xf32> to vector<512xf32>
    %64 = vector.shape_cast %63 : vector<512xf32> to vector<1x512xf32>
    %65 = vector.broadcast %64 : vector<1x512xf32> to vector<8x512xf32>
    %66 = arith.mulf %61, %65 : vector<8x512xf32>
    %c64 = arith.constant 64 : index
    %c0_13 = arith.constant 0 : index
    %67 = vector.load %arg9[%c64, %c0_13] : memref<216x512xf32, #tpu.memory_space<vmem>>, vector<8x512xf32>
    tpu.vector_store %arg9[%c64, %c0_13], %66 {strides = array<i32>} : memref<216x512xf32, #tpu.memory_space<vmem>>, vector<8x512xf32>,
    %68 = vector.extract_strided_slice %4 {offsets = [0, 119], sizes = [8, 512], strides = [1, 1]} : vector<8x768xf32> to vector<8x512xf32>
    %69 = vector.extract_strided_slice %0 {offsets = [9, 0], sizes = [1, 512], strides = [1, 1]} : vector<27x512xf32> to vector<1x512xf32>
    %70 = vector.shape_cast %69 : vector<1x512xf32> to vector<512xf32>
    %71 = vector.shape_cast %70 : vector<512xf32> to vector<1x512xf32>
    %72 = vector.broadcast %71 : vector<1x512xf32> to vector<8x512xf32>
    %73 = arith.mulf %68, %72 : vector<8x512xf32>
    %c72 = arith.constant 72 : index
    %c0_14 = arith.constant 0 : index
    %74 = vector.load %arg9[%c72, %c0_14] : memref<216x512xf32, #tpu.memory_space<vmem>>, vector<8x512xf32>
    tpu.vector_store %arg9[%c72, %c0_14], %73 {strides = array<i32>} : memref<216x512xf32, #tpu.memory_space<vmem>>, vector<8x512xf32>,
    %75 = vector.extract_strided_slice %4 {offsets = [0, 120], sizes = [8, 512], strides = [1, 1]} : vector<8x768xf32> to vector<8x512xf32>
    %76 = vector.extract_strided_slice %0 {offsets = [10, 0], sizes = [1, 512], strides = [1, 1]} : vector<27x512xf32> to vector<1x512xf32>
    %77 = vector.shape_cast %76 : vector<1x512xf32> to vector<512xf32>
    %78 = vector.shape_cast %77 : vector<512xf32> to vector<1x512xf32>
    %79 = vector.broadcast %78 : vector<1x512xf32> to vector<8x512xf32>
    %80 = arith.mulf %75, %79 : vector<8x512xf32>
    %c80 = arith.constant 80 : index
    %c0_15 = arith.constant 0 : index
    %81 = vector.load %arg9[%c80, %c0_15] : memref<216x512xf32, #tpu.memory_space<vmem>>, vector<8x512xf32>
    tpu.vector_store %arg9[%c80, %c0_15], %80 {strides = array<i32>} : memref<216x512xf32, #tpu.memory_space<vmem>>, vector<8x512xf32>,
    %82 = vector.extract_strided_slice %4 {offsets = [0, 121], sizes = [8, 512], strides = [1, 1]} : vector<8x768xf32> to vector<8x512xf32>
    %83 = vector.extract_strided_slice %0 {offsets = [11, 0], sizes = [1, 512], strides = [1, 1]} : vector<27x512xf32> to vector<1x512xf32>
    %84 = vector.shape_cast %83 : vector<1x512xf32> to vector<512xf32>
    %85 = vector.shape_cast %84 : vector<512xf32> to vector<1x512xf32>
    %86 = vector.broadcast %85 : vector<1x512xf32> to vector<8x512xf32>
    %87 = arith.mulf %82, %86 : vector<8x512xf32>
    %c88 = arith.constant 88 : index
    %c0_16 = arith.constant 0 : index
    %88 = vector.load %arg9[%c88, %c0_16] : memref<216x512xf32, #tpu.memory_space<vmem>>, vector<8x512xf32>
    tpu.vector_store %arg9[%c88, %c0_16], %87 {strides = array<i32>} : memref<216x512xf32, #tpu.memory_space<vmem>>, vector<8x512xf32>,
    %89 = vector.extract_strided_slice %4 {offsets = [0, 127], sizes = [8, 512], strides = [1, 1]} : vector<8x768xf32> to vector<8x512xf32>
    %90 = vector.extract_strided_slice %0 {offsets = [12, 0], sizes = [1, 512], strides = [1, 1]} : vector<27x512xf32> to vector<1x512xf32>
    %91 = vector.shape_cast %90 : vector<1x512xf32> to vector<512xf32>
    %92 = vector.shape_cast %91 : vector<512xf32> to vector<1x512xf32>
    %93 = vector.broadcast %92 : vector<1x512xf32> to vector<8x512xf32>
    %94 = arith.mulf %89, %93 : vector<8x512xf32>
    %c96 = arith.constant 96 : index
    %c0_17 = arith.constant 0 : index
    %95 = vector.load %arg9[%c96, %c0_17] : memref<216x512xf32, #tpu.memory_space<vmem>>, vector<8x512xf32>
    tpu.vector_store %arg9[%c96, %c0_17], %94 {strides = array<i32>} : memref<216x512xf32, #tpu.memory_space<vmem>>, vector<8x512xf32>,
    %96 = vector.extract_strided_slice %4 {offsets = [0, 128], sizes = [8, 512], strides = [1, 1]} : vector<8x768xf32> to vector<8x512xf32>
    %97 = vector.extract_strided_slice %0 {offsets = [13, 0], sizes = [1, 512], strides = [1, 1]} : vector<27x512xf32> to vector<1x512xf32>
    %98 = vector.shape_cast %97 : vector<1x512xf32> to vector<512xf32>
    %99 = vector.shape_cast %98 : vector<512xf32> to vector<1x512xf32>
    %100 = vector.broadcast %99 : vector<1x512xf32> to vector<8x512xf32>
    %101 = arith.mulf %96, %100 : vector<8x512xf32>
    %c104 = arith.constant 104 : index
    %c0_18 = arith.constant 0 : index
    %102 = vector.load %arg9[%c104, %c0_18] : memref<216x512xf32, #tpu.memory_space<vmem>>, vector<8x512xf32>
    tpu.vector_store %arg9[%c104, %c0_18], %101 {strides = array<i32>} : memref<216x512xf32, #tpu.memory_space<vmem>>, vector<8x512xf32>,
    %103 = vector.extract_strided_slice %4 {offsets = [0, 129], sizes = [8, 512], strides = [1, 1]} : vector<8x768xf32> to vector<8x512xf32>
    %104 = vector.extract_strided_slice %0 {offsets = [14, 0], sizes = [1, 512], strides = [1, 1]} : vector<27x512xf32> to vector<1x512xf32>
    %105 = vector.shape_cast %104 : vector<1x512xf32> to vector<512xf32>
    %106 = vector.shape_cast %105 : vector<512xf32> to vector<1x512xf32>
    %107 = vector.broadcast %106 : vector<1x512xf32> to vector<8x512xf32>
    %108 = arith.mulf %103, %107 : vector<8x512xf32>
    %c112 = arith.constant 112 : index
    %c0_19 = arith.constant 0 : index
    %109 = vector.load %arg9[%c112, %c0_19] : memref<216x512xf32, #tpu.memory_space<vmem>>, vector<8x512xf32>
    tpu.vector_store %arg9[%c112, %c0_19], %108 {strides = array<i32>} : memref<216x512xf32, #tpu.memory_space<vmem>>, vector<8x512xf32>,
    %110 = vector.extract_strided_slice %4 {offsets = [0, 135], sizes = [8, 512], strides = [1, 1]} : vector<8x768xf32> to vector<8x512xf32>
    %111 = vector.extract_strided_slice %0 {offsets = [15, 0], sizes = [1, 512], strides = [1, 1]} : vector<27x512xf32> to vector<1x512xf32>
    %112 = vector.shape_cast %111 : vector<1x512xf32> to vector<512xf32>
    %113 = vector.shape_cast %112 : vector<512xf32> to vector<1x512xf32>
    %114 = vector.broadcast %113 : vector<1x512xf32> to vector<8x512xf32>
    %115 = arith.mulf %110, %114 : vector<8x512xf32>
    %c120 = arith.constant 120 : index
    %c0_20 = arith.constant 0 : index
    %116 = vector.load %arg9[%c120, %c0_20] : memref<216x512xf32, #tpu.memory_space<vmem>>, vector<8x512xf32>
    tpu.vector_store %arg9[%c120, %c0_20], %115 {strides = array<i32>} : memref<216x512xf32, #tpu.memory_space<vmem>>, vector<8x512xf32>,
    %117 = vector.extract_strided_slice %4 {offsets = [0, 136], sizes = [8, 512], strides = [1, 1]} : vector<8x768xf32> to vector<8x512xf32>
    %118 = vector.extract_strided_slice %0 {offsets = [16, 0], sizes = [1, 512], strides = [1, 1]} : vector<27x512xf32> to vector<1x512xf32>
    %119 = vector.shape_cast %118 : vector<1x512xf32> to vector<512xf32>
    %120 = vector.shape_cast %119 : vector<512xf32> to vector<1x512xf32>
    %121 = vector.broadcast %120 : vector<1x512xf32> to vector<8x512xf32>
    %122 = arith.mulf %117, %121 : vector<8x512xf32>
    %c128 = arith.constant 128 : index
    %c0_21 = arith.constant 0 : index
    %123 = vector.load %arg9[%c128, %c0_21] : memref<216x512xf32, #tpu.memory_space<vmem>>, vector<8x512xf32>
    tpu.vector_store %arg9[%c128, %c0_21], %122 {strides = array<i32>} : memref<216x512xf32, #tpu.memory_space<vmem>>, vector<8x512xf32>,
    %124 = vector.extract_strided_slice %4 {offsets = [0, 137], sizes = [8, 512], strides = [1, 1]} : vector<8x768xf32> to vector<8x512xf32>
    %125 = vector.extract_strided_slice %0 {offsets = [17, 0], sizes = [1, 512], strides = [1, 1]} : vector<27x512xf32> to vector<1x512xf32>
    %126 = vector.shape_cast %125 : vector<1x512xf32> to vector<512xf32>
    %127 = vector.shape_cast %126 : vector<512xf32> to vector<1x512xf32>
    %128 = vector.broadcast %127 : vector<1x512xf32> to vector<8x512xf32>
    %129 = arith.mulf %124, %128 : vector<8x512xf32>
    %c136 = arith.constant 136 : index
    %c0_22 = arith.constant 0 : index
    %130 = vector.load %arg9[%c136, %c0_22] : memref<216x512xf32, #tpu.memory_space<vmem>>, vector<8x512xf32>
    tpu.vector_store %arg9[%c136, %c0_22], %129 {strides = array<i32>} : memref<216x512xf32, #tpu.memory_space<vmem>>, vector<8x512xf32>,
    %131 = vector.extract_strided_slice %4 {offsets = [0, 183], sizes = [8, 512], strides = [1, 1]} : vector<8x768xf32> to vector<8x512xf32>
    %132 = vector.extract_strided_slice %0 {offsets = [18, 0], sizes = [1, 512], strides = [1, 1]} : vector<27x512xf32> to vector<1x512xf32>
    %133 = vector.shape_cast %132 : vector<1x512xf32> to vector<512xf32>
    %134 = vector.shape_cast %133 : vector<512xf32> to vector<1x512xf32>
    %135 = vector.broadcast %134 : vector<1x512xf32> to vector<8x512xf32>
    %136 = arith.mulf %131, %135 : vector<8x512xf32>
    %c144 = arith.constant 144 : index
    %c0_23 = arith.constant 0 : index
    %137 = vector.load %arg9[%c144, %c0_23] : memref<216x512xf32, #tpu.memory_space<vmem>>, vector<8x512xf32>
    tpu.vector_store %arg9[%c144, %c0_23], %136 {strides = array<i32>} : memref<216x512xf32, #tpu.memory_space<vmem>>, vector<8x512xf32>,
    %138 = vector.extract_strided_slice %4 {offsets = [0, 184], sizes = [8, 512], strides = [1, 1]} : vector<8x768xf32> to vector<8x512xf32>
    %139 = vector.extract_strided_slice %0 {offsets = [19, 0], sizes = [1, 512], strides = [1, 1]} : vector<27x512xf32> to vector<1x512xf32>
    %140 = vector.shape_cast %139 : vector<1x512xf32> to vector<512xf32>
    %141 = vector.shape_cast %140 : vector<512xf32> to vector<1x512xf32>
    %142 = vector.broadcast %141 : vector<1x512xf32> to vector<8x512xf32>
    %143 = arith.mulf %138, %142 : vector<8x512xf32>
    %c152 = arith.constant 152 : index
    %c0_24 = arith.constant 0 : index
    %144 = vector.load %arg9[%c152, %c0_24] : memref<216x512xf32, #tpu.memory_space<vmem>>, vector<8x512xf32>
    tpu.vector_store %arg9[%c152, %c0_24], %143 {strides = array<i32>} : memref<216x512xf32, #tpu.memory_space<vmem>>, vector<8x512xf32>,
    %145 = vector.extract_strided_slice %4 {offsets = [0, 185], sizes = [8, 512], strides = [1, 1]} : vector<8x768xf32> to vector<8x512xf32>
    %146 = vector.extract_strided_slice %0 {offsets = [20, 0], sizes = [1, 512], strides = [1, 1]} : vector<27x512xf32> to vector<1x512xf32>
    %147 = vector.shape_cast %146 : vector<1x512xf32> to vector<512xf32>
    %148 = vector.shape_cast %147 : vector<512xf32> to vector<1x512xf32>
    %149 = vector.broadcast %148 : vector<1x512xf32> to vector<8x512xf32>
    %150 = arith.mulf %145, %149 : vector<8x512xf32>
    %c160 = arith.constant 160 : index
    %c0_25 = arith.constant 0 : index
    %151 = vector.load %arg9[%c160, %c0_25] : memref<216x512xf32, #tpu.memory_space<vmem>>, vector<8x512xf32>
    tpu.vector_store %arg9[%c160, %c0_25], %150 {strides = array<i32>} : memref<216x512xf32, #tpu.memory_space<vmem>>, vector<8x512xf32>,
    %152 = vector.extract_strided_slice %4 {offsets = [0, 191], sizes = [8, 512], strides = [1, 1]} : vector<8x768xf32> to vector<8x512xf32>
    %153 = vector.extract_strided_slice %0 {offsets = [21, 0], sizes = [1, 512], strides = [1, 1]} : vector<27x512xf32> to vector<1x512xf32>
    %154 = vector.shape_cast %153 : vector<1x512xf32> to vector<512xf32>
    %155 = vector.shape_cast %154 : vector<512xf32> to vector<1x512xf32>
    %156 = vector.broadcast %155 : vector<1x512xf32> to vector<8x512xf32>
    %157 = arith.mulf %152, %156 : vector<8x512xf32>
    %c168 = arith.constant 168 : index
    %c0_26 = arith.constant 0 : index
    %158 = vector.load %arg9[%c168, %c0_26] : memref<216x512xf32, #tpu.memory_space<vmem>>, vector<8x512xf32>
    tpu.vector_store %arg9[%c168, %c0_26], %157 {strides = array<i32>} : memref<216x512xf32, #tpu.memory_space<vmem>>, vector<8x512xf32>,
    %159 = vector.extract_strided_slice %4 {offsets = [0, 192], sizes = [8, 512], strides = [1, 1]} : vector<8x768xf32> to vector<8x512xf32>
    %160 = vector.extract_strided_slice %0 {offsets = [22, 0], sizes = [1, 512], strides = [1, 1]} : vector<27x512xf32> to vector<1x512xf32>
    %161 = vector.shape_cast %160 : vector<1x512xf32> to vector<512xf32>
    %162 = vector.shape_cast %161 : vector<512xf32> to vector<1x512xf32>
    %163 = vector.broadcast %162 : vector<1x512xf32> to vector<8x512xf32>
    %164 = arith.mulf %159, %163 : vector<8x512xf32>
    %c176 = arith.constant 176 : index
    %c0_27 = arith.constant 0 : index
    %165 = vector.load %arg9[%c176, %c0_27] : memref<216x512xf32, #tpu.memory_space<vmem>>, vector<8x512xf32>
    tpu.vector_store %arg9[%c176, %c0_27], %164 {strides = array<i32>} : memref<216x512xf32, #tpu.memory_space<vmem>>, vector<8x512xf32>,
    %166 = vector.extract_strided_slice %4 {offsets = [0, 193], sizes = [8, 512], strides = [1, 1]} : vector<8x768xf32> to vector<8x512xf32>
    %167 = vector.extract_strided_slice %0 {offsets = [23, 0], sizes = [1, 512], strides = [1, 1]} : vector<27x512xf32> to vector<1x512xf32>
    %168 = vector.shape_cast %167 : vector<1x512xf32> to vector<512xf32>
    %169 = vector.shape_cast %168 : vector<512xf32> to vector<1x512xf32>
    %170 = vector.broadcast %169 : vector<1x512xf32> to vector<8x512xf32>
    %171 = arith.mulf %166, %170 : vector<8x512xf32>
    %c184 = arith.constant 184 : index
    %c0_28 = arith.constant 0 : index
    %172 = vector.load %arg9[%c184, %c0_28] : memref<216x512xf32, #tpu.memory_space<vmem>>, vector<8x512xf32>
    tpu.vector_store %arg9[%c184, %c0_28], %171 {strides = array<i32>} : memref<216x512xf32, #tpu.memory_space<vmem>>, vector<8x512xf32>,
    %173 = vector.extract_strided_slice %4 {offsets = [0, 199], sizes = [8, 512], strides = [1, 1]} : vector<8x768xf32> to vector<8x512xf32>
    %174 = vector.extract_strided_slice %0 {offsets = [24, 0], sizes = [1, 512], strides = [1, 1]} : vector<27x512xf32> to vector<1x512xf32>
    %175 = vector.shape_cast %174 : vector<1x512xf32> to vector<512xf32>
    %176 = vector.shape_cast %175 : vector<512xf32> to vector<1x512xf32>
    %177 = vector.broadcast %176 : vector<1x512xf32> to vector<8x512xf32>
    %178 = arith.mulf %173, %177 : vector<8x512xf32>
    %c192 = arith.constant 192 : index
    %c0_29 = arith.constant 0 : index
    %179 = vector.load %arg9[%c192, %c0_29] : memref<216x512xf32, #tpu.memory_space<vmem>>, vector<8x512xf32>
    tpu.vector_store %arg9[%c192, %c0_29], %178 {strides = array<i32>} : memref<216x512xf32, #tpu.memory_space<vmem>>, vector<8x512xf32>,
    %180 = vector.extract_strided_slice %4 {offsets = [0, 200], sizes = [8, 512], strides = [1, 1]} : vector<8x768xf32> to vector<8x512xf32>
    %181 = vector.extract_strided_slice %0 {offsets = [25, 0], sizes = [1, 512], strides = [1, 1]} : vector<27x512xf32> to vector<1x512xf32>
    %182 = vector.shape_cast %181 : vector<1x512xf32> to vector<512xf32>
    %183 = vector.shape_cast %182 : vector<512xf32> to vector<1x512xf32>
    %184 = vector.broadcast %183 : vector<1x512xf32> to vector<8x512xf32>
    %185 = arith.mulf %180, %184 : vector<8x512xf32>
    %c200 = arith.constant 200 : index
    %c0_30 = arith.constant 0 : index
    %186 = vector.load %arg9[%c200, %c0_30] : memref<216x512xf32, #tpu.memory_space<vmem>>, vector<8x512xf32>
    tpu.vector_store %arg9[%c200, %c0_30], %185 {strides = array<i32>} : memref<216x512xf32, #tpu.memory_space<vmem>>, vector<8x512xf32>,
    %187 = vector.extract_strided_slice %4 {offsets = [0, 201], sizes = [8, 512], strides = [1, 1]} : vector<8x768xf32> to vector<8x512xf32>
    %188 = vector.extract_strided_slice %0 {offsets = [26, 0], sizes = [1, 512], strides = [1, 1]} : vector<27x512xf32> to vector<1x512xf32>
    %189 = vector.shape_cast %188 : vector<1x512xf32> to vector<512xf32>
    %190 = vector.shape_cast %189 : vector<512xf32> to vector<1x512xf32>
    %191 = vector.broadcast %190 : vector<1x512xf32> to vector<8x512xf32>
    %192 = arith.mulf %187, %191 : vector<8x512xf32>
    %c208 = arith.constant 208 : index
    %c0_31 = arith.constant 0 : index
    %193 = vector.load %arg9[%c208, %c0_31] : memref<216x512xf32, #tpu.memory_space<vmem>>, vector<8x512xf32>
    tpu.vector_store %arg9[%c208, %c0_31], %192 {strides = array<i32>} : memref<216x512xf32, #tpu.memory_space<vmem>>, vector<8x512xf32>,
    %c0_32 = arith.constant 0 : index
    %c0_33 = arith.constant 0 : index
    %194 = vector.load %arg4[%c0_32, %c0_33] : memref<3x216xf32, #tpu.memory_space<vmem>>, vector<3x216xf32>
    %c0_34 = arith.constant 0 : index
    %c0_35 = arith.constant 0 : index
    %195 = vector.load %arg9[%c0_34, %c0_35] : memref<216x512xf32, #tpu.memory_space<vmem>>, vector<216x512xf32>
    %cst_36 = arith.constant dense<0.000000e+00> : vector<3x512xf32>
    %196 = tpu.matmul %194, %195, %cst_36 {dimension_numbers = #tpu.dot_dimension_numbers<[1], [0], [0], [1], [0, 0, 1, 1], [], []>} : vector<3x216xf32>, vector<216x512xf32>, vector<3x512xf32> -> vector<3x512xf32>
    %cst_37 = arith.constant 0.000000e+00 : f32
    %197 = vector.broadcast %cst_37 : f32 to vector<1x512xf32>
    %c0_38 = arith.constant 0 : index
    %198 = memref.load %arg7[%c0_38] : memref<1xf32, #tpu.memory_space<smem>>
    %199 = vector.broadcast %198 : f32 to vector<1x512xf32>
    %200 = arith.addf %197, %199 : vector<1x512xf32>
    %201 = vector.extract_strided_slice %196 {offsets = [0, 0], sizes = [1, 512], strides = [1, 1]} : vector<3x512xf32> to vector<1x512xf32>
    %c0_39 = arith.constant 0 : index
    %202 = memref.load %arg5[%c0_39] : memref<3xf32, #tpu.memory_space<smem>>
    %203 = vector.broadcast %202 : f32 to vector<1x512xf32>
    %204 = arith.addf %201, %203 : vector<1x512xf32>
    %cst_40 = arith.constant 0.000000e+00 : f32
    %cst_41 = arith.constant 6.000000e+00 : f32
    %205 = vector.broadcast %cst_40 : f32 to vector<1x512xf32>
    %206 = arith.maximumf %205, %204 : vector<1x512xf32>
    %207 = vector.broadcast %cst_41 : f32 to vector<1x512xf32>
    %208 = arith.minimumf %207, %206 : vector<1x512xf32>
    %c0_42 = arith.constant 0 : index
    %209 = memref.load %arg6[%c0_42] : memref<3xf32, #tpu.memory_space<smem>>
    %210 = vector.broadcast %209 : f32 to vector<1x512xf32>
    %211 = arith.mulf %210, %208 : vector<1x512xf32>
    %212 = arith.addf %200, %211 : vector<1x512xf32>
    %213 = vector.extract_strided_slice %196 {offsets = [1, 0], sizes = [1, 512], strides = [1, 1]} : vector<3x512xf32> to vector<1x512xf32>
    %c1 = arith.constant 1 : index
    %214 = memref.load %arg5[%c1] : memref<3xf32, #tpu.memory_space<smem>>
    %215 = vector.broadcast %214 : f32 to vector<1x512xf32>
    %216 = arith.addf %213, %215 : vector<1x512xf32>
    %cst_43 = arith.constant 0.000000e+00 : f32
    %cst_44 = arith.constant 6.000000e+00 : f32
    %217 = vector.broadcast %cst_43 : f32 to vector<1x512xf32>
    %218 = arith.maximumf %217, %216 : vector<1x512xf32>
    %219 = vector.broadcast %cst_44 : f32 to vector<1x512xf32>
    %220 = arith.minimumf %219, %218 : vector<1x512xf32>
    %c1_45 = arith.constant 1 : index
    %221 = memref.load %arg6[%c1_45] : memref<3xf32, #tpu.memory_space<smem>>
    %222 = vector.broadcast %221 : f32 to vector<1x512xf32>
    %223 = arith.mulf %222, %220 : vector<1x512xf32>
    %224 = arith.addf %212, %223 : vector<1x512xf32>
    %225 = vector.extract_strided_slice %196 {offsets = [2, 0], sizes = [1, 512], strides = [1, 1]} : vector<3x512xf32> to vector<1x512xf32>
    %c2 = arith.constant 2 : index
    %226 = memref.load %arg5[%c2] : memref<3xf32, #tpu.memory_space<smem>>
    %227 = vector.broadcast %226 : f32 to vector<1x512xf32>
    %228 = arith.addf %225, %227 : vector<1x512xf32>
    %cst_46 = arith.constant 0.000000e+00 : f32
    %cst_47 = arith.constant 6.000000e+00 : f32
    %229 = vector.broadcast %cst_46 : f32 to vector<1x512xf32>
    %230 = arith.maximumf %229, %228 : vector<1x512xf32>
    %231 = vector.broadcast %cst_47 : f32 to vector<1x512xf32>
    %232 = arith.minimumf %231, %230 : vector<1x512xf32>
    %c2_48 = arith.constant 2 : index
    %233 = memref.load %arg6[%c2_48] : memref<3xf32, #tpu.memory_space<smem>>
    %234 = vector.broadcast %233 : f32 to vector<1x512xf32>
    %235 = arith.mulf %234, %232 : vector<1x512xf32>
    %236 = arith.addf %224, %235 : vector<1x512xf32>
    %237 = arith.negf %236 : vector<1x512xf32>
    %238 = math.exp %237 : vector<1x512xf32>
    %cst_49 = arith.constant 1.000000e+00 : f32
    %239 = vector.broadcast %cst_49 : f32 to vector<1x512xf32>
    %240 = arith.addf %239, %238 : vector<1x512xf32>
    %241 = arith.divf %239, %240 : vector<1x512xf32>
    %c0_50 = arith.constant 0 : index
    %c0_51 = arith.constant 0 : index
    %c0_52 = arith.constant 0 : index
    %242 = vector.load %arg3[%c0_50, %c0_51, %c0_52] : memref<1x16x512xf32, #tpu.memory_space<vmem>>, vector<1x16x512xf32>
    %243 = vector.shape_cast %242 : vector<1x16x512xf32> to vector<16x512xf32>
    %244 = vector.broadcast %241 : vector<1x512xf32> to vector<16x512xf32>
    %245 = arith.mulf %244, %243 : vector<16x512xf32>
    %c0_53 = arith.constant 0 : index
    %c0_54 = arith.constant 0 : index
    %c0_55 = arith.constant 0 : index
    %246 = vector.load %arg8[%c0_53, %c0_54, %c0_55] : memref<1x16x512xf32, #tpu.memory_space<vmem>>, vector<1x16x512xf32>
    %247 = vector.shape_cast %246 : vector<1x16x512xf32> to vector<16x512xf32>
    %248 = vector.shape_cast %245 : vector<16x512xf32> to vector<1x16x512xf32>
    tpu.vector_store %arg8[%c0_53, %c0_54, %c0_55], %248 {strides = array<i32>} : memref<1x16x512xf32, #tpu.memory_space<vmem>>, vector<1x16x512xf32>,
    return
  }
  func.func @transform_0(%arg0: i32) -> (i32, i32) {
    %c0_i32 = arith.constant 0 : i32
    %c0_i32_0 = arith.constant 0 : i32
    %c0_i32_1 = arith.constant 0 : i32
    return %c0_i32, %c0_i32_0 : i32, i32
  }
  func.func @transform_1(%arg0: i32) -> (i32, i32, i32) {
    %c0_i32 = arith.constant 0 : i32
    %c0_i32_0 = arith.constant 0 : i32
    %c0_i32_1 = arith.constant 0 : i32
    return %arg0, %c0_i32, %c0_i32_0 : i32, i32, i32
  }
  func.func @transform_2(%arg0: i32) -> (i32, i32, i32) {
    %c0_i32 = arith.constant 0 : i32
    %c0_i32_0 = arith.constant 0 : i32
    %c0_i32_1 = arith.constant 0 : i32
    return %arg0, %c0_i32, %c0_i32_0 : i32, i32, i32
  }
  func.func @transform_3(%arg0: i32) -> (i32, i32) {
    %c0_i32 = arith.constant 0 : i32
    %c0_i32_0 = arith.constant 0 : i32
    %c0_i32_1 = arith.constant 0 : i32
    return %c0_i32, %c0_i32_0 : i32, i32
  }
  func.func @transform_4(%arg0: i32) -> i32 {
    %c0_i32 = arith.constant 0 : i32
    %c0_i32_0 = arith.constant 0 : i32
    return %c0_i32 : i32
  }
  func.func @transform_5(%arg0: i32) -> i32 {
    %c0_i32 = arith.constant 0 : i32
    %c0_i32_0 = arith.constant 0 : i32
    return %c0_i32 : i32
  }
  func.func @transform_6(%arg0: i32) -> i32 {
    %c0_i32 = arith.constant 0 : i32
    %c0_i32_0 = arith.constant 0 : i32
    return %c0_i32 : i32
  }
  func.func @transform_7(%arg0: i32) -> (i32, i32, i32) {
    %c0_i32 = arith.constant 0 : i32
    %c0_i32_0 = arith.constant 0 : i32
    %c0_i32_1 = arith.constant 0 : i32
    return %arg0, %c0_i32, %c0_i32_0 : i32, i32, i32
  }
}

</mosaic_0001>

<bundles_post_ra>
// kernel: dcla_forward.2
= control target key start
LH: loop header
LB: loop body
LE: loop exit
PB: predicated region body
PF: predicated region fallthrough
CT: control target
= control target key end

     0   :  { %16 = vsyncpa [#allocation4], 0  ;;  %s7427_s0 = inlined_call_operand.vmem [shape: f32[27,512], index: 0, kind: input, shape index: {}]   ;;  %s7428_s1 = inlined_call_operand.vmem [shape: f32[2,4,8,512], index: 1, kind: input, shape index: {}]   ;;  %s7429_s2 = inlined_call_operand.vmem [shape: f32[2,8,8,512], index: 2, kind: input, shape index: {}]   ;;  %s7430_s3 = inlined_call_operand.vmem [shape: f32[2,16,1,512], index: 3, kind: input, shape index: {}]   ;;  %s7431_s4 = inlined_call_operand.vmem [shape: f32[2,216], index: 4, kind: input, shape index: {}]   ;;  %s7432_s5 = inlined_call_operand.vmem [shape: f32[2,216], index: 5, kind: input, shape index: {}]   ;;  %s7433_s6 = inlined_call_operand.vmem [shape: f32[4], index: 6, kind: input, shape index: {}]   ;;  %s7434_s7 = inlined_call_operand.vmem [shape: f32[8], index: 7, kind: input, shape index: {}]   ;;  %s7435_s8 = inlined_call_operand.vmem [shape: f32[16], index: 8, kind: input, shape index: {}]   ;;  %s7436_s9 = inlined_call_operand.vmem [shape: f32[3], index: 9, kind: input, shape index: {}]   ;;  %s7437_s10 = inlined_call_operand.vmem [shape: f32[2,2], index: 10, kind: input, shape index: {}]   ;;  %s7438_s11 = inlined_call_operand.vmem [shape: f32[2,3,512], index: 11, kind: output, shape index: {}]  }
   0x1   :  { %17 = vsyncpa [#allocation6], 0 }
   0x2   :  { %18 = vsyncpa [#allocation9], 0  ;;  %s5148_s17 = smov 0  }
   0x3 LB: > { %s334_s20 = sshll.u32 %s7434_s7, 4  ;;  %s5157_s21 = sadd.s32 4294967295, %s5063_s17   ;;  %s5063_s17 = sphi %s5148_s17, %s24_s17   ;;  %s335_s20 = int_to_ptr.vmem [resolvable:$true] %s334_s20 }
   0x4   : > { %p4118_p0 = scmp.ge.s32.totalorder %s5063_s17, 1  ;;  %p301_p1 = scmp.lt.s32.totalorder %s5063_s17, 3 }
   0x5   : > { %p7439_p2 = scmp.eq.s32.totalorder %s5157_s21, 0  ;;  %s356_s25 = sshll.u32 %s7436_s9, 4  ;;  %s5169_s25 = int_to_ptr.vmem [resolvable:$true] %s356_s25 }
   0x6   : > { %p5162_p3 = pnand %p4118_p0, %p301_p1  ;;  %s323_s28 = sshll.u32 %s7433_s6, 4  ;;  %s5176_s28 = int_to_ptr.vmem [resolvable:$true] %s323_s28 }
   0x7   : > { %s345_s13 = sshll.u32 %s7435_s8, 4  ;;  %s367_s16 = sshll.u32 %s7437_s10, 4  ;;  %s5187_s13 = int_to_ptr.vmem [resolvable:$true] %s345_s13  ;;  %s368_s16 = int_to_ptr.vmem [resolvable:$true] %s367_s16 }
   0x8   : > { %p4409_p4 = pneg %p5162_p3  ;;  %s4970_s18 = scalar_lea.vmem %s335_s20, 16 }
   0x9   : > { %p4971_p6 = scmp.ne.s32.totalorder %s335_s20, %s4970_s18  ;;  %p4978_p10 = scmp.lt.s32.totalorder %s335_s20, %s335_s20 }
   0xa   : > { %p5180_p5 = pnand %p7439_p2, %p4409_p4  ;;  %p4979_p11 = scmp.lt.s32.totalorder %s4970_s18, %s4970_s18 }
   0xc   : > { %p5194_p7 = pneg %p5180_p5  ;;  %p4980_p12 = por %p4979_p11, %p4978_p10 }
   0xe   : > { %p4973_p8 = pnand %p5194_p7, %p4971_p6 }
  0x10   : > { %p4974_p9 = pneg %p4973_p8 }
  0x12   : > { %p4981_p13 = pnand %p4980_p12, %p4974_p9 }
  0x14   : > { %4984 = shalt.err (!%p4981_p13)
}
  0x15   : > { %s5065_s23 = smov [#allocation5]   ;;  %s4985_s24 = scalar_lea.vmem %s5169_s25, 16 }
  0x16   : > { %4415 = dma.vmem_to_smem (!%p5180_p5), %s335_s20, 16, %s5065_s23, [#allocation6]  }
  0x17   : > { %p4986_p0 = scmp.ne.s32.totalorder %s5169_s25, %s4985_s24  ;;  %p4993_p6 = scmp.lt.s32.totalorder %s5169_s25, %s5169_s25 }
  0x18   : > { %p4994_p8 = scmp.lt.s32.totalorder %s4985_s24, %s4985_s24 }
  0x19   : > { %p4988_p1 = pnand %p4986_p0, %p5194_p7 }
  0x1a   : > { %p4995_p2 = por %p4994_p8, %p4993_p6 }
  0x1b   : > { %p4989_p4 = pneg %p4988_p1 }
  0x1d   : > { %p4996_p10 = pnand %p4995_p2, %p4989_p4 }
  0x1f   : > { %4999 = shalt.err (!%p4996_p10)
}
  0x20   : > { %s5066_s26 = smov [#allocation8]   ;;  %s5000_s20 = scalar_lea.vmem %s5176_s28, 16 }
  0x21   : > { %4421 = dma.vmem_to_smem (!%p5180_p5), %s5169_s25, 16, %s5066_s26, [#allocation9]  }
  0x22   : > { %p5001_p9 = scmp.ne.s32.totalorder %s5176_s28, %s5000_s20  ;;  %p5008_p13 = scmp.lt.s32.totalorder %s5176_s28, %s5176_s28 }
  0x23   : > { %p5009_p0 = scmp.lt.s32.totalorder %s5000_s20, %s5000_s20 }
  0x24   : > { %p5003_p11 = pnand %p5001_p9, %p5194_p7 }
  0x25   : > { %p5010_p1 = por %p5009_p0, %p5008_p13 }
  0x26   : > { %p5004_p12 = pneg %p5003_p11 }
  0x28   : > { %p5011_p2 = pnand %p5010_p1, %p5004_p12 }
  0x2a   : > { %5014 = shalt.err (!%p5011_p2)
}
  0x2b   : > { %s5067_s27 = smov [#allocation3]   ;;  %s5015_s25 = scalar_lea.vmem %s5187_s13, 16 }
  0x2c   : > { %4412 = dma.vmem_to_smem (!%p5180_p5), %s5176_s28, 16, %s5067_s27, [#allocation4]  }
  0x2d   : > { %p5016_p4 = scmp.ne.s32.totalorder %s5187_s13, %s5015_s25  ;;  %p5023_p10 = scmp.lt.s32.totalorder %s5187_s13, %s5187_s13 }
  0x2e   : > { %p5024_p9 = scmp.lt.s32.totalorder %s5015_s25, %s5015_s25 }
  0x2f   : > { %p5018_p6 = pnand %p5016_p4, %p5194_p7 }
  0x30   : > { %p5025_p11 = por %p5024_p9, %p5023_p10 }
  0x31   : > { %p5019_p8 = pneg %p5018_p6 }
  0x33   : > { %p5026_p12 = pnand %p5025_p11, %p5019_p8 }
  0x35   : > { %5029 = shalt.err (!%p5026_p12)
}
  0x36   : > { %s5068_s30 = smov [#allocation7]   ;;  %s5030_s28 = scalar_lea.vmem %s368_s16, 32 }
  0x37   : > { %4418 = dma.vmem_to_smem (!%p5180_p5), %s5187_s13, 16, %s5068_s30, [#allocation6]  }
  0x38   : > { %p5031_p13 = scmp.ne.s32.totalorder %s368_s16, %s5030_s28  ;;  %p5038_p2 = scmp.lt.s32.totalorder %s368_s16, %s368_s16 }
  0x39   : > { %p5039_p4 = scmp.lt.s32.totalorder %s5030_s28, %s5030_s28 }
  0x3a   : > { %p5033_p0 = pnand %p5031_p13, %p5194_p7 }
  0x3b   : > { %p5040_p6 = por %p5039_p4, %p5038_p2 }
  0x3c   : > { %p5034_p1 = pneg %p5033_p0 }
  0x3e   : > { %p5041_p8 = pnand %p5040_p6, %p5034_p1 }
  0x40   : > { %5044 = shalt.err (!%p5041_p8)
}
  0x41   : > { %s5069_s15 = smov [#allocation10]   ;;  %403 = sbr.rel (%p5162_p3) target bundleno = 1615 (0x64f), region = 64 }
  0x42   : > { %4424 = dma.vmem_to_smem (!%p5180_p5), %s368_s16, 32, %s5069_s15, [#allocation9]  }
  0x48   : > { %p7559_p10 = scmp.eq.s32.totalorder %s5157_s21, 0 }
  0x4a   : > { %5050 = dma.done.wait (%p7559_p10), [#allocation4], 16   ;;  %p7560_p9 = pmov %p7559_p10 }
  0x4c   : > { %5052 = vsyncadd (%p7560_p9), [#allocation4], 4294967280  ;;  %p7561_p7 = pmov %p7560_p9 }
  0x4e   : > { %5054 = dma.done.wait (%p7561_p7), [#allocation6], 32   ;;  %p7562_p11 = pmov %p7561_p7 }
  0x4f   : > { %p7563_p12 = pmov %p7561_p7 }
  0x50   : > { %5056 = vsyncadd (%p7562_p11), [#allocation6], 4294967264 }
  0x51   : > { %5058 = dma.done.wait (%p7563_p12), [#allocation9], 48   ;;  %p7564_p5 = pmov %p7561_p7 }
  0x53   : > { %5060 = vsyncadd (%p7564_p5), [#allocation9], 4294967248 }
  0x54   : > { %425 = sfence }
  0x55   : > { %v7444_v0 = vlaneseq  ;;  %v5257_v2 = vld [vmem:[%s7427_s0 + $0x10] sm:$0xff]  ;;  %v5262_v3 = vld [vmem:[%s7427_s0] sm:$0xff]  ;;  %v5270_v5 = vld [vmem:[%s7427_s0 + $0x18] sm:$0xff]  ;;  %s2745_s26 = sld [smem:[#allocation5]]  ;;  %p469_p3 = scmp.lt.s32.totalorder %s5157_s21, 1  ;;  %vm598_vm0 = vcmask 449536  }
  0x56   : > { %v5275_v6 = vld [vmem:[%s7427_s0 + $0x8] sm:$0xff]  ;;  %s4145_s20 = sld [smem:[#allocation5 + $0x1]]  ;;  %s4146_s27 = sld [smem:[#allocation5 + $0x2]]  ;;  %vm668_vm1 = vcmask 457728   ;;  %vm738_vm2 = vcmask 465920   ;;  %vm808_vm3 = vcmask 515072  }
  0x57   : > { %v5252_v1 = vshrl.u32 %v7444_v0, 7  ;;  %s7440_s25 = smov 55   ;;  %s4147_s30 = sld [smem:[#allocation5 + $0x3]]  ;;  %vm878_vm4 = vcmask 523264   ;;  %vm837_vm5 = vcmask 531456   ;;  %vm767_vm6 = vcmask 580608  }
  0x58   : > { %s4148_s12 = sld [smem:[#allocation5 + $0x4]]  ;;  %s4149_s14 = sld [smem:[#allocation5 + $0x5]]  ;;  %vm697_vm7 = vcmask 588800   ;;  %vm627_vm8 = vcmask 596992   ;;  %vm7505_vm9 = vcmask 973824   ;;  %vm1248_vm10 = vcmask 72704  }
  0x59   : > { %7565 = vst [vmem:[#allocation14_spill] sm:$0xff] %v5252_v1  ;;  %v5265_v4 = vsub.s32 0, %v5252_v1  ;;  %v5289_v11 = vsub.s32 1, %v5252_v1  ;;  %s4150_s28 = sld [smem:[#allocation5 + $0x6]]  ;;  %s7795_s21 = smov (!%p469_p3, %s5157_s21), 1  ;;  %v5304_v14 = vsub.s32 2, %v5252_v1 }
  0x5a   : > { %s5294_s15 = sld [smem:[#allocation5 + $0x7]]  ;;  %s4179_s22 = sshll.u32 %s7795_s21, 8  ;;  %vm1289_vm11 = vcmask 982016   ;;  %vm7554_vm12 = vcmask 990208   ;;  %vm1318_vm13 = vcmask 64512   ;;  %vm1388_vm14 = vcmask 56320  }
  0x5b   : > { %7566 = vst [vmem:[#allocation15_spill] sm:$0xff] %v5265_v4  ;;  %v581_v7 = vrot.slane %v5257_v2, %v5265_v4  ;;  %v573_v8 = vrot.slane %v5262_v3, %v5265_v4  ;;  %v585_v9 = vrot.slane %v5270_v5, %v5265_v4  ;;  %v577_v10 = vrot.slane %v5275_v6, %v5265_v4  ;;  %s5311_s16 = scalar_lea.vmem %s7429_s2, %s4179_s22  ;;  %s7442_s18 = smov 56  }
  0x5c   : > { %v643_v12 = vrot.slane %v5262_v3, %v5289_v11  ;;  %v647_v13 = vrot.slane %v5275_v6, %v5289_v11  ;;  %v5306_v15 = vstv %s2745_s26  ;;  %v2715_v16 = vld [vmem:[%s5311_s16 + $0x10] sm:$0xff]  ;;  %v2716_v17 = vld [vmem:[%s5311_s16 + $0x18] sm:$0xff]  ;;  %v651_v19 = vrot.slane %v5257_v2, %v5289_v11  ;;  %v2714_v62 = vld [vmem:[%s5311_s16 + $0x8] sm:$0xff]  ;;  %s5380_s19 = sld [smem:[#allocation8 + $0x1]]  ;;  %s5072_s23 = smov 57  }
  0x5d   : > { %594 = vrot.lane.b32.xlu1 %v581_v7, %s7440_s25  ;;  %590 = vrot.lane.b32.xlu0 %v573_v8, %s7440_s25  ;;  %v2719_v18 = vld [vmem:[%s5311_s16 + $0x30] sm:$0xff]  ;;  %v5318_v20 = vstv %s4145_s20  ;;  %v655_v24 = vrot.slane %v5270_v5, %v5289_v11  ;;  %v2749_v26 = vmul.f32 %v5306_v15, %v2715_v16  ;;  %v2750_v27 = vmul.f32 %v5306_v15, %v2716_v17  ;;  %s5073_s24 = smov 63   ;;  %s5074_s26 = smov 64  }
  0x5e   : > { %v5320_v21 = vstv %s4146_s27  ;;  %v2720_v22 = vld [vmem:[%s5311_s16 + $0x38] sm:$0xff]  ;;  %v2723_v23 = vld [vmem:[%s5311_s16 + $0x50] sm:$0xff]  ;;  %v5328_v25 = vstv %s4147_s30  ;;  %v717_v28 = vrot.slane %v5275_v6, %v5304_v14  ;;  %v713_v29 = vrot.slane %v5262_v3, %v5304_v14  ;;  %s5075_s20 = smov 65   ;;  %s5076_s27 = smov 71  }
  0x5f   : > { %v5336_v30 = vstv %s4148_s12  ;;  %v5338_v31 = vstv %s4149_s14  ;;  %v5340_v32 = vstv %s4150_s28  ;;  %v2724_v33 = vld [vmem:[%s5311_s16 + $0x58] sm:$0xff]  ;;  %v2755_v36 = vmul.f32 %v5318_v20, %v2719_v18  ;;  %s5077_s30 = smov 72   ;;  %s5078_s12 = smov 73  }
  0x60   : > { %v2727_v34 = vld [vmem:[%s5311_s16 + $0x70] sm:$0xff]  ;;  %v2728_v35 = vld [vmem:[%s5311_s16 + $0x78] sm:$0xff]  ;;  %v2756_v37 = vmul.f32 %v5318_v20, %v2720_v22  ;;  %v2765_v38 = vmul.f32 %v5320_v21, %v2723_v23  ;;  %v5349_v39 = vstv %s5294_s15  ;;  %v2766_v43 = vmul.f32 %v5320_v21, %v2724_v33  ;;  %v2718_v63 = vld [vmem:[%s5311_s16 + $0x28] sm:$0xff]  ;;  %s7483_s14 = smov 119   ;;  %s520_s28 = sld [smem:[#allocation3]] }
  0x61   : > { %596 = vrot.lane.b32.xlu1 %v585_v9, %s7440_s25  ;;  %592 = vrot.lane.b32.xlu0 %v577_v10, %s7440_s25  ;;  %v2731_v40 = vld [vmem:[%s5311_s16 + $0x90] sm:$0xff]  ;;  %v2732_v41 = vld [vmem:[%s5311_s16 + $0x98] sm:$0xff]  ;;  %v2775_v44 = vmul.f32 %v5328_v25, %v2727_v34  ;;  %v2776_v45 = vmul.f32 %v5328_v25, %v2728_v35  ;;  %v2759_v48 = vadd.f32 %v2755_v36, %v2749_v26  ;;  %v5378_v9 = vsub.s32 3, %v5252_v1  ;;  %s4138_s15 = sld [smem:[#allocation3 + $0x1]]  ;;  %s4178_s22 = sshll.u32 %s7795_s21, 7 }
  0x62   : > { %v2735_v42 = vld [vmem:[%s5311_s16 + $0xb0] sm:$0xff]  ;;  %v2736_v46 = vld [vmem:[%s5311_s16 + $0xb8] sm:$0xff]  ;;  %v2760_v49 = vadd.f32 %v2756_v37, %v2750_v27  ;;  %v2785_v50 = vmul.f32 %v5336_v30, %v2731_v40  ;;  %v2786_v54 = vmul.f32 %v5336_v30, %v2732_v41  ;;  %v725_v7 = vrot.slane %v5270_v5, %v5304_v14  ;;  %v2722_v16 = vld [vmem:[%s5311_s16 + $0x48] sm:$0xff]  ;;  %s4139_s29 = sld [smem:[#allocation3 + $0x2]]  ;;  %s5524_s25 = scalar_lea.vmem %s7428_s1, %s4178_s22 }
  0x63   : > { %v2739_v47 = vld [vmem:[%s5311_s16 + $0xd0] sm:$0xff]  ;;  %v2740_v51 = vld [vmem:[%s5311_s16 + $0xd8] sm:$0xff]  ;;  %v2795_v55 = vmul.f32 %v5338_v31, %v2735_v42  ;;  %v2796_v56 = vmul.f32 %v5338_v31, %v2736_v46  ;;  %v2769_v58 = vadd.f32 %v2765_v38, %v2759_v48  ;;  %v721_v8 = vrot.slane %v5257_v2, %v5304_v14  ;;  %v2726_v18 = vld [vmem:[%s5311_s16 + $0x68] sm:$0xff]  ;;  %s556_s22 = sld [smem:[#allocation8]]  ;;  %s7633_s13 = smov 119  }
  0x64   : > { %v2743_v52 = vld [vmem:[%s5311_s16 + $0xf0] sm:$0xff]  ;;  %v2744_v53 = vld [vmem:[%s5311_s16 + $0xf8] sm:$0xff]  ;;  %v2805_v57 = vmul.f32 %v5340_v32, %v2739_v47  ;;  %v2770_v59 = vadd.f32 %v2766_v43, %v2760_v49  ;;  %v2806_v60 = vmul.f32 %v5340_v32, %v2740_v51  ;;  %v2748_v17 = vmul.f32 %v5306_v15, %v2714_v62  ;;  %v2734_v27 = vld [vmem:[%s5311_s16 + $0xa8] sm:$0xff] }
  0x65   : > { %660 = vrot.lane.b32.xlu1 %v643_v12, %s7442_s18  ;;  %662 = vrot.lane.b32.xlu0 %v647_v13, %s7442_s18  ;;  %v2815_v61 = vmul.f32 %v5349_v39, %v2743_v52  ;;  %v2816_v10 = vmul.f32 %v5349_v39, %v2744_v53  ;;  %v2779_v12 = vadd.f32 %v2775_v44, %v2769_v58  ;;  %v2738_v34 = vld [vmem:[%s5311_s16 + $0xc8] sm:$0xff]  ;;  %v5408_v48 = vstv %s5380_s19  ;;  %s4166_s19 = sld [smem:[#allocation7 + $0x8]] }
  0x66   : > { %v2780_v13 = vadd.f32 %v2776_v45, %v2770_v59  ;;  %v2754_v22 = vmul.f32 %v5318_v20, %v2718_v63  ;;  %v2764_v23 = vmul.f32 %v5320_v21, %v2722_v16  ;;  %v787_v33 = vrot.slane %v5275_v6, %v5378_v9  ;;  %v2742_v35 = vld [vmem:[%s5311_s16 + $0xe8] sm:$0xff] }
  0x67   : > { %v2794_v41 = vmul.f32 %v5338_v31, %v2734_v27  ;;  %v2804_v43 = vmul.f32 %v5340_v32, %v2738_v34  ;;  %v2814_v46 = vmul.f32 %v5349_v39, %v2742_v35  ;;  %v791_v47 = vrot.slane %v5257_v2, %v5378_v9  ;;  %v5507_v34 = vld [vmem:[%s7427_s0 + $0x30] sm:$0xff] }
  0x68   : > { %v2790_v26 = vadd.f32 %v2786_v54, %v2780_v13  ;;  %v2758_v36 = vadd.f32 %v2754_v22, %v2748_v17  ;;  %v5415_v51 = vsub.s32 4, %v5252_v1  ;;  %v5454_v17 = vsub.s32 6, %v5252_v1 }
  0x69   : > { %664 = vrot.lane.b32.xlu1 %v651_v19, %s7442_s18  ;;  %666 = vrot.lane.b32.xlu0 %v655_v24, %s7442_s18  ;;  %v2730_v19 = vld [vmem:[%s5311_s16 + $0x88] sm:$0xff]  ;;  %v2789_v24 = vadd.f32 %v2785_v50, %v2779_v12  ;;  %v795_v50 = vrot.slane %v5270_v5, %v5378_v9  ;;  %s4140_s18 = sld [smem:[#allocation3 + $0x3]]  ;;  %vm7555_vm15 = vcmask 1039360  }
  0x6a   : > { %v2784_v37 = vmul.f32 %v5336_v30, %v2730_v19  ;;  %v2800_v40 = vadd.f32 %v2796_v56, %v2790_v26  ;;  %v2768_v42 = vadd.f32 %v2764_v23, %v2758_v36  ;;  %v857_v58 = vrot.slane %v5275_v6, %v5415_v51 }
  0x6b   : > { %v2799_v38 = vadd.f32 %v2795_v55, %v2789_v24  ;;  %v853_v59 = vrot.slane %v5262_v3, %v5415_v51  ;;  %v865_v62 = vrot.slane %v5270_v5, %v5415_v51  ;;  %v861_v63 = vrot.slane %v5257_v2, %v5415_v51 }
  0x6c   : > { %v2810_v45 = vadd.f32 %v2806_v60, %v2800_v40  ;;  %v990_v19 = vrot.slane %v5262_v3, %v5454_v17  ;;  %v1002_v22 = vrot.slane %v5270_v5, %v5454_v17  ;;  %v998_v23 = vrot.slane %v5257_v2, %v5454_v17 }
  0x6d   : > { %732 = vrot.lane.b32.xlu1 %v717_v28, %s5072_s23  ;;  %730 = vrot.lane.b32.xlu0 %v713_v29, %s5072_s23  ;;  %v2774_v28 = vmul.f32 %v5328_v25, %v2726_v18  ;;  %v783_v29 = vrot.slane %v5262_v3, %v5378_v9  ;;  %v2809_v44 = vadd.f32 %v2805_v57, %v2799_v38  ;;  %v5469_v24 = vsub.s32 7, %v5252_v1 }
  0x6e   : > { %v2820_v53 = vadd.f32 %v2816_v10, %v2810_v45  ;;  %v994_v18 = vrot.slane %v5275_v6, %v5454_v17  ;;  %v1134_v36 = vrot.slane %v5507_v34, %v5265_v4  ;;  %v5526_v38 = vstv %s520_s28  ;;  %s7485_s28 = smov 120  }
  0x6f   : > { %v2778_v49 = vadd.f32 %v2774_v28, %v2768_v42  ;;  %v2819_v52 = vadd.f32 %v2815_v61, %v2809_v44  ;;  %7569 = vst [vmem:[#allocation18_spill] sm:$0xff] %v5469_v24  ;;  %v1058_v26 = vrot.slane %v5262_v3, %v5469_v24  ;;  %v1062_v27 = vrot.slane %v5275_v6, %v5469_v24  ;;  %v511_v42 = vld [vmem:[%s5524_s25 + $0x38] sm:$0xff] }
  0x70   : > { %v5421_v56 = vadd.f32 %v5408_v48, %v2820_v53  ;;  %v1066_v28 = vrot.slane %v5257_v2, %v5469_v24  ;;  %v5528_v40 = vstv %s4138_s15  ;;  %v5534_v45 = vstv %s4139_s29  ;;  %s5082_s15 = smov 8   ;;  %s7516_s29 = smov 1  }
  0x71   : > { %736 = vrot.lane.b32.xlu1 %v725_v7, %s5072_s23  ;;  %734 = vrot.lane.b32.xlu0 %v721_v8, %s5072_s23  ;;  %v2788_v54 = vadd.f32 %v2784_v37, %v2778_v49  ;;  %v5418_v55 = vadd.f32 %v5408_v48, %v2819_v52  ;;  %v5436_v7 = vsub.s32 5, %v5252_v1  ;;  %v531_v44 = vmul.f32 %v5528_v40, %v511_v42  ;;  %v519_v52 = vld [vmem:[%s5524_s25 + $0x78] sm:$0xff]  ;;  %v510_v1 = vld [vmem:[%s5524_s25 + $0x30] sm:$0xff] }
  0x72   : > { %7567 = vst [vmem:[#allocation16_spill] sm:$0xff] %v5421_v56 }
  0x73   : > { %v2798_v57 = vadd.f32 %v2794_v41, %v2788_v54  ;;  %7568 = vst [vmem:[#allocation17_spill] sm:$0xff] %v5436_v7  ;;  %v922_v10 = vrot.slane %v5262_v3, %v5436_v7  ;;  %v926_v12 = vrot.slane %v5275_v6, %v5436_v7  ;;  %v930_v13 = vrot.slane %v5257_v2, %v5436_v7  ;;  %v5491_v3 = vld [vmem:[%s7427_s0 + $0x20] sm:$0xff]  ;;  %v5502_v6 = vld [vmem:[%s7427_s0 + $0x38] sm:$0xff] }
  0x74   : > { %v934_v16 = vrot.slane %v5270_v5, %v5436_v7  ;;  %v1138_v35 = vrot.slane %v5502_v6, %v5265_v4  ;;  %v1194_v37 = vrot.slane %v5491_v3, %v5289_v11  ;;  %v507_v41 = vld [vmem:[%s5524_s25 + $0x18] sm:$0xff] }
  0x75   : > { %800 = vrot.lane.b32.xlu1 %v783_v29, %s5073_s24  ;;  %802 = vrot.lane.b32.xlu0 %v787_v33, %s5073_s24  ;;  %v2808_v60 = vadd.f32 %v2804_v43, %v2798_v57  ;;  %v1070_v29 = vrot.slane %v5270_v5, %v5469_v24  ;;  %v5486_v33 = vld [vmem:[%s7427_s0 + $0x28] sm:$0xff]  ;;  %v1126_v5 = vrot.slane %v5491_v3, %v5265_v4 }
  0x76   : > { %v1130_v2 = vrot.slane %v5486_v33, %v5265_v4  ;;  %v525_v43 = vmul.f32 %v5526_v38, %v507_v41  ;;  %v518_v4 = vld [vmem:[%s5524_s25 + $0x70] sm:$0xff] }
  0x77   : > { %v2818_v61 = vadd.f32 %v2814_v46, %v2808_v60  ;;  %v515_v46 = vld [vmem:[%s5524_s25 + $0x58] sm:$0xff]  ;;  %v2829_v60 = vmax.f32 %v5418_v55, 0.0 }
  0x78   : > { %v541_v49 = vmul.f32 %v5534_v45, %v515_v46 }
  0x79   : > { %804 = vrot.lane.b32.xlu1 %v791_v47, %s5073_s24  ;;  %806 = vrot.lane.b32.xlu0 %v795_v50, %s5073_s24  ;;  %v5439_v8 = vadd.f32 %v5408_v48, %v2818_v61  ;;  %v535_v47 = vadd.f32 %v531_v44, %v525_v43  ;;  %v5538_v50 = vstv %s4140_s18  ;;  %s5080_s18 = smov 9  }
  0x7a   : > { %v551_v54 = vmul.f32 %v5538_v50, %v519_v52 }
  0x7b   : > { %v545_v53 = vadd.f32 %v541_v49, %v535_v47  ;;  %v2828_v61 = vmax.f32 %v5439_v8, 0.0 }
  0x7d   : > { %872 = vrot.lane.b32.xlu1 %v857_v58, %s5074_s26  ;;  %870 = vrot.lane.b32.xlu0 %v853_v59, %s5074_s26  ;;  %v555_v57 = vadd.f32 %v551_v54, %v545_v53  ;;  %v5542_v58 = vstv %s556_s22  ;;  %s7503_s22 = smov 127  }
  0x7f   : > { %v561_v59 = vadd.f32 %v5542_v58, %v555_v57  ;;  %v504_v57 = vld [vmem:[%s5524_s25] sm:$0xff] }
  0x80   : > { %v522_v0 = vmul.f32 %v5526_v38, %v504_v57 }
  0x81   : > { %876 = vrot.lane.b32.xlu1 %v865_v62, %s5074_s26  ;;  %874 = vrot.lane.b32.xlu0 %v861_v63, %s5074_s26  ;;  %v565_v62 = vmax.f32 %v561_v59, 0.0  ;;  %v508_v59 = vld [vmem:[%s5524_s25 + $0x20] sm:$0xff] }
  0x82   : > { %v528_v46 = vmul.f32 %v5528_v40, %v508_v59 }
  0x85   : > { %939 = vrot.lane.b32.xlu1 %v922_v10, %s5075_s20  ;;  %941 = vrot.lane.b32.xlu0 %v926_v12, %s5075_s20  ;;  %v5549_v12 = vmin.f32 %v2829_v60, 6.0 }
  0x87   : > { %7570 = vst [vmem:[#allocation19_spill] sm:$0xff] %v5549_v12 }
  0x89   : > { %943 = vrot.lane.b32.xlu1 %v930_v13, %s5075_s20  ;;  %945 = vrot.lane.b32.xlu0 %v934_v16, %s5075_s20  ;;  %v5551_v13 = vmin.f32 %v2828_v61, 6.0  ;;  %v5553_v16 = vmin.f32 %v565_v62, 6.0 }
  0x8d   : > { %1009 = vrot.lane.b32.xlu1 %v994_v18, %s5076_s27  ;;  %1007 = vrot.lane.b32.xlu0 %v990_v19, %s5076_s27 }
  0x91   : > { %1013 = vrot.lane.b32.xlu1 %v1002_v22, %s5076_s27  ;;  %1011 = vrot.lane.b32.xlu0 %v998_v23, %s5076_s27 }
  0x95   : > { %1075 = vrot.lane.b32.xlu1 %v1058_v26, %s5077_s30  ;;  %1077 = vrot.lane.b32.xlu0 %v1062_v27, %s5077_s30  ;;  %v506_v27 = vld [vmem:[%s5524_s25 + $0x10] sm:$0xff] }
  0x99   : > { %1079 = vrot.lane.b32.xlu1 %v1066_v28, %s5077_s30  ;;  %1081 = vrot.lane.b32.xlu0 %v1070_v29, %s5077_s30 }
  0x9d   : > { %1145 = vrot.lane.b32.xlu1 %v1130_v2, %s5078_s12  ;;  %1143 = vrot.lane.b32.xlu0 %v1126_v5, %s5078_s12 }
  0xa1   : > { %1149 = vrot.lane.b32.xlu1 %v1138_v35, %s5078_s12  ;;  %1147 = vrot.lane.b32.xlu0 %v1134_v36, %s5078_s12 }
  0xa5   : > { %1211 = vrot.lane.b32.xlu1 %v1194_v37, %s7483_s14 }
  0xcf   : > { %v595_v63 = vpop.permute.xlu1 %594  ;;  %v5547_v10 = vpop.permute.xlu0 %590 }
  0xd3   : > { %v5555_v18 = vpop.permute.xlu1 %596  ;;  %v5557_v19 = vpop.permute.xlu0 %592 }
  0xd4   : > { %7571 = vst [vmem:[#allocation20_spill] sm:$0xff] %v5555_v18  ;;  %v5561_v55 = vsel %vm598_vm0, %v595_v63, %v5555_v18  ;;  %v5565_v8 = vsel %vm598_vm0, %v5557_v19, %v595_v63  ;;  %v611_v26 = vmul.f32 %v5555_v18, %v5553_v16 }
  0xd5   : > { %v5569_v22 = vmul.f32 %v5549_v12, %v5561_v55  ;;  %v5573_v23 = vmul.f32 %v5551_v13, %v5565_v8 }
  0xd6   : > { %625 = vrot.lane.b32.xlu0 %v611_v26, %s5078_s12 }
  0xd7   : > { %7572 = vst [vmem:[#allocation21_spill] sm:$0xff] %v5569_v22  ;;  %7573 = vst [vmem:[#allocation22_spill] sm:$0xff] %v5573_v23  ;;  %v5579_v28 = vpop.permute.xlu1 %660  ;;  %v5581_v29 = vpop.permute.xlu0 %662  ;;  %v514_v23 = vld [vmem:[%s5524_s25 + $0x50] sm:$0xff] }
  0xd8   : > { %v540_v7 = vmul.f32 %v5534_v45, %v514_v23 }
  0xdb   : > { %v665_v2 = vpop.permute.xlu1 %664  ;;  %v5584_v5 = vpop.permute.xlu0 %666 }
  0xdc   : > { %7574 = vst [vmem:[#allocation23_spill] sm:$0xff] %v5584_v5  ;;  %v5588_v35 = vsel %vm668_vm1, %v5581_v29, %v665_v2  ;;  %v5592_v36 = vsel %vm668_vm1, %v665_v2, %v5584_v5  ;;  %v681_v37 = vmul.f32 %v5584_v5, %v5553_v16  ;;  %v505_v2 = vld [vmem:[%s5524_s25 + $0x8] sm:$0xff]  ;;  %v530_v5 = vmul.f32 %v5528_v40, %v510_v1 }
  0xdd   : > { %v5598_v41 = vmul.f32 %v5551_v13, %v5588_v35  ;;  %v5602_v42 = vmul.f32 %v5549_v12, %v5592_v36 }
  0xde   : > { %695 = vrot.lane.b32.xlu1 %v681_v37, %s5077_s30  ;;  %v509_v37 = vld [vmem:[%s5524_s25 + $0x28] sm:$0xff] }
  0xdf   : > { %7575 = vst [vmem:[#allocation24_spill] sm:$0xff] %v5598_v41  ;;  %7576 = vst [vmem:[#allocation25_spill] sm:$0xff] %v5602_v42  ;;  %v5605_v43 = vpop.permute.xlu1 %732  ;;  %v5607_v44 = vpop.permute.xlu0 %730  ;;  %v529_v62 = vmul.f32 %v5528_v40, %v509_v37  ;;  %v513_v41 = vld [vmem:[%s5524_s25 + $0x48] sm:$0xff]  ;;  %v532_v42 = vadd.f32 %v528_v46, %v522_v0  ;;  %v516_v37 = vld [vmem:[%s5524_s25 + $0x60] sm:$0xff] }
  0xe0   : > { %v517_v40 = vld [vmem:[%s5524_s25 + $0x68] sm:$0xff]  ;;  %v548_v18 = vmul.f32 %v5538_v50, %v516_v37 }
  0xe3   : > { %v5611_v47 = vpop.permute.xlu1 %736  ;;  %v735_v49 = vpop.permute.xlu0 %734 }
  0xe4   : > { %7577 = vst [vmem:[#allocation26_spill] sm:$0xff] %v5611_v47  ;;  %v5615_v52 = vsel %vm738_vm2, %v5605_v43, %v735_v49  ;;  %v5619_v53 = vsel %vm738_vm2, %v735_v49, %v5611_v47  ;;  %v751_v54 = vmul.f32 %v5611_v47, %v5553_v16  ;;  %v512_v49 = vld [vmem:[%s5524_s25 + $0x40] sm:$0xff]  ;;  %s7593_s25 = smov 56  }
  0xe5   : > { %v5627_v60 = vmul.f32 %v5551_v13, %v5615_v52  ;;  %v5631_v61 = vmul.f32 %v5549_v12, %v5619_v53 }
  0xe6   : > { %765 = vrot.lane.b32.xlu0 %v751_v54, %s5076_s27  ;;  %v523_v54 = vmul.f32 %v5526_v38, %v505_v2 }
  0xe7   : > { %7578 = vst [vmem:[#allocation27_spill] sm:$0xff] %v5627_v60  ;;  %7579 = vst [vmem:[#allocation28_spill] sm:$0xff] %v5631_v61  ;;  %v5636_v63 = vpop.permute.xlu1 %800  ;;  %v5638_v26 = vpop.permute.xlu0 %802  ;;  %v538_v60 = vmul.f32 %v5534_v45, %v512_v49  ;;  %v524_v49 = vmul.f32 %v5526_v38, %v506_v27 }
  0xe9   : > { %v542_v27 = vadd.f32 %v538_v60, %v532_v42  ;;  %v534_v56 = vadd.f32 %v530_v5, %v524_v49  ;;  %v550_v42 = vmul.f32 %v5538_v50, %v518_v4 }
  0xeb   : > { %v805_v61 = vpop.permute.xlu1 %804  ;;  %v5650_v47 = vpop.permute.xlu0 %806  ;;  %v544_v23 = vadd.f32 %v540_v7, %v534_v56 }
  0xec   : > { %7580 = vst [vmem:[#allocation29_spill] sm:$0xff] %v5650_v47  ;;  %v5655_v57 = vsel %vm808_vm3, %v5638_v26, %v805_v61  ;;  %v5659_v59 = vsel %vm808_vm3, %v805_v61, %v5650_v47  ;;  %v821_v2 = vmul.f32 %v5650_v47, %v5553_v16  ;;  %v533_v61 = vadd.f32 %v529_v62, %v523_v54 }
  0xed   : > { %v5668_v0 = vmul.f32 %v5551_v13, %v5655_v57  ;;  %v5672_v46 = vmul.f32 %v5549_v12, %v5659_v59  ;;  %v539_v47 = vmul.f32 %v5534_v45, %v513_v41  ;;  %v549_v62 = vmul.f32 %v5538_v50, %v517_v40  ;;  %v2717_v50 = vld [vmem:[%s5311_s16 + $0x20] sm:$0xff] }
  0xee   : > { %835 = vrot.lane.b32.xlu1 %v821_v2, %s5075_s20  ;;  %v552_v2 = vadd.f32 %v548_v18, %v542_v27  ;;  %v554_v7 = vadd.f32 %v550_v42, %v544_v23 }
  0xef   : > { %7581 = vst [vmem:[#allocation30_spill] sm:$0xff] %v5668_v0  ;;  %7582 = vst [vmem:[#allocation31_spill] sm:$0xff] %v5672_v46  ;;  %v5677_v22 = vpop.permute.xlu1 %872  ;;  %v5679_v38 = vpop.permute.xlu0 %870  ;;  %v543_v24 = vadd.f32 %v539_v47, %v533_v61  ;;  %v2713_v61 = vld [vmem:[%s5311_s16] sm:$0xff] }
  0xf0   : > { %v558_v56 = vadd.f32 %v5542_v58, %v552_v2  ;;  %v560_v2 = vadd.f32 %v5542_v58, %v554_v7 }
  0xf1   : > { %v553_v4 = vadd.f32 %v549_v62, %v543_v24 }
  0xf3   : > { %v5688_v41 = vpop.permute.xlu1 %876  ;;  %v875_v54 = vpop.permute.xlu0 %874  ;;  %v559_v62 = vadd.f32 %v5542_v58, %v553_v4 }
  0xf4   : > { %7583 = vst [vmem:[#allocation32_spill] sm:$0xff] %v5688_v41  ;;  %v5692_v1 = vsel %vm878_vm4, %v5677_v22, %v875_v54  ;;  %v5696_v5 = vsel %vm878_vm4, %v875_v54, %v5688_v41  ;;  %v891_v45 = vmul.f32 %v5688_v41, %v5553_v16  ;;  %v562_v54 = vmax.f32 %v558_v56, 0.0 }
  0xf5   : > { %v5703_v47 = vmul.f32 %v5551_v13, %v5692_v1  ;;  %v5707_v18 = vmul.f32 %v5549_v12, %v5696_v5  ;;  %v2753_v56 = vmul.f32 %v5318_v20, %v2717_v50  ;;  %v563_v20 = vmax.f32 %v559_v62, 0.0 }
  0xf6   : > { %905 = vrot.lane.b32.xlu0 %v891_v45, %s5074_s26  ;;  %v5751_v7 = vmin.f32 %v562_v54, 6.0  ;;  %v564_v50 = vmax.f32 %v560_v2, 0.0 }
  0xf7   : > { %7584 = vst [vmem:[#allocation33_spill] sm:$0xff] %v5703_v47  ;;  %7585 = vst [vmem:[#allocation34_spill] sm:$0xff] %v5707_v18  ;;  %v5712_v37 = vpop.permute.xlu1 %939  ;;  %v5714_v49 = vpop.permute.xlu0 %941  ;;  %v5756_v18 = vsel %vm598_vm0, %v5547_v10, %v5557_v19 }
  0xf8   : > { %7589 = vst [vmem:[#allocation38_spill] sm:$0xff] %v5756_v18  ;;  %v608_v54 = vmul.f32 %v5756_v18, %v5751_v7  ;;  %v5776_v62 = vmin.f32 %v564_v50, 6.0 }
  0xfb   : > { %v944_v40 = vpop.permute.xlu1 %943  ;;  %v5719_v27 = vpop.permute.xlu0 %945 }
  0xfc   : > { %7586 = vst [vmem:[#allocation35_spill] sm:$0xff] %v5719_v27  ;;  %v5723_v45 = vsel %vm837_vm5, %v5714_v49, %v944_v40  ;;  %v5727_v60 = vsel %vm837_vm5, %v944_v40, %v5719_v27  ;;  %v959_v24 = vmul.f32 %v5719_v27, %v5553_v16  ;;  %v2747_v40 = vmul.f32 %v5306_v15, %v2713_v61  ;;  %v2721_v27 = vld [vmem:[%s5311_s16 + $0x40] sm:$0xff] }
  0xfd   : > { %v5735_v23 = vmul.f32 %v5551_v13, %v5723_v45  ;;  %v5739_v42 = vmul.f32 %v5549_v12, %v5727_v60  ;;  %v2763_v15 = vmul.f32 %v5320_v21, %v2721_v27  ;;  %v5774_v27 = vmin.f32 %v563_v20, 6.0  ;;  %v2729_v20 = vld [vmem:[%s5311_s16 + $0x80] sm:$0xff] }
  0xfe   : > { %973 = vrot.lane.b32.xlu1 %v959_v24, %s5073_s24  ;;  %v2757_v61 = vadd.f32 %v2753_v56, %v2747_v40  ;;  %v2725_v24 = vld [vmem:[%s5311_s16 + $0x60] sm:$0xff]  ;;  %v607_v40 = vmul.f32 0.0, %v5547_v10  ;;  %v680_v10 = vmul.f32 %v5592_v36, %v5776_v62  ;;  %v5813_v36 = vsel %vm668_vm1, %v5579_v28, %v5581_v29 }
  0xff   : > { %7587 = vst [vmem:[#allocation36_spill] sm:$0xff] %v5735_v23  ;;  %7588 = vst [vmem:[#allocation37_spill] sm:$0xff] %v5739_v42  ;;  %v5745_v47 = vpop.permute.xlu1 %1009  ;;  %v5747_v4 = vpop.permute.xlu0 %1007  ;;  %v679_v50 = vmul.f32 %v5588_v35, %v5774_v27  ;;  %v609_v35 = vmul.f32 %v5565_v8, %v5774_v27  ;;  %v610_v8 = vmul.f32 %v5561_v55, %v5776_v62 }
 0x100   : > { %v2767_v23 = vadd.f32 %v2763_v15, %v2757_v61  ;;  %v4466_v18 = vpack.i.bf16 %v608_v54, %v607_v40  ;;  %v2783_v15 = vmul.f32 %v5336_v30, %v2729_v20  ;;  %v747_v54 = vmul.f32 0.0, %v5607_v44 }
 0x101   : > { %v4481_v30 = vpack.i.bf16 %v680_v10, %v679_v50  ;;  %v677_v50 = vmul.f32 0.0, %v5579_v28  ;;  %v2737_v10 = vld [vmem:[%s5311_s16 + $0xc0] sm:$0xff]  ;;  %v887_v28 = vmul.f32 0.0, %v5679_v38 }
 0x103   : > { %v5760_v41 = vpop.permute.xlu1 %1013  ;;  %v1012_v0 = vpop.permute.xlu0 %1011 }
 0x104   : > { %7590 = vst [vmem:[#allocation39_spill] sm:$0xff] %v5760_v41  ;;  %v5766_v58 = vsel %vm767_vm6, %v5745_v47, %v1012_v0  ;;  %v5770_v19 = vsel %vm767_vm6, %v1012_v0, %v5760_v41  ;;  %v1027_v21 = vmul.f32 %v5760_v41, %v5553_v16  ;;  %v2773_v0 = vmul.f32 %v5328_v25, %v2725_v24  ;;  %v2733_v24 = vld [vmem:[%s5311_s16 + $0xa0] sm:$0xff] }
 0x105   : > { %v5780_v2 = vmul.f32 %v5551_v13, %v5766_v58  ;;  %v5784_v56 = vmul.f32 %v5549_v12, %v5770_v19  ;;  %v5803_v25 = vsel %vm738_vm2, %v5607_v44, %v5605_v43  ;;  %v819_v41 = vmul.f32 %v5655_v57, %v5774_v27  ;;  %v2741_v57 = vld [vmem:[%s5311_s16 + $0xe0] sm:$0xff]  ;;  %s7594_s16 = smov 55  }
 0x106   : > { %1041 = vrot.lane.b32.xlu0 %v1027_v21, %s5072_s23  ;;  %v2777_v61 = vadd.f32 %v2773_v0, %v2767_v23  ;;  %v748_v23 = vmul.f32 %v5803_v25, %v5751_v7  ;;  %v2793_v0 = vmul.f32 %v5338_v31, %v2733_v24  ;;  %v5856_v24 = vsel %vm878_vm4, %v5679_v38, %v5677_v22 }
 0x107   : > { %7591 = vst [vmem:[#allocation40_spill] sm:$0xff] %v5780_v2  ;;  %v5794_v42 = vpop.permute.xlu1 %1075  ;;  %v5796_v46 = vpop.permute.xlu0 %1077  ;;  %v2813_v38 = vmul.f32 %v5349_v39, %v2741_v57  ;;  %v958_v39 = vmul.f32 %v5727_v60, %v5776_v62 }
 0x108   : > { %v2787_v20 = vadd.f32 %v2783_v15, %v2777_v61  ;;  %v4471_v15 = vpack.i.bf16 %v610_v8, %v609_v35  ;;  %v4486_v61 = vpack.i.bf16 %v748_v23, %v747_v54  ;;  %v750_v35 = vmul.f32 %v5619_v53, %v5776_v62 }
 0x10a   : > { %4467 = vrot.lane.b32.xlu0 %v4466_v18, %s5078_s12 }
 0x10b   : > { %v1080_v43 = vpop.permute.xlu1 %1079  ;;  %v5816_v21 = vpop.permute.xlu0 %1081 }
 0x10c   : > { %7592 = vst [vmem:[#allocation41_spill] sm:$0xff] %v5816_v21  ;;  %v5824_v18 = vsel %vm697_vm7, %v5796_v46, %v1080_v43  ;;  %v5828_v29 = vsel %vm697_vm7, %v1080_v43, %v5816_v21  ;;  %v1095_v44 = vmul.f32 %v5816_v21, %v5553_v16  ;;  %v678_v43 = vmul.f32 %v5813_v36, %v5751_v7 }
 0x10d   : > { %v5834_v40 = vmul.f32 %v5551_v13, %v5824_v18  ;;  %v5838_v55 = vmul.f32 %v5549_v12, %v5828_v29  ;;  %v820_v21 = vmul.f32 %v5659_v59, %v5776_v62  ;;  %v749_v59 = vmul.f32 %v5615_v52, %v5774_v27 }
 0x10e   : > { %1109 = vrot.lane.b32.xlu1 %v1095_v44, %s7593_s25  ;;  %4482 = vrot.lane.b32.xlu0 %v4481_v30, %s5077_s30  ;;  %v2803_v30 = vmul.f32 %v5340_v32, %v2737_v10  ;;  %v2797_v44 = vadd.f32 %v2793_v0, %v2787_v20  ;;  %v4476_v54 = vpack.i.bf16 %v678_v43, %v677_v50  ;;  %v817_v50 = vmul.f32 0.0, %v5636_v63 }
 0x10f   : > { %v1146_v2 = vpop.permute.xlu1 %1145  ;;  %v1144_v31 = vpop.permute.xlu0 %1143  ;;  %v4501_v8 = vpack.i.bf16 %v820_v21, %v819_v41  ;;  %v888_v32 = vmul.f32 %v5856_v24, %v5751_v7  ;;  %v5877_v52 = vsel %vm808_vm3, %v5636_v63, %v5638_v26  ;;  %v4491_v10 = vpack.i.bf16 %v750_v35, %v749_v59 }
 0x110   : > { %v2807_v21 = vadd.f32 %v2803_v30, %v2797_v44  ;;  %v818_v43 = vmul.f32 %v5877_v52, %v5751_v7  ;;  %v5900_v30 = vsel %vm767_vm6, %v5747_v4, %v5745_v47  ;;  %v889_v44 = vmul.f32 %v5692_v1, %v5774_v27 }
 0x111   : > { %v1024_v60 = vmul.f32 %v5900_v30, %v5751_v7  ;;  %v5914_v47 = vsel %vm837_vm5, %v5712_v37, %v5714_v49  ;;  %v955_v1 = vmul.f32 0.0, %v5712_v37  ;;  %v1094_v49 = vmul.f32 %v5828_v29, %v5776_v62 }
 0x112   : > { %4472 = vrot.lane.b32.xlu1 %v4471_v15, %s5078_s12  ;;  %4487 = vrot.lane.b32.xlu0 %v4486_v61, %s5076_s27  ;;  %v957_v15 = vmul.f32 %v5723_v45, %v5774_v27  ;;  %v4506_v61 = vpack.i.bf16 %v888_v32, %v887_v28  ;;  %v2817_v63 = vadd.f32 %v2813_v38, %v2807_v21  ;;  %v1023_v28 = vmul.f32 0.0, %v5747_v4 }
 0x113   : > { %v5866_v23 = vpop.permute.xlu1 %1149  ;;  %v1148_v22 = vpop.permute.xlu0 %1147  ;;  %v890_v45 = vmul.f32 %v5696_v5, %v5776_v62  ;;  %v4496_v57 = vpack.i.bf16 %v818_v43, %v817_v50  ;;  %v1151_v5 = vsel %vm627_vm8, %v1144_v31, %v1146_v2  ;;  %v1159_v32 = vmul.f32 0.0, %v1144_v31 }
 0x114   : > { %v1152_v0 = vsel %vm627_vm8, %v1146_v2, %v1148_v22  ;;  %v1153_v20 = vsel %vm627_vm8, %v1148_v22, %v5866_v23  ;;  %v4521_v59 = vpack.i.bf16 %v958_v39, %v957_v15  ;;  %v2823_v35 = vadd.f32 %v5408_v48, %v2817_v63 }
 0x115   : > { %v5880_v53 = vmul.f32 %v5551_v13, %v1152_v0  ;;  %v5883_v41 = vmul.f32 %v5549_v12, %v1153_v20  ;;  %v4511_v4 = vpack.i.bf16 %v890_v45, %v889_v44  ;;  %v4526_v22 = vpack.i.bf16 %v1024_v60, %v1023_v28 }
 0x116   : > { %4477 = vrot.lane.b32.xlu1 %v4476_v54, %s5077_s30  ;;  %4502 = vrot.lane.b32.xlu0 %v4501_v8, %s5075_s20  ;;  %v956_v54 = vmul.f32 %v5914_v47, %v5751_v7  ;;  %v1093_v8 = vmul.f32 %v5824_v18, %v5774_v27  ;;  %v2827_v48 = vmax.f32 %v2823_v35, 0.0  ;;  %v1160_v38 = vmul.f32 %v1151_v5, %v5751_v7 }
 0x117   : > { %v1025_v37 = vmul.f32 %v5766_v58, %v5774_v27  ;;  %v1026_v2 = vmul.f32 %v5770_v19, %v5776_v62  ;;  %v5937_v29 = vsel %vm697_vm7, %v5794_v42, %v5796_v46  ;;  %v1091_v58 = vmul.f32 0.0, %v5794_v42  ;;  %v5965_v28 = vpop.permute.xlu1 %1211 }
 0x118   : > { %v4516_v21 = vpack.i.bf16 %v956_v54, %v955_v1  ;;  %v4541_v18 = vpack.i.bf16 %v1094_v49, %v1093_v8  ;;  %v5939_v31 = vmin.f32 %v2827_v48, 6.0  ;;  %v4546_v50 = vpack.i.bf16 %v1160_v38, %v1159_v32 }
 0x119   : > { %v1092_v19 = vmul.f32 %v5937_v29, %v5751_v7  ;;  %v1163_v15 = vmul.f32 %v5866_v23, %v5553_v16  ;;  %v1161_v46 = vmul.f32 %v1152_v0, %v5774_v27  ;;  %v1198_v42 = vrot.slane %v5486_v33, %v5289_v11 }
 0x11a   : > { %4492 = vrot.lane.b32.xlu1 %v4491_v10, %s5076_s27  ;;  %4507 = vrot.lane.b32.xlu0 %v4506_v61, %s5074_s26  ;;  %v4531_v10 = vpack.i.bf16 %v1026_v2, %v1025_v37  ;;  %v3059_v43 = vmul.f32 %v5939_v31, %v1151_v5  ;;  %v1162_v61 = vmul.f32 %v1153_v20, %v5776_v62 }
 0x11b   : > { %v4536_v39 = vpack.i.bf16 %v1092_v19, %v1091_v58  ;;  %v1202_v45 = vrot.slane %v5507_v34, %v5289_v11  ;;  %v1206_v0 = vrot.slane %v5502_v6, %v5289_v11 }
 0x11c   : > { %v4556_v63 = vpack.i.bf16 %v3059_v43, %v1163_v15  ;;  %v4551_v44 = vpack.i.bf16 %v1162_v61, %v1161_v46 }
 0x11e   : > { %4497 = vrot.lane.b32.xlu1 %v4496_v57, %s5075_s20  ;;  %4522 = vrot.lane.b32.xlu0 %v4521_v59, %s5073_s24 }
 0x122   : > { %4512 = vrot.lane.b32.xlu1 %v4511_v4, %s5074_s26  ;;  %4527 = vrot.lane.b32.xlu0 %v4526_v22, %s5072_s23 }
 0x126   : > { %4517 = vrot.lane.b32.xlu1 %v4516_v21, %s5073_s24  ;;  %4542 = vrot.lane.b32.xlu0 %v4541_v18, %s7593_s25 }
 0x12a   : > { %4532 = vrot.lane.b32.xlu1 %v4531_v10, %s5072_s23  ;;  %4547 = vrot.lane.b32.xlu0 %v4546_v50, %s7594_s16 }
 0x12e   : > { %4537 = vrot.lane.b32.xlu1 %v4536_v39, %s7593_s25  ;;  %4557 = vrot.lane.b32.xlu0 %v4556_v63, %s7594_s16 }
 0x132   : > { %4552 = vrot.lane.b32.xlu1 %v4551_v44, %s7594_s16  ;;  %1213 = vrot.lane.b32.xlu0 %v1198_v42, %s7483_s14 }
 0x136   : > { %1215 = vrot.lane.b32.xlu1 %v1202_v45, %s7483_s14  ;;  %1217 = vrot.lane.b32.xlu0 %v1206_v0, %s7483_s14  ;;  %s7501_s14 = smov 121  }
 0x148   : > { %v626_v20 = vpop.permute.xlu0 %625 }
 0x150   : > { %v696_v57 = vpop.permute.xlu1 %695 }
 0x158   : > { %v766_v60 = vpop.permute.xlu0 %765 }
 0x160   : > { %v836_v35 = vpop.permute.xlu1 %835 }
 0x168   : > { %v5967_v59 = vpop.permute.xlu0 %905 }
 0x170   : > { %v5971_v5 = vpop.permute.xlu1 %973 }
 0x178   : > { %v5969_v1 = vpop.permute.xlu0 %1041 }
 0x17c   : > { %v5973_v4 = vpop.permute.xlu0 %4467 }
 0x17d   : > { %7595 = vst [vmem:[#allocation42_spill] sm:$0xff] %v5973_v4  ;;  %v4470_v2 = vunpack.i.h.bf16 %v5973_v4  ;;  %v7481_v21 = vunpack.i.l.bf16 %v5973_v4 }
 0x17f   : > { %v628_v42 = vsel %vm627_vm8, %v7481_v21, %v4470_v2 }
 0x180   : > { %v5975_v54 = vpop.permute.xlu1 %1109  ;;  %v4483_v8 = vpop.permute.xlu0 %4482 }
 0x181   : > { %v4485_v22 = vunpack.i.h.bf16 %v4483_v8  ;;  %v4484_v49 = vunpack.i.l.bf16 %v4483_v8 }
 0x183   : > { %v701_v50 = vsel %vm697_vm7, %v4485_v22, %v696_v57  ;;  %v700_v58 = vsel %vm697_vm7, %v4484_v49, %v4485_v22 }
 0x184   : > { %v4473_v48 = vpop.permute.xlu1 %4472  ;;  %v5977_v32 = vpop.permute.xlu0 %4487 }
 0x185   : > { %7596 = vst [vmem:[#allocation43_spill] sm:$0xff] %v5977_v32  ;;  %v4475_v38 = vunpack.i.h.bf16 %v4473_v48  ;;  %v4474_v37 = vunpack.i.l.bf16 %v4473_v48 }
 0x187   : > { %v631_v18 = vsel %vm627_vm8, %v4475_v38, %v626_v20  ;;  %v630_v10 = vsel %vm627_vm8, %v4474_v37, %v4475_v38  ;;  %v629_v63 = vsel %vm627_vm8, %v4470_v2, %v4474_v37  ;;  %v7479_v2 = vunpack.i.l.bf16 %v5977_v32 }
 0x188   : > { %v5985_v19 = vpop.permute.xlu1 %4477  ;;  %v4503_v43 = vpop.permute.xlu0 %4502  ;;  %v4233_v15 = vpack.c.bf16 %v701_v50, %v631_v18  ;;  %v4235_v46 = vpack.c.bf16 %v700_v58, %v630_v10  ;;  %v4490_v18 = vunpack.i.h.bf16 %v5977_v32 }
 0x189   : > { %7597 = vst [vmem:[#allocation44_spill] sm:$0xff] %v5985_v19  ;;  %v4480_v61 = vunpack.i.h.bf16 %v5985_v19  ;;  %v7482_v39 = vunpack.i.l.bf16 %v5985_v19  ;;  %v4505_v44 = vunpack.i.h.bf16 %v4503_v43  ;;  %v4504_v45 = vunpack.i.l.bf16 %v4503_v43 }
 0x18a   : > { %4234 = vmatprep.subr.bf16.mxu1 %v4233_v15 }
 0x18b   : > { %4236 = vmatpush1.bf16.msra.mxu1 %v4235_v46  ;;  %v699_v0 = vsel %vm697_vm7, %v4480_v61, %v4484_v49  ;;  %v698_v20 = vsel %vm697_vm7, %v7482_v39, %v4480_v61  ;;  %v841_v49 = vsel %vm837_vm5, %v4505_v44, %v836_v35  ;;  %v840_v58 = vsel %vm837_vm5, %v4504_v45, %v4505_v44 }
 0x18c   : > { %v4493_v57 = vpop.permute.xlu1 %4492  ;;  %v5997_v8 = vpop.permute.xlu0 %4507  ;;  %v4181_v22 = vpack.c.bf16 %v699_v0, %v629_v63  ;;  %v4183_v48 = vpack.c.bf16 %v698_v20, %v628_v42 }
 0x18d   : > { %7598 = vst [vmem:[#allocation45_spill] sm:$0xff] %v5997_v8  ;;  %v4495_v38 = vunpack.i.h.bf16 %v4493_v57  ;;  %v4494_v37 = vunpack.i.l.bf16 %v4493_v57 }
 0x18e   : > { %4182 = vmatprep.subr.bf16.mxu0 %v4181_v22 }
 0x18f   : > { %4184 = vmatpush1.bf16.msra.mxu0 %v4183_v48  ;;  %v771_v50 = vsel %vm767_vm6, %v4495_v38, %v766_v60  ;;  %v770_v10 = vsel %vm767_vm6, %v4494_v37, %v4495_v38  ;;  %v769_v0 = vsel %vm767_vm6, %v4490_v18, %v4494_v37  ;;  %v768_v60 = vsel %vm767_vm6, %v7479_v2, %v4490_v18 }
 0x190   : > { %v6005_v43 = vpop.permute.xlu1 %4497  ;;  %v4523_v15 = vpop.permute.xlu0 %4522  ;;  %v4237_v46 = vpack.c.bf16 %v841_v49, %v771_v50  ;;  %v4239_v61 = vpack.c.bf16 %v840_v58, %v770_v10  ;;  %v4510_v10 = vunpack.i.h.bf16 %v5997_v8  ;;  %v7477_v18 = vunpack.i.l.bf16 %v5997_v8 }
 0x191   : > { %7599 = vst [vmem:[#allocation46_spill] sm:$0xff] %v6005_v43  ;;  %v4500_v63 = vunpack.i.h.bf16 %v6005_v43  ;;  %v7480_v42 = vunpack.i.l.bf16 %v6005_v43  ;;  %v4525_v35 = vunpack.i.h.bf16 %v4523_v15  ;;  %v4524_v20 = vunpack.i.l.bf16 %v4523_v15 }
 0x192   : > { %4238 = vmatprep.subr.bf16.mxu1 %v4237_v46 }
 0x193   : > { %4240 = vmatpush1.bf16.msra.mxu1 %v4239_v61  ;;  %v839_v44 = vsel %vm837_vm5, %v4500_v63, %v4504_v45  ;;  %v838_v57 = vsel %vm837_vm5, %v7480_v42, %v4500_v63  ;;  %v978_v58 = vsel %vm808_vm3, %v4525_v35, %v5971_v5  ;;  %v977_v46 = vsel %vm808_vm3, %v4524_v20, %v4525_v35 }
 0x194   : > { %v4513_v22 = vpop.permute.xlu1 %4512  ;;  %v6017_v48 = vpop.permute.xlu0 %4527  ;;  %v4185_v38 = vpack.c.bf16 %v839_v44, %v769_v0  ;;  %v4187_v50 = vpack.c.bf16 %v838_v57, %v768_v60 }
 0x195   : > { %7600 = vst [vmem:[#allocation47_spill] sm:$0xff] %v6017_v48  ;;  %v4515_v49 = vunpack.i.h.bf16 %v4513_v22  ;;  %v4514_v37 = vunpack.i.l.bf16 %v4513_v22 }
 0x196   : > { %4186 = vmatprep.subr.bf16.mxu0 %v4185_v38 }
 0x197   : > { %4188 = vmatpush1.bf16.msra.mxu0 %v4187_v50  ;;  %v910_v45 = vsel %vm878_vm4, %v4515_v49, %v5967_v59  ;;  %v909_v15 = vsel %vm878_vm4, %v4514_v37, %v4515_v49  ;;  %v908_v22 = vsel %vm878_vm4, %v4510_v10, %v4514_v37  ;;  %v907_v59 = vsel %vm878_vm4, %v7477_v18, %v4510_v10 }
 0x198   : > { %v6027_v61 = vpop.permute.xlu1 %4517  ;;  %v4543_v63 = vpop.permute.xlu0 %4542  ;;  %v4241_v0 = vpack.c.bf16 %v978_v58, %v910_v45  ;;  %v4243_v60 = vpack.c.bf16 %v977_v46, %v909_v15  ;;  %v7474_v10 = vunpack.i.l.bf16 %v6017_v48 }
 0x199   : > { %7601 = vst [vmem:[#allocation48_spill] sm:$0xff] %v6027_v61  ;;  %v4520_v44 = vunpack.i.h.bf16 %v6027_v61  ;;  %v7478_v57 = vunpack.i.l.bf16 %v6027_v61  ;;  %v4545_v5 = vunpack.i.h.bf16 %v4543_v63  ;;  %v4544_v38 = vunpack.i.l.bf16 %v4543_v63 }
 0x19a   : > { %4242 = vmatprep.subr.bf16.mxu1 %v4241_v0  ;;  %v4530_v0 = vunpack.i.h.bf16 %v6017_v48 }
 0x19b   : > { %4244 = vmatpush1.bf16.msra.mxu1 %v4243_v60  ;;  %v976_v35 = vsel %vm808_vm3, %v4520_v44, %v4524_v20  ;;  %v975_v50 = vsel %vm808_vm3, %v7478_v57, %v4520_v44  ;;  %v1114_v63 = vsel %vm668_vm1, %v4545_v5, %v5975_v54  ;;  %v1113_v44 = vsel %vm668_vm1, %v4544_v38, %v4545_v5 }
 0x19c   : > { %v4533_v49 = vpop.permute.xlu1 %4532  ;;  %v6039_v45 = vpop.permute.xlu0 %4547  ;;  %v4189_v58 = vpack.c.bf16 %v976_v35, %v908_v22  ;;  %v4191_v15 = vpack.c.bf16 %v975_v50, %v907_v59  ;;  %v1043_v5 = vsel %vm738_vm2, %v7474_v10, %v4530_v0 }
 0x19d   : > { %v4535_v46 = vunpack.i.h.bf16 %v4533_v49  ;;  %v4534_v37 = vunpack.i.l.bf16 %v4533_v49 }
 0x19e   : > { %4190 = vmatprep.subr.bf16.mxu0 %v4189_v58 }
 0x19f   : > { %4192 = vmatpush1.bf16.msra.mxu0 %v4191_v15  ;;  %v1046_v20 = vsel %vm738_vm2, %v4535_v46, %v5969_v1  ;;  %v1045_v60 = vsel %vm738_vm2, %v4534_v37, %v4535_v46  ;;  %v1044_v1 = vsel %vm738_vm2, %v4530_v0, %v4534_v37 }
 0x1a0   : > { %v6049_v22 = vpop.permute.xlu1 %4537  ;;  %v6051_v59 = vpop.permute.xlu0 %4557  ;;  %v4245_v35 = vpack.c.bf16 %v1114_v63, %v1046_v20  ;;  %v4247_v50 = vpack.c.bf16 %v1113_v44, %v1045_v60 }
 0x1a1   : > { %7602 = vst [vmem:[#allocation49_spill] sm:$0xff] %v6049_v22  ;;  %7603 = vst [vmem:[#allocation50_spill] sm:$0xff] %v6051_v59  ;;  %v4540_v49 = vunpack.i.h.bf16 %v6049_v22  ;;  %v7475_v58 = vunpack.i.l.bf16 %v6049_v22 }
 0x1a2   : > { %4246 = vmatprep.subr.bf16.mxu1 %v4245_v35  ;;  %v1228_v35 = vmul.f32 0.0, %v5965_v28 }
 0x1a3   : > { %4248 = vmatpush1.bf16.msra.mxu1 %v4247_v50  ;;  %v1112_v54 = vsel %vm668_vm1, %v4540_v49, %v4544_v38  ;;  %v1111_v15 = vsel %vm668_vm1, %v7475_v58, %v4540_v49 }
 0x1a4   : > { %v4553_v46 = vpop.permute.xlu1 %4552  ;;  %v1214_v20 = vpop.permute.xlu0 %1213  ;;  %v4193_v63 = vpack.c.bf16 %v1112_v54, %v1044_v1  ;;  %v4195_v60 = vpack.c.bf16 %v1111_v15, %v1043_v5 }
 0x1a5   : > { %v1220_v44 = vsel %vm7505_vm9, %v5965_v28, %v1214_v20 }
 0x1a6   : > { %v1229_v37 = vmul.f32 %v1220_v44, %v5751_v7  ;;  %4194 = vmatprep.subr.bf16.mxu0 %v4193_v63  ;;  %v3087_v10 = vmul.f32 %v5939_v31, %v1220_v44 }
 0x1a7   : > { %4196 = vmatpush1.bf16.msra.mxu0 %v4195_v60 }
 0x1a8   : > { %v1216_v38 = vpop.permute.xlu1 %1215  ;;  %v6067_v50 = vpop.permute.xlu0 %1217  ;;  %v4561_v0 = vpack.i.bf16 %v1229_v37, %v1228_v35  ;;  %v1268_v35 = vrot.slane %v5486_v33, %v5304_v14  ;;  %v1264_v37 = vrot.slane %v5491_v3, %v5304_v14  ;;  %v4550_v33 = vunpack.i.h.bf16 %v6039_v45 }
 0x1a9   : > { %v1221_v49 = vsel %vm7505_vm9, %v1214_v20, %v1216_v38  ;;  %v1222_v1 = vsel %vm7505_vm9, %v1216_v38, %v6067_v50  ;;  %v1232_v54 = vmul.f32 %v6067_v50, %v5553_v16  ;;  %v1272_v38 = vrot.slane %v5507_v34, %v5304_v14 }
 0x1aa   : > { %v1230_v28 = vmul.f32 %v1221_v49, %v5774_v27  ;;  %v6077_v5 = vmul.f32 %v5551_v13, %v1221_v49  ;;  %v6080_v15 = vmul.f32 %v5549_v12, %v1222_v1  ;;  %4562 = vrot.lane.b32.xlu1 %v4561_v0, %s5080_s18  ;;  %v1231_v63 = vmul.f32 %v1222_v1, %v5776_v62 }
 0x1ab   : > { %v4571_v20 = vpack.i.bf16 %v3087_v10, %v1232_v54  ;;  %v1276_v10 = vrot.slane %v5502_v6, %v5304_v14  ;;  %v4549_v0 = vunpack.i.l.bf16 %v6039_v45  ;;  %v7476_v3 = vunpack.i.h.bf16 %v6051_v59 }
 0x1ac   : > { %v4566_v60 = vpack.i.bf16 %v1231_v63, %v1230_v28  ;;  %v4555_v1 = vunpack.i.h.bf16 %v4553_v46  ;;  %v4554_v54 = vunpack.i.l.bf16 %v4553_v46  ;;  %v4559_v6 = vunpack.i.l.bf16 %v6051_v59 }
 0x1ad   : > { %v6107_v34 = vsel %vm598_vm0, %v4549_v0, %v7476_v3  ;;  %v1179_v45 = vsel %vm598_vm0, %v4549_v0, %v4550_v33  ;;  %vm7545_vm9 = vcmask 7168  }
 0x1ae   : > { %4572 = vrot.lane.b32.xlu1 %v4571_v20, %s5080_s18  ;;  %4567 = vrot.lane.b32.xlu0 %v4566_v60, %s5080_s18  ;;  %7604 = vst [vmem:[#allocation51_spill] sm:$0xff] %v6107_v34  ;;  %v1181_v3 = vsel %vm598_vm0, %v4554_v54, %v4555_v1 }
 0x1b2   : > { %1283 = vrot.lane.b32.xlu1 %v1268_v35, %s7485_s28  ;;  %1281 = vrot.lane.b32.xlu0 %v1264_v37, %s7485_s28 }
 0x1b6   : > { %1287 = vrot.lane.b32.xlu1 %v1276_v10, %s7485_s28  ;;  %1285 = vrot.lane.b32.xlu0 %v1272_v38, %s7485_s28  ;;  %v1180_v38 = vsel %vm598_vm0, %v4550_v33, %v4554_v54  ;;  %s7543_s28 = smov 7  }
 0x21c   : > { %v4563_v49 = vpop.permute.xlu1 %4562 }
 0x21d   : > { %v4565_v28 = vunpack.i.h.bf16 %v4563_v49  ;;  %v4564_v63 = vunpack.i.l.bf16 %v4563_v49  ;;  %v1182_v49 = vsel %vm598_vm0, %v4555_v1, %v4559_v6 }
 0x21f   : > { %v1249_v58 = vsel %vm1248_vm10, %v4564_v63, %v4565_v28 }
 0x220   : > { %v6109_v20 = vpop.permute.xlu1 %4572  ;;  %v4568_v60 = vpop.permute.xlu0 %4567  ;;  %v4199_v44 = vpack.c.bf16 %v1249_v58, %v1179_v45 }
 0x221   : > { %7605 = vst [vmem:[#allocation52_spill] sm:$0xff] %v6109_v20  ;;  %v7487_v35 = vunpack.i.h.bf16 %v6109_v20  ;;  %v4574_v46 = vunpack.i.l.bf16 %v6109_v20  ;;  %v4570_v37 = vunpack.i.h.bf16 %v4568_v60  ;;  %v4569_v10 = vunpack.i.l.bf16 %v4568_v60 }
 0x223   : > { %v6121_v18 = vsel %vm1248_vm10, %v4564_v63, %v7487_v35  ;;  %v1250_v0 = vsel %vm1248_vm10, %v4565_v28, %v4569_v10  ;;  %v1252_v57 = vsel %vm1248_vm10, %v4570_v37, %v4574_v46  ;;  %v1251_v2 = vsel %vm1248_vm10, %v4569_v10, %v4570_v37 }
 0x224   : > { %7606 = vst [vmem:[#allocation53_spill] sm:$0xff] %v6121_v18  ;;  %v1284_v60 = vpop.permute.xlu1 %1283  ;;  %v1282_v42 = vpop.permute.xlu0 %1281  ;;  %v4197_v33 = vpack.c.bf16 %v1250_v0, %v1180_v38  ;;  %v4249_v21 = vpack.c.bf16 %v1252_v57, %v1182_v49  ;;  %v4251_v6 = vpack.c.bf16 %v1251_v2, %v1181_v3  ;;  %v6154_v0 = vld [vmem:[%s7427_s0 + $0x28] sm:$0xff] }
 0x225   : > { %v1290_v1 = vsel %vm1289_vm11, %v1282_v42, %v1284_v60  ;;  %v1298_v54 = vmul.f32 0.0, %v1282_v42 }
 0x226   : > { %v1299_v63 = vmul.f32 %v1290_v1, %v5751_v7  ;;  %4198 = vmatprep.subr.bf16.mxu0 %v4197_v33  ;;  %4250 = vmatprep.subr.bf16.mxu1 %v4249_v21  ;;  %v3115_v57 = vmul.f32 %v5939_v31, %v1290_v1  ;;  %v6161_v33 = vld [vmem:[%s7427_s0 + $0x20] sm:$0xff]  ;;  %v6170_v1 = vld [vmem:[%s7427_s0 + $0x38] sm:$0xff] }
 0x227   : > { %4200 = vmatpush1.bf16.msra.mxu0 %v4199_v44  ;;  %4252 = vmatpush1.bf16.msra.mxu1 %v4251_v6  ;;  %v1334_v6 = vrot.slane %v6161_v33, %v5378_v9 }
 0x228   : > { %v6130_v28 = vpop.permute.xlu1 %1287  ;;  %v1286_v46 = vpop.permute.xlu0 %1285  ;;  %v4576_v37 = vpack.i.bf16 %v1299_v63, %v1298_v54  ;;  %v1346_v54 = vrot.slane %v6170_v1, %v5378_v9  ;;  %v6177_v63 = vld [vmem:[%s7427_s0 + $0x30] sm:$0xff] }
 0x229   : > { %v1302_v2 = vmul.f32 %v6130_v28, %v5553_v16  ;;  %v1291_v3 = vsel %vm1289_vm11, %v1284_v60, %v1286_v46  ;;  %v1292_v42 = vsel %vm1289_vm11, %v1286_v46, %v6130_v28  ;;  %v1338_v60 = vrot.slane %v6154_v0, %v5378_v9 }
 0x22a   : > { %v1301_v58 = vmul.f32 %v1292_v42, %v5776_v62  ;;  %v6140_v21 = vmul.f32 %v5551_v13, %v1291_v3  ;;  %v6143_v44 = vmul.f32 %v5549_v12, %v1292_v42  ;;  %v1300_v45 = vmul.f32 %v1291_v3, %v5774_v27  ;;  %4577 = vrot.lane.b32.xlu0 %v4576_v37, %s5082_s15 }
 0x22b   : > { %v4586_v10 = vpack.i.bf16 %v3115_v57, %v1302_v2  ;;  %v1342_v46 = vrot.slane %v6177_v63, %v5378_v9 }
 0x22c   : > { %v4581_v49 = vpack.i.bf16 %v1301_v58, %v1300_v45 }
 0x22e   : > { %4587 = vrot.lane.b32.xlu0 %v4586_v10, %s5082_s15  ;;  %4582 = vrot.lane.b32.xlu1 %v4581_v49, %s5082_s15 }
 0x232   : > { %1353 = vrot.lane.b32.xlu0 %v1338_v60, %s7501_s14  ;;  %1351 = vrot.lane.b32.xlu1 %v1334_v6, %s7501_s14 }
 0x236   : > { %1357 = vrot.lane.b32.xlu0 %v1346_v54, %s7501_s14  ;;  %1355 = vrot.lane.b32.xlu1 %v1342_v46, %s7501_s14  ;;  %s7624_s14 = smov 127  }
 0x29c   : > { %v6183_v37 = vpop.permute.xlu0 %4577 }
 0x2a0   : > { %v4583_v57 = vpop.permute.xlu1 %4582  ;;  %v6185_v2 = vpop.permute.xlu0 %4587 }
 0x2a1   : > { %7607 = vst [vmem:[#allocation54_spill] sm:$0xff] %v6185_v2 }
 0x2a4   : > { %v1352_v3 = vpop.permute.xlu1 %1351  ;;  %v1354_v42 = vpop.permute.xlu0 %1353 }
 0x2a5   : > { %v1368_v58 = vmul.f32 0.0, %v1352_v3  ;;  %v1360_v45 = vsel %vm7554_vm12, %v1352_v3, %v1354_v42 }
 0x2a6   : > { %v1369_v10 = vmul.f32 %v1360_v45, %v5751_v7  ;;  %v3143_v54 = vmul.f32 %v5939_v31, %v1360_v45 }
 0x2a8   : > { %v1356_v49 = vpop.permute.xlu1 %1355  ;;  %v6189_v60 = vpop.permute.xlu0 %1357  ;;  %v4591_v6 = vpack.i.bf16 %v1369_v10, %v1368_v58 }
 0x2a9   : > { %v1361_v46 = vsel %vm7554_vm12, %v1354_v42, %v1356_v49  ;;  %v1362_v39 = vsel %vm7554_vm12, %v1356_v49, %v6189_v60  ;;  %v1372_v35 = vmul.f32 %v6189_v60, %v5553_v16  ;;  %v1408_v49 = vrot.slane %v6154_v0, %v5415_v51 }
 0x2aa   : > { %v1370_v38 = vmul.f32 %v1361_v46, %v5774_v27  ;;  %v6199_v3 = vmul.f32 %v5551_v13, %v1361_v46  ;;  %v6202_v26 = vmul.f32 %v5549_v12, %v1362_v39  ;;  %4592 = vrot.lane.b32.xlu1 %v4591_v6, %s7543_s28  ;;  %v1371_v58 = vmul.f32 %v1362_v39, %v5776_v62 }
 0x2ab   : > { %v4601_v42 = vpack.i.bf16 %v3143_v54, %v1372_v35  ;;  %v1404_v46 = vrot.slane %v6161_v33, %v5415_v51  ;;  %v1416_v39 = vrot.slane %v6170_v1, %v5415_v51  ;;  %v1412_v35 = vrot.slane %v6177_v63, %v5415_v51 }
 0x2ac   : > { %7608 = vst [vmem:[#allocation55_spill] sm:$0xff] %v6199_v3  ;;  %v4596_v45 = vpack.i.bf16 %v1371_v58, %v1370_v38  ;;  %v4580_v38 = vunpack.i.h.bf16 %v6183_v37  ;;  %v4579_v6 = vunpack.i.l.bf16 %v6183_v37  ;;  %v4585_v58 = vunpack.i.h.bf16 %v4583_v57 }
 0x2ae   : > { %4602 = vrot.lane.b32.xlu1 %v4601_v42, %s7543_s28  ;;  %4597 = vrot.lane.b32.xlu0 %v4596_v45, %s7543_s28  ;;  %v4584_v42 = vunpack.i.l.bf16 %v4583_v57  ;;  %v4589_v45 = vunpack.i.l.bf16 %v6185_v2 }
 0x2b0   : > { %v1320_v57 = vsel %vm1318_vm13, %v4580_v38, %v4584_v42  ;;  %v1322_v48 = vsel %vm1318_vm13, %v4585_v58, %v4589_v45  ;;  %v1321_v8 = vsel %vm1318_vm13, %v4584_v42, %v4585_v58 }
 0x2b2   : > { %1423 = vrot.lane.b32.xlu1 %v1408_v49, %s7503_s22  ;;  %1421 = vrot.lane.b32.xlu0 %v1404_v46, %s7503_s22 }
 0x2b6   : > { %1427 = vrot.lane.b32.xlu1 %v1416_v39, %s7503_s22  ;;  %1425 = vrot.lane.b32.xlu0 %v1412_v35, %s7503_s22  ;;  %v1319_v35 = vsel %vm1318_vm13, %v4579_v6, %v4580_v38  ;;  %s7630_s22 = smov 120  }
 0x31c   : > { %v4593_v54 = vpop.permute.xlu1 %4592 }
 0x31d   : > { %v4595_v49 = vunpack.i.h.bf16 %v4593_v54  ;;  %v4594_v46 = vunpack.i.l.bf16 %v4593_v54 }
 0x31f   : > { %v1389_v54 = vsel %vm1388_vm14, %v4594_v46, %v4595_v49 }
 0x320   : > { %v6226_v34 = vpop.permute.xlu1 %4602  ;;  %v4598_v39 = vpop.permute.xlu0 %4597 }
 0x321   : > { %7609 = vst [vmem:[#allocation56_spill] sm:$0xff] %v6226_v34  ;;  %v7506_v18 = vunpack.i.h.bf16 %v6226_v34  ;;  %v4604_v37 = vunpack.i.l.bf16 %v6226_v34  ;;  %v4600_v20 = vunpack.i.h.bf16 %v4598_v39  ;;  %v4599_v59 = vunpack.i.l.bf16 %v4598_v39 }
 0x323   : > { %v1390_v10 = vsel %vm1388_vm14, %v4595_v49, %v4599_v59  ;;  %v1392_v22 = vsel %vm1388_vm14, %v4600_v20, %v4604_v37  ;;  %v1391_v61 = vsel %vm1388_vm14, %v4599_v59, %v4600_v20  ;;  %v6241_v32 = vsel %vm1388_vm14, %v4594_v46, %v7506_v18  ;;  %v7622_v18 = vld [vmem:[#allocation16_spill] sm:$0xff] }
 0x324   : > { %7610 = vst [vmem:[#allocation57_spill] sm:$0xff] %v6241_v32  ;;  %v1424_v39 = vpop.permute.xlu1 %1423  ;;  %v1422_v43 = vpop.permute.xlu0 %1421  ;;  %v4201_v38 = vpack.c.bf16 %v1390_v10, %v1320_v57  ;;  %v4253_v4 = vpack.c.bf16 %v1392_v22, %v1322_v48  ;;  %v4255_v45 = vpack.c.bf16 %v1391_v61, %v1321_v8  ;;  %v4203_v49 = vpack.c.bf16 %v1389_v54, %v1319_v35 }
 0x325   : > { %v1430_v19 = vsel %vm7555_vm15, %v1422_v43, %v1424_v39  ;;  %v1438_v3 = vmul.f32 0.0, %v1422_v43  ;;  %v7611_v37 = vunpack.i.h.bf16 %v6185_v2  ;;  %v1502_v54 = vrot.slane %v6154_v0, %v5454_v17 }
 0x326   : > { %v1439_v59 = vmul.f32 %v1430_v19, %v5751_v7  ;;  %4202 = vmatprep.subr.bf16.mxu0 %v4201_v38  ;;  %4254 = vmatprep.subr.bf16.mxu1 %v4253_v4  ;;  %v3171_v43 = vmul.f32 %v5939_v31, %v1430_v19  ;;  %v1510_v38 = vrot.slane %v6170_v1, %v5454_v17  ;;  %v2830_v35 = vmax.f32 %v7622_v18, 0.0 }
 0x327   : > { %v6247_v58 = vsel %vm1318_vm13, %v4579_v6, %v7611_v37  ;;  %4204 = vmatpush1.bf16.msra.mxu0 %v4203_v49  ;;  %4256 = vmatpush1.bf16.msra.mxu1 %v4255_v45  ;;  %v1506_v45 = vrot.slane %v6177_v63, %v5454_v17  ;;  %v7614_v49 = vld [vmem:[#allocation18_spill] sm:$0xff] }
 0x328   : > { %7612 = vst [vmem:[#allocation58_spill] sm:$0xff] %v6247_v58  ;;  %v6252_v48 = vpop.permute.xlu1 %1427  ;;  %v1426_v8 = vpop.permute.xlu0 %1425  ;;  %v4606_v61 = vpack.i.bf16 %v1439_v59, %v1438_v3  ;;  %v1566_v37 = vrot.slane %v6161_v33, %v7614_v49  ;;  %v1574_v59 = vrot.slane %v6177_v63, %v7614_v49 }
 0x329   : > { %v1442_v22 = vmul.f32 %v6252_v48, %v5553_v16  ;;  %v1431_v10 = vsel %vm7555_vm15, %v1424_v39, %v1426_v8  ;;  %v1432_v6 = vsel %vm7555_vm15, %v1426_v8, %v6252_v48  ;;  %v1498_v39 = vrot.slane %v6161_v33, %v5454_v17  ;;  %v496_v8 = vld [vmem:[%s7427_s0 + $0x40] sm:$0xff] }
 0x32a   : > { %v1441_v4 = vmul.f32 %v1432_v6, %v5776_v62  ;;  %v6262_v42 = vmul.f32 %v5551_v13, %v1431_v10  ;;  %v6265_v46 = vmul.f32 %v5549_v12, %v1432_v6  ;;  %v1440_v3 = vmul.f32 %v1431_v10, %v5774_v27  ;;  %4607 = vrot.lane.b32.xlu0 %v4606_v61, %s7516_s29  ;;  %v7615_v61 = vld [vmem:[#allocation15_spill] sm:$0xff] }
 0x32b   : > { %v4616_v19 = vpack.i.bf16 %v3171_v43, %v1442_v22  ;;  %v1634_v43 = vrot.slane %v496_v8, %v7615_v61  ;;  %v498_v22 = vld [vmem:[%s7427_s0 + $0x50] sm:$0xff]  ;;  %v1702_v6 = vrot.slane %v496_v8, %v5289_v11 }
 0x32c   : > { %7613 = vst [vmem:[#allocation59_spill] sm:$0xff] %v6262_v42  ;;  %v4611_v57 = vpack.i.bf16 %v1441_v4, %v1440_v3  ;;  %v1642_v10 = vrot.slane %v498_v22, %v7615_v61  ;;  %v1710_v4 = vrot.slane %v498_v22, %v5289_v11  ;;  %v1770_v3 = vrot.slane %v496_v8, %v5304_v14 }
 0x32e   : > { %4617 = vrot.lane.b32.xlu0 %v4616_v19, %s7516_s29  ;;  %4612 = vrot.lane.b32.xlu1 %v4611_v57, %s7516_s29  ;;  %v1778_v19 = vrot.slane %v498_v22, %v5304_v14  ;;  %v1838_v57 = vrot.slane %v496_v8, %v5378_v9 }
 0x332   : > { %1517 = vrot.lane.b32.xlu0 %v1502_v54, %s7516_s29  ;;  %1515 = vrot.lane.b32.xlu1 %v1498_v39, %s7516_s29  ;;  %v1846_v54 = vrot.slane %v498_v22, %v5378_v9  ;;  %v1906_v39 = vrot.slane %v496_v8, %v5415_v51 }
 0x336   : > { %1521 = vrot.lane.b32.xlu0 %v1510_v38, %s7516_s29  ;;  %1519 = vrot.lane.b32.xlu1 %v1506_v45, %s7516_s29  ;;  %v1914_v38 = vrot.slane %v498_v22, %v5415_v51  ;;  %v7616_v45 = vld [vmem:[#allocation17_spill] sm:$0xff]  ;;  %s7629_s29 = smov 121  }
 0x33a   : > { %1583 = vrot.lane.b32.xlu0 %v1566_v37, %s7543_s28  ;;  %v1974_v37 = vrot.slane %v496_v8, %v7616_v45 }
 0x33e   : > { %1587 = vrot.lane.b32.xlu0 %v1574_v59, %s7543_s28  ;;  %v1982_v59 = vrot.slane %v498_v22, %v7616_v45 }
 0x342   : > { %1651 = vrot.lane.b32.xlu0 %v1634_v43, %s5082_s15  ;;  %v2042_v43 = vrot.slane %v496_v8, %v5454_v17 }
 0x346   : > { %1655 = vrot.lane.b32.xlu0 %v1642_v10, %s5082_s15  ;;  %v2050_v10 = vrot.slane %v498_v22, %v5454_v17 }
 0x34a   : > { %1719 = vrot.lane.b32.xlu0 %v1702_v6, %s5080_s18  ;;  %v2110_v6 = vrot.slane %v496_v8, %v7614_v49 }
 0x34e   : > { %1723 = vrot.lane.b32.xlu0 %v1710_v4, %s5080_s18  ;;  %v2118_v4 = vrot.slane %v498_v22, %v7614_v49 }
 0x352   : > { %1787 = vrot.lane.b32.xlu0 %v1770_v3, %s7594_s16  ;;  %v500_v3 = vld [vmem:[%s7427_s0 + $0x60] sm:$0x7] }
 0x353   : > { %v2246_v22 = vrot.slane %v500_v3, %v5289_v11 }
 0x356   : > { %1791 = vrot.lane.b32.xlu0 %v1778_v19, %s7594_s16  ;;  %v2178_v19 = vrot.slane %v500_v3, %v7615_v61 }
 0x35a   : > { %1855 = vrot.lane.b32.xlu0 %v1838_v57, %s7593_s25  ;;  %v502_v57 = vld [vmem:[%s7427_s0 + $0x70] sm:$0x7] }
 0x35b   : > { %v2186_v8 = vrot.slane %v502_v57, %v7615_v61 }
 0x35e   : > { %1859 = vrot.lane.b32.xlu0 %v1846_v54, %s7593_s25  ;;  %v2254_v54 = vrot.slane %v502_v57, %v5289_v11 }
 0x362   : > { %1923 = vrot.lane.b32.xlu0 %v1906_v39, %s5072_s23  ;;  %v2314_v39 = vrot.slane %v500_v3, %v5304_v14 }
 0x366   : > { %1927 = vrot.lane.b32.xlu0 %v1914_v38, %s5072_s23  ;;  %v2322_v38 = vrot.slane %v502_v57, %v5304_v14 }
 0x36a   : > { %1991 = vrot.lane.b32.xlu0 %v1974_v37, %s5073_s24  ;;  %v1474_v37 = vrot.slane %v6161_v33, %v7616_v45 }
 0x36e   : > { %1995 = vrot.lane.b32.xlu0 %v1982_v59, %s5073_s24 }
 0x372   : > { %2059 = vrot.lane.b32.xlu0 %v2042_v43, %s5074_s26  ;;  %v6351_v43 = vrot.slane %v6154_v0, %v7616_v45 }
 0x374   : > { %7617 = vst [vmem:[#allocation18_spill] sm:$0xff] %v6351_v43 }
 0x376   : > { %2063 = vrot.lane.b32.xlu0 %v2050_v10, %s5074_s26  ;;  %v6355_v10 = vrot.slane %v6170_v1, %v7616_v45 }
 0x378   : > { %7618 = vst [vmem:[#allocation15_spill] sm:$0xff] %v6355_v10 }
 0x37a   : > { %2127 = vrot.lane.b32.xlu0 %v2110_v6, %s5075_s20  ;;  %v6359_v6 = vrot.slane %v6177_v63, %v7616_v45  ;;  %v6371_v63 = vmul.f32 %v5939_v31, %v1474_v37 }
 0x37c   : > { %7619 = vst [vmem:[#allocation17_spill] sm:$0xff] %v6359_v6  ;;  %7621 = vst [vmem:[#allocation61_spill] sm:$0xff] %v6371_v63 }
 0x37e   : > { %2131 = vrot.lane.b32.xlu0 %v2118_v4, %s5075_s20 }
 0x382   : > { %2195 = vrot.lane.b32.xlu0 %v2178_v19, %s5076_s27  ;;  %v1487_v19 = vmul.f32 %v1474_v37, %v5751_v7 }
 0x386   : > { %2199 = vrot.lane.b32.xlu0 %v2186_v8, %s5076_s27  ;;  %v1488_v8 = vmul.f32 %v6351_v43, %v5774_v27 }
 0x38a   : > { %2263 = vrot.lane.b32.xlu0 %v2246_v22, %s5077_s30  ;;  %v1490_v22 = vmul.f32 %v6355_v10, %v5553_v16 }
 0x38e   : > { %2267 = vrot.lane.b32.xlu0 %v2254_v54, %s5077_s30  ;;  %v1489_v54 = vmul.f32 %v6359_v6, %v5776_v62 }
 0x392   : > { %2331 = vrot.lane.b32.xlu0 %v2314_v39, %s5078_s12 }
 0x396   : > { %2335 = vrot.lane.b32.xlu0 %v2322_v38, %s5078_s12 }
 0x39c   : > { %v4608_v59 = vpop.permute.xlu0 %4607 }
 0x39d   : > { %v4610_v4 = vunpack.i.h.bf16 %v4608_v59  ;;  %v4609_v3 = vunpack.i.l.bf16 %v4608_v59 }
 0x39f   : > { %v1459_v58 = vsel %vm7545_vm9, %v4609_v3, %v4610_v4 }
 0x3a0   : > { %v4613_v57 = vpop.permute.xlu1 %4612  ;;  %v6362_v33 = vpop.permute.xlu0 %4617 }
 0x3a1   : > { %7620 = vst [vmem:[#allocation60_spill] sm:$0xff] %v6362_v33  ;;  %v4615_v39 = vunpack.i.h.bf16 %v4613_v57  ;;  %v4614_v38 = vunpack.i.l.bf16 %v4613_v57  ;;  %v7518_v59 = vunpack.i.h.bf16 %v6362_v33  ;;  %v4619_v20 = vunpack.i.l.bf16 %v6362_v33 }
 0x3a3   : > { %v6380_v32 = vsel %vm7545_vm9, %v4609_v3, %v7518_v59  ;;  %v1460_v10 = vsel %vm7545_vm9, %v4610_v4, %v4614_v38  ;;  %v1462_v37 = vsel %vm7545_vm9, %v4615_v39, %v4619_v20  ;;  %v1461_v34 = vsel %vm7545_vm9, %v4614_v38, %v4615_v39 }
 0x3a4   : > { %7623 = vst [vmem:[#allocation16_spill] sm:$0xff] %v6380_v32  ;;  %v6385_v57 = vpop.permute.xlu1 %1515  ;;  %v1518_v43 = vpop.permute.xlu0 %1517  ;;  %v4205_v2 = vpack.c.bf16 %v1488_v8, %v1460_v10  ;;  %v4257_v6 = vpack.c.bf16 %v1490_v22, %v1462_v37  ;;  %v4259_v42 = vpack.c.bf16 %v1489_v54, %v1461_v34  ;;  %v4207_v4 = vpack.c.bf16 %v1487_v19, %v1459_v58  ;;  %v499_v37 = vld [vmem:[%s7427_s0 + $0x58] sm:$0xff] }
 0x3a5   : > { %v1531_v33 = vmul.f32 %v6385_v57, %v5751_v7  ;;  %v6393_v3 = vsel %vm7545_vm9, %v6385_v57, %v1518_v43  ;;  %v6397_v10 = vmin.f32 %v2830_v35, 6.0  ;;  %v1570_v58 = vrot.slane %v6154_v0, %v7614_v49 }
 0x3a6   : > { %v1532_v20 = vmul.f32 %v6393_v3, %v5774_v27  ;;  %4206 = vmatprep.subr.bf16.mxu0 %v4205_v2  ;;  %4258 = vmatprep.subr.bf16.mxu1 %v4257_v6  ;;  %v1578_v0 = vrot.slane %v6170_v1, %v7614_v49 }
 0x3a7   : > { %4208 = vmatpush1.bf16.msra.mxu0 %v4207_v4  ;;  %4260 = vmatpush1.bf16.msra.mxu1 %v4259_v42  ;;  %v1646_v4 = vrot.slane %v499_v37, %v7615_v61 }
 0x3a8   : > { %v1520_v34 = vpop.permute.xlu1 %1519  ;;  %v6399_v8 = vpop.permute.xlu0 %1521  ;;  %v4621_v22 = vpack.i.bf16 %v1532_v20, %v1531_v33  ;;  %v497_v33 = vld [vmem:[%s7427_s0 + $0x48] sm:$0xff]  ;;  %v1714_v20 = vrot.slane %v499_v37, %v5289_v11 }
 0x3a9   : > { %v1524_v54 = vsel %vm7545_vm9, %v1518_v43, %v1520_v34  ;;  %v1525_v39 = vsel %vm7545_vm9, %v1520_v34, %v6399_v8  ;;  %v1638_v38 = vrot.slane %v497_v33, %v7615_v61  ;;  %v1706_v1 = vrot.slane %v497_v33, %v5289_v11 }
 0x3aa   : > { %v1533_v19 = vmul.f32 %v1524_v54, %v5776_v62  ;;  %v6408_v2 = vmul.f32 %v5549_v12, %v1524_v54  ;;  %v6411_v42 = vmul.f32 %v6397_v10, %v1525_v39  ;;  %v1534_v35 = vmul.f32 %v1525_v39, %v5553_v16  ;;  %4622 = vrot.lane.b32.xlu1 %v4621_v22, %s7624_s14 }
 0x3ab   : > { %v1774_v34 = vrot.slane %v497_v33, %v5304_v14  ;;  %v1782_v22 = vrot.slane %v499_v37, %v5304_v14  ;;  %v1842_v54 = vrot.slane %v497_v33, %v5378_v9  ;;  %v1850_v39 = vrot.slane %v499_v37, %v5378_v9 }
 0x3ac   : > { %v4626_v6 = vpack.i.bf16 %v1534_v35, %v1533_v19  ;;  %v1918_v19 = vrot.slane %v499_v37, %v5415_v51  ;;  %v1978_v35 = vrot.slane %v497_v33, %v7616_v45  ;;  %v2046_v9 = vrot.slane %v497_v33, %v5454_v17 }
 0x3ad   : > { %vm2498_vm9 = vcmask 719872  }
 0x3ae   : > { %1585 = vrot.lane.b32.xlu1 %v1570_v58, %s7543_s28  ;;  %4627 = vrot.lane.b32.xlu0 %v4626_v6, %s7624_s14  ;;  %v1910_v58 = vrot.slane %v497_v33, %v5415_v51  ;;  %v1986_v6 = vrot.slane %v499_v37, %v7616_v45  ;;  %v2114_v51 = vrot.slane %v497_v33, %v7614_v49  ;;  %v501_v45 = vld [vmem:[%s7427_s0 + $0x68] sm:$0x7] }
 0x3b2   : > { %1589 = vrot.lane.b32.xlu1 %v1578_v0, %s7543_s28  ;;  %v2054_v0 = vrot.slane %v499_v37, %v5454_v17  ;;  %v503_v17 = vld [vmem:[%s7427_s0 + $0x78] sm:$0x7]  ;;  %s4161_s28 = sld [smem:[#allocation7 + $0x3]] }
 0x3b3   : > { %v2190_v33 = vrot.slane %v503_v17, %v7615_v61 }
 0x3b6   : > { %1653 = vrot.lane.b32.xlu1 %v1638_v38, %s5082_s15  ;;  %v2122_v38 = vrot.slane %v499_v37, %v7614_v49  ;;  %v2250_v49 = vrot.slane %v501_v45, %v5289_v11  ;;  %v2258_v37 = vrot.slane %v503_v17, %v5289_v11 }
 0x3ba   : > { %1657 = vrot.lane.b32.xlu1 %v1646_v4, %s5082_s15  ;;  %v2182_v4 = vrot.slane %v501_v45, %v7615_v61  ;;  %v2326_v61 = vrot.slane %v503_v17, %v5304_v14 }
 0x3be   : > { %1721 = vrot.lane.b32.xlu1 %v1706_v1, %s5080_s18  ;;  %v6467_v1 = vpop.permute.xlu0 %1583 }
 0x3c2   : > { %1725 = vrot.lane.b32.xlu1 %v1714_v20, %s5080_s18  ;;  %v1588_v20 = vpop.permute.xlu0 %1587 }
 0x3c6   : > { %1789 = vrot.lane.b32.xlu1 %v1774_v34, %s7594_s16  ;;  %v6475_v34 = vpop.permute.xlu0 %1651 }
 0x3c7   : > { %7625 = vst [vmem:[#allocation62_spill] sm:$0xff] %v6475_v34 }
 0x3ca   : > { %1793 = vrot.lane.b32.xlu1 %v1782_v22, %s7594_s16  ;;  %v2318_v22 = vrot.slane %v501_v45, %v5304_v14 }
 0x3ce   : > { %1857 = vrot.lane.b32.xlu1 %v1842_v54, %s7593_s25  ;;  %v1656_v54 = vpop.permute.xlu0 %1655 }
 0x3d2   : > { %1861 = vrot.lane.b32.xlu1 %v1850_v39, %s7593_s25  ;;  %v1535_v39 = vmul.f32 0.0, %v6399_v8  ;;  %v6485_v11 = vpop.permute.xlu0 %1719 }
 0x3d3   : > { %7626 = vst [vmem:[#allocation63_spill] sm:$0xff] %v6485_v11 }
 0x3d6   : > { %1925 = vrot.lane.b32.xlu1 %v1910_v58, %s5072_s23  ;;  %v3208_v58 = vmul.f32 %v5551_v13, %v6393_v3 }
 0x3da   : > { %1929 = vrot.lane.b32.xlu1 %v1918_v19, %s5072_s23  ;;  %v4631_v19 = vpack.i.bf16 %v3208_v58, %v1535_v39  ;;  %v1599_v58 = vmul.f32 %v6467_v1, %v5751_v7 }
 0x3de   : > { %1993 = vrot.lane.b32.xlu1 %v1978_v35, %s5073_s24  ;;  %v1724_v35 = vpop.permute.xlu0 %1723 }
 0x3e2   : > { %1997 = vrot.lane.b32.xlu1 %v1986_v6, %s5073_s24  ;;  %v6488_v6 = vpop.permute.xlu0 %1787 }
 0x3e3   : > { %7627 = vst [vmem:[#allocation64_spill] sm:$0xff] %v6488_v6 }
 0x3e6   : > { %2061 = vrot.lane.b32.xlu1 %v2046_v9, %s5074_s26 }
 0x3ea   : > { %2065 = vrot.lane.b32.xlu1 %v2054_v0, %s5074_s26  ;;  %v6492_v0 = vpop.permute.xlu0 %1791 }
 0x3ee   : > { %2129 = vrot.lane.b32.xlu1 %v2114_v51, %s5075_s20  ;;  %v6499_v45 = vpop.permute.xlu0 %1855 }
 0x3ef   : > { %7628 = vst [vmem:[#allocation65_spill] sm:$0xff] %v6499_v45 }
 0x3f2   : > { %2133 = vrot.lane.b32.xlu1 %v2122_v38, %s5075_s20 }
 0x3f6   : > { %2197 = vrot.lane.b32.xlu1 %v2182_v4, %s5076_s27 }
 0x3fa   : > { %2201 = vrot.lane.b32.xlu1 %v2190_v33, %s5076_s27 }
 0x3fe   : > { %2265 = vrot.lane.b32.xlu1 %v2250_v49, %s5077_s30 }
 0x402   : > { %2269 = vrot.lane.b32.xlu1 %v2258_v37, %s5077_s30 }
 0x406   : > { %2333 = vrot.lane.b32.xlu1 %v2318_v22, %s5078_s12 }
 0x40a   : > { %2337 = vrot.lane.b32.xlu1 %v2326_v61, %s5078_s12 }
 0x40e   : > { %4632 = vrot.lane.b32.xlu1 %v4631_v19, %s7624_s14 }
 0x41c   : > { %v6490_v9 = vpop.permute.xlu1 %4622 }
 0x420   : > { %v1586_v14 = vpop.permute.xlu1 %1585 }
 0x421   : > { %v1591_v8 = vsel %vm1388_vm14, %v6467_v1, %v1586_v14  ;;  %v1592_v3 = vsel %vm1388_vm14, %v1586_v14, %v1588_v20 }
 0x422   : > { %v1600_v51 = vmul.f32 %v1591_v8, %v5774_v27  ;;  %v1601_v38 = vmul.f32 %v1592_v3, %v5776_v62  ;;  %v3236_v33 = vmul.f32 %v5551_v13, %v1591_v8  ;;  %v6504_v22 = vmul.f32 %v5549_v12, %v1592_v3 }
 0x424   : > { %v4636_v4 = vpack.i.bf16 %v1601_v38, %v1600_v51  ;;  %v1590_v17 = vpop.permute.xlu1 %1589  ;;  %v6518_v38 = vpop.permute.xlu0 %1859 }
 0x425   : > { %v1593_v49 = vsel %vm1388_vm14, %v1588_v20, %v1590_v17  ;;  %v1603_v37 = vmul.f32 0.0, %v1590_v17  ;;  %v4646_v20 = vpack.i.bf16 %v3236_v33, %v1599_v58 }
 0x426   : > { %v1602_v61 = vmul.f32 %v1593_v49, %v5553_v16  ;;  %v6508_v39 = vmul.f32 %v6397_v10, %v1593_v49  ;;  %4637 = vrot.lane.b32.xlu0 %v4636_v4, %s7629_s29 }
 0x428   : > { %v4641_v19 = vpack.i.bf16 %v1603_v37, %v1602_v61  ;;  %v1654_v8 = vpop.permute.xlu1 %1653  ;;  %v6533_v59 = vpop.permute.xlu0 %1923 }
 0x429   : > { %v1659_v3 = vsel %vm1318_vm13, %v6475_v34, %v1654_v8  ;;  %v1660_v51 = vsel %vm1318_vm13, %v1654_v8, %v1656_v54  ;;  %7631 = vst [vmem:[#allocation66_spill] sm:$0xff] %v6533_v59 }
 0x42a   : > { %v1668_v17 = vmul.f32 %v1659_v3, %v5774_v27  ;;  %v1669_v4 = vmul.f32 %v1660_v51, %v5776_v62  ;;  %4642 = vrot.lane.b32.xlu1 %v4641_v19, %s7629_s29  ;;  %4647 = vrot.lane.b32.xlu0 %v4646_v20, %s7629_s29  ;;  %v6526_v58 = vmul.f32 %v5549_v12, %v1660_v51 }
 0x42b   : > { %v3264_v14 = vmul.f32 %v5551_v13, %v1659_v3 }
 0x42c   : > { %v4651_v49 = vpack.i.bf16 %v1669_v4, %v1668_v17  ;;  %v1658_v37 = vpop.permute.xlu1 %1657  ;;  %v6545_v20 = vpop.permute.xlu0 %1927 }
 0x42d   : > { %v1661_v61 = vsel %vm1318_vm13, %v1656_v54, %v1658_v37  ;;  %v1671_v33 = vmul.f32 0.0, %v1658_v37 }
 0x42e   : > { %v1670_v8 = vmul.f32 %v1661_v61, %v5553_v16  ;;  %v6530_v18 = vmul.f32 %v6397_v10, %v1661_v61  ;;  %4652 = vrot.lane.b32.xlu1 %v4651_v49, %s7630_s22 }
 0x430   : > { %v4656_v19 = vpack.i.bf16 %v1671_v33, %v1670_v8  ;;  %v1722_v17 = vpop.permute.xlu1 %1721 }
 0x431   : > { %v1727_v54 = vsel %vm1248_vm10, %v6485_v11, %v1722_v17  ;;  %v1728_v51 = vsel %vm1248_vm10, %v1722_v17, %v1724_v35 }
 0x432   : > { %v1736_v4 = vmul.f32 %v1727_v54, %v5774_v27  ;;  %v1737_v37 = vmul.f32 %v1728_v51, %v5776_v62  ;;  %4657 = vrot.lane.b32.xlu0 %v4656_v19, %s7630_s22  ;;  %v6548_v43 = vmul.f32 %v5549_v12, %v1728_v51  ;;  %v1667_v19 = vmul.f32 %v6475_v34, %v5751_v7 }
 0x433   : > { %v3292_v3 = vmul.f32 %v5551_v13, %v1727_v54 }
 0x434   : > { %v4661_v61 = vpack.i.bf16 %v1737_v37, %v1736_v4  ;;  %v1726_v49 = vpop.permute.xlu1 %1725  ;;  %7632 = vst [vmem:[#allocation67_spill] sm:$0xff] %v6548_v43 }
 0x435   : > { %v1729_v33 = vsel %vm1248_vm10, %v1724_v35, %v1726_v49  ;;  %v1739_v8 = vmul.f32 0.0, %v1726_v49  ;;  %v4671_v49 = vpack.i.bf16 %v3264_v14, %v1667_v19  ;;  %v6573_v14 = vpop.permute.xlu0 %1991 }
 0x436   : > { %v1738_v17 = vmul.f32 %v1729_v33, %v5553_v16  ;;  %v6552_v32 = vmul.f32 %v6397_v10, %v1729_v33  ;;  %4662 = vrot.lane.b32.xlu1 %v4661_v61, %s7633_s13  ;;  %v1735_v61 = vmul.f32 %v6485_v11, %v5751_v7 }
 0x438   : > { %v4666_v4 = vpack.i.bf16 %v1739_v8, %v1738_v17  ;;  %v1790_v37 = vpop.permute.xlu1 %1789  ;;  %v4676_v8 = vpack.i.bf16 %v3292_v3, %v1735_v61 }
 0x439   : > { %v6562_v51 = vsel %vm598_vm0, %v6488_v6, %v1790_v37  ;;  %v1796_v33 = vsel %vm598_vm0, %v1790_v37, %v6492_v0 }
 0x43a   : > { %v1804_v63 = vmul.f32 %v6562_v51, %v5774_v27  ;;  %v1805_v54 = vmul.f32 %v1796_v33, %v5776_v62  ;;  %4667 = vrot.lane.b32.xlu0 %v4666_v4, %s7633_s13  ;;  %4672 = vrot.lane.b32.xlu1 %v4671_v49, %s7630_s22  ;;  %v6578_v11 = vmul.f32 %v5549_v12, %v1796_v33  ;;  %v1996_v33 = vpop.permute.xlu0 %1995 }
 0x43c   : > { %v4681_v17 = vpack.i.bf16 %v1805_v54, %v1804_v63  ;;  %v1794_v19 = vpop.permute.xlu1 %1793  ;;  %7634 = vst [vmem:[#allocation68_spill] sm:$0xff] %v6578_v11 }
 0x43d   : > { %v1797_v37 = vsel %vm598_vm0, %v6492_v0, %v1794_v19  ;;  %v1807_v35 = vmul.f32 0.0, %v1794_v19 }
 0x43e   : > { %v1806_v34 = vmul.f32 %v1797_v37, %v5553_v16  ;;  %v6582_v43 = vmul.f32 %v6397_v10, %v1797_v37  ;;  %4677 = vrot.lane.b32.xlu0 %v4676_v8, %s7633_s13  ;;  %4682 = vrot.lane.b32.xlu1 %v4681_v17, %s5078_s12  ;;  %v1803_v8 = vmul.f32 %v6488_v6, %v5751_v7  ;;  %v6614_v6 = vpop.permute.xlu0 %2059 }
 0x440   : > { %7635 = vst [vmem:[#allocation69_spill] sm:$0xff] %v6582_v43  ;;  %v4686_v4 = vpack.i.bf16 %v1807_v35, %v1806_v34  ;;  %v1858_v3 = vpop.permute.xlu1 %1857 }
 0x441   : > { %v6590_v0 = vsel %vm668_vm1, %v6499_v45, %v1858_v3  ;;  %v1864_v49 = vsel %vm668_vm1, %v1858_v3, %v6518_v38 }
 0x442   : > { %v1872_v61 = vmul.f32 %v6590_v0, %v5774_v27  ;;  %v1873_v54 = vmul.f32 %v1864_v49, %v5776_v62  ;;  %4687 = vrot.lane.b32.xlu0 %v4686_v4, %s5078_s12  ;;  %v6603_v37 = vmul.f32 %v5549_v12, %v1864_v49  ;;  %v7638_v4 = vld [vmem:[#allocation38_spill] sm:$0xff] }
 0x444   : > { %v4691_v34 = vpack.i.bf16 %v1873_v54, %v1872_v61  ;;  %v1862_v35 = vpop.permute.xlu1 %1861  ;;  %7636 = vst [vmem:[#allocation70_spill] sm:$0xff] %v6603_v37  ;;  %v2835_v61 = vmul.f32 %v5939_v31, %v7638_v4  ;;  %v1871_v54 = vmul.f32 %v6499_v45, %v5751_v7  ;;  %v2863_v4 = vmul.f32 %v5939_v31, %v5813_v36 }
 0x445   : > { %v1865_v17 = vsel %vm668_vm1, %v6518_v38, %v1862_v35  ;;  %v1875_v19 = vmul.f32 0.0, %v1862_v35 }
 0x446   : > { %v1874_v3 = vmul.f32 %v1865_v17, %v5553_v16  ;;  %v6607_v63 = vmul.f32 %v6397_v10, %v1865_v17  ;;  %4692 = vrot.lane.b32.xlu1 %v4691_v34, %s5077_s30  ;;  %v4701_v17 = vpack.i.bf16 %v2835_v61, %v1803_v8  ;;  %v4706_v37 = vpack.i.bf16 %v2863_v4, %v1871_v54  ;;  %v2064_v8 = vpop.permute.xlu0 %2063 }
 0x448   : > { %7637 = vst [vmem:[#allocation71_spill] sm:$0xff] %v6607_v63  ;;  %v4696_v38 = vpack.i.bf16 %v1875_v19, %v1874_v3  ;;  %v1926_v35 = vpop.permute.xlu1 %1925 }
 0x449   : > { %v6620_v11 = vsel %vm738_vm2, %v6533_v59, %v1926_v35  ;;  %v1932_v34 = vsel %vm738_vm2, %v1926_v35, %v6545_v20 }
 0x44a   : > { %v1940_v45 = vmul.f32 %v6620_v11, %v5774_v27  ;;  %v1941_v19 = vmul.f32 %v1932_v34, %v5776_v62  ;;  %4697 = vrot.lane.b32.xlu0 %v4696_v38, %s5077_s30  ;;  %4702 = vrot.lane.b32.xlu1 %v4701_v17, %s5078_s12  ;;  %v6634_v61 = vmul.f32 %v5549_v12, %v1932_v34  ;;  %v6656_v4 = vpop.permute.xlu0 %2127 }
 0x44b   : > { %7642 = vst [vmem:[#allocation74_spill] sm:$0xff] %v6656_v4 }
 0x44c   : > { %v4711_v3 = vpack.i.bf16 %v1941_v19, %v1940_v45  ;;  %v1930_v49 = vpop.permute.xlu1 %1929  ;;  %7639 = vst [vmem:[#allocation38_spill] sm:$0xff] %v6634_v61  ;;  %v2919_v19 = vmul.f32 %v5939_v31, %v5877_v52 }
 0x44d   : > { %v1933_v63 = vsel %vm738_vm2, %v6545_v20, %v1930_v49  ;;  %v1943_v35 = vmul.f32 0.0, %v1930_v49 }
 0x44e   : > { %v1942_v36 = vmul.f32 %v1933_v63, %v5553_v16  ;;  %v6638_v43 = vmul.f32 %v6397_v10, %v1933_v63  ;;  %4707 = vrot.lane.b32.xlu0 %v4706_v37, %s5077_s30  ;;  %4712 = vrot.lane.b32.xlu1 %v4711_v3, %s5076_s27 }
 0x450   : > { %v4716_v45 = vpack.i.bf16 %v1943_v35, %v1942_v36  ;;  %v1994_v38 = vpop.permute.xlu1 %1993  ;;  %v1939_v36 = vmul.f32 %v6533_v59, %v5751_v7 }
 0x451   : > { %v1999_v20 = vsel %vm808_vm3, %v6573_v14, %v1994_v38  ;;  %v2000_v49 = vsel %vm808_vm3, %v1994_v38, %v1996_v33 }
 0x452   : > { %v2008_v34 = vmul.f32 %v1999_v20, %v5774_v27  ;;  %v6649_v17 = vmul.f32 %v5551_v13, %v1999_v20  ;;  %v6652_v63 = vmul.f32 %v5549_v12, %v2000_v49  ;;  %v2009_v37 = vmul.f32 %v2000_v49, %v5776_v62  ;;  %4717 = vrot.lane.b32.xlu0 %v4716_v45, %s5076_s27 }
 0x453   : > { %v2891_v45 = vmul.f32 %v5939_v31, %v5803_v25  ;;  %v2007_v49 = vmul.f32 %v6573_v14, %v5751_v7 }
 0x454   : > { %7640 = vst [vmem:[#allocation72_spill] sm:$0xff] %v6649_v17  ;;  %7641 = vst [vmem:[#allocation73_spill] sm:$0xff] %v6652_v63  ;;  %v4721_v3 = vpack.i.bf16 %v2009_v37, %v2008_v34  ;;  %v1998_v35 = vpop.permute.xlu1 %1997  ;;  %v2132_v17 = vpop.permute.xlu0 %2131 }
 0x455   : > { %v6663_v38 = vsel %vm808_vm3, %v1996_v33, %v1998_v35  ;;  %v2011_v20 = vmul.f32 0.0, %v1998_v35  ;;  %v4731_v59 = vpack.i.bf16 %v2891_v45, %v1939_v36  ;;  %v4736_v45 = vpack.i.bf16 %v2919_v19, %v2007_v49 }
 0x456   : > { %v2010_v54 = vmul.f32 %v6663_v38, %v5553_v16  ;;  %4722 = vrot.lane.b32.xlu1 %v4721_v3, %s5075_s20 }
 0x458   : > { %v4726_v34 = vpack.i.bf16 %v2011_v20, %v2010_v54  ;;  %v2062_v37 = vpop.permute.xlu1 %2061 }
 0x459   : > { %v2067_v33 = vsel %vm878_vm4, %v6614_v6, %v2062_v37  ;;  %v2068_v35 = vsel %vm878_vm4, %v2062_v37, %v2064_v8 }
 0x45a   : > { %v2076_v3 = vmul.f32 %v2067_v33, %v5774_v27  ;;  %v6679_v63 = vmul.f32 %v5551_v13, %v2067_v33  ;;  %v6682_v25 = vmul.f32 %v5549_v12, %v2068_v35  ;;  %v2077_v54 = vmul.f32 %v2068_v35, %v5776_v62  ;;  %4727 = vrot.lane.b32.xlu0 %v4726_v34, %s5075_s20  ;;  %v6696_v34 = vpop.permute.xlu0 %2195 }
 0x45b   : > { %4732 = vrot.lane.b32.xlu1 %v4731_v59, %s5076_s27 }
 0x45c   : > { %7643 = vst [vmem:[#allocation75_spill] sm:$0xff] %v6679_v63  ;;  %7644 = vst [vmem:[#allocation76_spill] sm:$0xff] %v6682_v25  ;;  %v4741_v20 = vpack.i.bf16 %v2077_v54, %v2076_v3  ;;  %v2066_v36 = vpop.permute.xlu1 %2065 }
 0x45d   : > { %v6690_v37 = vsel %vm878_vm4, %v2064_v8, %v2066_v36  ;;  %v2079_v33 = vmul.f32 0.0, %v2066_v36 }
 0x45e   : > { %v2078_v61 = vmul.f32 %v6690_v37, %v5553_v16  ;;  %4737 = vrot.lane.b32.xlu0 %v4736_v45, %s5075_s20  ;;  %v2200_v52 = vpop.permute.xlu0 %2199 }
 0x45f   : > { %4742 = vrot.lane.b32.xlu1 %v4741_v20, %s5074_s26 }
 0x460   : > { %v4746_v59 = vpack.i.bf16 %v2079_v33, %v2078_v61  ;;  %v2130_v35 = vpop.permute.xlu1 %2129  ;;  %v2075_v33 = vmul.f32 %v6614_v6, %v5751_v7  ;;  %v2975_v61 = vmul.f32 %v5939_v31, %v5914_v47 }
 0x461   : > { %v2135_v3 = vsel %vm837_vm5, %v6656_v4, %v2130_v35  ;;  %v2136_v19 = vsel %vm837_vm5, %v2130_v35, %v2132_v17 }
 0x462   : > { %v2144_v8 = vmul.f32 %v2135_v3, %v5774_v27  ;;  %v6703_v49 = vmul.f32 %v5551_v13, %v2135_v3  ;;  %v6706_v54 = vmul.f32 %v5549_v12, %v2136_v19  ;;  %v2145_v36 = vmul.f32 %v2136_v19, %v5776_v62  ;;  %4747 = vrot.lane.b32.xlu0 %v4746_v59, %s5074_s26  ;;  %v6739_v47 = vpop.permute.xlu0 %2263 }
 0x463   : > { %v2947_v59 = vmul.f32 %v5939_v31, %v5856_v24  ;;  %v2143_v19 = vmul.f32 %v6656_v4, %v5751_v7 }
 0x464   : > { %7645 = vst [vmem:[#allocation77_spill] sm:$0xff] %v6703_v49  ;;  %7646 = vst [vmem:[#allocation78_spill] sm:$0xff] %v6706_v54  ;;  %v4751_v20 = vpack.i.bf16 %v2145_v36, %v2144_v8  ;;  %v2134_v45 = vpop.permute.xlu1 %2133 }
 0x465   : > { %v6715_v35 = vsel %vm837_vm5, %v2132_v17, %v2134_v45  ;;  %v2147_v3 = vmul.f32 0.0, %v2134_v45  ;;  %v4761_v49 = vpack.i.bf16 %v2947_v59, %v2075_v33 }
 0x466   : > { %v2146_v63 = vmul.f32 %v6715_v35, %v5553_v16  ;;  %4752 = vrot.lane.b32.xlu1 %v4751_v20, %s5073_s24 }
 0x468   : > { %v4756_v8 = vpack.i.bf16 %v2147_v3, %v2146_v63  ;;  %v2198_v36 = vpop.permute.xlu1 %2197 }
 0x469   : > { %v2203_v17 = vsel %vm767_vm6, %v6696_v34, %v2198_v36  ;;  %v2204_v45 = vsel %vm767_vm6, %v2198_v36, %v2200_v52  ;;  %v4766_v36 = vpack.i.bf16 %v2975_v61, %v2143_v19 }
 0x46a   : > { %v2212_v54 = vmul.f32 %v2203_v17, %v5774_v27  ;;  %v6731_v20 = vmul.f32 %v5551_v13, %v2203_v17  ;;  %v6734_v24 = vmul.f32 %v5549_v12, %v2204_v45  ;;  %v2213_v63 = vmul.f32 %v2204_v45, %v5776_v62  ;;  %4757 = vrot.lane.b32.xlu0 %v4756_v8, %s5073_s24 }
 0x46b   : > { %4762 = vrot.lane.b32.xlu1 %v4761_v49, %s5074_s26  ;;  %v2268_v49 = vpop.permute.xlu0 %2267 }
 0x46c   : > { %v4771_v33 = vpack.i.bf16 %v2213_v63, %v2212_v54  ;;  %v2202_v59 = vpop.permute.xlu1 %2201 }
 0x46d   : > { %v6744_v17 = vsel %vm767_vm6, %v2200_v52, %v2202_v59  ;;  %v2215_v25 = vmul.f32 0.0, %v2202_v59  ;;  %v2211_v59 = vmul.f32 %v6696_v34, %v5751_v7 }
 0x46e   : > { %v2214_v4 = vmul.f32 %v6744_v17, %v5553_v16  ;;  %4767 = vrot.lane.b32.xlu0 %v4766_v36, %s5073_s24 }
 0x46f   : > { %4772 = vrot.lane.b32.xlu1 %v4771_v33, %s5072_s23 }
 0x470   : > { %v4776_v8 = vpack.i.bf16 %v2215_v25, %v2214_v4  ;;  %v2266_v45 = vpop.permute.xlu1 %2265  ;;  %v3031_v4 = vmul.f32 %v5939_v31, %v5937_v29 }
 0x471   : > { %v2271_v3 = vsel %vm697_vm7, %v6739_v47, %v2266_v45  ;;  %v2272_v54 = vsel %vm697_vm7, %v2266_v45, %v2268_v49  ;;  %v6769_v45 = vpop.permute.xlu0 %2331 }
 0x472   : > { %v2280_v61 = vmul.f32 %v2271_v3, %v5774_v27  ;;  %v6755_v52 = vmul.f32 %v5551_v13, %v2271_v3  ;;  %v6758_v19 = vmul.f32 %v5549_v12, %v2272_v54  ;;  %v2281_v63 = vmul.f32 %v2272_v54, %v5776_v62  ;;  %4777 = vrot.lane.b32.xlu0 %v4776_v8, %s5072_s23 }
 0x473   : > { %7649 = vst [vmem:[#allocation81_spill] sm:$0xff] %v6769_v45  ;;  %v3003_v8 = vmul.f32 %v5939_v31, %v5900_v30  ;;  %v2279_v54 = vmul.f32 %v6739_v47, %v5751_v7 }
 0x474   : > { %7647 = vst [vmem:[#allocation79_spill] sm:$0xff] %v6755_v52  ;;  %7648 = vst [vmem:[#allocation80_spill] sm:$0xff] %v6758_v19  ;;  %v4781_v25 = vpack.i.bf16 %v2281_v63, %v2280_v61  ;;  %v2270_v33 = vpop.permute.xlu1 %2269 }
 0x475   : > { %v6767_v36 = vsel %vm697_vm7, %v2268_v49, %v2270_v33  ;;  %v2283_v3 = vmul.f32 0.0, %v2270_v33  ;;  %v4791_v33 = vpack.i.bf16 %v3003_v8, %v2211_v59  ;;  %v2336_v30 = vpop.permute.xlu0 %2335  ;;  %v4796_v19 = vpack.i.bf16 %v3031_v4, %v2279_v54  ;;  %v6804_v4 = vld.sshfl [vmem:[%s7431_s4] sm:$0x33 pattern:$0x76325410]  ;;  %v7653_v54 = vld [vmem:[#allocation21_spill] sm:$0xff] }
 0x476   : > { %v2282_v12 = vmul.f32 %v6767_v36, %v5553_v16  ;;  %4782 = vrot.lane.b32.xlu1 %v4781_v25, %s7593_s25  ;;  %7651 = vst [vmem:[#allocation83_spill] sm:$0xff] %v6804_v4 }
 0x478   : > { %v4786_v61 = vpack.i.bf16 %v2283_v3, %v2282_v12  ;;  %v2334_v63 = vpop.permute.xlu1 %2333 }
 0x479   : > { %v6780_v49 = vsel %vm627_vm8, %v6769_v45, %v2334_v63  ;;  %v6789_v12 = vsel %vm627_vm8, %v2334_v63, %v2336_v30 }
 0x47a   : > { %4787 = vrot.lane.b32.xlu0 %v4786_v61, %s7593_s25  ;;  %v2348_v25 = vmul.f32 %v6780_v49, %v5774_v27  ;;  %4792 = vrot.lane.b32.xlu1 %v4791_v33, %s5072_s23  ;;  %v2349_v27 = vmul.f32 %v6789_v12, %v5776_v62  ;;  %v7652_v62 = vld [vmem:[#allocation20_spill] sm:$0xff]  ;;  %v7654_v61 = vld [vmem:[#allocation22_spill] sm:$0xff] }
 0x47b   : > { %v2838_v8 = vmul.f32 %v6397_v10, %v7652_v62  ;;  %v7655_v63 = vpack.i.bf16 %v7653_v54, %v7654_v61  ;;  %v7661_v54 = vld [vmem:[#allocation28_spill] sm:$0xff]  ;;  %v7662_v61 = vld [vmem:[#allocation27_spill] sm:$0xff] }
 0x47c   : > { %v2338_v52 = vpop.permute.xlu1 %2337 }
 0x47d   : > { %v6792_v3 = vsel %vm627_vm8, %v2336_v30, %v2338_v52  ;;  %v2351_v59 = vmul.f32 0.0, %v2338_v52  ;;  %v7657_v30 = vld [vmem:[#allocation25_spill] sm:$0xff] }
 0x47e   : > { %7650 = vst [vmem:[#allocation82_spill] sm:$0xff] %v6792_v3  ;;  %4797 = vrot.lane.b32.xlu0 %v4796_v19, %s7593_s25  ;;  %v2350_v29 = vmul.f32 %v6792_v3, %v5553_v16  ;;  %2359 = vrot.lane.b32.xlu1 %v2348_v25, %s7594_s16  ;;  %v2496_v19 = vcombine.high %v6804_v4, %v6804_v4 }
 0x47f   : > { %v3320_v16 = vmul.f32 %v5551_v13, %v6562_v51  ;;  %v3348_v25 = vmul.f32 %v5551_v13, %v6590_v0  ;;  %v7656_v51 = vld [vmem:[#allocation23_spill] sm:$0xff]  ;;  %v7660_v0 = vld [vmem:[#allocation26_spill] sm:$0xff] }
 0x480   : > { %4142 = vmatprep.mubr.msk.f32.mxu0 %vm2498_vm9, %v2496_v19  ;;  %4143 = vmatprep.mubr.msk.f32.mxu1 %vm2498_vm9, %v2496_v19  ;;  %v2866_v52 = vmul.f32 %v6397_v10, %v7656_v51  ;;  %v2894_v62 = vmul.f32 %v6397_v10, %v7660_v0  ;;  %v7666_v51 = vld [vmem:[#allocation30_spill] sm:$0xff] }
 0x481   : > { %v4806_v33 = vpack.i.bf16 %v3320_v16, %v2838_v8  ;;  %v3376_v16 = vmul.f32 %v5551_v13, %v6620_v11  ;;  %v7665_v11 = vld [vmem:[#allocation31_spill] sm:$0xff] }
 0x482   : > { %2361 = vrot.lane.b32.xlu0 %v2349_v27, %s7594_s16  ;;  %2363 = vrot.lane.b32.xlu1 %v2350_v29, %s7594_s16  ;;  %v7658_v29 = vld [vmem:[#allocation24_spill] sm:$0xff]  ;;  %v4816_v19 = vpack.i.bf16 %v3348_v25, %v2866_v52  ;;  %v7667_v52 = vpack.i.bf16 %v7665_v11, %v7666_v51  ;;  %v4624_v51 = vunpack.i.l.bf16 %v6490_v9 }
 0x483   : > { %v7659_v27 = vpack.i.bf16 %v7657_v30, %v7658_v29  ;;  %v4826_v8 = vpack.i.bf16 %v3376_v16, %v2894_v62  ;;  %v6849_v29 = vpop.permute.xlu1 %4632  ;;  %v4625_v16 = vunpack.i.h.bf16 %v6490_v9 }
 0x484   : > { %7668 = vst [vmem:[#allocation20_spill] sm:$0xff] %v6849_v29  ;;  %v7679_v9 = vunpack.i.l.bf16 %v6849_v29 }
 0x485   : > { %v1551_v3 = vsel %vm7555_vm15, %v4624_v51, %v4625_v16 }
 0x486   : > { %2365 = vrot.lane.b32.xlu0 %v2351_v59, %s7594_s16  ;;  %4802 = vrot.lane.b32.xlu1 %v7655_v63, %s5078_s12  ;;  %v2347_v59 = vmul.f32 %v6769_v45, %v5751_v7  ;;  %v7663_v63 = vpack.i.bf16 %v7661_v54, %v7662_v61  ;;  %v7664_v7 = vld [vmem:[#allocation29_spill] sm:$0xff] }
 0x487   : > { %v2922_v25 = vmul.f32 %v6397_v10, %v7664_v7  ;;  %v7671_v54 = vld [vmem:[#allocation33_spill] sm:$0xff]  ;;  %v7677_v7 = vld [vmem:[#allocation36_spill] sm:$0xff] }
 0x48a   : > { %4807 = vrot.lane.b32.xlu0 %v4806_v33, %s5078_s12  ;;  %4812 = vrot.lane.b32.xlu1 %v7659_v27, %s5077_s30  ;;  %v4628_v33 = vpop.permute.xlu0 %4627 }
 0x48b   : > { %v4629_v30 = vunpack.i.l.bf16 %v4628_v33 }
 0x48e   : > { %4817 = vrot.lane.b32.xlu0 %v4816_v19, %s5077_s30  ;;  %2357 = vrot.lane.b32.xlu1 %v2347_v59, %s7594_s16  ;;  %v7669_v19 = vld [vmem:[#allocation32_spill] sm:$0xff] }
 0x48f   : > { %v2950_v59 = vmul.f32 %v6397_v10, %v7669_v19 }
 0x492   : > { %4822 = vrot.lane.b32.xlu0 %v7663_v63, %s5076_s27  ;;  %4827 = vrot.lane.b32.xlu1 %v4826_v8, %s5076_s27  ;;  %v7670_v8 = vld [vmem:[#allocation34_spill] sm:$0xff]  ;;  %v4630_v63 = vunpack.i.h.bf16 %v4628_v33 }
 0x493   : > { %v7672_v61 = vpack.i.bf16 %v7670_v8, %v7671_v54 }
 0x496   : > { %4832 = vrot.lane.b32.xlu0 %v7667_v52, %s5075_s20  ;;  %2933 = vrot.lane.b32.xlu1 %v2922_v25, %s5075_s20  ;;  %v1552_v25 = vsel %vm7555_vm15, %v4625_v16, %v4629_v30  ;;  %v7683_v16 = vld [vmem:[#allocation41_spill] sm:$0xff] }
 0x498   : > { %v4638_v27 = vpop.permute.xlu0 %4637 }
 0x499   : > { %v4640_v0 = vunpack.i.h.bf16 %v4638_v27  ;;  %v4639_v62 = vunpack.i.l.bf16 %v4638_v27  ;;  %v7674_v27 = vld [vmem:[#allocation35_spill] sm:$0xff] }
 0x49a   : > { %4837 = vrot.lane.b32.xlu0 %v7672_v61, %s5074_s26  ;;  %2961 = vrot.lane.b32.xlu1 %v2950_v59, %s5074_s26  ;;  %v2978_v4 = vmul.f32 %v6397_v10, %v7674_v27  ;;  %v7676_v61 = vld [vmem:[#allocation37_spill] sm:$0xff]  ;;  %v1553_v27 = vsel %vm7555_vm15, %v4629_v30, %v4630_v63 }
 0x49b   : > { %v1620_v11 = vsel %vm7554_vm12, %v4639_v62, %v4640_v0  ;;  %v7678_v45 = vpack.i.bf16 %v7676_v61, %v7677_v7  ;;  %v7680_v61 = vld [vmem:[#allocation39_spill] sm:$0xff] }
 0x49c   : > { %v6863_v52 = vpop.permute.xlu1 %4642  ;;  %v4209_v19 = vpack.c.bf16 %v1620_v11, %v1552_v25  ;;  %v6869_v54 = vpop.permute.xlu0 %4647  ;;  %v1554_v25 = vsel %vm7555_vm15, %v4630_v63, %v7679_v9  ;;  %v7681_v9 = vld [vmem:[#allocation40_spill] sm:$0xff] }
 0x49d   : > { %7673 = vst [vmem:[#allocation21_spill] sm:$0xff] %v6863_v52  ;;  %v4645_v8 = vunpack.i.h.bf16 %v6863_v52  ;;  %v4644_v33 = vunpack.i.l.bf16 %v6863_v52  ;;  %7675 = vst [vmem:[#allocation22_spill] sm:$0xff] %v6869_v54  ;;  %v4649_v59 = vunpack.i.l.bf16 %v6869_v54  ;;  %v7682_v52 = vpack.i.bf16 %v5784_v56, %v7681_v9 }
 0x49e   : > { %4842 = vrot.lane.b32.xlu0 %v7678_v45, %s5073_s24  ;;  %4210 = vmatprep.subr.bf16.mxu0 %v4209_v19 }
 0x49f   : > { %2989 = vrot.lane.b32.xlu1 %v2978_v4, %s5073_s24  ;;  %v1622_v11 = vsel %vm7554_vm12, %v4644_v33, %v4645_v8  ;;  %v1621_v54 = vsel %vm7554_vm12, %v4640_v0, %v4644_v33  ;;  %v1619_v7 = vsel %vm7554_vm12, %v4649_v59, %v4639_v62  ;;  %v3006_v4 = vmul.f32 %v6397_v10, %v7680_v61 }
 0x4a0   : > { %v4261_v45 = vpack.c.bf16 %v1622_v11, %v1554_v25  ;;  %v4263_v19 = vpack.c.bf16 %v1621_v54, %v1553_v27  ;;  %v4211_v29 = vpack.c.bf16 %v1619_v7, %v1551_v3  ;;  %v4653_v30 = vpop.permute.xlu1 %4652  ;;  %v3034_v0 = vmul.f32 %v6397_v10, %v7683_v16 }
 0x4a1   : > { %v7684_v62 = vpack.i.bf16 %v5838_v55, %v5834_v40  ;;  %v4655_v3 = vunpack.i.h.bf16 %v4653_v30  ;;  %v4654_v63 = vunpack.i.l.bf16 %v4653_v30  ;;  %v7685_v40 = vpack.i.bf16 %v5883_v41, %v5880_v53 }
 0x4a2   : > { %4847 = vrot.lane.b32.xlu0 %v7682_v52, %s5072_s23  ;;  %4262 = vmatprep.subr.bf16.mxu1 %v4261_v45  ;;  %vm7686_vm12 = vcmask 973824   ;;  %v3090_v27 = vmul.f32 %v6397_v10, %v6067_v50  ;;  %v7687_v53 = vpack.i.bf16 %v6080_v15, %v6077_v5  ;;  %v3118_v16 = vmul.f32 %v6397_v10, %v6130_v28 }
 0x4a3   : > { %3017 = vrot.lane.b32.xlu1 %v3006_v4, %s5072_s23  ;;  %4212 = vmatpush1.bf16.msra.mxu0 %v4211_v29  ;;  %v3062_v29 = vmul.f32 %v6397_v10, %v5866_v23  ;;  %v1688_v55 = vsel %vm1289_vm11, %v4654_v63, %v4655_v3  ;;  %vm7688_vm15 = vmmov %vm7686_vm12  ;;  %v3146_v28 = vmul.f32 %v6397_v10, %v6189_v60 }
 0x4a4   : > { %4264 = vmatpush1.bf16.msra.mxu1 %v4263_v19  ;;  %v6900_v51 = vpop.permute.xlu0 %4657 }
 0x4a5   : > { %v4660_v54 = vunpack.i.h.bf16 %v6900_v51  ;;  %v4659_v59 = vunpack.i.l.bf16 %v6900_v51 }
 0x4a6   : > { %4852 = vrot.lane.b32.xlu0 %v7684_v62, %s7593_s25  ;;  %v7689_v62 = vpack.i.bf16 %v6143_v44, %v6140_v21 }
 0x4a7   : > { %3045 = vrot.lane.b32.xlu1 %v3034_v0, %s7593_s25  ;;  %v1690_v41 = vsel %vm1289_vm11, %v4659_v59, %v4660_v54  ;;  %v1689_v4 = vsel %vm1289_vm11, %v4655_v3, %v4659_v59  ;;  %v7692_v59 = vld [vmem:[#allocation55_spill] sm:$0xff] }
 0x4a8   : > { %v4663_v56 = vpop.permute.xlu1 %4662 }
 0x4a9   : > { %v4665_v52 = vunpack.i.h.bf16 %v4663_v56  ;;  %v4664_v33 = vunpack.i.l.bf16 %v4663_v56 }
 0x4aa   : > { %4857 = vrot.lane.b32.xlu0 %v7685_v40, %s7594_s16  ;;  %v7693_v40 = vpack.i.bf16 %v6202_v26, %v7692_v59  ;;  %v7695_v26 = vld [vmem:[#allocation59_spill] sm:$0xff] }
 0x4ab   : > { %3073 = vrot.lane.b32.xlu1 %v3062_v29, %s7594_s16  ;;  %v1756_v25 = vsel %vm7686_vm12, %v4664_v33, %v4665_v52 }
 0x4ac   : > { %v6914_v11 = vpop.permute.xlu0 %4667  ;;  %v4213_v23 = vpack.c.bf16 %v1756_v25, %v1688_v55  ;;  %v6918_v7 = vpop.permute.xlu1 %4672 }
 0x4ad   : > { %v4670_v45 = vunpack.i.h.bf16 %v6914_v11  ;;  %v4669_v19 = vunpack.i.l.bf16 %v6914_v11  ;;  %v4674_v61 = vunpack.i.l.bf16 %v6918_v7 }
 0x4ae   : > { %4862 = vrot.lane.b32.xlu0 %v7687_v53, %s5080_s18  ;;  %4214 = vmatprep.subr.bf16.mxu0 %v4213_v23 }
 0x4af   : > { %3101 = vrot.lane.b32.xlu1 %v3090_v27, %s5080_s18  ;;  %v1758_v50 = vsel %vm7686_vm12, %v4669_v19, %v4670_v45  ;;  %v1757_v9 = vsel %vm7688_vm15, %v4665_v52, %v4669_v19  ;;  %v1687_v3 = vsel %vm1289_vm11, %v4674_v61, %v4654_v63  ;;  %vm7690_vm15 = vmmov %vm7686_vm12  ;;  %s7691_s18 = smov 7   ;;  %v7696_v19 = vpack.i.bf16 %v6265_v46, %v7695_v26  ;;  %v7703_v26 = vld [vmem:[#allocation63_spill] sm:$0xff] }
 0x4b0   : > { %v6936_v30 = vpop.permute.xlu0 %4677  ;;  %v4265_v5 = vpack.c.bf16 %v1758_v50, %v1690_v41  ;;  %v4267_v15 = vpack.c.bf16 %v1757_v9, %v1689_v4  ;;  %v4683_v29 = vpop.permute.xlu1 %4682  ;;  %v7697_v46 = vpack.i.bf16 %v6411_v42, %v6408_v2  ;;  %v3207_v42 = vmul.f32 %v5939_v31, %v6385_v57 }
 0x4b1   : > { %v4679_v0 = vunpack.i.l.bf16 %v6936_v30  ;;  %v4685_v21 = vunpack.i.h.bf16 %v4683_v29  ;;  %v4684_v44 = vunpack.i.l.bf16 %v4683_v29 }
 0x4b2   : > { %4867 = vrot.lane.b32.xlu0 %v7689_v62, %s5082_s15  ;;  %4266 = vmatprep.subr.bf16.mxu1 %v4265_v5 }
 0x4b3   : > { %3129 = vrot.lane.b32.xlu1 %v3118_v16, %s5082_s15  ;;  %4268 = vmatpush1.bf16.msra.mxu1 %v4267_v15  ;;  %v1755_v56 = vsel %vm7690_vm15, %v4679_v0, %v4664_v33  ;;  %v3174_v33 = vmul.f32 %v6397_v10, %v6252_v48  ;;  %s7694_s15 = smov 1   ;;  %v1824_v53 = vsel %vm627_vm8, %v4684_v44, %v4685_v21 }
 0x4b4   : > { %v4215_v52 = vpack.c.bf16 %v1755_v56, %v1687_v3  ;;  %v6954_v55 = vpop.permute.xlu0 %4687  ;;  %v7698_v16 = vpack.i.bf16 %v6508_v39, %v6504_v22 }
 0x4b5   : > { %v4690_v60 = vunpack.i.h.bf16 %v6954_v55  ;;  %v4689_v27 = vunpack.i.l.bf16 %v6954_v55 }
 0x4b6   : > { %4872 = vrot.lane.b32.xlu0 %v7693_v40, %s7691_s18  ;;  %4216 = vmatpush1.bf16.msra.mxu0 %v4215_v52  ;;  %v3235_v52 = vmul.f32 %v5939_v31, %v6467_v1  ;;  %v7699_v40 = vpack.i.bf16 %v6530_v18, %v6526_v58 }
 0x4b7   : > { %3157 = vrot.lane.b32.xlu1 %v3146_v28, %s7691_s18  ;;  %v1826_v5 = vsel %vm627_vm8, %v4689_v27, %v4690_v60  ;;  %v1825_v62 = vsel %vm627_vm8, %v4685_v21, %v4689_v27  ;;  %s4167_s18 = sld [smem:[#allocation7 + $0x9]] }
 0x4b8   : > { %v4693_v63 = vpop.permute.xlu1 %4692 }
 0x4b9   : > { %v4695_v25 = vunpack.i.h.bf16 %v4693_v63  ;;  %v4694_v23 = vunpack.i.l.bf16 %v4693_v63 }
 0x4ba   : > { %4877 = vrot.lane.b32.xlu0 %v7696_v19, %s7694_s15  ;;  %v3291_v19 = vmul.f32 %v5939_v31, %v7703_v26 }
 0x4bb   : > { %3185 = vrot.lane.b32.xlu1 %v3174_v33, %s7694_s15  ;;  %v1892_v41 = vsel %vm697_vm7, %v4694_v23, %v4695_v25  ;;  %v7700_v33 = vld [vmem:[#allocation67_spill] sm:$0xff]  ;;  %s4168_s15 = sld [smem:[#allocation7 + $0xa]] }
 0x4bc   : > { %v6968_v61 = vpop.permute.xlu0 %4697  ;;  %v4217_v48 = vpack.c.bf16 %v1892_v41, %v1824_v53  ;;  %v6970_v50 = vpop.permute.xlu1 %4702 }
 0x4bd   : > { %v4700_v4 = vunpack.i.h.bf16 %v6968_v61  ;;  %v4699_v9 = vunpack.i.l.bf16 %v6968_v61  ;;  %v4704_v15 = vunpack.i.l.bf16 %v6970_v50 }
 0x4be   : > { %4882 = vrot.lane.b32.xlu0 %v7697_v46, %s7624_s14  ;;  %4218 = vmatprep.subr.bf16.mxu0 %v4217_v48 }
 0x4bf   : > { %4887 = vrot.lane.b32.xlu1 %v7698_v16, %s7629_s29  ;;  %v1894_v0 = vsel %vm697_vm7, %v4699_v9, %v4700_v4  ;;  %v1893_v2 = vsel %vm697_vm7, %v4695_v25, %v4699_v9  ;;  %v1823_v39 = vsel %vm627_vm8, %v4704_v15, %v4684_v44  ;;  %v7701_v25 = vpack.i.bf16 %v6552_v32, %v7700_v33  ;;  %v7702_v44 = vld [vmem:[#allocation62_spill] sm:$0xff] }
 0x4c0   : > { %v6993_v3 = vpop.permute.xlu0 %4707  ;;  %v4269_v56 = vpack.c.bf16 %v1894_v0, %v1826_v5  ;;  %v4271_v29 = vpack.c.bf16 %v1893_v2, %v1825_v62  ;;  %v4713_v57 = vpop.permute.xlu1 %4712  ;;  %v7704_v0 = vld [vmem:[#allocation69_spill] sm:$0xff]  ;;  %v7705_v62 = vld [vmem:[#allocation68_spill] sm:$0xff] }
 0x4c1   : > { %v4709_v22 = vunpack.i.l.bf16 %v6993_v3  ;;  %v4715_v1 = vunpack.i.h.bf16 %v4713_v57  ;;  %v4714_v21 = vunpack.i.l.bf16 %v4713_v57  ;;  %v7706_v2 = vpack.i.bf16 %v7704_v0, %v7705_v62 }
 0x4c2   : > { %3215 = vrot.lane.b32.xlu0 %v3207_v42, %s7624_s14  ;;  %4270 = vmatprep.subr.bf16.mxu1 %v4269_v56  ;;  %s4162_s14 = sld [smem:[#allocation7 + $0x4]] }
 0x4c3   : > { %3243 = vrot.lane.b32.xlu1 %v3235_v52, %s7629_s29  ;;  %4272 = vmatpush1.bf16.msra.mxu1 %v4271_v29  ;;  %v1891_v28 = vsel %vm697_vm7, %v4709_v22, %v4694_v23  ;;  %v3263_v23 = vmul.f32 %v5939_v31, %v7702_v44  ;;  %v1960_v32 = vsel %vm767_vm6, %v4714_v21, %v4715_v1  ;;  %v7707_v29 = vld [vmem:[#allocation71_spill] sm:$0xff]  ;;  %v7708_v52 = vld [vmem:[#allocation70_spill] sm:$0xff]  ;;  %s4163_s29 = sld [smem:[#allocation7 + $0x5]] }
 0x4c4   : > { %v4219_v59 = vpack.c.bf16 %v1891_v28, %v1823_v39  ;;  %v7006_v63 = vpop.permute.xlu0 %4717  ;;  %v7709_v22 = vpack.i.bf16 %v7707_v29, %v7708_v52  ;;  %v7717_v29 = vld [vmem:[#allocation66_spill] sm:$0xff]  ;;  %v3434_v52 = vmul.f32 %v6397_v10, %v6690_v37 }
 0x4c5   : > { %v4720_v58 = vunpack.i.h.bf16 %v7006_v63  ;;  %v4719_v41 = vunpack.i.l.bf16 %v7006_v63 }
 0x4c6   : > { %4892 = vrot.lane.b32.xlu0 %v7699_v40, %s7630_s22  ;;  %4220 = vmatpush1.bf16.msra.mxu0 %v4219_v59  ;;  %v7710_v59 = vld [vmem:[#allocation64_spill] sm:$0xff] }
 0x4c7   : > { %4897 = vrot.lane.b32.xlu1 %v7701_v25, %s7633_s13  ;;  %v1962_v42 = vsel %vm767_vm6, %v4719_v41, %v4720_v58  ;;  %v1961_v28 = vsel %vm767_vm6, %v4715_v1, %v4719_v41  ;;  %v3319_v40 = vmul.f32 %v5939_v31, %v7710_v59 }
 0x4c8   : > { %v4723_v27 = vpop.permute.xlu1 %4722 }
 0x4c9   : > { %v4725_v53 = vunpack.i.h.bf16 %v4723_v27  ;;  %v4724_v18 = vunpack.i.l.bf16 %v4723_v27 }
 0x4ca   : > { %3271 = vrot.lane.b32.xlu0 %v3263_v23, %s7630_s22  ;;  %v7711_v23 = vld [vmem:[#allocation65_spill] sm:$0xff]  ;;  %s4164_s22 = sld [smem:[#allocation7 + $0x6]] }
 0x4cb   : > { %3299 = vrot.lane.b32.xlu1 %v3291_v19, %s7633_s13  ;;  %v2028_v48 = vsel %vm837_vm5, %v4724_v18, %v4725_v53  ;;  %v3347_v27 = vmul.f32 %v5939_v31, %v7711_v23  ;;  %v3462_v23 = vmul.f32 %v6397_v10, %v6715_v35  ;;  %s4165_s13 = sld [smem:[#allocation7 + $0x7]] }
 0x4cc   : > { %v7022_v9 = vpop.permute.xlu0 %4727  ;;  %v4221_v46 = vpack.c.bf16 %v2028_v48, %v1960_v32  ;;  %v3403_v48 = vmul.f32 %v5939_v31, %v6573_v14  ;;  %v3375_v14 = vmul.f32 %v5939_v31, %v7717_v29  ;;  %v3490_v29 = vmul.f32 %v6397_v10, %v6744_v17 }
 0x4cd   : > { %v7024_v5 = vpop.permute.xlu1 %4732  ;;  %v4730_v15 = vunpack.i.h.bf16 %v7022_v9  ;;  %v4729_v16 = vunpack.i.l.bf16 %v7022_v9 }
 0x4ce   : > { %4902 = vrot.lane.b32.xlu0 %v7706_v2, %s5078_s12  ;;  %4222 = vmatprep.subr.bf16.mxu0 %v4221_v46  ;;  %v4734_v56 = vunpack.i.l.bf16 %v7024_v5  ;;  %v7712_v46 = vld [vmem:[#allocation38_spill] sm:$0xff] }
 0x4cf   : > { %4907 = vrot.lane.b32.xlu1 %v7709_v22, %s5077_s30  ;;  %v2030_v39 = vsel %vm837_vm5, %v4729_v16, %v4730_v15  ;;  %v2029_v57 = vsel %vm837_vm5, %v4725_v53, %v4729_v16  ;;  %v3406_v53 = vmul.f32 %v6397_v10, %v6663_v38  ;;  %v7713_v16 = vpack.i.bf16 %v6638_v43, %v7712_v46 }
 0x4d0   : > { %v7047_v33 = vpop.permute.xlu0 %4737  ;;  %v4273_v25 = vpack.c.bf16 %v2030_v39, %v1962_v42  ;;  %v4275_v44 = vpack.c.bf16 %v2029_v57, %v1961_v28  ;;  %v1959_v1 = vsel %vm767_vm6, %v4734_v56, %v4714_v21  ;;  %v7714_v21 = vld [vmem:[#allocation73_spill] sm:$0xff]  ;;  %v3431_v57 = vmul.f32 %v5939_v31, %v6614_v6  ;;  %v7718_v6 = vld [vmem:[#allocation74_spill] sm:$0xff] }
 0x4d1   : > { %v4739_v26 = vunpack.i.l.bf16 %v7047_v33  ;;  %v4743_v41 = vpop.permute.xlu1 %4742  ;;  %v4921_v38 = vpack.i.bf16 %v3403_v48, %v3406_v53  ;;  %v7719_v53 = vld [vmem:[#allocation76_spill] sm:$0xff] }
 0x4d2   : > { %3327 = vrot.lane.b32.xlu0 %v3319_v40, %s5078_s12  ;;  %4274 = vmatprep.subr.bf16.mxu1 %v4273_v25  ;;  %v4745_v0 = vunpack.i.h.bf16 %v4743_v41  ;;  %v4744_v62 = vunpack.i.l.bf16 %v4743_v41  ;;  %v7720_v41 = vld [vmem:[#allocation75_spill] sm:$0xff]  ;;  %s3917_s12 = sld [smem:[#allocation7]] }
 0x4d3   : > { %3355 = vrot.lane.b32.xlu1 %v3347_v27, %s5077_s30  ;;  %4276 = vmatpush1.bf16.msra.mxu1 %v4275_v44  ;;  %v2027_v19 = vsel %vm837_vm5, %v4739_v26, %v4724_v18  ;;  %v7715_v18 = vld [vmem:[#allocation72_spill] sm:$0xff]  ;;  %v4931_v44 = vpack.i.bf16 %v3431_v57, %v3434_v52  ;;  %v7722_v52 = vld [vmem:[#allocation78_spill] sm:$0xff]  ;;  %v7723_v57 = vld [vmem:[#allocation77_spill] sm:$0xff] }
 0x4d4   : > { %v4223_v32 = vpack.c.bf16 %v2027_v19, %v1959_v1  ;;  %v7064_v2 = vpop.permute.xlu0 %4747  ;;  %v7716_v42 = vpack.i.bf16 %v7714_v21, %v7715_v18  ;;  %v2096_v59 = vsel %vm878_vm4, %v4744_v62, %v4745_v0  ;;  %v3459_v19 = vmul.f32 %v5939_v31, %v7718_v6 }
 0x4d5   : > { %v4750_v39 = vunpack.i.h.bf16 %v7064_v2  ;;  %v4749_v28 = vunpack.i.l.bf16 %v7064_v2 }
 0x4d6   : > { %4912 = vrot.lane.b32.xlu0 %v7713_v16, %s5076_s27  ;;  %4224 = vmatpush1.bf16.msra.mxu0 %v4223_v32  ;;  %v7721_v32 = vpack.i.bf16 %v7719_v53, %v7720_v41 }
 0x4d7   : > { %4917 = vrot.lane.b32.xlu1 %v7716_v42, %s5075_s20  ;;  %v2098_v48 = vsel %vm878_vm4, %v4749_v28, %v4750_v39  ;;  %v2097_v16 = vsel %vm878_vm4, %v4745_v0, %v4749_v28  ;;  %v3487_v0 = vmul.f32 %v5939_v31, %v6696_v34  ;;  %v3515_v34 = vmul.f32 %v5939_v31, %v6739_v47 }
 0x4d8   : > { %v4753_v56 = vpop.permute.xlu1 %4752 }
 0x4d9   : > { %v4755_v43 = vunpack.i.h.bf16 %v4753_v56  ;;  %v4754_v22 = vunpack.i.l.bf16 %v4753_v56  ;;  %v4941_v56 = vpack.i.bf16 %v3459_v19, %v3462_v23  ;;  %v7725_v23 = vpack.i.bf16 %v6734_v24, %v6731_v20  ;;  %v7726_v20 = vld [vmem:[#allocation80_spill] sm:$0xff]  ;;  %v7727_v24 = vld [vmem:[#allocation79_spill] sm:$0xff] }
 0x4da   : > { %4922 = vrot.lane.b32.xlu0 %v4921_v38, %s5075_s20  ;;  %s4172_s20 = sld [smem:[#allocation7 + $0xe]] }
 0x4db   : > { %3383 = vrot.lane.b32.xlu1 %v3375_v14, %s5076_s27  ;;  %v2164_v40 = vsel %vm808_vm3, %v4754_v22, %v4755_v43  ;;  %s4173_s27 = sld [smem:[#allocation7 + $0xf]] }
 0x4dc   : > { %v7082_v25 = vpop.permute.xlu0 %4757  ;;  %v4225_v37 = vpack.c.bf16 %v2164_v40, %v2096_v59  ;;  %v7724_v59 = vpack.i.bf16 %v7722_v52, %v7723_v57 }
 0x4dd   : > { %v7086_v27 = vpop.permute.xlu1 %4762  ;;  %v4760_v26 = vunpack.i.h.bf16 %v7082_v25  ;;  %v4759_v1 = vunpack.i.l.bf16 %v7082_v25 }
 0x4de   : > { %4927 = vrot.lane.b32.xlu0 %v7721_v32, %s5074_s26  ;;  %4226 = vmatprep.subr.bf16.mxu0 %v4225_v37  ;;  %v4764_v35 = vunpack.i.l.bf16 %v7086_v27  ;;  %v4951_v37 = vpack.i.bf16 %v3487_v0, %v3490_v29  ;;  %v7730_v0 = vld [vmem:[#allocation82_spill] sm:$0xff] }
 0x4df   : > { %4932 = vrot.lane.b32.xlu1 %v4931_v44, %s5074_s26  ;;  %v2166_v46 = vsel %vm808_vm3, %v4759_v1, %v4760_v26  ;;  %v2165_v21 = vsel %vm808_vm3, %v4755_v43, %v4759_v1  ;;  %v3518_v44 = vmul.f32 %v6397_v10, %v6767_v36  ;;  %s4135_s26 = sshll.u32 %s7795_s21, 6 }
 0x4e0   : > { %v7106_v18 = vpop.permute.xlu0 %4767  ;;  %v4277_v42 = vpack.c.bf16 %v2166_v46, %v2098_v48  ;;  %v4279_v38 = vpack.c.bf16 %v2165_v21, %v2097_v16  ;;  %v2095_v43 = vsel %vm878_vm4, %v4764_v35, %v4744_v62  ;;  %v7728_v48 = vpack.i.bf16 %v7726_v20, %v7727_v24  ;;  %s7385_s30 = scalar_lea.vmem %s7430_s3, %s4135_s26  ;;  %s4171_s26 = sld [smem:[#allocation7 + $0xd]] }
 0x4e1   : > { %v4769_v14 = vunpack.i.l.bf16 %v7106_v18  ;;  %v4773_v40 = vpop.permute.xlu1 %4772  ;;  %v4961_v19 = vpack.i.bf16 %v3515_v34, %v3518_v44  ;;  %v3544_v46 = vmul.f32 %v5551_v13, %v6780_v49 }
 0x4e2   : > { %4937 = vrot.lane.b32.xlu0 %v7724_v59, %s5073_s24  ;;  %4278 = vmatprep.subr.bf16.mxu1 %v4277_v42  ;;  %v4775_v1 = vunpack.i.h.bf16 %v4773_v40  ;;  %v4774_v6 = vunpack.i.l.bf16 %v4773_v40  ;;  %v7729_v42 = vld [vmem:[#allocation19_spill] sm:$0xff] }
 0x4e3   : > { %4942 = vrot.lane.b32.xlu1 %v4941_v56, %s5073_s24  ;;  %4280 = vmatpush1.bf16.msra.mxu1 %v4279_v38  ;;  %v2163_v28 = vsel %vm808_vm3, %v4769_v14, %v4754_v22  ;;  %v3545_v38 = vmul.f32 %v7729_v42, %v6789_v12  ;;  %s4170_s24 = sld [smem:[#allocation7 + $0xc]] }
 0x4e4   : > { %v4227_v17 = vpack.c.bf16 %v2163_v28, %v2095_v43  ;;  %v7128_v62 = vpop.permute.xlu0 %4777  ;;  %v2232_v47 = vsel %vm738_vm2, %v4774_v6, %v4775_v1  ;;  %v3546_v43 = vmul.f32 %v6397_v10, %v7730_v0 }
 0x4e5   : > { %v4780_v36 = vunpack.i.h.bf16 %v7128_v62  ;;  %v4779_v32 = vunpack.i.l.bf16 %v7128_v62 }
 0x4e6   : > { %4947 = vrot.lane.b32.xlu0 %v7725_v23, %s5072_s23  ;;  %4228 = vmatpush1.bf16.msra.mxu0 %v4227_v17 }
 0x4e7   : > { %4952 = vrot.lane.b32.xlu1 %v4951_v37, %s5072_s23  ;;  %v2234_v52 = vsel %vm738_vm2, %v4779_v32, %v4780_v36  ;;  %v2233_v57 = vsel %vm738_vm2, %v4775_v1, %v4779_v32  ;;  %v7731_v37 = vld [vmem:[#allocation81_spill] sm:$0xff]  ;;  %s4169_s23 = sld [smem:[#allocation7 + $0xb]] }
 0x4e8   : > { %v4783_v22 = vpop.permute.xlu1 %4782  ;;  %v3543_v44 = vmul.f32 %v5939_v31, %v7731_v37  ;;  %v7176_v31 = vld.sshfl [vmem:[%s7432_s5] sm:$0x33 pattern:$0x76325410] }
 0x4e9   : > { %v4785_v53 = vunpack.i.h.bf16 %v4783_v22  ;;  %v4784_v41 = vunpack.i.l.bf16 %v4783_v22 }
 0x4ea   : > { %4957 = vrot.lane.b32.xlu0 %v7728_v48, %s7593_s25 }
 0x4eb   : > { %4962 = vrot.lane.b32.xlu1 %v4961_v19, %s7593_s25  ;;  %v2300_v35 = vsel %vm668_vm1, %v4784_v41, %v4785_v53  ;;  %s4159_s25 = sld [smem:[#allocation7 + $0x1]] }
 0x4ec   : > { %v7142_v16 = vpop.permute.xlu0 %4787  ;;  %v4229_v21 = vpack.c.bf16 %v2300_v35, %v2232_v47  ;;  %v7146_v56 = vpop.permute.xlu1 %4792  ;;  %v4710_v35 = vunpack.i.h.bf16 %v6993_v3 }
 0x4ed   : > { %v4790_v29 = vunpack.i.h.bf16 %v7142_v16  ;;  %v4789_v14 = vunpack.i.l.bf16 %v7142_v16  ;;  %v4794_v49 = vunpack.i.l.bf16 %v7146_v56 }
 0x4ee   : > { %3553 = vrot.lane.b32.xlu0 %v3544_v46, %s7594_s16  ;;  %4230 = vmatprep.subr.bf16.mxu0 %v4229_v21 }
 0x4ef   : > { %3555 = vrot.lane.b32.xlu1 %v3545_v38, %s7594_s16  ;;  %v2302_v12 = vsel %vm668_vm1, %v4789_v14, %v4790_v29  ;;  %v2301_v59 = vsel %vm668_vm1, %v4785_v53, %v4789_v14  ;;  %v2231_v1 = vsel %vm738_vm2, %v4794_v49, %v4774_v6  ;;  %v7732_v38 = vld [vmem:[#allocation83_spill] sm:$0xff] }
 0x4f0   : > { %v7163_v28 = vpop.permute.xlu0 %4797  ;;  %v4281_v40 = vpack.c.bf16 %v2302_v12, %v2234_v52  ;;  %v4283_v17 = vpack.c.bf16 %v2301_v59, %v2233_v57  ;;  %v2360_v23 = vpop.permute.xlu1 %2359  ;;  %v4705_v52 = vunpack.i.h.bf16 %v6970_v50  ;;  %v7733_v59 = vld [vmem:[#allocation44_spill] sm:$0xff]  ;;  %v7735_v50 = vld [vmem:[#allocation42_spill] sm:$0xff] }
 0x4f1   : > { %v4799_v34 = vunpack.i.l.bf16 %v7163_v28  ;;  %v7734_v0 = vunpack.i.l.bf16 %v7733_v59 }
 0x4f2   : > { %3557 = vrot.lane.b32.xlu0 %v3546_v43, %s7594_s16  ;;  %4282 = vmatprep.subr.bf16.mxu1 %v4281_v40 }
 0x4f3   : > { %3551 = vrot.lane.b32.xlu1 %v3543_v44, %s7594_s16  ;;  %4284 = vmatpush1.bf16.msra.mxu1 %v4283_v17  ;;  %v2299_v22 = vsel %vm668_vm1, %v4799_v34, %v4784_v41  ;;  %v3688_v41 = vcombine.high %v7176_v31, %v7176_v31  ;;  %v2879_v43 = vsel %vm697_vm7, %v7734_v0, %v4710_v35  ;;  %s4160_s16 = sld [smem:[#allocation7 + $0x2]] }
 0x4f4   : > { %v2362_v19 = vpop.permute.xlu0 %2361  ;;  %v4231_v53 = vpack.c.bf16 %v2299_v22, %v2231_v1  ;;  %v2364_v32 = vpop.permute.xlu1 %2363  ;;  %v7736_v22 = vunpack.i.l.bf16 %v7735_v50 }
 0x4f5   : > { %v2368_v20 = vsel %vm598_vm0, %v2360_v23, %v2362_v19  ;;  %v2369_v47 = vsel %vm598_vm0, %v2362_v19, %v2364_v32 }
 0x4f6   : > { %4232 = vmatpush1.bf16.msra.mxu0 %v4231_v53  ;;  %v2851_v19 = vsel %vm627_vm8, %v7736_v22, %v4705_v52  ;;  %v7739_v22 = vld [vmem:[#allocation43_spill] sm:$0xff] }
 0x4f7   : > { %2553 = vmatprep.subr.mxu0 %v2368_v20  ;;  %v4287_v20 = vpack.c.bf16 %v2879_v43, %v2851_v19  ;;  %v7740_v19 = vunpack.i.l.bf16 %v7739_v22 }
 0x4f8   : > { %v7178_v24 = vpop.permute.xlu0 %2365  ;;  %v4803_v48 = vpop.permute.xlu1 %4802 }
 0x4f9   : > { %v2370_v6 = vsel %vm598_vm0, %v2364_v32, %v7178_v24  ;;  %v4804_v46 = vunpack.i.l.bf16 %v4803_v48  ;;  %v4805_v40 = vunpack.i.h.bf16 %v4803_v48 }
 0x4fa   : > { %2624 = vmatprep.subr.mxu1 %v2370_v6 }
 0x4fb   : > { %2625 = vmatpush1.msra.mxu1 %v2369_v47  ;;  %v2852_v17 = vsel %vm627_vm8, %v4705_v52, %v4804_v46  ;;  %v2853_v47 = vsel %vm627_vm8, %v4804_v46, %v4805_v40  ;;  %v4735_v46 = vunpack.i.h.bf16 %v7024_v5 }
 0x4fc   : > { %v7186_v21 = vpop.permute.xlu0 %4807  ;;  %2637 = vmatmul.mubr.f32.vlgmr.msra.gmra.mrb[0].mxu1 %v7732_v38  ;;  %v4813_v14 = vpop.permute.xlu1 %4812 }
 0x4fd   : > { %4155 = vmatprep.mubr.msk.f32.mxu1 %vm2498_vm9, %v3688_v41  ;;  %v4815_v49 = vunpack.i.h.bf16 %v4813_v14  ;;  %v4814_v12 = vunpack.i.l.bf16 %v4813_v14  ;;  %v4809_v57 = vunpack.i.l.bf16 %v7186_v21 }
 0x4ff   : > { %v2880_v37 = vsel %vm697_vm7, %v4710_v35, %v4814_v12  ;;  %v2881_v53 = vsel %vm697_vm7, %v4814_v12, %v4815_v49  ;;  %v2854_v48 = vsel %vm627_vm8, %v4805_v40, %v4809_v57 }
 0x500   : > { %v7195_v3 = vpop.permute.xlu0 %4817  ;;  %v2358_v44 = vpop.permute.xlu1 %2357  ;;  %v4285_v1 = vpack.c.bf16 %v2880_v37, %v2852_v17  ;;  %v4339_v59 = vpack.c.bf16 %v2881_v53, %v2853_v47  ;;  %v7737_v17 = vld [vmem:[#allocation46_spill] sm:$0xff]  ;;  %v2907_v53 = vsel %vm767_vm6, %v7740_v19, %v4735_v46 }
 0x501   : > { %v4819_v34 = vunpack.i.l.bf16 %v7195_v3  ;;  %v2367_v32 = vsel %vm598_vm0, %v2358_v44, %v2360_v23  ;;  %v4740_v23 = vunpack.i.h.bf16 %v7047_v33  ;;  %v7738_v37 = vunpack.i.l.bf16 %v7737_v17 }
 0x502   : > { %2554 = vmatpush1.msra.mxu0 %v2367_v32 }
 0x503   : > { %v2882_v6 = vsel %vm697_vm7, %v4815_v49, %v4819_v34  ;;  %4286 = vmatprep.subr.bf16.mxu0 %v4285_v1  ;;  %2566 = vmatmul.mubr.f32.vlgmr.msra.gmra.mrb[0].mxu0 %v7732_v38  ;;  %v2935_v44 = vsel %vm837_vm5, %v7738_v37, %v4740_v23 }
 0x504   : > { %v4823_v35 = vpop.permute.xlu0 %4822  ;;  %v4337_v14 = vpack.c.bf16 %v2882_v6, %v2854_v48  ;;  %v7209_v0 = vpop.permute.xlu1 %4827  ;;  %4288 = vmatpush1.bf16.msra.mxu0 %v4287_v20  ;;  %4154 = vmatprep.mubr.msk.f32.mxu0 %vm2498_vm9, %v3688_v41  ;;  %v4291_v47 = vpack.c.bf16 %v2935_v44, %v2907_v53  ;;  %vm7763_vm9 = vcmask 7168  }
 0x505   : > { %v4825_v52 = vunpack.i.h.bf16 %v4823_v35  ;;  %v4824_v12 = vunpack.i.l.bf16 %v4823_v35  ;;  %v4829_v49 = vunpack.i.l.bf16 %v7209_v0 }
 0x506   : > { %4338 = vmatprep.subr.bf16.mxu1 %v4337_v14  ;;  %v4770_v14 = vunpack.i.h.bf16 %v7106_v18 }
 0x507   : > { %4340 = vmatpush1.bf16.msra.mxu1 %v4339_v59  ;;  %v2909_v41 = vsel %vm767_vm6, %v4824_v12, %v4825_v52  ;;  %v2908_v33 = vsel %vm767_vm6, %v4735_v46, %v4824_v12  ;;  %v2910_v50 = vsel %vm767_vm6, %v4825_v52, %v4829_v49 }
 0x508   : > { %v4833_v57 = vpop.permute.xlu0 %4832  ;;  %v2934_v43 = vpop.permute.xlu1 %2933 }
 0x509   : > { %v4835_v38 = vunpack.i.h.bf16 %v4833_v57  ;;  %v4834_v40 = vunpack.i.l.bf16 %v4833_v57 }
 0x50b   : > { %v2937_v34 = vsel %vm837_vm5, %v4834_v40, %v4835_v38  ;;  %v2936_v1 = vsel %vm837_vm5, %v4740_v23, %v4834_v40  ;;  %v2938_v5 = vsel %vm837_vm5, %v4835_v38, %v2934_v43  ;;  %v4765_v23 = vunpack.i.h.bf16 %v7086_v27  ;;  %v7741_v43 = vld [vmem:[#allocation48_spill] sm:$0xff] }
 0x50c   : > { %v4343_v32 = vpack.c.bf16 %v2937_v34, %v2909_v41  ;;  %v4838_v20 = vpop.permute.xlu0 %4837  ;;  %v4289_v48 = vpack.c.bf16 %v2936_v1, %v2908_v33  ;;  %v4341_v6 = vpack.c.bf16 %v2938_v5, %v2910_v50  ;;  %v2962_v35 = vpop.permute.xlu1 %2961  ;;  %v7742_v38 = vunpack.i.l.bf16 %v7741_v43  ;;  %v7743_v33 = vld [vmem:[#allocation45_spill] sm:$0xff] }
 0x50d   : > { %v4840_v59 = vunpack.i.h.bf16 %v4838_v20  ;;  %v4839_v12 = vunpack.i.l.bf16 %v4838_v20  ;;  %v7744_v34 = vunpack.i.l.bf16 %v7743_v33  ;;  %v4800_v20 = vunpack.i.h.bf16 %v7163_v28 }
 0x50e   : > { %4290 = vmatprep.subr.bf16.mxu0 %v4289_v48  ;;  %4342 = vmatprep.subr.bf16.mxu1 %v4341_v6  ;;  %v2991_v40 = vsel %vm808_vm3, %v7742_v38, %v4770_v14 }
 0x50f   : > { %4292 = vmatpush1.bf16.msra.mxu0 %v4291_v47  ;;  %4344 = vmatpush1.bf16.msra.mxu1 %v4343_v32  ;;  %v2965_v17 = vsel %vm878_vm4, %v4839_v12, %v4840_v59  ;;  %v2964_v18 = vsel %vm878_vm4, %v4765_v23, %v4839_v12  ;;  %v2966_v41 = vsel %vm878_vm4, %v4840_v59, %v2962_v35  ;;  %v4795_v47 = vunpack.i.h.bf16 %v7146_v56 }
 0x510   : > { %v4843_v52 = vpop.permute.xlu0 %4842  ;;  %v2963_v1 = vsel %vm878_vm4, %v7744_v34, %v4765_v23  ;;  %v7745_v23 = vld [vmem:[#allocation49_spill] sm:$0xff] }
 0x511   : > { %v2990_v49 = vpop.permute.xlu1 %2989  ;;  %v4845_v57 = vunpack.i.h.bf16 %v4843_v52  ;;  %v4844_v46 = vunpack.i.l.bf16 %v4843_v52  ;;  %v4295_v53 = vpack.c.bf16 %v2991_v40, %v2963_v1  ;;  %v7746_v52 = vunpack.i.l.bf16 %v7745_v23  ;;  %v7747_v40 = vld [vmem:[#allocation47_spill] sm:$0xff] }
 0x513   : > { %v2993_v37 = vsel %vm808_vm3, %v4844_v46, %v4845_v57  ;;  %v2992_v44 = vsel %vm808_vm3, %v4770_v14, %v4844_v46  ;;  %v2994_v27 = vsel %vm808_vm3, %v4845_v57, %v2990_v49  ;;  %v3047_v49 = vsel %vm668_vm1, %v7746_v52, %v4800_v20 }
 0x514   : > { %v4347_v50 = vpack.c.bf16 %v2993_v37, %v2965_v17  ;;  %v4848_v5 = vpop.permute.xlu0 %4847  ;;  %v4293_v22 = vpack.c.bf16 %v2992_v44, %v2964_v18  ;;  %v4345_v19 = vpack.c.bf16 %v2994_v27, %v2966_v41  ;;  %v7748_v17 = vunpack.i.l.bf16 %v7747_v40  ;;  %v7754_v40 = vld [vmem:[#allocation51_spill] sm:$0xff] }
 0x515   : > { %v3018_v32 = vpop.permute.xlu1 %3017  ;;  %v4850_v48 = vunpack.i.h.bf16 %v4848_v5  ;;  %v4849_v6 = vunpack.i.l.bf16 %v4848_v5 }
 0x516   : > { %4294 = vmatprep.subr.bf16.mxu0 %v4293_v22  ;;  %4346 = vmatprep.subr.bf16.mxu1 %v4345_v19  ;;  %v3019_v18 = vsel %vm738_vm2, %v7748_v17, %v4795_v47 }
 0x517   : > { %4296 = vmatpush1.bf16.msra.mxu0 %v4295_v53  ;;  %4348 = vmatpush1.bf16.msra.mxu1 %v4347_v50  ;;  %v3021_v57 = vsel %vm738_vm2, %v4849_v6, %v4850_v48  ;;  %v3020_v28 = vsel %vm738_vm2, %v4795_v47, %v4849_v6  ;;  %v3022_v38 = vsel %vm738_vm2, %v4850_v48, %v3018_v32 }
 0x518   : > { %v4853_v35 = vpop.permute.xlu0 %4852  ;;  %v4299_v33 = vpack.c.bf16 %v3047_v49, %v3019_v18 }
 0x519   : > { %v3046_v14 = vpop.permute.xlu1 %3045  ;;  %v4855_v59 = vunpack.i.h.bf16 %v4853_v35  ;;  %v4854_v12 = vunpack.i.l.bf16 %v4853_v35  ;;  %v7751_v35 = vld [vmem:[#allocation52_spill] sm:$0xff] }
 0x51b   : > { %v3049_v46 = vsel %vm668_vm1, %v4854_v12, %v4855_v59  ;;  %v3048_v43 = vsel %vm668_vm1, %v4800_v20, %v4854_v12  ;;  %v3050_v56 = vsel %vm668_vm1, %v4855_v59, %v3046_v14  ;;  %v7749_v20 = vld [vmem:[#allocation50_spill] sm:$0xff]  ;;  %v7752_v14 = vunpack.i.h.bf16 %v7751_v35 }
 0x51c   : > { %v4351_v37 = vpack.c.bf16 %v3049_v46, %v3021_v57  ;;  %v4858_v44 = vpop.permute.xlu0 %4857  ;;  %v4297_v41 = vpack.c.bf16 %v3048_v43, %v3020_v28  ;;  %v4349_v27 = vpack.c.bf16 %v3050_v56, %v3022_v38  ;;  %v7750_v48 = vunpack.i.h.bf16 %v7749_v20  ;;  %v7753_v56 = vld [vmem:[#allocation53_spill] sm:$0xff] }
 0x51d   : > { %v3074_v34 = vpop.permute.xlu1 %3073  ;;  %v4860_v1 = vunpack.i.h.bf16 %v4858_v44  ;;  %v4859_v50 = vunpack.i.l.bf16 %v4858_v44  ;;  %v7755_v17 = vpack.c.bf16 %v7753_v56, %v7754_v40 }
 0x51e   : > { %4298 = vmatprep.subr.bf16.mxu0 %v4297_v41  ;;  %4350 = vmatprep.subr.bf16.mxu1 %v4349_v27 }
 0x51f   : > { %4300 = vmatpush1.bf16.msra.mxu0 %v4299_v33  ;;  %4352 = vmatpush1.bf16.msra.mxu1 %v4351_v37  ;;  %v3077_v32 = vsel %vm598_vm0, %v4859_v50, %v4860_v1  ;;  %v3076_v6 = vsel %vm598_vm0, %v7750_v48, %v4859_v50  ;;  %v3078_v12 = vsel %vm598_vm0, %v4860_v1, %v3074_v34  ;;  %v7756_v33 = vld [vmem:[#allocation17_spill] sm:$0xff]  ;;  %v7757_v1 = vld [vmem:[#allocation54_spill] sm:$0xff] }
 0x520   : > { %v4863_v5 = vpop.permute.xlu0 %4862  ;;  %v3201_v34 = vmul.f32 %v7729_v42, %v7756_v33  ;;  %v7758_v50 = vunpack.i.h.bf16 %v7757_v1 }
 0x521   : > { %v3102_v22 = vpop.permute.xlu1 %3101  ;;  %v4865_v19 = vunpack.i.h.bf16 %v4863_v5  ;;  %v4864_v53 = vunpack.i.l.bf16 %v4863_v5 }
 0x523   : > { %v3105_v47 = vsel %vm1248_vm10, %v4864_v53, %v4865_v19  ;;  %v3104_v59 = vsel %vm1248_vm10, %v7752_v14, %v4864_v53  ;;  %v3106_v23 = vsel %vm1248_vm10, %v4865_v19, %v3102_v22  ;;  %v7759_v22 = vld [vmem:[#allocation18_spill] sm:$0xff]  ;;  %vm7769_vm10 = vmmov %vm7763_vm9 }
 0x524   : > { %v4355_v52 = vpack.c.bf16 %v3105_v47, %v3077_v32  ;;  %v4868_v49 = vpop.permute.xlu0 %4867  ;;  %v4301_v57 = vpack.c.bf16 %v3104_v59, %v3076_v6  ;;  %v4353_v28 = vpack.c.bf16 %v3106_v23, %v3078_v12  ;;  %v3200_v19 = vmul.f32 %v5551_v13, %v7759_v22  ;;  %v7760_v32 = vld [vmem:[#allocation56_spill] sm:$0xff]  ;;  %v7762_v12 = vld [vmem:[#allocation15_spill] sm:$0xff] }
 0x525   : > { %v3130_v46 = vpop.permute.xlu1 %3129  ;;  %v4870_v43 = vunpack.i.h.bf16 %v4868_v49  ;;  %v4869_v38 = vunpack.i.l.bf16 %v4868_v49  ;;  %v7761_v20 = vunpack.i.h.bf16 %v7760_v32  ;;  %v3202_v23 = vmul.f32 %v6397_v10, %v7762_v12 }
 0x526   : > { %4302 = vmatprep.subr.bf16.mxu0 %v4301_v57  ;;  %4354 = vmatprep.subr.bf16.mxu1 %v4353_v28  ;;  %v7764_v28 = vld [vmem:[#allocation57_spill] sm:$0xff] }
 0x527   : > { %4304 = vmatpush1.bf16.msra.mxu0 %v7755_v17  ;;  %4356 = vmatpush1.bf16.msra.mxu1 %v4355_v52  ;;  %v3133_v27 = vsel %vm1318_vm13, %v4869_v38, %v4870_v43  ;;  %v3132_v5 = vsel %vm1318_vm13, %v7758_v50, %v4869_v38  ;;  %v3134_v6 = vsel %vm1318_vm13, %v4870_v43, %v3130_v46  ;;  %v7765_v38 = vld [vmem:[#allocation58_spill] sm:$0xff]  ;;  %v7767_v46 = vld [vmem:[#allocation60_spill] sm:$0xff]  ;;  %vm7770_vm13 = vmmov %vm7763_vm9 }
 0x528   : > { %v4873_v18 = vpop.permute.xlu0 %4872  ;;  %v7766_v56 = vpack.c.bf16 %v7764_v28, %v7765_v38  ;;  %v7768_v43 = vunpack.i.h.bf16 %v7767_v46 }
 0x529   : > { %v3158_v37 = vpop.permute.xlu1 %3157  ;;  %v4875_v44 = vunpack.i.h.bf16 %v4873_v18  ;;  %v4874_v41 = vunpack.i.l.bf16 %v4873_v18 }
 0x52b   : > { %v3161_v53 = vsel %vm1388_vm14, %v4874_v41, %v4875_v44  ;;  %v3160_v48 = vsel %vm1388_vm14, %v7761_v20, %v4874_v41  ;;  %v3162_v47 = vsel %vm1388_vm14, %v4875_v44, %v3158_v37  ;;  %v7771_v41 = vld [vmem:[#allocation20_spill] sm:$0xff]  ;;  %vm7773_vm14 = vcmask 1039360  }
 0x52c   : > { %v4359_v35 = vpack.c.bf16 %v3161_v53, %v3133_v27  ;;  %v4878_v14 = vpop.permute.xlu0 %4877  ;;  %v4305_v42 = vpack.c.bf16 %v3160_v48, %v3132_v5  ;;  %v4357_v59 = vpack.c.bf16 %v3162_v47, %v3134_v6  ;;  %v4635_v27 = vunpack.i.h.bf16 %v7771_v41  ;;  %v7772_v5 = vld [vmem:[#allocation22_spill] sm:$0xff]  ;;  %v7774_v48 = vld [vmem:[#allocation61_spill] sm:$0xff]  ;;  %v7775_v6 = vld [vmem:[#allocation16_spill] sm:$0xff] }
 0x52d   : > { %v3186_v52 = vpop.permute.xlu1 %3185  ;;  %v4880_v49 = vunpack.i.h.bf16 %v4878_v14  ;;  %v4879_v13 = vunpack.i.l.bf16 %v4878_v14  ;;  %v4650_v22 = vunpack.i.h.bf16 %v7772_v5  ;;  %v7776_v47 = vpack.c.bf16 %v7774_v48, %v7775_v6  ;;  %vm7777_vm12 = vmmov %vm7773_vm14 }
 0x52e   : > { %4306 = vmatprep.subr.bf16.mxu0 %v4305_v42  ;;  %4358 = vmatprep.subr.bf16.mxu1 %v4357_v59  ;;  %vm7779_vm15 = vmmov %vm7777_vm12  ;;  %v4810_v48 = vunpack.i.h.bf16 %v7186_v21 }
 0x52f   : > { %v3189_v57 = vsel %vm7763_vm9, %v4879_v13, %v4880_v49  ;;  %4308 = vmatpush1.bf16.msra.mxu0 %v7766_v56  ;;  %4360 = vmatpush1.bf16.msra.mxu1 %v4359_v35  ;;  %v3188_v40 = vsel %vm7769_vm10, %v7768_v43, %v4879_v13  ;;  %v3190_v17 = vsel %vm7770_vm13, %v4880_v49, %v3186_v52  ;;  %vm7780_vm9 = vcmask 990208  }
 0x530   : > { %v4363_v18 = vpack.c.bf16 %v3201_v34, %v3189_v57  ;;  %v4883_v10 = vpop.permute.xlu0 %4882  ;;  %v4309_v37 = vpack.c.bf16 %v3200_v19, %v3188_v40  ;;  %v4361_v44 = vpack.c.bf16 %v3202_v23, %v3190_v17  ;;  %v7778_v19 = vunpack.i.l.bf16 %v7771_v41  ;;  %vm7781_vm10 = vmmov %vm7780_vm9 }
 0x531   : > { %v4888_v33 = vpop.permute.xlu1 %4887  ;;  %v4885_v1 = vunpack.i.h.bf16 %v4883_v10  ;;  %v4884_v50 = vunpack.i.l.bf16 %v4883_v10  ;;  %vm7783_vm13 = vmmov %vm7780_vm9  ;;  %v4675_v43 = vunpack.i.h.bf16 %v6918_v7 }
 0x532   : > { %v4890_v53 = vunpack.i.h.bf16 %v4888_v33  ;;  %v4889_v32 = vunpack.i.l.bf16 %v4888_v33  ;;  %4310 = vmatprep.subr.bf16.mxu0 %v4309_v37  ;;  %4362 = vmatprep.subr.bf16.mxu1 %v4361_v44 }
 0x533   : > { %v3225_v20 = vsel %vm7773_vm14, %v4884_v50, %v4885_v1  ;;  %4312 = vmatpush1.bf16.msra.mxu0 %v7776_v47  ;;  %4364 = vmatpush1.bf16.msra.mxu1 %v4363_v18  ;;  %v3224_v34 = vsel %vm7777_vm12, %v4635_v27, %v4884_v50  ;;  %v3226_v35 = vsel %vm7779_vm15, %v4885_v1, %v7778_v19  ;;  %vm7784_vm14 = vmmov %vm7777_vm12  ;;  %vm7786_vm15 = vcmask 973824  }
 0x534   : > { %v3253_v14 = vsel %vm7780_vm9, %v4889_v32, %v4890_v53  ;;  %v3216_v42 = vpop.permute.xlu0 %3215  ;;  %v3252_v59 = vsel %vm7781_vm10, %v4650_v22, %v4889_v32  ;;  %v3254_v23 = vsel %vm7783_vm13, %v4890_v53, %v4645_v8  ;;  %vm7785_vm12 = vmmov %vm7780_vm9  ;;  %v4680_v8 = vunpack.i.h.bf16 %v6936_v30 }
 0x535   : > { %v4367_v52 = vpack.c.bf16 %v3253_v14, %v3225_v20  ;;  %v3244_v49 = vpop.permute.xlu1 %3243  ;;  %v3223_v13 = vsel %vm7784_vm14, %v3216_v42, %v4635_v27  ;;  %v4313_v57 = vpack.c.bf16 %v3252_v59, %v3224_v34  ;;  %v4365_v28 = vpack.c.bf16 %v3254_v23, %v3226_v35  ;;  %vm7787_vm9 = vmmov %vm7786_vm15 }
 0x536   : > { %v3251_v38 = vsel %vm7785_vm12, %v3244_v49, %v4650_v22  ;;  %vm7788_vm10 = vmmov %vm7787_vm9 }
 0x537   : > { %v4315_v56 = vpack.c.bf16 %v3251_v38, %v3223_v13  ;;  %4314 = vmatprep.subr.bf16.mxu0 %v4313_v57  ;;  %4366 = vmatprep.subr.bf16.mxu1 %v4365_v28  ;;  %vm7789_vm13 = vmmov %vm7787_vm9  ;;  %v4830_v38 = vunpack.i.h.bf16 %v7209_v0 }
 0x538   : > { %4368 = vmatpush1.bf16.msra.mxu1 %v4367_v52  ;;  %v4893_v46 = vpop.permute.xlu0 %4892 }
 0x539   : > { %v4898_v40 = vpop.permute.xlu1 %4897  ;;  %v4895_v17 = vunpack.i.h.bf16 %v4893_v46  ;;  %v4894_v18 = vunpack.i.l.bf16 %v4893_v46  ;;  %4316 = vmatpush1.bf16.msra.mxu0 %v4315_v56 }
 0x53a   : > { %v4900_v10 = vunpack.i.h.bf16 %v4898_v40  ;;  %v4899_v37 = vunpack.i.l.bf16 %v4898_v40 }
 0x53b   : > { %v3281_v44 = vsel %vm1289_vm11, %v4894_v18, %v4895_v17  ;;  %v3280_v41 = vsel %vm1289_vm11, %v4675_v43, %v4894_v18  ;;  %v3282_v27 = vsel %vm1289_vm11, %v4895_v17, %v4660_v54 }
 0x53c   : > { %v3309_v33 = vsel %vm7786_vm15, %v4899_v37, %v4900_v10  ;;  %v3272_v1 = vpop.permute.xlu0 %3271  ;;  %v3308_v7 = vsel %vm7787_vm9, %v4680_v8, %v4899_v37  ;;  %v3310_v50 = vsel %vm7788_vm10, %v4900_v10, %v4670_v45  ;;  %v4820_v45 = vunpack.i.h.bf16 %v7195_v3 }
 0x53d   : > { %v4371_v30 = vpack.c.bf16 %v3309_v33, %v3281_v44  ;;  %v3300_v5 = vpop.permute.xlu1 %3299  ;;  %v3279_v22 = vsel %vm1289_vm11, %v3272_v1, %v4675_v43  ;;  %v4317_v53 = vpack.c.bf16 %v3308_v7, %v3280_v41  ;;  %v4369_v32 = vpack.c.bf16 %v3310_v50, %v3282_v27 }
 0x53e   : > { %v3307_v20 = vsel %vm7789_vm13, %v3300_v5, %v4680_v8 }
 0x53f   : > { %v4319_v51 = vpack.c.bf16 %v3307_v20, %v3279_v22  ;;  %4318 = vmatprep.subr.bf16.mxu0 %v4317_v53  ;;  %4370 = vmatprep.subr.bf16.mxu1 %v4369_v32 }
 0x540   : > { %4372 = vmatpush1.bf16.msra.mxu1 %v4371_v30  ;;  %v4903_v54 = vpop.permute.xlu0 %4902 }
 0x541   : > { %v4908_v6 = vpop.permute.xlu1 %4907  ;;  %v4905_v47 = vunpack.i.h.bf16 %v4903_v54  ;;  %v4904_v11 = vunpack.i.l.bf16 %v4903_v54  ;;  %4320 = vmatpush1.bf16.msra.mxu0 %v4319_v51 }
 0x542   : > { %v4910_v34 = vunpack.i.h.bf16 %v4908_v6  ;;  %v4909_v19 = vunpack.i.l.bf16 %v4908_v6 }
 0x543   : > { %v3337_v35 = vsel %vm627_vm8, %v4904_v11, %v4905_v47  ;;  %v3336_v14 = vsel %vm627_vm8, %v4810_v48, %v4904_v11  ;;  %v3338_v42 = vsel %vm627_vm8, %v4905_v47, %v4690_v60 }
 0x544   : > { %v3365_v59 = vsel %vm697_vm7, %v4909_v19, %v4910_v34  ;;  %v3328_v12 = vpop.permute.xlu0 %3327  ;;  %v3364_v21 = vsel %vm697_vm7, %v4820_v45, %v4909_v19  ;;  %v3366_v23 = vsel %vm697_vm7, %v4910_v34, %v4700_v4 }
 0x545   : > { %v4375_v3 = vpack.c.bf16 %v3365_v59, %v3337_v35  ;;  %v3356_v52 = vpop.permute.xlu1 %3355  ;;  %v3335_v49 = vsel %vm627_vm8, %v3328_v12, %v4810_v48  ;;  %v4321_v13 = vpack.c.bf16 %v3364_v21, %v3336_v14  ;;  %v4373_v57 = vpack.c.bf16 %v3366_v23, %v3338_v42 }
 0x546   : > { %v3363_v28 = vsel %vm697_vm7, %v3356_v52, %v4820_v45 }
 0x547   : > { %v4323_v55 = vpack.c.bf16 %v3363_v28, %v3335_v49  ;;  %4322 = vmatprep.subr.bf16.mxu0 %v4321_v13  ;;  %4374 = vmatprep.subr.bf16.mxu1 %v4373_v57 }
 0x548   : > { %4376 = vmatpush1.bf16.msra.mxu1 %v4375_v3  ;;  %v4913_v60 = vpop.permute.xlu0 %4912 }
 0x549   : > { %v4918_v56 = vpop.permute.xlu1 %4917  ;;  %v4914_v46 = vunpack.i.l.bf16 %v4913_v60  ;;  %4324 = vmatpush1.bf16.msra.mxu0 %v4323_v55  ;;  %v4915_v43 = vunpack.i.h.bf16 %v4913_v60 }
 0x54a   : > { %v4920_v61 = vunpack.i.h.bf16 %v4918_v56  ;;  %v4919_v4 = vunpack.i.l.bf16 %v4918_v56 }
 0x54b   : > { %v3392_v40 = vsel %vm767_vm6, %v4830_v38, %v4914_v46  ;;  %v3393_v41 = vsel %vm767_vm6, %v4914_v46, %v4915_v43  ;;  %v3394_v0 = vsel %vm767_vm6, %v4915_v43, %v4720_v58 }
 0x54c   : > { %v4923_v17 = vpop.permute.xlu0 %4922  ;;  %v3420_v18 = vsel %vm837_vm5, %v4919_v4, %v4920_v61 }
 0x54d   : > { %v3384_v8 = vpop.permute.xlu1 %3383  ;;  %v4925_v10 = vunpack.i.h.bf16 %v4923_v17  ;;  %v4924_v37 = vunpack.i.l.bf16 %v4923_v17  ;;  %v4325_v44 = vpack.c.bf16 %v3420_v18, %v3392_v40 }
 0x54e   : > { %v3391_v27 = vsel %vm767_vm6, %v3384_v8, %v4830_v38 }
 0x54f   : > { %v3419_v33 = vsel %vm837_vm5, %v4925_v10, %v4919_v4  ;;  %v3421_v1 = vsel %vm837_vm5, %v4920_v61, %v4924_v37  ;;  %4326 = vmatprep.subr.bf16.mxu0 %v4325_v44  ;;  %v3422_v7 = vsel %vm837_vm5, %v4924_v37, %v4730_v15 }
 0x550   : > { %v4327_v50 = vpack.c.bf16 %v3419_v33, %v3391_v27  ;;  %v4379_v30 = vpack.c.bf16 %v3421_v1, %v3393_v41  ;;  %v4928_v5 = vpop.permute.xlu0 %4927  ;;  %v4377_v22 = vpack.c.bf16 %v3422_v7, %v3394_v0  ;;  %v3902_v33 = vld [vmem:[%s7385_s30 + $0x4] sm:$0xf]  ;;  %v3904_v1 = vld [vmem:[%s7385_s30 + $0xc] sm:$0xf]  ;;  %v3918_v7 = vstv %s3917_s12  ;;  %s4174_s12 = sld [smem:[#allocation8 + $0x2]] }
 0x551   : > { %v4933_v53 = vpop.permute.xlu1 %4932  ;;  %v4930_v32 = vunpack.i.h.bf16 %v4928_v5  ;;  %v4929_v20 = vunpack.i.l.bf16 %v4928_v5 }
 0x552   : > { %4328 = vmatpush1.bf16.msra.mxu0 %v4327_v50  ;;  %4378 = vmatprep.subr.bf16.mxu1 %v4377_v22  ;;  %v4935_v63 = vunpack.i.h.bf16 %v4933_v53  ;;  %v4934_v58 = vunpack.i.l.bf16 %v4933_v53  ;;  %v3921_v50 = vstv %s4159_s25  ;;  %v3925_v22 = vstv %s4160_s16  ;;  %s4180_s25 = sshll.u32 %s7795_s21, 4  ;;  %s4156_s21 = sld [smem:[#allocation10 + $0x80]] }
 0x553   : > { %4380 = vmatpush1.bf16.msra.mxu1 %v4379_v30  ;;  %v3448_v45 = vsel %vm878_vm4, %v4929_v20, %v4930_v32  ;;  %v3922_v5 = vmul.f32 %v3921_v50, %v3902_v33  ;;  %v3929_v53 = vstv %s4161_s28 }
 0x554   : > { %v4938_v51 = vpop.permute.xlu0 %4937  ;;  %v3449_v15 = vsel %vm878_vm4, %v4930_v32, %v4934_v58  ;;  %v3447_v11 = vsel %vm878_vm4, %v4935_v63, %v4929_v20  ;;  %v3450_v3 = vsel %vm878_vm4, %v4934_v58, %v4750_v39  ;;  %v3905_v63 = vld [vmem:[%s7385_s30 + $0x10] sm:$0xf]  ;;  %v3933_v32 = vstv %s4162_s14  ;;  %s7407_s14 = scalar_lea.vmem %s7438_s11, %s4180_s25 }
 0x555   : > { %v4943_v54 = vpop.permute.xlu1 %4942  ;;  %v4940_v48 = vunpack.i.h.bf16 %v4938_v51  ;;  %v4939_v6 = vunpack.i.l.bf16 %v4938_v51  ;;  %v3930_v51 = vmul.f32 %v3929_v53, %v3904_v1  ;;  %v7790_v1 = vlaneseq }
 0x556   : > { %v4945_v47 = vunpack.i.h.bf16 %v4943_v54  ;;  %v4944_v9 = vunpack.i.l.bf16 %v4943_v54  ;;  %v3906_v54 = vld [vmem:[%s7385_s30 + $0x14] sm:$0xf] }
 0x557   : > { %v3476_v34 = vsel %vm808_vm3, %v4939_v6, %v4940_v48 }
 0x558   : > { %v3477_v19 = vsel %vm808_vm3, %v4940_v48, %v4944_v9  ;;  %v3475_v35 = vsel %vm808_vm3, %v4945_v47, %v4939_v6  ;;  %v4948_v14 = vpop.permute.xlu0 %4947  ;;  %v4329_v42 = vpack.c.bf16 %v3476_v34, %v3448_v45  ;;  %v3478_v59 = vsel %vm808_vm3, %v4944_v9, %v4760_v26  ;;  %v3907_v9 = vld [vmem:[%s7385_s30 + $0x18] sm:$0xf]  ;;  %v3908_v34 = vld [vmem:[%s7385_s30 + $0x1c] sm:$0xf] }
 0x559   : > { %v4331_v12 = vpack.c.bf16 %v3475_v35, %v3447_v11  ;;  %v4383_v21 = vpack.c.bf16 %v3477_v19, %v3449_v15  ;;  %v4953_v23 = vpop.permute.xlu1 %4952  ;;  %v4950_v52 = vunpack.i.h.bf16 %v4948_v14  ;;  %v4949_v49 = vunpack.i.l.bf16 %v4948_v14 }
 0x55a   : > { %4330 = vmatprep.subr.bf16.mxu0 %v4329_v42  ;;  %v4381_v13 = vpack.c.bf16 %v3478_v59, %v3450_v3  ;;  %v4955_v57 = vunpack.i.h.bf16 %v4953_v23  ;;  %v4954_v28 = vunpack.i.l.bf16 %v4953_v23  ;;  %v3937_v48 = vstv %s4163_s29  ;;  %v3909_v42 = vld [vmem:[%s7385_s30 + $0x20] sm:$0xf]  ;;  %v3910_v23 = vld [vmem:[%s7385_s30 + $0x24] sm:$0xf]  ;;  %s4144_s29 = sld [smem:[#allocation10 + $0x1]] }
 0x55b   : > { %4332 = vmatpush1.bf16.msra.mxu0 %v4331_v12  ;;  %v3504_v46 = vsel %vm738_vm2, %v4949_v49, %v4950_v52  ;;  %v3934_v47 = vmul.f32 %v3933_v32, %v3905_v63  ;;  %v3941_v15 = vstv %s4164_s22  ;;  %v3938_v45 = vmul.f32 %v3937_v48, %v3906_v54  ;;  %s4157_s22 = sld [smem:[#allocation10 + $0x81]] }
 0x55c   : > { %4382 = vmatprep.subr.bf16.mxu1 %v4381_v13  ;;  %v4958_v55 = vpop.permute.xlu0 %4957  ;;  %v3505_v2 = vsel %vm738_vm2, %v4950_v52, %v4954_v28  ;;  %v3503_v39 = vsel %vm738_vm2, %v4955_v57, %v4949_v49  ;;  %v3506_v4 = vsel %vm738_vm2, %v4954_v28, %v4780_v36  ;;  %v3945_v19 = vstv %s4165_s13  ;;  %v3911_v13 = vld [vmem:[%s7385_s30 + $0x28] sm:$0xf] }
 0x55d   : > { %4384 = vmatpush1.bf16.msra.mxu1 %v4383_v21  ;;  %v4963_v25 = vpop.permute.xlu1 %4962  ;;  %v4960_v60 = vunpack.i.h.bf16 %v4958_v55  ;;  %v4959_v26 = vunpack.i.l.bf16 %v4958_v55  ;;  %v3942_v14 = vmul.f32 %v3941_v15, %v3907_v9  ;;  %v3949_v59 = vstv %s4166_s19 }
 0x55e   : > { %v4965_v38 = vunpack.i.h.bf16 %v4963_v25  ;;  %v4964_v56 = vunpack.i.l.bf16 %v4963_v25  ;;  %v3946_v21 = vmul.f32 %v3945_v19, %v3908_v34  ;;  %v3953_v3 = vstv %s4167_s18  ;;  %v3912_v25 = vld [vmem:[%s7385_s30 + $0x2c] sm:$0xf] }
 0x55f   : > { %v3532_v61 = vsel %vm668_vm1, %v4959_v26, %v4960_v60  ;;  %v3950_v49 = vmul.f32 %v3949_v59, %v3909_v42  ;;  %v3957_v57 = vstv %s4168_s15  ;;  %v3954_v55 = vmul.f32 %v3953_v3, %v3910_v23 }
 0x560   : > { %v3533_v43 = vsel %vm668_vm1, %v4960_v60, %v4964_v56  ;;  %v3531_v40 = vsel %vm668_vm1, %v4965_v38, %v4959_v26  ;;  %v3554_v17 = vpop.permute.xlu0 %3553  ;;  %v4333_v18 = vpack.c.bf16 %v3532_v61, %v3504_v46  ;;  %v3534_v8 = vsel %vm668_vm1, %v4964_v56, %v4790_v29  ;;  %v3913_v56 = vld [vmem:[%s7385_s30 + $0x30] sm:$0xf]  ;;  %v3914_v61 = vld [vmem:[%s7385_s30 + $0x34] sm:$0xf] }
 0x561   : > { %v4335_v10 = vpack.c.bf16 %v3531_v40, %v3503_v39  ;;  %v4387_v37 = vpack.c.bf16 %v3533_v43, %v3505_v2  ;;  %v3556_v44 = vpop.permute.xlu1 %3555  ;;  %v4385_v41 = vpack.c.bf16 %v3534_v8, %v3506_v4  ;;  %v3961_v60 = vstv %s4169_s23 }
 0x562   : > { %4334 = vmatprep.subr.bf16.mxu0 %v4333_v18  ;;  %v3560_v62 = vsel %vm598_vm0, %v3554_v17, %v3556_v44  ;;  %v3958_v38 = vmul.f32 %v3957_v57, %v3911_v13  ;;  %v3965_v46 = vstv %s4170_s24  ;;  %v3962_v39 = vmul.f32 %v3961_v60, %v3912_v25 }
 0x563   : > { %4386 = vmatprep.subr.bf16.mxu1 %v4385_v41  ;;  %4336 = vmatpush1.bf16.msra.mxu0 %v4335_v10  ;;  %v3969_v4 = vstv %s4171_s26  ;;  %v3966_v40 = vmul.f32 %v3965_v46, %v3913_v56  ;;  %v3973_v18 = vstv %s4172_s20 }
 0x564   : > { %4388 = vmatpush1.bf16.msra.mxu1 %v4387_v37  ;;  %v3558_v36 = vpop.permute.xlu0 %3557  ;;  %3744 = vmatprep.subr.mxu0 %v3560_v62  ;;  %v3970_v10 = vmul.f32 %v3969_v4, %v3914_v61  ;;  %v3916_v37 = vld [vmem:[%s7385_s30 + $0x3c] sm:$0xf]  ;;  %v3845_v61 = vstv %s4157_s22 }
 0x565   : > { %v3552_v0 = vpop.permute.xlu1 %3551  ;;  %v3561_v27 = vsel %vm598_vm0, %v3556_v44, %v3558_v36  ;;  %v3562_v16 = vsel %vm598_vm0, %v3558_v36, %v7178_v24  ;;  %v3901_v24 = vld [vmem:[%s7385_s30] sm:$0xf]  ;;  %v3977_v44 = vstv %s4173_s27 }
 0x566   : > { %v3559_v29 = vsel %vm598_vm0, %v3552_v0, %v3554_v17  ;;  %3815 = vmatprep.subr.mxu1 %v3562_v16  ;;  %v3919_v30 = vmul.f32 %v3918_v7, %v3901_v24  ;;  %v3915_v17 = vld [vmem:[%s7385_s30 + $0x38] sm:$0xf]  ;;  %v3978_v0 = vmul.f32 %v3977_v44, %v3916_v37  ;;  %v3981_v16 = vstv %s4174_s12 }
 0x567   : > { %3745 = vmatpush1.msra.mxu0 %v3559_v29  ;;  %v3974_v62 = vmul.f32 %v3973_v18, %v3915_v17  ;;  %vm7410_vm0 = vcmp.lt.s32.totalorder %v7790_v1, 512 }
 0x568   : > { %3816 = vmatpush1.msra.mxu1 %v3561_v27  ;;  %3757 = vmatmul.mubr.f32.vlgmr.msra.gmra.mrb[2].mxu0 %v7176_v31  ;;  %v3923_v20 = vadd.f32 %v3922_v5, %v3919_v30  ;;  %v2654_v30 = vstv %s4144_s29 }
 0x569   : > { %3828 = vmatmul.mubr.f32.vlgmr.msra.gmra.mrb[2].mxu1 %v7176_v31  ;;  %v3903_v31 = vld [vmem:[%s7385_s30 + $0x8] sm:$0xf]  ;;  %s2643_s30 = sld [smem:[#allocation10]] }
 0x56a   : > { %v3926_v58 = vmul.f32 %v3925_v22, %v3903_v31 }
 0x56c   : > { %v3927_v6 = vadd.f32 %v3926_v58, %v3923_v20 }
 0x56e   : > { %v3931_v11 = vadd.f32 %v3930_v51, %v3927_v6 }
 0x56f   : > { %v2644_v50 = vstv %s2643_s30 }
 0x570   : > { %v3935_v35 = vadd.f32 %v3934_v47, %v3931_v11  ;;  %v5087_v47 = vmov 1966171168  }
 0x571   : > { %v2686_v9 = vunpack.c.l.s4 %v5087_v47 }
 0x572   : > { %v3939_v12 = vadd.f32 %v3938_v45, %v3935_v35 }
 0x574   : > { %v3943_v52 = vadd.f32 %v3942_v14, %v3939_v12  ;;  %v2687_v12 = vunpack.c.0.s8 %v2686_v9 }
 0x576   : > { %v3947_v28 = vadd.f32 %v3946_v21, %v3943_v52 }
 0x578   : > { %v3951_v26 = vadd.f32 %v3950_v49, %v3947_v28  ;;  %v7793_v28 = vld [vmem:[#allocation14_spill] sm:$0xff] }
 0x57a   : > { %v3955_v2 = vadd.f32 %v3954_v55, %v3951_v26  ;;  %v2690_v55 = vsub.s32 %v2687_v12, %v7793_v28 }
 0x57c   : > { %v3959_v43 = vadd.f32 %v3958_v38, %v3955_v2 }
 0x57e   : > { %v3963_v8 = vadd.f32 %v3962_v39, %v3959_v43  ;;  %v3835_v39 = vstv %s4156_s21 }
 0x580   : > { %v3967_v41 = vadd.f32 %v3966_v40, %v3963_v8 }
 0x582   : > { %v3971_v36 = vadd.f32 %v3970_v10, %v3967_v41 }
 0x584   : > { %v3975_v27 = vadd.f32 %v3974_v62, %v3971_v36 }
 0x586   : > { %v3979_v29 = vadd.f32 %v3978_v0, %v3975_v27 }
 0x588   : > { %v3982_v24 = vadd.f32 %v3981_v16, %v3979_v29 }
 0x58a   : > { %v3983_v33 = vmax.f32 %v3982_v24, 0.0 }
 0x58c   : > { %v3984_v31 = vmin.f32 %v3983_v33, 6.0 }
 0x58e   : > { %4175 = vst.msk [vmem:[%s7407_s14 + $0x2] ss:$4 sm:$0xf] %vm7410_vm0, %v3984_v31 }
 0x5cf   : > { %v2638_v5 = vpop.f32.mrb[0].mxu1 }
 0x5d0   : > { %v2647_v22 = vadd.f32 %v2644_v50, %v2638_v5  ;;  %v2657_v53 = vadd.f32 %v2654_v30, %v2638_v5  ;;  %v2640_v63 = vpop.f32.mrb[1].mxu1 }
 0x5d1   : > { %v2648_v58 = vadd.f32 %v2644_v50, %v2640_v63  ;;  %v2658_v32 = vadd.f32 %v2654_v30, %v2640_v63 }
 0x5d2   : > { %v2651_v20 = vmax.f32 %v2647_v22, 0.0  ;;  %v2661_v51 = vmax.f32 %v2657_v53, 0.0 }
 0x5d3   : > { %v2652_v54 = vmax.f32 %v2648_v58, 0.0  ;;  %v2662_v48 = vmax.f32 %v2658_v32, 0.0 }
 0x5d4   : > { %v2669_v6 = vrot.slane %v2661_v51, 1 }
 0x5d5   : > { %v2670_v15 = vrot.slane %v2662_v48, 1 }
 0x5d6   : > { %v2677_v11 = vadd.f32 %v2669_v6, %v2651_v20  ;;  %v2567_v45 = vpop.f32.mrb[0].mxu0 }
 0x5d7   : > { %v2678_v34 = vadd.f32 %v2670_v15, %v2652_v54  ;;  %v2645_v19 = vadd.f32 %v2644_v50, %v2567_v45  ;;  %v2655_v35 = vadd.f32 %v2654_v30, %v2567_v45  ;;  %v2569_v14 = vpop.f32.mrb[1].mxu0 }
 0x5d8   : > { %v2646_v42 = vadd.f32 %v2644_v50, %v2569_v14  ;;  %v2656_v59 = vadd.f32 %v2654_v30, %v2569_v14 }
 0x5d9   : > { %v2684_v21 = vcombine.low %v2677_v11, %v2678_v34  ;;  %v2649_v23 = vmax.f32 %v2645_v19, 0.0  ;;  %v2659_v3 = vmax.f32 %v2655_v35, 0.0 }
 0x5da   : > { %v2650_v52 = vmax.f32 %v2646_v42, 0.0  ;;  %v2660_v49 = vmax.f32 %v2656_v59, 0.0 }
 0x5db   : > { %v2667_v13 = vrot.slane %v2659_v3, 1  ;;  %v2698_v38 = vrot.slane %v2684_v21, %v2690_v55 }
 0x5dc   : > { %v2668_v57 = vrot.slane %v2660_v49, 1 }
 0x5dd   : > { %v2675_v25 = vadd.f32 %v2667_v13, %v2649_v23 }
 0x5de   : > { %v2676_v60 = vadd.f32 %v2668_v57, %v2650_v52 }
 0x5e0   : > { %v2683_v26 = vcombine.low %v2675_v25, %v2676_v60 }
 0x5e2   : > { %v2691_v56 = vrot.slane %v2683_v26, %v2690_v55 }
 0x5e4   : > { %v2699_v46 = vcombine.low %v2691_v56, %v2698_v38 }
 0x5e6   : > { %v2706_v2 = vrot.slane %v2699_v46, %v2690_v55 }
 0x5e8   : > { %2712 = vst.msk [vmem:[%s7407_s14] ss:$4 sm:$0xf] %vm7410_vm0, %v2706_v2 }
 0x63b   : > { %v3758_v4 = vpop.f32.mrb[2].mxu0 }
 0x63c   : > { %v3836_v43 = vadd.f32 %v3835_v39, %v3758_v4  ;;  %v3846_v40 = vadd.f32 %v3845_v61, %v3758_v4  ;;  %v3829_v17 = vpop.f32.mrb[2].mxu1  ;;  %v3760_v18 = vpop.f32.mrb[3].mxu0 }
 0x63d   : > { %v3838_v8 = vadd.f32 %v3835_v39, %v3829_v17  ;;  %v3848_v10 = vadd.f32 %v3845_v61, %v3829_v17  ;;  %v3837_v37 = vadd.f32 %v3835_v39, %v3760_v18  ;;  %v3847_v44 = vadd.f32 %v3845_v61, %v3760_v18  ;;  %v3831_v41 = vpop.f32.mrb[3].mxu1 }
 0x63e   : > { %v3850_v62 = vmax.f32 %v3846_v40, 0.0  ;;  %v3839_v36 = vadd.f32 %v3835_v39, %v3831_v41  ;;  %v3849_v0 = vadd.f32 %v3845_v61, %v3831_v41  ;;  %v3840_v29 = vmax.f32 %v3836_v43, 0.0 }
 0x63f   : > { %v3852_v27 = vmax.f32 %v3848_v10, 0.0  ;;  %v3851_v16 = vmax.f32 %v3847_v44, 0.0  ;;  %v3842_v31 = vmax.f32 %v3838_v8, 0.0  ;;  %v3841_v50 = vmax.f32 %v3837_v37, 0.0 }
 0x640   : > { %v3858_v24 = vrot.slane %v3850_v62, 1  ;;  %v3853_v33 = vmax.f32 %v3849_v0, 0.0  ;;  %v3843_v22 = vmax.f32 %v3839_v36, 0.0 }
 0x641   : > { %v3860_v1 = vrot.slane %v3852_v27, 1  ;;  %v3859_v30 = vrot.slane %v3851_v16, 1 }
 0x642   : > { %v3866_v5 = vadd.f32 %v3858_v24, %v3840_v29  ;;  %v3861_v53 = vrot.slane %v3853_v33, 1 }
 0x643   : > { %v3868_v63 = vadd.f32 %v3860_v1, %v3842_v31  ;;  %v3867_v58 = vadd.f32 %v3859_v30, %v3841_v50 }
 0x644   : > { %v3869_v32 = vadd.f32 %v3861_v53, %v3843_v22 }
 0x645   : > { %v3874_v20 = vcombine.low %v3866_v5, %v3867_v58 }
 0x646   : > { %v3875_v51 = vcombine.low %v3868_v63, %v3869_v32 }
 0x647   : > { %v3882_v54 = vrot.slane %v3874_v20, %v2690_v55 }
 0x648   : > { %v3889_v48 = vrot.slane %v3875_v51, %v2690_v55 }
 0x64a   : > { %v3890_v6 = vcombine.low %v3882_v54, %v3889_v48 }
 0x64c   : > { %v3897_v47 = vrot.slane %v3890_v6, %v2690_v55 }
 0x64e   : > { %4158 = vst.msk [vmem:[%s7407_s14 + $0x1] ss:$4 sm:$0xf] %vm7410_vm0, %v3897_v47 }
 0x64f PF: > { %s24_s17 = sadd.s32 1, %s5063_s17  }
 0x650   : > { %p21_p13 = scmp.ge.s32.totalorder %s24_s17, 4  }
 0x652   :  { %23 = sbr.rel (!%p21_p13) target bundleno = 3 (0x3), region = 123 }
 0x659   :  { %4008 = vsyncpa [#allocation4], 1 }
 0x65a   :  { %4010 = vsyncpa [#allocation4 + $0x1], 1 }
 0x65b   :  { %4011 = vsyncpa [#allocation6], 1 }
 0x65c   :  { %4012 = vsyncpa [#allocation9], 1 }

// kernel: dcla_forward.3
= control target key start
LH: loop header
LB: loop body
LE: loop exit
PB: predicated region body
PF: predicated region fallthrough
CT: control target
= control target key end

     0   :  { %s4585_s0 = inlined_call_operand.vmem [shape: f32[27,512], index: 0, kind: input, shape index: {}]   ;;  %s4586_s1 = inlined_call_operand.vmem [shape: f32[2,8,512], index: 1, kind: input, shape index: {}]   ;;  %s4587_s2 = inlined_call_operand.vmem [shape: f32[2,16,512], index: 2, kind: input, shape index: {}]   ;;  %s4588_s3 = inlined_call_operand.vmem [shape: f32[3,216], index: 3, kind: input, shape index: {}]   ;;  %s4589_s4 = inlined_call_operand.vmem [shape: f32[3], index: 4, kind: input, shape index: {}]   ;;  %s4590_s5 = inlined_call_operand.vmem [shape: f32[3], index: 5, kind: input, shape index: {}]   ;;  %s4591_s6 = inlined_call_operand.<no memory space> [shape: f32[1], index: 6, kind: input, shape index: {}]   ;;  %s4592_s7 = inlined_call_operand.vmem [shape: f32[2,16,512], index: 7, kind: output, shape index: {}]  }
   0x1   :  { %12 = sst [smem:[#allocation3]] %s4591_s6 }
   0x2   :  { %13 = vsyncpa [#allocation5], 0 }
   0x3   :  { %14 = vsyncpa [#allocation7], 0  ;;  %s3242_s26 = smov 0  }
   0x4 LB: > { %s3248_s27 = sadd.s32 4294967295, %s3178_s26   ;;  %p2666_p0 = scmp.ge.s32.totalorder %s3178_s26, 1  ;;  %s3178_s26 = sphi %s3242_s26, %s20_s26  }
   0x5   : > { %p208_p1 = scmp.lt.s32.totalorder %s3178_s26, 3  ;;  %s227_s29 = sshll.u32 %s4589_s4, 4  ;;  %s228_s29 = int_to_ptr.vmem [resolvable:$true] %s227_s29 }
   0x6   : > { %p4593_p3 = scmp.eq.s32.totalorder %s3248_s27, 0  ;;  %s238_s10 = sshll.u32 %s4590_s5, 4  ;;  %s239_s10 = int_to_ptr.vmem [resolvable:$true] %s238_s10 }
   0x7   : > { %p3255_p2 = pnand %p2666_p0, %p208_p1  ;;  %s3134_s12 = scalar_lea.vmem %s228_s29, 16 }
   0x8   : > { %p3135_p6 = scmp.ne.s32.totalorder %s228_s29, %s3134_s12  ;;  %p3142_p10 = scmp.lt.s32.totalorder %s228_s29, %s228_s29 }
   0x9   : > { %s4624_s30 = scalar_select %p3255_p2, 1, 0 }
   0xa   : > { %p2806_p4 = pneg %p3255_p2  ;;  %p3143_p11 = scmp.lt.s32.totalorder %s3134_s12, %s3134_s12 }
   0xc   : > { %p3267_p5 = pnand %p4593_p3, %p2806_p4  ;;  %p3144_p12 = por %p3143_p11, %p3142_p10 }
   0xe   : > { %p3136_p7 = pneg %p3267_p5 }
  0x10   : > { %p3137_p8 = pnand %p3136_p7, %p3135_p6 }
  0x12   : > { %p3138_p9 = pneg %p3137_p8 }
  0x14   : > { %p3145_p13 = pnand %p3144_p12, %p3138_p9 }
  0x16   : > { %3148 = shalt.err (!%p3145_p13)
}
  0x17   : > { %s3180_s13 = smov [#allocation4]   ;;  %s3149_s14 = scalar_lea.vmem %s239_s10, 16 }
  0x18   : > { %2809 = dma.vmem_to_smem (!%p3267_p5), %s228_s29, 16, %s3180_s13, [#allocation5]  }
  0x19   : > { %p3150_p0 = scmp.ne.s32.totalorder %s239_s10, %s3149_s14  ;;  %p3157_p3 = scmp.lt.s32.totalorder %s239_s10, %s239_s10 }
  0x1a   : > { %p3158_p2 = scmp.lt.s32.totalorder %s3149_s14, %s3149_s14 }
  0x1b   : > { %p3152_p1 = pnand %p3150_p0, %p3136_p7 }
  0x1c   : > { %p3159_p6 = por %p3158_p2, %p3157_p3 }
  0x1d   : > { %p3153_p4 = pneg %p3152_p1 }
  0x1f   : > { %p3160_p8 = pnand %p3159_p6, %p3153_p4 }
  0x21   : > { %3163 = shalt.err (!%p3160_p8)
}
  0x22   : > { %s3181_s15 = smov [#allocation6]   ;;  %p4626_p9 = scmp.ne.s32.totalorder %s4624_s30, 0 }
  0x23   : > { %2812 = dma.vmem_to_smem (!%p3267_p5), %s239_s10, 16, %s3181_s15, [#allocation7]  }
  0x24   : > { %270 = sbr.rel (%p4626_p9) target bundleno = 877 (0x36d), region = 48 }
  0x2b   : > { %p4627_p10 = scmp.eq.s32.totalorder %s3248_s27, 0 }
  0x2d   : > { %3169 = dma.done.wait (%p4627_p10), [#allocation5], 16   ;;  %p4628_p11 = pmov %p4627_p10 }
  0x2e   : > { %p4629_p7 = pmov %p4627_p10 }
  0x2f   : > { %3171 = vsyncadd (%p4628_p11), [#allocation5], 4294967280 }
  0x30   : > { %3173 = dma.done.wait (%p4629_p7), [#allocation7], 16   ;;  %p4630_p2 = pmov %p4629_p7 }
  0x32   : > { %3175 = vsyncadd (%p4630_p2), [#allocation7], 4294967280 }
  0x33   : > { %280 = sfence }
  0x34   : > { %v347_v0 = vlaneseq  ;;  %v3292_v2 = vld [vmem:[%s4585_s0 + $0x10] sm:$0xff]  ;;  %v3297_v3 = vld [vmem:[%s4585_s0] sm:$0xff]  ;;  %v3305_v5 = vld [vmem:[%s4585_s0 + $0x18] sm:$0xff]  ;;  %s3182_s24 = smov 55   ;;  %s3183_s25 = smov 56   ;;  %vm375_vm0 = vcmask 449536  }
  0x35   : > { %v3310_v6 = vld [vmem:[%s4585_s0 + $0x8] sm:$0xff]  ;;  %s3184_s28 = smov 57   ;;  %s3185_s6 = smov 63   ;;  %v3430_v46 = vld [vmem:[%s4585_s0 + $0x20] sm:$0xff]  ;;  %v3446_v50 = vld [vmem:[%s4585_s0 + $0x30] sm:$0xff]  ;;  %vm445_vm1 = vcmask 457728  }
  0x36   : > { %v3287_v1 = vshrl.u32 %v347_v0, 7  ;;  %s3186_s29 = smov 64   ;;  %s3187_s30 = smov 65   ;;  %v3435_v47 = vld [vmem:[%s4585_s0 + $0x28] sm:$0xff]  ;;  %v3451_v51 = vld [vmem:[%s4585_s0 + $0x38] sm:$0xff]  ;;  %vm515_vm2 = vcmask 465920  }
  0x37   : > { %s3188_s8 = smov 71   ;;  %s3189_s9 = smov 72   ;;  %vm585_vm3 = vcmask 515072   ;;  %vm4622_vm4 = vcmask 588800   ;;  %vm4623_vm5 = vcmask 596992   ;;  %vm655_vm6 = vcmask 523264  }
  0x38   : > { %v3300_v4 = vsub.s32 0, %v3287_v1  ;;  %v3323_v11 = vsub.s32 1, %v3287_v1  ;;  %v3338_v16 = vsub.s32 2, %v3287_v1  ;;  %v3351_v20 = vsub.s32 3, %v3287_v1  ;;  %s3190_s18 = smov 73   ;;  %s3191_s19 = smov 119  }
  0x39   : > { %v3366_v25 = vsub.s32 4, %v3287_v1  ;;  %v3381_v30 = vsub.s32 5, %v3287_v1  ;;  %v3396_v35 = vsub.s32 6, %v3287_v1  ;;  %v3411_v40 = vsub.s32 7, %v3287_v1  ;;  %s3192_s20 = smov 120   ;;  %s3193_s21 = smov 121  }
  0x3a   : > { %4631 = vst [vmem:[#allocation10_spill] sm:$0xff] %v3300_v4  ;;  %v358_v7 = vrot.slane %v3292_v2, %v3300_v4  ;;  %v350_v8 = vrot.slane %v3297_v3, %v3300_v4  ;;  %v362_v9 = vrot.slane %v3305_v5, %v3300_v4  ;;  %v354_v10 = vrot.slane %v3310_v6, %v3300_v4  ;;  %s3194_s22 = smov 127   ;;  %p312_p3 = scmp.lt.s32.totalorder %s3248_s27, 1 }
  0x3b   : > { %v420_v12 = vrot.slane %v3297_v3, %v3323_v11  ;;  %v424_v13 = vrot.slane %v3310_v6, %v3323_v11  ;;  %v428_v14 = vrot.slane %v3292_v2, %v3323_v11  ;;  %v432_v15 = vrot.slane %v3305_v5, %v3323_v11  ;;  %4632 = vst [vmem:[#allocation11_spill] sm:$0xff] %v3381_v30  ;;  %s3195_s23 = smov 1   ;;  %s3196_s11 = smov 7  }
  0x3c   : > { %371 = vrot.lane.b32.xlu1 %v358_v7, %s3182_s24  ;;  %367 = vrot.lane.b32.xlu0 %v350_v8, %s3182_s24  ;;  %v490_v17 = vrot.slane %v3297_v3, %v3338_v16  ;;  %v494_v18 = vrot.slane %v3310_v6, %v3338_v16  ;;  %v498_v19 = vrot.slane %v3292_v2, %v3338_v16  ;;  %s4705_s27 = smov (!%p312_p3, %s3248_s27), 1  ;;  %s3197_s15 = smov 8   ;;  %vm614_vm7 = vcmask 531456  }
  0x3d   : > { %v502_v21 = vrot.slane %v3305_v5, %v3338_v16  ;;  %v560_v22 = vrot.slane %v3297_v3, %v3351_v20  ;;  %v564_v23 = vrot.slane %v3310_v6, %v3351_v20  ;;  %v568_v24 = vrot.slane %v3292_v2, %v3351_v20  ;;  %s2691_s10 = sshll.u32 %s4705_s27, 5 }
  0x3e   : > { %v572_v26 = vrot.slane %v3305_v5, %v3351_v20  ;;  %v630_v27 = vrot.slane %v3297_v3, %v3366_v25  ;;  %v634_v28 = vrot.slane %v3310_v6, %v3366_v25  ;;  %v638_v29 = vrot.slane %v3292_v2, %v3366_v25  ;;  %s3535_s14 = scalar_lea.vmem %s4586_s1, %s2691_s10  ;;  %s3198_s10 = smov 9  }
  0x3f   : > { %v642_v31 = vrot.slane %v3305_v5, %v3366_v25  ;;  %v699_v32 = vrot.slane %v3297_v3, %v3381_v30  ;;  %v703_v33 = vrot.slane %v3310_v6, %v3381_v30  ;;  %v707_v34 = vrot.slane %v3292_v2, %v3381_v30 }
  0x40   : > { %373 = vrot.lane.b32.xlu1 %v362_v9, %s3182_s24  ;;  %369 = vrot.lane.b32.xlu0 %v354_v10, %s3182_s24  ;;  %v711_v36 = vrot.slane %v3305_v5, %v3381_v30  ;;  %v767_v37 = vrot.slane %v3297_v3, %v3396_v35  ;;  %v771_v38 = vrot.slane %v3310_v6, %v3396_v35  ;;  %vm544_vm8 = vcmask 580608  }
  0x41   : > { %v775_v39 = vrot.slane %v3292_v2, %v3396_v35  ;;  %v779_v41 = vrot.slane %v3305_v5, %v3396_v35  ;;  %v835_v42 = vrot.slane %v3297_v3, %v3411_v40  ;;  %v839_v43 = vrot.slane %v3310_v6, %v3411_v40 }
  0x42   : > { %v843_v44 = vrot.slane %v3292_v2, %v3411_v40  ;;  %v847_v45 = vrot.slane %v3305_v5, %v3411_v40  ;;  %v903_v48 = vrot.slane %v3430_v46, %v3300_v4  ;;  %v907_v49 = vrot.slane %v3435_v47, %v3300_v4 }
  0x43   : > { %v911_v52 = vrot.slane %v3446_v50, %v3300_v4  ;;  %v915_v53 = vrot.slane %v3451_v51, %v3300_v4  ;;  %v971_v54 = vrot.slane %v3430_v46, %v3323_v11  ;;  %v975_v55 = vrot.slane %v3435_v47, %v3323_v11 }
  0x44   : > { %437 = vrot.lane.b32.xlu1 %v420_v12, %s3183_s25  ;;  %439 = vrot.lane.b32.xlu0 %v424_v13, %s3183_s25  ;;  %v979_v56 = vrot.slane %v3446_v50, %v3323_v11  ;;  %v983_v57 = vrot.slane %v3451_v51, %v3323_v11  ;;  %v1041_v58 = vrot.slane %v3430_v46, %v3338_v16  ;;  %vm996_vm9 = vcmask 973824  }
  0x45   : > { %v1045_v59 = vrot.slane %v3435_v47, %v3338_v16  ;;  %v1049_v60 = vrot.slane %v3446_v50, %v3338_v16  ;;  %v1053_v61 = vrot.slane %v3451_v51, %v3338_v16  ;;  %v1111_v62 = vrot.slane %v3430_v46, %v3351_v20 }
  0x46   : > { %v1115_v63 = vrot.slane %v3435_v47, %v3351_v20  ;;  %v1119_v0 = vrot.slane %v3446_v50, %v3351_v20  ;;  %v1123_v1 = vrot.slane %v3451_v51, %v3351_v20  ;;  %v1181_v2 = vrot.slane %v3430_v46, %v3366_v25 }
  0x47   : > { %v1185_v3 = vrot.slane %v3435_v47, %v3366_v25  ;;  %v1189_v5 = vrot.slane %v3446_v50, %v3366_v25  ;;  %v1193_v6 = vrot.slane %v3451_v51, %v3366_v25  ;;  %v1275_v7 = vrot.slane %v3430_v46, %v3396_v35 }
  0x48   : > { %441 = vrot.lane.b32.xlu1 %v428_v14, %s3183_s25  ;;  %443 = vrot.lane.b32.xlu0 %v432_v15, %s3183_s25  ;;  %v1279_v8 = vrot.slane %v3435_v47, %v3396_v35  ;;  %v1283_v9 = vrot.slane %v3446_v50, %v3396_v35  ;;  %v1287_v10 = vrot.slane %v3451_v51, %v3396_v35  ;;  %vm1066_vm10 = vcmask 982016  }
  0x49   : > { %v1343_v12 = vrot.slane %v3430_v46, %v3411_v40  ;;  %v1347_v13 = vrot.slane %v3435_v47, %v3411_v40  ;;  %vm1136_vm11 = vcmask 990208   ;;  %vm1206_vm12 = vcmask 1039360  }
  0x4a   : > { %vm1235_vm13 = vcmask 7168   ;;  %vm1165_vm14 = vcmask 56320   ;;  %vm1095_vm15 = vcmask 64512  }
  0x4c   : > { %507 = vrot.lane.b32.xlu0 %v490_v17, %s3184_s28  ;;  %509 = vrot.lane.b32.xlu1 %v494_v18, %s3184_s28  ;;  %v3538_v17 = vld [vmem:[%s3535_s14 + $0x18] sm:$0xff]  ;;  %v3541_v18 = vld [vmem:[%s3535_s14] sm:$0xff] }
  0x50   : > { %511 = vrot.lane.b32.xlu0 %v498_v19, %s3184_s28  ;;  %513 = vrot.lane.b32.xlu1 %v502_v21, %s3184_s28 }
  0x54   : > { %577 = vrot.lane.b32.xlu0 %v560_v22, %s3185_s6  ;;  %579 = vrot.lane.b32.xlu1 %v564_v23, %s3185_s6 }
  0x58   : > { %581 = vrot.lane.b32.xlu0 %v568_v24, %s3185_s6  ;;  %583 = vrot.lane.b32.xlu1 %v572_v26, %s3185_s6 }
  0x5c   : > { %647 = vrot.lane.b32.xlu0 %v630_v27, %s3186_s29  ;;  %649 = vrot.lane.b32.xlu1 %v634_v28, %s3186_s29 }
  0x60   : > { %651 = vrot.lane.b32.xlu0 %v638_v29, %s3186_s29  ;;  %653 = vrot.lane.b32.xlu1 %v642_v31, %s3186_s29  ;;  %v3548_v31 = vld [vmem:[%s3535_s14 + $0x10] sm:$0xff] }
  0x64   : > { %716 = vrot.lane.b32.xlu0 %v699_v32, %s3187_s30  ;;  %718 = vrot.lane.b32.xlu1 %v703_v33, %s3187_s30  ;;  %v3552_v33 = vld [vmem:[%s3535_s14 + $0x8] sm:$0xff] }
  0x68   : > { %720 = vrot.lane.b32.xlu0 %v707_v34, %s3187_s30  ;;  %722 = vrot.lane.b32.xlu1 %v711_v36, %s3187_s30 }
  0x6c   : > { %784 = vrot.lane.b32.xlu0 %v767_v37, %s3188_s8  ;;  %786 = vrot.lane.b32.xlu1 %v771_v38, %s3188_s8 }
  0x70   : > { %788 = vrot.lane.b32.xlu0 %v775_v39, %s3188_s8  ;;  %790 = vrot.lane.b32.xlu1 %v779_v41, %s3188_s8 }
  0x74   : > { %852 = vrot.lane.b32.xlu0 %v835_v42, %s3189_s9  ;;  %854 = vrot.lane.b32.xlu1 %v839_v43, %s3189_s9 }
  0x78   : > { %856 = vrot.lane.b32.xlu0 %v843_v44, %s3189_s9  ;;  %858 = vrot.lane.b32.xlu1 %v847_v45, %s3189_s9 }
  0x7c   : > { %920 = vrot.lane.b32.xlu0 %v903_v48, %s3190_s18  ;;  %922 = vrot.lane.b32.xlu1 %v907_v49, %s3190_s18 }
  0x80   : > { %924 = vrot.lane.b32.xlu0 %v911_v52, %s3190_s18  ;;  %926 = vrot.lane.b32.xlu1 %v915_v53, %s3190_s18 }
  0x84   : > { %988 = vrot.lane.b32.xlu0 %v971_v54, %s3191_s19  ;;  %990 = vrot.lane.b32.xlu1 %v975_v55, %s3191_s19  ;;  %v1351_v55 = vrot.slane %v3446_v50, %v3411_v40  ;;  %v1355_v50 = vrot.slane %v3451_v51, %v3411_v40 }
  0x88   : > { %992 = vrot.lane.b32.xlu0 %v979_v56, %s3191_s19  ;;  %994 = vrot.lane.b32.xlu1 %v983_v57, %s3191_s19  ;;  %v3577_v56 = vld [vmem:[%s4585_s0 + $0x40] sm:$0xff] }
  0x8c   : > { %1058 = vrot.lane.b32.xlu0 %v1041_v58, %s3192_s20  ;;  %1060 = vrot.lane.b32.xlu1 %v1045_v59, %s3192_s20 }
  0x90   : > { %1062 = vrot.lane.b32.xlu0 %v1049_v60, %s3192_s20  ;;  %1064 = vrot.lane.b32.xlu1 %v1053_v61, %s3192_s20  ;;  %v1411_v60 = vrot.slane %v3577_v56, %v3300_v4  ;;  %v3592_v61 = vld [vmem:[%s4585_s0 + $0x50] sm:$0xff] }
  0x91   : > { %v1419_v51 = vrot.slane %v3592_v61, %v3300_v4 }
  0x94   : > { %1128 = vrot.lane.b32.xlu0 %v1111_v62, %s3193_s21  ;;  %1130 = vrot.lane.b32.xlu1 %v1115_v63, %s3193_s21  ;;  %v3599_v63 = vld [vmem:[%s4585_s0 + $0x48] sm:$0xff] }
  0x98   : > { %1132 = vrot.lane.b32.xlu0 %v1119_v0, %s3193_s21  ;;  %1134 = vrot.lane.b32.xlu1 %v1123_v1, %s3193_s21  ;;  %v1415_v1 = vrot.slane %v3599_v63, %v3300_v4 }
  0x9c   : > { %1198 = vrot.lane.b32.xlu0 %v1181_v2, %s3194_s22  ;;  %1200 = vrot.lane.b32.xlu1 %v1185_v3, %s3194_s22  ;;  %v3614_v3 = vld [vmem:[%s4585_s0 + $0x58] sm:$0xff] }
  0xa0   : > { %1202 = vrot.lane.b32.xlu0 %v1189_v5, %s3194_s22  ;;  %1204 = vrot.lane.b32.xlu1 %v1193_v6, %s3194_s22  ;;  %v1479_v6 = vrot.slane %v3577_v56, %v3323_v11 }
  0xa4   : > { %1292 = vrot.lane.b32.xlu0 %v1275_v7, %s3195_s23  ;;  %1294 = vrot.lane.b32.xlu1 %v1279_v8, %s3195_s23  ;;  %v1423_v7 = vrot.slane %v3614_v3, %v3300_v4 }
  0xa8   : > { %1296 = vrot.lane.b32.xlu0 %v1283_v9, %s3195_s23  ;;  %1298 = vrot.lane.b32.xlu1 %v1287_v10, %s3195_s23  ;;  %v1487_v10 = vrot.slane %v3592_v61, %v3323_v11 }
  0xac   : > { %1360 = vrot.lane.b32.xlu0 %v1343_v12, %s3196_s11  ;;  %1362 = vrot.lane.b32.xlu1 %v1347_v13, %s3196_s11  ;;  %v1483_v12 = vrot.slane %v3599_v63, %v3323_v11 }
  0xae   : > { %v372_v14 = vpop.permute.xlu1 %371  ;;  %v368_v15 = vpop.permute.xlu0 %367 }
  0xaf   : > { %v384_v24 = vmul.f32 0.0, %v368_v15 }
  0xb2   : > { %v374_v19 = vpop.permute.xlu1 %373  ;;  %v370_v21 = vpop.permute.xlu0 %369 }
  0xb3   : > { %v388_v22 = vmul.f32 %v374_v19, %v3538_v17  ;;  %v376_v23 = vsel %vm375_vm0, %v368_v15, %v370_v21  ;;  %v378_v32 = vsel %vm375_vm0, %v372_v14, %v374_v19  ;;  %v377_v34 = vsel %vm375_vm0, %v370_v21, %v372_v14 }
  0xb4   : > { %v385_v26 = vmul.f32 %v376_v23, %v3541_v18  ;;  %v387_v36 = vmul.f32 %v378_v32, %v3548_v31  ;;  %v386_v39 = vmul.f32 %v377_v34, %v3552_v33  ;;  %v1547_v15 = vrot.slane %v3577_v56, %v3338_v16 }
  0xb5   : > { %402 = vrot.lane.b32.xlu0 %v388_v22, %s3190_s18  ;;  %v1491_v19 = vrot.slane %v3614_v3, %v3323_v11  ;;  %v1555_v23 = vrot.slane %v3592_v61, %v3338_v16 }
  0xb6   : > { %v438_v27 = vpop.permute.xlu1 %437  ;;  %v440_v28 = vpop.permute.xlu0 %439  ;;  %v2844_v29 = vpack.i.bf16 %v385_v26, %v384_v24  ;;  %v2849_v54 = vpack.i.bf16 %v387_v36, %v386_v39  ;;  %v1551_v24 = vrot.slane %v3599_v63, %v3338_v16  ;;  %v1623_v36 = vrot.slane %v3592_v61, %v3351_v20 }
  0xb7   : > { %v446_v44 = vsel %vm445_vm1, %v438_v27, %v440_v28  ;;  %v454_v52 = vmul.f32 0.0, %v438_v27 }
  0xb8   : > { %v455_v53 = vmul.f32 %v446_v44, %v3541_v18 }
  0xb9   : > { %2845 = vrot.lane.b32.xlu0 %v2844_v29, %s3190_s18  ;;  %v1559_v29 = vrot.slane %v3614_v3, %v3338_v16 }
  0xba   : > { %v442_v37 = vpop.permute.xlu1 %441  ;;  %v444_v38 = vpop.permute.xlu0 %443  ;;  %v2854_v59 = vpack.i.bf16 %v455_v53, %v454_v52  ;;  %v1695_v53 = vrot.slane %v3614_v3, %v3366_v25 }
  0xbb   : > { %v447_v41 = vsel %vm445_vm1, %v440_v28, %v442_v37  ;;  %v448_v42 = vsel %vm445_vm1, %v442_v37, %v444_v38  ;;  %v458_v43 = vmul.f32 %v444_v38, %v3538_v17  ;;  %v1615_v28 = vrot.slane %v3577_v56, %v3351_v20 }
  0xbc   : > { %v456_v45 = vmul.f32 %v447_v41, %v3552_v33  ;;  %v457_v46 = vmul.f32 %v448_v42, %v3548_v31  ;;  %v1619_v37 = vrot.slane %v3599_v63, %v3351_v20  ;;  %v1683_v41 = vrot.slane %v3577_v56, %v3366_v25 }
  0xbd   : > { %472 = vrot.lane.b32.xlu1 %v458_v43, %s3189_s9  ;;  %v1627_v42 = vrot.slane %v3614_v3, %v3351_v20  ;;  %v1751_v20 = vrot.slane %v3577_v56, %v3381_v30 }
  0xbe   : > { %v2859_v47 = vpack.i.bf16 %v457_v46, %v456_v45  ;;  %v3565_v48 = vpop.permute.xlu0 %507  ;;  %v3567_v49 = vpop.permute.xlu1 %509  ;;  %v1691_v45 = vrot.slane %v3592_v61, %v3366_v25  ;;  %v1687_v46 = vrot.slane %v3599_v63, %v3366_v25  ;;  %v1819_v25 = vrot.slane %v3577_v56, %v3396_v35 }
  0xc0   : > { %2860 = vrot.lane.b32.xlu0 %v2859_v47, %s3189_s9 }
  0xc1   : > { %2850 = vrot.lane.b32.xlu1 %v2849_v54, %s3190_s18 }
  0xc2   : > { %v3579_v57 = vpop.permute.xlu0 %511  ;;  %v3581_v58 = vpop.permute.xlu1 %513 }
  0xc4   : > { %1364 = vrot.lane.b32.xlu0 %v1351_v55, %s3196_s11 }
  0xc5   : > { %2855 = vrot.lane.b32.xlu1 %v2854_v59, %s3189_s9  ;;  %v1759_v59 = vrot.slane %v3592_v61, %v3381_v30 }
  0xc6   : > { %v3594_v62 = vpop.permute.xlu0 %577  ;;  %v3601_v0 = vpop.permute.xlu1 %579 }
  0xc8   : > { %1428 = vrot.lane.b32.xlu0 %v1411_v60, %s3197_s15  ;;  %v1755_v60 = vrot.slane %v3599_v63, %v3381_v30 }
  0xc9   : > { %1366 = vrot.lane.b32.xlu1 %v1355_v50, %s3196_s11 }
  0xca   : > { %v3609_v2 = vpop.permute.xlu0 %581  ;;  %v3616_v5 = vpop.permute.xlu1 %583 }
  0xcc   : > { %1432 = vrot.lane.b32.xlu0 %v1419_v51, %s3197_s15 }
  0xcd   : > { %1430 = vrot.lane.b32.xlu1 %v1415_v1, %s3197_s15  ;;  %v1763_v1 = vrot.slane %v3614_v3, %v3381_v30 }
  0xce   : > { %v3624_v8 = vpop.permute.xlu0 %647  ;;  %v3626_v9 = vpop.permute.xlu1 %649 }
  0xd0   : > { %1496 = vrot.lane.b32.xlu0 %v1479_v6, %s3198_s10 }
  0xd1   : > { %1434 = vrot.lane.b32.xlu1 %v1423_v7, %s3197_s15 }
  0xd2   : > { %v3634_v13 = vpop.permute.xlu0 %651  ;;  %v3636_v14 = vpop.permute.xlu1 %653 }
  0xd4   : > { %1500 = vrot.lane.b32.xlu0 %v1487_v10, %s3198_s10  ;;  %v1827_v10 = vrot.slane %v3592_v61, %v3396_v35 }
  0xd5   : > { %1498 = vrot.lane.b32.xlu1 %v1483_v12, %s3198_s10  ;;  %v1823_v12 = vrot.slane %v3599_v63, %v3396_v35 }
  0xd6   : > { %v3644_v21 = vpop.permute.xlu0 %716  ;;  %v3646_v22 = vpop.permute.xlu1 %718 }
  0xd8   : > { %1564 = vrot.lane.b32.xlu0 %v1547_v15, %s3182_s24 }
  0xd9   : > { %1502 = vrot.lane.b32.xlu1 %v1491_v19, %s3198_s10 }
  0xda   : > { %v3654_v26 = vpop.permute.xlu0 %720  ;;  %v3656_v27 = vpop.permute.xlu1 %722 }
  0xdc   : > { %1568 = vrot.lane.b32.xlu0 %v1555_v23, %s3182_s24  ;;  %v1887_v23 = vrot.slane %v3577_v56, %v3411_v40  ;;  %v339_v56 = vld [vmem:[%s4585_s0 + $0x60] sm:$0x7] }
  0xdd   : > { %1566 = vrot.lane.b32.xlu1 %v1551_v24, %s3182_s24  ;;  %v1831_v24 = vrot.slane %v3614_v3, %v3396_v35 }
  0xde   : > { %v3664_v32 = vpop.permute.xlu0 %784  ;;  %v3666_v34 = vpop.permute.xlu1 %786 }
  0xe0   : > { %1632 = vrot.lane.b32.xlu0 %v1615_v28, %s3183_s25 }
  0xe1   : > { %1570 = vrot.lane.b32.xlu1 %v1559_v29, %s3182_s24 }
  0xe2   : > { %v3674_v38 = vpop.permute.xlu0 %788  ;;  %v3676_v39 = vpop.permute.xlu1 %790 }
  0xe4   : > { %1636 = vrot.lane.b32.xlu0 %v1623_v36, %s3183_s25  ;;  %v1895_v36 = vrot.slane %v3592_v61, %v3411_v40  ;;  %v1899_v61 = vrot.slane %v3614_v3, %v3411_v40 }
  0xe5   : > { %1634 = vrot.lane.b32.xlu1 %v1619_v37, %s3183_s25  ;;  %v1891_v37 = vrot.slane %v3599_v63, %v3411_v40  ;;  %v341_v63 = vld [vmem:[%s4585_s0 + $0x70] sm:$0x7] }
  0xe6   : > { %v3684_v43 = vpop.permute.xlu0 %852  ;;  %v3686_v44 = vpop.permute.xlu1 %854 }
  0xe8   : > { %1700 = vrot.lane.b32.xlu0 %v1683_v41, %s3184_s28 }
  0xe9   : > { %1638 = vrot.lane.b32.xlu1 %v1627_v42, %s3183_s25  ;;  %v1955_v42 = vrot.slane %v339_v56, %v3300_v4 }
  0xea   : > { %v3694_v47 = vpop.permute.xlu0 %856  ;;  %v3696_v52 = vpop.permute.xlu1 %858 }
  0xec   : > { %1704 = vrot.lane.b32.xlu0 %v1691_v45, %s3184_s28 }
  0xed   : > { %1702 = vrot.lane.b32.xlu1 %v1687_v46, %s3184_s28  ;;  %v340_v46 = vld [vmem:[%s4585_s0 + $0x68] sm:$0x7] }
  0xee   : > { %v3704_v54 = vpop.permute.xlu0 %920  ;;  %v3706_v55 = vpop.permute.xlu1 %922  ;;  %v1959_v40 = vrot.slane %v340_v46, %v3300_v4 }
  0xf0   : > { %1768 = vrot.lane.b32.xlu0 %v1751_v20, %s3185_s6 }
  0xf1   : > { %1706 = vrot.lane.b32.xlu1 %v1695_v53, %s3184_s28  ;;  %v1963_v53 = vrot.slane %v341_v63, %v3300_v4 }
  0xf2   : > { %v3714_v50 = vpop.permute.xlu0 %924  ;;  %v3716_v51 = vpop.permute.xlu1 %926 }
  0xf4   : > { %1772 = vrot.lane.b32.xlu0 %v1759_v59, %s3185_s6  ;;  %v342_v59 = vld [vmem:[%s4585_s0 + $0x78] sm:$0x7] }
  0xf5   : > { %1770 = vrot.lane.b32.xlu1 %v1755_v60, %s3185_s6 }
  0xf6   : > { %v3724_v6 = vpop.permute.xlu0 %988  ;;  %v3726_v7 = vpop.permute.xlu1 %990 }
  0xf8   : > { %1836 = vrot.lane.b32.xlu0 %v1819_v25, %s3186_s29  ;;  %v2023_v25 = vrot.slane %v339_v56, %v3323_v11 }
  0xf9   : > { %1774 = vrot.lane.b32.xlu1 %v1763_v1, %s3185_s6  ;;  %v1967_v1 = vrot.slane %v342_v59, %v3300_v4 }
  0xfa   : > { %v3734_v15 = vpop.permute.xlu0 %992  ;;  %v3736_v19 = vpop.permute.xlu1 %994 }
  0xfc   : > { %1840 = vrot.lane.b32.xlu0 %v1827_v10, %s3186_s29 }
  0xfd   : > { %1838 = vrot.lane.b32.xlu1 %v1823_v12, %s3186_s29  ;;  %v2031_v12 = vrot.slane %v341_v63, %v3323_v11 }
  0xfe   : > { %v3744_v28 = vpop.permute.xlu0 %1058  ;;  %v3746_v29 = vpop.permute.xlu1 %1060 }
 0x100   : > { %1904 = vrot.lane.b32.xlu0 %v1887_v23, %s3187_s30  ;;  %v2027_v23 = vrot.slane %v340_v46, %v3323_v11 }
 0x101   : > { %1842 = vrot.lane.b32.xlu1 %v1831_v24, %s3186_s29 }
 0x102   : > { %v3757_v41 = vpop.permute.xlu0 %1062  ;;  %v3759_v35 = vpop.permute.xlu1 %1064 }
 0x104   : > { %1908 = vrot.lane.b32.xlu0 %v1895_v36, %s3187_s30 }
 0x105   : > { %1906 = vrot.lane.b32.xlu1 %v1891_v37, %s3187_s30  ;;  %v2091_v37 = vrot.slane %v339_v56, %v3338_v16  ;;  %v2099_v56 = vrot.slane %v341_v63, %v3338_v16  ;;  %v518_v63 = vsel %vm515_vm2, %v3579_v57, %v3581_v58 }
 0x106   : > { %v3769_v45 = vpop.permute.xlu0 %1128  ;;  %v3774_v20 = vpop.permute.xlu1 %1130 }
 0x108   : > { %1972 = vrot.lane.b32.xlu0 %v1955_v42, %s3188_s8  ;;  %v2035_v42 = vrot.slane %v342_v59, %v3323_v11  ;;  %v2095_v11 = vrot.slane %v340_v46, %v3338_v16  ;;  %v2103_v46 = vrot.slane %v342_v59, %v3338_v16 }
 0x109   : > { %1910 = vrot.lane.b32.xlu1 %v1899_v61, %s3187_s30 }
 0x10a   : > { %v3780_v3 = vpop.permute.xlu0 %1132  ;;  %v3785_v60 = vpop.permute.xlu1 %1134 }
 0x10c   : > { %1976 = vrot.lane.b32.xlu0 %v1963_v53, %s3188_s8  ;;  %v516_v53 = vsel %vm515_vm2, %v3565_v48, %v3567_v49 }
 0x10d   : > { %1974 = vrot.lane.b32.xlu1 %v1959_v40, %s3188_s8  ;;  %v517_v40 = vsel %vm515_vm2, %v3567_v49, %v3579_v57  ;;  %v587_v49 = vsel %vm585_vm3, %v3601_v0, %v3609_v2  ;;  %v528_v57 = vmul.f32 %v3581_v58, %v3538_v17 }
 0x10e   : > { %v3791_v10 = vpop.permute.xlu0 %1198  ;;  %v3797_v24 = vpop.permute.xlu1 %1200  ;;  %v596_v4 = vmul.f32 %v587_v49, %v3552_v33 }
 0x110   : > { %2040 = vrot.lane.b32.xlu0 %v2023_v25, %s3189_s9 }
 0x111   : > { %1978 = vrot.lane.b32.xlu1 %v1967_v1, %s3188_s8  ;;  %v525_v1 = vmul.f32 %v516_v53, %v3541_v18 }
 0x112   : > { %v3799_v36 = vpop.permute.xlu0 %1202  ;;  %v3813_v25 = vpop.permute.xlu1 %1204 }
 0x114   : > { %2044 = vrot.lane.b32.xlu0 %v2031_v12, %s3189_s9  ;;  %v526_v12 = vmul.f32 %v517_v40, %v3552_v33 }
 0x115   : > { %2042 = vrot.lane.b32.xlu1 %v2027_v23, %s3189_s9  ;;  %v586_v23 = vsel %vm585_vm3, %v3594_v62, %v3601_v0  ;;  %v527_v0 = vmul.f32 %v518_v63, %v3548_v31 }
 0x116   : > { %v3805_v61 = vpop.permute.xlu0 %1292  ;;  %v2864_v53 = vpack.i.bf16 %v526_v12, %v525_v1  ;;  %v595_v40 = vmul.f32 %v586_v23, %v3541_v18  ;;  %v598_v12 = vmul.f32 %v3616_v5, %v3538_v17 }
 0x117   : > { %4633 = vst [vmem:[#allocation12_spill] sm:$0xff] %v3805_v61 }
 0x118   : > { %2108 = vrot.lane.b32.xlu0 %v2091_v37, %s3190_s18  ;;  %v2874_v16 = vpack.i.bf16 %v596_v4, %v595_v40 }
 0x119   : > { %2046 = vrot.lane.b32.xlu1 %v2035_v42, %s3189_s9  ;;  %v3835_v42 = vpop.permute.xlu1 %1294 }
 0x11a   : > { %v3831_v37 = vpop.permute.xlu0 %1296 }
 0x11b   : > { %4634 = vst [vmem:[#allocation13_spill] sm:$0xff] %v3831_v37 }
 0x11c   : > { %2112 = vrot.lane.b32.xlu0 %v2099_v56, %s3190_s18  ;;  %v588_v56 = vsel %vm585_vm3, %v3609_v2, %v3616_v5 }
 0x11d   : > { %2110 = vrot.lane.b32.xlu1 %v2095_v11, %s3190_s18  ;;  %v2869_v11 = vpack.i.bf16 %v528_v57, %v527_v0  ;;  %v597_v1 = vmul.f32 %v588_v56, %v3548_v31  ;;  %v3852_v23 = vpop.permute.xlu1 %1298 }
 0x11e   : > { %v3847_v59 = vpop.permute.xlu0 %1360  ;;  %4636 = vst [vmem:[#allocation15_spill] sm:$0xff] %v3852_v23 }
 0x11f   : > { %4635 = vst [vmem:[#allocation14_spill] sm:$0xff] %v3847_v59  ;;  %v2879_v58 = vpack.i.bf16 %v598_v12, %v597_v1 }
 0x120   : > { %2865 = vrot.lane.b32.xlu0 %v2864_v53, %s3188_s8 }
 0x121   : > { %2114 = vrot.lane.b32.xlu1 %v2103_v46, %s3190_s18  ;;  %v3857_v49 = vpop.permute.xlu1 %1362 }
 0x122   : > { %4637 = vst [vmem:[#allocation16_spill] sm:$0xff] %v3857_v49 }
 0x124   : > { %2875 = vrot.lane.b32.xlu0 %v2874_v16, %s3187_s30 }
 0x125   : > { %2870 = vrot.lane.b32.xlu1 %v2869_v11, %s3188_s8 }
 0x127   : > { %v403_v2 = vpop.permute.xlu0 %402 }
 0x129   : > { %2880 = vrot.lane.b32.xlu1 %v2879_v58, %s3187_s30 }
 0x12b   : > { %v2846_v4 = vpop.permute.xlu0 %2845 }
 0x12c   : > { %v2848_v11 = vunpack.i.h.bf16 %v2846_v4  ;;  %v2847_v1 = vunpack.i.l.bf16 %v2846_v4 }
 0x12e   : > { %v405_v4 = vsel %vm4623_vm5, %v2847_v1, %v2848_v11 }
 0x12f   : > { %v473_v63 = vpop.permute.xlu1 %472 }
 0x132   : > { %v2861_v46 = vpop.permute.xlu0 %2860 }
 0x133   : > { %v2863_v53 = vunpack.i.h.bf16 %v2861_v46  ;;  %v2862_v40 = vunpack.i.l.bf16 %v2861_v46  ;;  %v2851_v0 = vpop.permute.xlu1 %2850 }
 0x134   : > { %v2853_v5 = vunpack.i.h.bf16 %v2851_v0  ;;  %v2852_v57 = vunpack.i.l.bf16 %v2851_v0 }
 0x135   : > { %v478_v56 = vsel %vm4622_vm4, %v2863_v53, %v473_v63  ;;  %v477_v16 = vsel %vm4622_vm4, %v2862_v40, %v2863_v53 }
 0x136   : > { %v3861_v12 = vpop.permute.xlu0 %1364  ;;  %v408_v58 = vsel %vm4623_vm5, %v2853_v5, %v403_v2  ;;  %v407_v30 = vsel %vm4623_vm5, %v2852_v57, %v2853_v5  ;;  %v406_v63 = vsel %vm4623_vm5, %v2848_v11, %v2852_v57 }
 0x137   : > { %4638 = vst [vmem:[#allocation17_spill] sm:$0xff] %v3861_v12  ;;  %v2856_v59 = vpop.permute.xlu1 %2855  ;;  %v2746_v49 = vpack.c.bf16 %v478_v56, %v408_v58  ;;  %v2748_v46 = vpack.c.bf16 %v477_v16, %v407_v30 }
 0x138   : > { %v2858_v23 = vunpack.i.h.bf16 %v2856_v59  ;;  %v2857_v37 = vunpack.i.l.bf16 %v2856_v59 }
 0x139   : > { %2747 = vmatprep.subr.bf16.mxu1 %v2746_v49 }
 0x13a   : > { %v3865_v0 = vpop.permute.xlu0 %1428  ;;  %2749 = vmatpush1.bf16.msra.mxu1 %v2748_v46  ;;  %v476_v53 = vsel %vm4622_vm4, %v2858_v23, %v2862_v40  ;;  %v475_v12 = vsel %vm4622_vm4, %v2857_v37, %v2858_v23 }
 0x13b   : > { %v3871_v2 = vpop.permute.xlu1 %1366  ;;  %v2694_v5 = vpack.c.bf16 %v476_v53, %v406_v63  ;;  %v2696_v61 = vpack.c.bf16 %v475_v12, %v405_v4 }
 0x13d   : > { %2695 = vmatprep.subr.bf16.mxu0 %v2694_v5  ;;  %v656_v5 = vsel %vm655_vm6, %v3624_v8, %v3626_v9 }
 0x13e   : > { %v3873_v30 = vpop.permute.xlu0 %1432  ;;  %2697 = vmatpush1.bf16.msra.mxu0 %v2696_v61 }
 0x13f   : > { %v3875_v59 = vpop.permute.xlu1 %1430 }
 0x142   : > { %v3877_v49 = vpop.permute.xlu0 %1496 }
 0x143   : > { %4639 = vst [vmem:[#allocation18_spill] sm:$0xff] %v3877_v49  ;;  %v3879_v56 = vpop.permute.xlu1 %1434 }
 0x146   : > { %v3881_v57 = vpop.permute.xlu0 %1500 }
 0x147   : > { %4640 = vst [vmem:[#allocation19_spill] sm:$0xff] %v3881_v57  ;;  %v3883_v40 = vpop.permute.xlu1 %1498 }
 0x14a   : > { %v3885_v16 = vpop.permute.xlu0 %1564 }
 0x14b   : > { %4641 = vst [vmem:[#allocation20_spill] sm:$0xff] %v3885_v16  ;;  %v3887_v37 = vpop.permute.xlu1 %1502  ;;  %v665_v16 = vmul.f32 %v656_v5, %v3541_v18 }
 0x14c   : > { %4642 = vst [vmem:[#allocation21_spill] sm:$0xff] %v3887_v37 }
 0x14e   : > { %v3889_v23 = vpop.permute.xlu0 %1568 }
 0x14f   : > { %4643 = vst [vmem:[#allocation22_spill] sm:$0xff] %v3889_v23  ;;  %v3891_v11 = vpop.permute.xlu1 %1566 }
 0x150   : > { %4644 = vst [vmem:[#allocation23_spill] sm:$0xff] %v3891_v11 }
 0x152   : > { %v3893_v1 = vpop.permute.xlu0 %1632 }
 0x153   : > { %4645 = vst [vmem:[#allocation24_spill] sm:$0xff] %v3893_v1  ;;  %v3895_v61 = vpop.permute.xlu1 %1570  ;;  %v657_v1 = vsel %vm655_vm6, %v3626_v9, %v3634_v13  ;;  %v724_v9 = vsel %vm614_vm7, %v3644_v21, %v3646_v22 }
 0x154   : > { %4646 = vst [vmem:[#allocation25_spill] sm:$0xff] %v3895_v61  ;;  %v524_v61 = vmul.f32 0.0, %v3565_v48  ;;  %v666_v11 = vmul.f32 %v657_v1, %v3552_v33  ;;  %v658_v1 = vsel %vm655_vm6, %v3634_v13, %v3636_v14 }
 0x155   : > { %v667_v13 = vmul.f32 %v658_v1, %v3548_v31 }
 0x156   : > { %v3897_v12 = vpop.permute.xlu0 %1636 }
 0x157   : > { %4647 = vst [vmem:[#allocation26_spill] sm:$0xff] %v3897_v12  ;;  %v3899_v58 = vpop.permute.xlu1 %1634 }
 0x158   : > { %4648 = vst [vmem:[#allocation27_spill] sm:$0xff] %v3899_v58 }
 0x15a   : > { %v3901_v46 = vpop.permute.xlu0 %1700 }
 0x15b   : > { %4649 = vst [vmem:[#allocation28_spill] sm:$0xff] %v3901_v46  ;;  %v3903_v63 = vpop.permute.xlu1 %1638 }
 0x15c   : > { %4650 = vst [vmem:[#allocation29_spill] sm:$0xff] %v3903_v63 }
 0x15e   : > { %v1705_v53 = vpop.permute.xlu0 %1704 }
 0x15f   : > { %v1703_v4 = vpop.permute.xlu1 %1702 }
 0x160   : > { %v1708_v12 = vsel %vm515_vm2, %v3901_v46, %v1703_v4  ;;  %v1709_v58 = vsel %vm515_vm2, %v1703_v4, %v1705_v53  ;;  %v725_v4 = vsel %vm614_vm7, %v3646_v22, %v3654_v26  ;;  %v733_v46 = vmul.f32 %v724_v9, %v3541_v18 }
 0x161   : > { %v1717_v63 = vmul.f32 %v1708_v12, %v3552_v33  ;;  %v3929_v12 = vmul.f32 %v1709_v58, %v3548_v31  ;;  %v734_v22 = vmul.f32 %v725_v4, %v3552_v33 }
 0x162   : > { %v1769_v23 = vpop.permute.xlu0 %1768 }
 0x163   : > { %v2884_v37 = vpack.i.bf16 %v1717_v63, %v524_v61  ;;  %v3918_v57 = vpop.permute.xlu1 %1706  ;;  %v2894_v63 = vpack.i.bf16 %v666_v11, %v665_v16  ;;  %v668_v16 = vmul.f32 %v3636_v14, %v3538_v17  ;;  %v2904_v9 = vpack.i.bf16 %v734_v22, %v733_v46 }
 0x164   : > { %4651 = vst [vmem:[#allocation30_spill] sm:$0xff] %v3918_v57  ;;  %v1710_v48 = vsel %vm515_vm2, %v1705_v53, %v3918_v57  ;;  %v792_v22 = vsel %vm544_vm8, %v3664_v32, %v3666_v34 }
 0x165   : > { %v3932_v5 = vmul.f32 %v1710_v48, %v3538_v17  ;;  %2885 = vrot.lane.b32.xlu0 %v2884_v37, %s3188_s8  ;;  %v594_v37 = vmul.f32 0.0, %v3594_v62  ;;  %v3954_v62 = vmul.f32 %v1769_v23, %v3541_v18 }
 0x166   : > { %v1773_v61 = vpop.permute.xlu0 %1772 }
 0x167   : > { %v1771_v58 = vpop.permute.xlu1 %1770 }
 0x168   : > { %v1776_v57 = vsel %vm585_vm3, %v1769_v23, %v1771_v58  ;;  %v1777_v48 = vsel %vm585_vm3, %v1771_v58, %v1773_v61  ;;  %v726_v58 = vsel %vm614_vm7, %v3654_v26, %v3656_v27  ;;  %v736_v26 = vmul.f32 %v3656_v27, %v3538_v17 }
 0x169   : > { %v1785_v49 = vmul.f32 %v1776_v57, %v3552_v33  ;;  %2895 = vrot.lane.b32.xlu0 %v2894_v63, %s3186_s29  ;;  %v3960_v1 = vmul.f32 %v1777_v48, %v3548_v31  ;;  %v794_v23 = vsel %vm544_vm8, %v3674_v38, %v3676_v39 }
 0x16a   : > { %v1837_v11 = vpop.permute.xlu0 %1836 }
 0x16b   : > { %v2889_v4 = vpack.i.bf16 %v1785_v49, %v594_v37  ;;  %v1775_v53 = vpop.permute.xlu1 %1774  ;;  %v2899_v49 = vpack.i.bf16 %v668_v16, %v667_v13  ;;  %v664_v16 = vmul.f32 0.0, %v3624_v8 }
 0x16c   : > { %v3956_v57 = vmul.f32 0.0, %v1775_v53  ;;  %v1778_v63 = vsel %vm585_vm3, %v1773_v61, %v1775_v53  ;;  %v735_v61 = vmul.f32 %v726_v58, %v3548_v31  ;;  %v793_v53 = vsel %vm544_vm8, %v3666_v34, %v3674_v38 }
 0x16d   : > { %v3963_v14 = vmul.f32 %v1778_v63, %v3538_v17  ;;  %2905 = vrot.lane.b32.xlu0 %v2904_v9, %s3185_s6  ;;  %2890 = vrot.lane.b32.xlu1 %v2889_v4, %s3187_s30  ;;  %v801_v4 = vmul.f32 %v792_v22, %v3541_v18  ;;  %v802_v58 = vmul.f32 %v793_v53, %v3552_v33 }
 0x16e   : > { %v1841_v46 = vpop.permute.xlu0 %1840  ;;  %v2909_v34 = vpack.i.bf16 %v736_v26, %v735_v61  ;;  %v3999_v22 = vmul.f32 %v1837_v11, %v3541_v18  ;;  %v732_v61 = vmul.f32 0.0, %v3644_v21 }
 0x16f   : > { %v1839_v37 = vpop.permute.xlu1 %1838 }
 0x170   : > { %v1844_v27 = vsel %vm655_vm6, %v1837_v11, %v1839_v37  ;;  %v1845_v13 = vsel %vm655_vm6, %v1839_v37, %v1841_v46  ;;  %v860_v37 = vsel %vm4622_vm4, %v3684_v43, %v3686_v44  ;;  %v803_v11 = vmul.f32 %v794_v23, %v3548_v31 }
 0x171   : > { %v1853_v9 = vmul.f32 %v1844_v27, %v3552_v33  ;;  %2900 = vrot.lane.b32.xlu1 %v2899_v49, %s3186_s29  ;;  %v861_v49 = vsel %vm4622_vm4, %v3686_v44, %v3694_v47  ;;  %v4006_v38 = vmul.f32 %v1845_v13, %v3548_v31  ;;  %v2919_v44 = vpack.i.bf16 %v802_v58, %v801_v4 }
 0x172   : > { %v3987_v63 = vpop.permute.xlu0 %1904  ;;  %v870_v13 = vmul.f32 %v861_v49, %v3552_v33  ;;  %v872_v49 = vmul.f32 %v3696_v52, %v3538_v17 }
 0x173   : > { %v2914_v8 = vpack.i.bf16 %v1853_v9, %v664_v16  ;;  %v1843_v48 = vpop.permute.xlu1 %1842  ;;  %v804_v16 = vmul.f32 %v3676_v39, %v3538_v17  ;;  %v862_v9 = vsel %vm4622_vm4, %v3694_v47, %v3696_v52 }
 0x174   : > { %v4001_v53 = vmul.f32 0.0, %v1843_v48  ;;  %v1846_v26 = vsel %vm655_vm6, %v1841_v46, %v1843_v48  ;;  %v869_v48 = vmul.f32 %v860_v37, %v3541_v18 }
 0x175   : > { %v4009_v27 = vmul.f32 %v1846_v26, %v3538_v17  ;;  %2910 = vrot.lane.b32.xlu1 %v2909_v34, %s3185_s6  ;;  %2915 = vrot.lane.b32.xlu0 %v2914_v8, %s3186_s29  ;;  %v2924_v47 = vpack.i.bf16 %v804_v16, %v803_v11  ;;  %v871_v8 = vmul.f32 %v862_v9, %v3548_v31  ;;  %v800_v9 = vmul.f32 0.0, %v3664_v32 }
 0x176   : > { %v1909_v21 = vpop.permute.xlu0 %1908  ;;  %v2929_v4 = vpack.i.bf16 %v870_v13, %v869_v48 }
 0x177   : > { %v1907_v58 = vpop.permute.xlu1 %1906 }
 0x178   : > { %v1912_v23 = vsel %vm614_vm7, %v3987_v63, %v1907_v58  ;;  %v1913_v39 = vsel %vm614_vm7, %v1907_v58, %v1909_v21  ;;  %v928_v58 = vsel %vm4623_vm5, %v3704_v54, %v3706_v55 }
 0x179   : > { %v4029_v34 = vmul.f32 %v1912_v23, %v3552_v33  ;;  %v4032_v37 = vmul.f32 %v1913_v39, %v3548_v31  ;;  %742 = vrot.lane.b32.xlu1 %v732_v61, %s3185_s6  ;;  %2920 = vrot.lane.b32.xlu0 %v2919_v44, %s3184_s28  ;;  %v929_v23 = vsel %vm4623_vm5, %v3706_v55, %v3714_v50 }
 0x17a   : > { %v4039_v26 = vpop.permute.xlu0 %1972  ;;  %v937_v48 = vmul.f32 %v928_v58, %v3541_v18  ;;  %v938_v55 = vmul.f32 %v929_v23, %v3552_v33  ;;  %v2934_v39 = vpack.i.bf16 %v872_v49, %v871_v8  ;;  %v868_v58 = vmul.f32 0.0, %v3684_v43 }
 0x17b   : > { %v1911_v44 = vpop.permute.xlu1 %1910  ;;  %v940_v61 = vmul.f32 %v3716_v51, %v3538_v17 }
 0x17c   : > { %v1914_v11 = vsel %vm614_vm7, %v1909_v21, %v1911_v44  ;;  %v4050_v16 = vmul.f32 0.0, %v1911_v44  ;;  %v930_v21 = vsel %vm4623_vm5, %v3714_v50, %v3716_v51  ;;  %v2939_v23 = vpack.i.bf16 %v938_v55, %v937_v48 }
 0x17d   : > { %v4053_v52 = vmul.f32 %v1914_v11, %v3538_v17  ;;  %2925 = vrot.lane.b32.xlu1 %v2924_v47, %s3184_s28  ;;  %2930 = vrot.lane.b32.xlu0 %v2929_v4, %s3183_s25  ;;  %v997_v4 = vsel %vm996_vm9, %v3724_v6, %v3726_v7  ;;  %v998_v47 = vsel %vm996_vm9, %v3726_v7, %v3734_v15 }
 0x17e   : > { %v1977_v13 = vpop.permute.xlu0 %1976  ;;  %v939_v7 = vmul.f32 %v930_v21, %v3548_v31 }
 0x17f   : > { %v1975_v11 = vpop.permute.xlu1 %1974 }
 0x180   : > { %v1980_v32 = vsel %vm544_vm8, %v4039_v26, %v1975_v11  ;;  %v1981_v8 = vsel %vm544_vm8, %v1975_v11, %v1977_v13  ;;  %v1006_v11 = vmul.f32 %v997_v4, %v3541_v18  ;;  %v2944_v21 = vpack.i.bf16 %v940_v61, %v939_v7 }
 0x181   : > { %v4075_v49 = vmul.f32 %v1980_v32, %v3552_v33  ;;  %v4078_v50 = vmul.f32 %v1981_v8, %v3548_v31  ;;  %2935 = vrot.lane.b32.xlu1 %v2934_v39, %s3183_s25  ;;  %810 = vrot.lane.b32.xlu0 %v800_v9, %s3184_s28  ;;  %v1007_v32 = vmul.f32 %v998_v47, %v3552_v33 }
 0x182   : > { %v4086_v44 = vpop.permute.xlu0 %2040  ;;  %v999_v39 = vsel %vm996_vm9, %v3734_v15, %v3736_v19  ;;  %v1009_v15 = vmul.f32 %v3736_v19, %v3538_v17 }
 0x183   : > { %v1979_v43 = vpop.permute.xlu1 %1978  ;;  %v1008_v4 = vmul.f32 %v999_v39, %v3548_v31  ;;  %v2949_v8 = vpack.i.bf16 %v1007_v32, %v1006_v11 }
 0x184   : > { %v1982_v48 = vsel %vm544_vm8, %v1977_v13, %v1979_v43  ;;  %v4096_v55 = vmul.f32 0.0, %v1979_v43  ;;  %v1067_v13 = vsel %vm1066_vm10, %v3744_v28, %v3746_v29  ;;  %v1068_v43 = vsel %vm1066_vm10, %v3746_v29, %v3757_v41 }
 0x185   : > { %v4099_v51 = vmul.f32 %v1982_v48, %v3538_v17  ;;  %878 = vrot.lane.b32.xlu1 %v868_v58, %s3183_s25  ;;  %2940 = vrot.lane.b32.xlu0 %v2939_v23, %s3182_s24  ;;  %v1076_v29 = vmul.f32 %v1067_v13, %v3541_v18  ;;  %v1077_v32 = vmul.f32 %v1068_v43, %v3552_v33  ;;  %v936_v48 = vmul.f32 0.0, %v3704_v54 }
 0x186   : > { %v2045_v47 = vpop.permute.xlu0 %2044 }
 0x187   : > { %v2043_v23 = vpop.permute.xlu1 %2042 }
 0x188   : > { %v2048_v61 = vsel %vm4622_vm4, %v4086_v44, %v2043_v23  ;;  %v2049_v7 = vsel %vm4622_vm4, %v2043_v23, %v2045_v47  ;;  %v2954_v23 = vpack.i.bf16 %v1009_v15, %v1008_v4  ;;  %v2959_v15 = vpack.i.bf16 %v1077_v32, %v1076_v29 }
 0x189   : > { %v4118_v19 = vmul.f32 %v2048_v61, %v3552_v33  ;;  %v4121_v11 = vmul.f32 %v2049_v7, %v3548_v31  ;;  %2945 = vrot.lane.b32.xlu1 %v2944_v21, %s3182_s24  ;;  %2950 = vrot.lane.b32.xlu0 %v2949_v8, %s3198_s10  ;;  %v1069_v61 = vsel %vm1066_vm10, %v3757_v41, %v3759_v35  ;;  %v1005_v41 = vmul.f32 0.0, %v3724_v6 }
 0x18a   : > { %v4127_v39 = vpop.permute.xlu0 %2108  ;;  %v1137_v21 = vsel %vm1136_vm11, %v3769_v45, %v3774_v20  ;;  %v1138_v8 = vsel %vm1136_vm11, %v3774_v20, %v3780_v3  ;;  %v1078_v43 = vmul.f32 %v1069_v61, %v3548_v31  ;;  %v1079_v7 = vmul.f32 %v3759_v35, %v3538_v17 }
 0x18b   : > { %4652 = vst [vmem:[#allocation31_spill] sm:$0xff] %v4127_v39  ;;  %v2047_v58 = vpop.permute.xlu1 %2046 }
 0x18c   : > { %v2050_v13 = vsel %vm4622_vm4, %v2045_v47, %v2047_v58  ;;  %v4142_v54 = vmul.f32 0.0, %v2047_v58  ;;  %v1146_v47 = vmul.f32 %v1137_v21, %v3541_v18  ;;  %v1147_v58 = vmul.f32 %v1138_v8, %v3552_v33 }
 0x18d   : > { %v4145_v4 = vmul.f32 %v2050_v13, %v3538_v17  ;;  %2955 = vrot.lane.b32.xlu1 %v2954_v23, %s3198_s10  ;;  %946 = vrot.lane.b32.xlu0 %v936_v48, %s3182_s24  ;;  %v1139_v13 = vsel %vm1136_vm11, %v3780_v3, %v3785_v60  ;;  %v1149_v3 = vmul.f32 %v3785_v60, %v3538_v17  ;;  %vm1025_vm4 = vcmask 72704  }
 0x18e   : > { %v2113_v20 = vpop.permute.xlu0 %2112  ;;  %v1148_v35 = vmul.f32 %v1139_v13, %v3548_v31  ;;  %v2964_v61 = vpack.i.bf16 %v1079_v7, %v1078_v43  ;;  %v2969_v21 = vpack.i.bf16 %v1147_v58, %v1146_v47  ;;  %v1209_v60 = vsel %vm1206_vm12, %v3799_v36, %v3813_v25 }
 0x18f   : > { %v2111_v23 = vpop.permute.xlu1 %2110  ;;  %v1075_v47 = vmul.f32 0.0, %v3744_v28  ;;  %v1218_v46 = vmul.f32 %v1209_v60, %v3548_v31  ;;  %v4657_v28 = vld [vmem:[#allocation12_spill] sm:$0xff] }
 0x190   : > { %v4162_v6 = vsel %vm4623_vm5, %v4127_v39, %v2111_v23  ;;  %v4165_v29 = vsel %vm4623_vm5, %v2111_v23, %v2113_v20  ;;  %v1207_v23 = vsel %vm1206_vm12, %v3791_v10, %v3797_v24  ;;  %v2974_v58 = vpack.i.bf16 %v1149_v3, %v1148_v35 }
 0x191   : > { %4653 = vst [vmem:[#allocation32_spill] sm:$0xff] %v4162_v6  ;;  %4654 = vst [vmem:[#allocation33_spill] sm:$0xff] %v4165_v29  ;;  %1015 = vrot.lane.b32.xlu1 %v1005_v41, %s3198_s10  ;;  %2960 = vrot.lane.b32.xlu0 %v2959_v15, %s3197_s15  ;;  %v1208_v41 = vsel %vm1206_vm12, %v3797_v24, %v3799_v36  ;;  %v1300_v35 = vsel %vm1235_vm13, %v4657_v28, %v3835_v42  ;;  %s2692_s10 = sshll.u32 %s4705_s27, 6 }
 0x192   : > { %v4172_v32 = vpop.permute.xlu0 %2865  ;;  %v1217_v13 = vmul.f32 %v1208_v41, %v3552_v33  ;;  %s321_s16 = scalar_lea.vmem %s4587_s2, %s2692_s10 }
 0x193   : > { %v4174_v8 = vpop.permute.xlu1 %2114  ;;  %v2868_v7 = vunpack.i.h.bf16 %v4172_v32  ;;  %v4620_v43 = vunpack.i.l.bf16 %v4172_v32 }
 0x194   : > { %4655 = vst [vmem:[#allocation34_spill] sm:$0xff] %v4174_v8  ;;  %v4184_v15 = vsel %vm4623_vm5, %v2113_v20, %v4174_v8  ;;  %v1216_v20 = vmul.f32 %v1207_v23, %v3541_v18  ;;  %v1145_v8 = vmul.f32 0.0, %v3769_v45  ;;  %vm2267_vm5 = vcmask 719872  }
 0x195   : > { %4656 = vst [vmem:[#allocation35_spill] sm:$0xff] %v4184_v15  ;;  %2965 = vrot.lane.b32.xlu1 %v2964_v61, %s3197_s15  ;;  %2970 = vrot.lane.b32.xlu0 %v2969_v21, %s3196_s11  ;;  %v1219_v61 = vmul.f32 %v3813_v25, %v3538_v17  ;;  %v546_v18 = vsel %vm544_vm8, %v4620_v43, %v2868_v7  ;;  %v4658_v21 = vld [vmem:[#allocation13_spill] sm:$0xff] }
 0x196   : > { %v4194_v24 = vpop.permute.xlu0 %2875  ;;  %v1301_v25 = vsel %vm1235_vm13, %v3835_v42, %v4658_v21  ;;  %v1309_v42 = vmul.f32 %v1300_v35, %v3552_v33 }
 0x197   : > { %v2878_v36 = vunpack.i.h.bf16 %v4194_v24  ;;  %v4621_v48 = vunpack.i.l.bf16 %v4194_v24  ;;  %v2871_v9 = vpop.permute.xlu1 %2870  ;;  %v2984_v6 = vpack.i.bf16 %v1219_v61, %v1218_v46 }
 0x198   : > { %v2873_v23 = vunpack.i.h.bf16 %v2871_v9  ;;  %v2872_v41 = vunpack.i.l.bf16 %v2871_v9  ;;  %v1310_v9 = vmul.f32 %v1301_v25, %v3548_v31 }
 0x199   : > { %2975 = vrot.lane.b32.xlu1 %v2974_v58, %s3196_s11  ;;  %1085 = vrot.lane.b32.xlu0 %v1075_v47, %s3197_s15  ;;  %v616_v3 = vsel %vm614_vm7, %v4621_v48, %v2878_v36  ;;  %v2979_v58 = vpack.i.bf16 %v1217_v13, %v1216_v20  ;;  %v4659_v47 = vld [vmem:[#allocation15_spill] sm:$0xff]  ;;  %v1215_v48 = vmul.f32 0.0, %v3791_v10  ;;  %s2684_s15 = sld [smem:[#allocation6 + $0x2]] }
 0x19a   : > { %v2698_v60 = vpack.c.bf16 %v616_v3, %v546_v18  ;;  %v1302_v15 = vsel %vm1235_vm13, %v4658_v21, %v4659_v47  ;;  %v548_v45 = vsel %vm544_vm8, %v2872_v41, %v2873_v23  ;;  %v547_v13 = vsel %vm544_vm8, %v2868_v7, %v2872_v41  ;;  %v4660_v18 = vld [vmem:[#allocation17_spill] sm:$0xff]  ;;  %v4661_v3 = vld [vmem:[#allocation16_spill] sm:$0xff] }
 0x19b   : > { %v2881_v39 = vpop.permute.xlu1 %2880  ;;  %v1311_v10 = vmul.f32 %v1302_v15, %v3538_v17  ;;  %v1312_v46 = vmul.f32 0.0, %v4659_v47  ;;  %v1370_v21 = vsel %vm1165_vm14, %v4660_v18, %v3871_v2  ;;  %v2989_v7 = vpack.i.bf16 %v1310_v9, %v1309_v42  ;;  %v4271_v42 = vld [vmem:[%s3535_s14 + $0x8] sm:$0xff]  ;;  %v4275_v9 = vld [vmem:[%s3535_s14 + $0x10] sm:$0xff] }
 0x19c   : > { %v2883_v43 = vunpack.i.h.bf16 %v2881_v39  ;;  %v2882_v29 = vunpack.i.l.bf16 %v2881_v39  ;;  %2699 = vmatprep.subr.bf16.mxu0 %v2698_v60  ;;  %v1380_v23 = vmul.f32 0.0, %v3871_v2  ;;  %v1437_v2 = vsel %vm1095_vm15, %v3875_v59, %v3873_v30 }
 0x19d   : > { %1155 = vrot.lane.b32.xlu1 %v1145_v8, %s3196_s11  ;;  %2980 = vrot.lane.b32.xlu0 %v2979_v58, %s3195_s23  ;;  %v1369_v8 = vsel %vm1165_vm14, %v4661_v3, %v4660_v18  ;;  %v2994_v15 = vpack.i.bf16 %v1312_v46, %v1311_v10  ;;  %v1438_v60 = vsel %vm1095_vm15, %v3873_v30, %v3879_v56  ;;  %v4665_v46 = vld [vmem:[#allocation21_spill] sm:$0xff]  ;;  %s2429_s11 = sld [smem:[#allocation6]] }
 0x19e   : > { %v618_v20 = vsel %vm614_vm7, %v2882_v29, %v2883_v43  ;;  %v617_v39 = vsel %vm614_vm7, %v2878_v36, %v2882_v29  ;;  %v4662_v29 = vld [vmem:[#allocation14_spill] sm:$0xff]  ;;  %v1378_v43 = vmul.f32 %v1369_v8, %v3548_v31  ;;  %v4245_v36 = vld [vmem:[%s3535_s14 + $0x18] sm:$0xff]  ;;  %v1436_v31 = vsel %vm1095_vm15, %v3865_v0, %v3875_v59 }
 0x19f   : > { %v2750_v61 = vpack.c.bf16 %v618_v20, %v548_v45  ;;  %v2752_v35 = vpack.c.bf16 %v617_v39, %v547_v13  ;;  %v1368_v17 = vsel %vm1165_vm14, %v4662_v29, %v4661_v3  ;;  %v1379_v25 = vmul.f32 %v4245_v36, %v1370_v21  ;;  %v4663_v13 = vld [vmem:[#allocation18_spill] sm:$0xff] }
 0x1a0   : > { %v1445_v59 = vmul.f32 %v4271_v42, %v1436_v31  ;;  %v1446_v30 = vmul.f32 %v4275_v9, %v1437_v2  ;;  %v1447_v45 = vmul.f32 %v4245_v36, %v1438_v60  ;;  %v1448_v20 = vmul.f32 0.0, %v3879_v56 }
 0x1a1   : > { %2985 = vrot.lane.b32.xlu1 %v2984_v6, %s3195_s23  ;;  %1225 = vrot.lane.b32.xlu0 %v1215_v48, %s3195_s23  ;;  %v1377_v48 = vmul.f32 %v1368_v17, %v3552_v33  ;;  %v3004_v41 = vpack.i.bf16 %v1380_v23, %v1379_v25  ;;  %v4264_v33 = vld [vmem:[%s3535_s14] sm:$0xff]  ;;  %v1504_v39 = vsel %vm1025_vm4, %v4663_v13, %v3883_v40  ;;  %v1516_v21 = vmul.f32 0.0, %v4665_v46  ;;  %v4667_v17 = vld [vmem:[#allocation20_spill] sm:$0xff]  ;;  %v4669_v23 = vld [vmem:[#allocation25_spill] sm:$0xff]  ;;  %s2412_s23 = sld [smem:[#allocation3]]  ;;  %s2682_s14 = sld [smem:[#allocation6 + $0x1]] }
 0x1a2   : > { %2751 = vmatprep.subr.bf16.mxu1 %v2750_v61  ;;  %v1308_v58 = vmul.f32 %v4264_v33, %v4657_v28  ;;  %v1376_v47 = vmul.f32 %v4264_v33, %v4662_v29  ;;  %v4664_v28 = vld [vmem:[#allocation19_spill] sm:$0xff]  ;;  %v3009_v18 = vpack.i.bf16 %v1446_v30, %v1445_v59  ;;  %v3014_v3 = vpack.i.bf16 %v1448_v20, %v1447_v45  ;;  %v4671_v59 = vld [vmem:[#allocation24_spill] sm:$0xff]  ;;  %v4672_v45 = vld [vmem:[#allocation26_spill] sm:$0xff] }
 0x1a3   : > { %2753 = vmatpush1.bf16.msra.mxu1 %v2752_v35  ;;  %v2999_v6 = vpack.i.bf16 %v1378_v43, %v1377_v48  ;;  %v1505_v10 = vsel %vm1025_vm4, %v3883_v40, %v4664_v28  ;;  %v1506_v61 = vsel %vm1025_vm4, %v4664_v28, %v4665_v46  ;;  %v1513_v35 = vmul.f32 %v4271_v42, %v1504_v39  ;;  %v4666_v29 = vld [vmem:[#allocation23_spill] sm:$0xff]  ;;  %v4668_v43 = vld [vmem:[#allocation22_spill] sm:$0xff]  ;;  %v4673_v39 = vld [vmem:[#allocation29_spill] sm:$0xff] }
 0x1a4   : > { %v1514_v56 = vmul.f32 %v4275_v9, %v1505_v10  ;;  %v1515_v8 = vmul.f32 %v4245_v36, %v1506_v61  ;;  %v1573_v25 = vsel %vm375_vm0, %v4666_v29, %v4668_v43  ;;  %v1574_v48 = vsel %vm375_vm0, %v4668_v43, %v4669_v23 }
 0x1a5   : > { %2990 = vrot.lane.b32.xlu1 %v2989_v7, %s3194_s22  ;;  %2995 = vrot.lane.b32.xlu0 %v2994_v15, %s3194_s22  ;;  %v1572_v15 = vsel %vm375_vm0, %v4667_v17, %v4666_v29  ;;  %v1583_v31 = vmul.f32 %v4245_v36, %v1574_v48  ;;  %v1584_v2 = vmul.f32 0.0, %v4669_v23  ;;  %v1444_v60 = vmul.f32 %v4264_v33, %v3865_v0 }
 0x1a6   : > { %v3019_v40 = vpack.i.bf16 %v1514_v56, %v1513_v35  ;;  %v3024_v7 = vpack.i.bf16 %v1516_v21, %v1515_v8  ;;  %v1642_v28 = vsel %vm445_vm1, %v4672_v45, %v4673_v39  ;;  %v1652_v35 = vmul.f32 0.0, %v4673_v39  ;;  %v4674_v21 = vld [vmem:[#allocation30_spill] sm:$0xff] }
 0x1a7   : > { %v3034_v10 = vpack.i.bf16 %v1584_v2, %v1583_v31  ;;  %v1651_v61 = vmul.f32 %v4245_v36, %v1642_v28  ;;  %v1648_v8 = vmul.f32 %v4264_v33, %v4671_v59  ;;  %v4676_v43 = vpack.i.bf16 %v3932_v5, %v3929_v12 }
 0x1a8   : > { %v4679_v23 = vpack.i.bf16 %v3999_v22, %v4001_v53  ;;  %v4680_v12 = vpack.i.bf16 %v4009_v27, %v4006_v38  ;;  %v4681_v5 = vpack.i.bf16 %v4050_v16, %v4053_v52  ;;  %v4684_v53 = vpack.i.bf16 %v4096_v55, %v4099_v51 }
 0x1a9   : > { %3000 = vrot.lane.b32.xlu1 %v2999_v6, %s3193_s21  ;;  %3005 = vrot.lane.b32.xlu0 %v3004_v41, %s3193_s21  ;;  %v1581_v6 = vmul.f32 %v4271_v42, %v1572_v15  ;;  %v1582_v41 = vmul.f32 %v4275_v9, %v1573_v25  ;;  %v4678_v25 = vpack.i.bf16 %v3954_v62, %v3956_v57  ;;  %v4687_v48 = vunpack.i.l.bf16 %v4172_v32 }
 0x1aa   : > { %v4682_v62 = vpack.i.bf16 %v4032_v37, %v4029_v34  ;;  %v1920_v57 = vmul.f32 %v4264_v33, %v3987_v63  ;;  %v4685_v38 = vpack.i.bf16 %v4121_v11, %v4118_v19  ;;  %v1988_v37 = vmul.f32 %v4264_v33, %v4039_v26 }
 0x1ab   : > { %v3029_v0 = vpack.i.bf16 %v1582_v41, %v1581_v6  ;;  %v2056_v19 = vmul.f32 %v4264_v33, %v4086_v44  ;;  %v4686_v11 = vpack.i.bf16 %v4142_v54, %v4145_v4  ;;  %v4688_v41 = vunpack.i.l.bf16 %v4194_v24  ;;  %v4689_v54 = vld [vmem:[#allocation32_spill] sm:$0xff] }
 0x1ac   : > { %v2125_v4 = vmul.f32 %v4271_v42, %v4689_v54 }
 0x1ad   : > { %1318 = vrot.lane.b32.xlu1 %v1308_v58, %s3194_s22  ;;  %1386 = vrot.lane.b32.xlu0 %v1376_v47, %s3193_s21  ;;  %v1512_v58 = vmul.f32 %v4264_v33, %v4663_v13  ;;  %v4670_v47 = vld [vmem:[#allocation27_spill] sm:$0xff]  ;;  %s2681_s21 = sld [smem:[#allocation4 + $0x1]]  ;;  %s2683_s22 = sld [smem:[#allocation4 + $0x2]] }
 0x1ae   : > { %v1640_v30 = vsel %vm445_vm1, %v4671_v59, %v4670_v47  ;;  %v1641_v20 = vsel %vm445_vm1, %v4670_v47, %v4672_v45  ;;  %v4690_v59 = vld [vmem:[#allocation33_spill] sm:$0xff]  ;;  %v4691_v45 = vld [vmem:[#allocation35_spill] sm:$0xff] }
 0x1af   : > { %v1649_v13 = vmul.f32 %v4271_v42, %v1640_v30  ;;  %v1650_v46 = vmul.f32 %v4275_v9, %v1641_v20  ;;  %v2126_v30 = vmul.f32 %v4275_v9, %v4690_v59  ;;  %v2127_v20 = vmul.f32 %v4245_v36, %v4691_v45 }
 0x1b1   : > { %3010 = vrot.lane.b32.xlu1 %v3009_v18, %s3192_s20  ;;  %3015 = vrot.lane.b32.xlu0 %v3014_v3, %s3192_s20  ;;  %v3039_v56 = vpack.i.bf16 %v1650_v46, %v1649_v13  ;;  %v3044_v18 = vpack.i.bf16 %v1652_v35, %v1651_v61  ;;  %v1580_v3 = vmul.f32 %v4264_v33, %v4667_v17 }
 0x1b2   : > { %v4677_v17 = vpack.i.bf16 %v3963_v14, %v3960_v1  ;;  %v4683_v14 = vpack.i.bf16 %v4078_v50, %v4075_v49  ;;  %v4398_v49 = vld [vmem:[%s4588_s3] sm:$0x77] }
 0x1b3   : > { %v2266_v26 = vcombine.high %v4398_v49, %v4398_v49 }
 0x1b5   : > { %3020 = vrot.lane.b32.xlu1 %v3019_v40, %s3191_s19  ;;  %3025 = vrot.lane.b32.xlu0 %v3024_v7, %s3191_s19  ;;  %v1720_v40 = vmul.f32 0.0, %v4674_v21  ;;  %v4675_v7 = vld [vmem:[#allocation28_spill] sm:$0xff] }
 0x1b6   : > { %v1716_v29 = vmul.f32 %v4264_v33, %v4675_v7  ;;  %2679 = vmatprep.mubr.msk.f32.mxu0 %vm2267_vm5, %v2266_v26  ;;  %2680 = vmatprep.mubr.msk.f32.mxu1 %vm2267_vm5, %v2266_v26 }
 0x1b8   : > { %v3054_v15 = vpack.i.bf16 %v1716_v29, %v1720_v40 }
 0x1b9   : > { %1454 = vrot.lane.b32.xlu1 %v1444_v60, %s3192_s20  ;;  %1522 = vrot.lane.b32.xlu0 %v1512_v58, %s3191_s19  ;;  %s2415_s20 = sld [smem:[#allocation4]] }
 0x1bd   : > { %3030 = vrot.lane.b32.xlu1 %v3029_v0, %s3190_s18  ;;  %3035 = vrot.lane.b32.xlu0 %v3034_v10, %s3190_s18 }
 0x1c1   : > { %3040 = vrot.lane.b32.xlu1 %v3039_v56, %s3189_s9  ;;  %3045 = vrot.lane.b32.xlu0 %v3044_v18, %s3189_s9  ;;  %v4692_v18 = vld [vmem:[#allocation31_spill] sm:$0xff] }
 0x1c5   : > { %1590 = vrot.lane.b32.xlu1 %v1580_v3, %s3190_s18  ;;  %1658 = vrot.lane.b32.xlu0 %v1648_v8, %s3189_s9  ;;  %v2124_v3 = vmul.f32 %v4264_v33, %v4692_v18  ;;  %v4693_v8 = vld [vmem:[#allocation34_spill] sm:$0xff] }
 0x1c6   : > { %v2128_v21 = vmul.f32 0.0, %v4693_v8 }
 0x1c9   : > { %3050 = vrot.lane.b32.xlu1 %v4676_v43, %s3188_s8  ;;  %3055 = vrot.lane.b32.xlu0 %v3054_v15, %s3188_s8 }
 0x1cd   : > { %3060 = vrot.lane.b32.xlu1 %v4677_v17, %s3187_s30  ;;  %3065 = vrot.lane.b32.xlu0 %v4678_v25, %s3187_s30 }
 0x1d1   : > { %3075 = vrot.lane.b32.xlu0 %v4679_v23, %s3186_s29  ;;  %3070 = vrot.lane.b32.xlu1 %v4680_v12, %s3186_s29 }
 0x1d5   : > { %3085 = vrot.lane.b32.xlu0 %v4681_v5, %s3185_s6  ;;  %3080 = vrot.lane.b32.xlu1 %v4682_v62, %s3185_s6 }
 0x1d7   : > { %v4375_v1 = vpop.permute.xlu0 %2885 }
 0x1d8   : > { %v2887_v63 = vunpack.i.l.bf16 %v4375_v1 }
 0x1d9   : > { %1930 = vrot.lane.b32.xlu1 %v1920_v57, %s3185_s6  ;;  %3090 = vrot.lane.b32.xlu0 %v4683_v14, %s3184_s28  ;;  %s326_s6 = scalar_lea.vmem %s4592_s7, %s2692_s10 }
 0x1da   : > { %v545_v6 = vsel %vm544_vm8, %v2887_v63, %v4687_v48 }
 0x1db   : > { %v2896_v22 = vpop.permute.xlu0 %2895 }
 0x1dc   : > { %v2898_v27 = vunpack.i.h.bf16 %v2896_v22  ;;  %v2897_v34 = vunpack.i.l.bf16 %v2896_v22 }
 0x1dd   : > { %3095 = vrot.lane.b32.xlu1 %v4684_v53, %s3184_s28  ;;  %3100 = vrot.lane.b32.xlu0 %v4685_v38, %s3183_s25 }
 0x1de   : > { %v685_v44 = vsel %vm655_vm6, %v2897_v34, %v2898_v27 }
 0x1df   : > { %v4393_v16 = vpop.permute.xlu1 %2890  ;;  %v2906_v52 = vpop.permute.xlu0 %2905 }
 0x1e0   : > { %v2892_v50 = vunpack.i.l.bf16 %v4393_v16  ;;  %v2908_v55 = vunpack.i.h.bf16 %v2906_v52  ;;  %v2907_v51 = vunpack.i.l.bf16 %v2906_v52 }
 0x1e1   : > { %3105 = vrot.lane.b32.xlu1 %v4686_v11, %s3183_s25  ;;  %1998 = vrot.lane.b32.xlu0 %v1988_v37, %s3184_s28 }
 0x1e2   : > { %v615_v31 = vsel %vm614_vm7, %v2892_v50, %v4688_v41  ;;  %v753_v2 = vsel %vm585_vm3, %v2907_v51, %v2908_v55 }
 0x1e3   : > { %v2901_v60 = vpop.permute.xlu1 %2900  ;;  %v2700_v58 = vpack.c.bf16 %v615_v31, %v545_v6  ;;  %v2702_v47 = vpack.c.bf16 %v753_v2, %v685_v44 }
 0x1e4   : > { %v2903_v32 = vunpack.i.h.bf16 %v2901_v60  ;;  %v2902_v24 = vunpack.i.l.bf16 %v2901_v60 }
 0x1e5   : > { %2066 = vrot.lane.b32.xlu1 %v2056_v19, %s3183_s25  ;;  %2136 = vrot.lane.b32.xlu0 %v2125_v4, %s3182_s24 }
 0x1e6   : > { %2701 = vmatpush1.bf16.msra.mxu0 %v2700_v58  ;;  %v687_v46 = vsel %vm655_vm6, %v2902_v24, %v2903_v32  ;;  %v686_v35 = vsel %vm655_vm6, %v2898_v27, %v2902_v24 }
 0x1e7   : > { %2703 = vmatprep.subr.bf16.mxu0 %v2702_v47  ;;  %v2911_v39 = vpop.permute.xlu1 %2910  ;;  %v4426_v28 = vpop.permute.xlu0 %2915 }
 0x1e8   : > { %v2913_v0 = vunpack.i.h.bf16 %v2911_v39  ;;  %v2912_v10 = vunpack.i.l.bf16 %v2911_v39  ;;  %v2917_v13 = vunpack.i.l.bf16 %v4426_v28 }
 0x1e9   : > { %2140 = vrot.lane.b32.xlu0 %v2127_v20, %s3182_s24  ;;  %2138 = vrot.lane.b32.xlu1 %v2126_v30, %s3182_s24 }
 0x1ea   : > { %v755_v61 = vsel %vm585_vm3, %v2912_v10, %v2913_v0  ;;  %v754_v56 = vsel %vm585_vm3, %v2908_v55, %v2912_v10  ;;  %v684_v43 = vsel %vm655_vm6, %v2917_v13, %v2897_v34 }
 0x1eb   : > { %v743_v40 = vpop.permute.xlu1 %742  ;;  %v2921_v7 = vpop.permute.xlu0 %2920  ;;  %v2754_v29 = vpack.c.bf16 %v755_v61, %v687_v46  ;;  %v2756_v15 = vpack.c.bf16 %v754_v56, %v686_v35 }
 0x1ec   : > { %v752_v17 = vsel %vm585_vm3, %v743_v40, %v2907_v51  ;;  %v2923_v23 = vunpack.i.h.bf16 %v2921_v7  ;;  %v2922_v12 = vunpack.i.l.bf16 %v2921_v7 }
 0x1ed   : > { %v2704_v25 = vpack.c.bf16 %v752_v17, %v684_v43  ;;  %2134 = vrot.lane.b32.xlu0 %v2124_v3, %s3182_s24  ;;  %2142 = vrot.lane.b32.xlu1 %v2128_v21, %s3182_s24 }
 0x1ee   : > { %2755 = vmatprep.subr.bf16.mxu1 %v2754_v29  ;;  %v821_v38 = vsel %vm515_vm2, %v2922_v12, %v2923_v23 }
 0x1ef   : > { %2757 = vmatpush1.bf16.msra.mxu1 %v2756_v15  ;;  %v2926_v5 = vpop.permute.xlu1 %2925  ;;  %v2931_v62 = vpop.permute.xlu0 %2930  ;;  %2705 = vmatpush1.bf16.msra.mxu0 %v2704_v25 }
 0x1f0   : > { %v2933_v57 = vunpack.i.h.bf16 %v2931_v62  ;;  %v2932_v14 = vunpack.i.l.bf16 %v2931_v62  ;;  %v2928_v22 = vunpack.i.h.bf16 %v2926_v5  ;;  %v2927_v53 = vunpack.i.l.bf16 %v2926_v5  ;;  %v3130_v5 = vld [vmem:[%s4585_s0 + $0x28] sm:$0xff] }
 0x1f1   : > { %v4694_v62 = vld [vmem:[#allocation11_spill] sm:$0xff] }
 0x1f2   : > { %v889_v63 = vsel %vm445_vm1, %v2932_v14, %v2933_v57  ;;  %v823_v55 = vsel %vm515_vm2, %v2927_v53, %v2928_v22  ;;  %v822_v19 = vsel %vm515_vm2, %v2923_v23, %v2927_v53 }
 0x1f3   : > { %v2936_v27 = vpop.permute.xlu1 %2935  ;;  %v811_v34 = vpop.permute.xlu0 %810  ;;  %v2706_v37 = vpack.c.bf16 %v889_v63, %v821_v38 }
 0x1f4   : > { %v2938_v52 = vunpack.i.h.bf16 %v2936_v27  ;;  %v2937_v50 = vunpack.i.l.bf16 %v2936_v27  ;;  %v820_v31 = vsel %vm515_vm2, %v811_v34, %v2922_v12 }
 0x1f5   : > { %2707 = vmatprep.subr.bf16.mxu0 %v2706_v37 }
 0x1f6   : > { %v891_v51 = vsel %vm445_vm1, %v2937_v50, %v2938_v52  ;;  %v890_v11 = vsel %vm445_vm1, %v2933_v57, %v2937_v50  ;;  %v1255_v57 = vrot.slane %v3130_v5, %v4694_v62  ;;  %v3131_v50 = vld [vmem:[%s4585_s0 + $0x20] sm:$0xff] }
 0x1f7   : > { %v879_v26 = vpop.permute.xlu1 %878  ;;  %v2941_v48 = vpop.permute.xlu0 %2940  ;;  %v2758_v6 = vpack.c.bf16 %v891_v51, %v823_v55  ;;  %v2760_v41 = vpack.c.bf16 %v890_v11, %v822_v19  ;;  %v1251_v55 = vrot.slane %v3131_v50, %v4694_v62 }
 0x1f8   : > { %v888_v44 = vsel %vm445_vm1, %v879_v26, %v2932_v14  ;;  %v2943_v54 = vunpack.i.h.bf16 %v2941_v48  ;;  %v2942_v4 = vunpack.i.l.bf16 %v2941_v48  ;;  %v1265_v51 = vmul.f32 %v4271_v42, %v1255_v57  ;;  %v3133_v42 = vld [vmem:[%s4585_s0 + $0x30] sm:$0xff] }
 0x1f9   : > { %v2708_v2 = vpack.c.bf16 %v888_v44, %v820_v31  ;;  %2759 = vmatprep.subr.bf16.mxu1 %v2758_v6 }
 0x1fa   : > { %2761 = vmatpush1.bf16.msra.mxu1 %v2760_v41  ;;  %v957_v30 = vsel %vm375_vm0, %v2942_v4, %v2943_v54 }
 0x1fb   : > { %v2946_v60 = vpop.permute.xlu1 %2945  ;;  %v2951_v58 = vpop.permute.xlu0 %2950  ;;  %2709 = vmatpush1.bf16.msra.mxu0 %v2708_v2  ;;  %v3132_v2 = vld [vmem:[%s4585_s0 + $0x38] sm:$0xff] }
 0x1fc   : > { %v2953_v47 = vunpack.i.h.bf16 %v2951_v58  ;;  %v2952_v32 = vunpack.i.l.bf16 %v2951_v58  ;;  %v2948_v24 = vunpack.i.h.bf16 %v2946_v60  ;;  %v2947_v59 = vunpack.i.l.bf16 %v2946_v60 }
 0x1fe   : > { %v1027_v45 = vsel %vm1025_vm4, %v2952_v32, %v2953_v47  ;;  %v959_v46 = vsel %vm375_vm0, %v2947_v59, %v2948_v24  ;;  %v958_v35 = vsel %vm375_vm0, %v2943_v54, %v2947_v59  ;;  %v1263_v54 = vrot.slane %v3132_v2, %v4694_v62 }
 0x1ff   : > { %v2956_v20 = vpop.permute.xlu1 %2955  ;;  %v947_v39 = vpop.permute.xlu0 %946  ;;  %v2710_v0 = vpack.c.bf16 %v1027_v45, %v957_v30  ;;  %v1264_v59 = vmul.f32 %v4264_v33, %v1251_v55 }
 0x200   : > { %v2958_v10 = vunpack.i.h.bf16 %v2956_v20  ;;  %v2957_v13 = vunpack.i.l.bf16 %v2956_v20  ;;  %v956_v40 = vsel %vm375_vm0, %v947_v39, %v2942_v4  ;;  %v1259_v4 = vrot.slane %v3133_v42, %v4694_v62 }
 0x201   : > { %2711 = vmatprep.subr.bf16.mxu0 %v2710_v0  ;;  %v1267_v0 = vmul.f32 %v4245_v36, %v1263_v54 }
 0x202   : > { %v1029_v61 = vsel %vm1025_vm4, %v2957_v13, %v2958_v10  ;;  %v1028_v56 = vsel %vm1025_vm4, %v2953_v47, %v2957_v13  ;;  %v1266_v10 = vmul.f32 %v4275_v9, %v1259_v4 }
 0x203   : > { %v1016_v18 = vpop.permute.xlu1 %1015  ;;  %v2961_v3 = vpop.permute.xlu0 %2960  ;;  %v2762_v8 = vpack.c.bf16 %v1029_v61, %v959_v46  ;;  %v2764_v21 = vpack.c.bf16 %v1028_v56, %v958_v35 }
 0x204   : > { %v1026_v7 = vsel %vm1025_vm4, %v1016_v18, %v2952_v32  ;;  %v2963_v15 = vunpack.i.h.bf16 %v2961_v3  ;;  %v2962_v43 = vunpack.i.l.bf16 %v2961_v3  ;;  %vm4695_vm4 = vcmask 596992  }
 0x205   : > { %v2712_v29 = vpack.c.bf16 %v1026_v7, %v956_v40  ;;  %2763 = vmatprep.subr.bf16.mxu1 %v2762_v8  ;;  %vm4696_vm5 = vmmov %vm4695_vm4 }
 0x206   : > { %2765 = vmatpush1.bf16.msra.mxu1 %v2764_v21  ;;  %v1097_v53 = vsel %vm1095_vm15, %v2962_v43, %v2963_v15 }
 0x207   : > { %v2966_v17 = vpop.permute.xlu1 %2965  ;;  %v2971_v25 = vpop.permute.xlu0 %2970  ;;  %2713 = vmatpush1.bf16.msra.mxu0 %v2712_v29 }
 0x208   : > { %v2973_v23 = vunpack.i.h.bf16 %v2971_v25  ;;  %v2972_v12 = vunpack.i.l.bf16 %v2971_v25  ;;  %v2968_v14 = vunpack.i.h.bf16 %v2966_v17  ;;  %v2967_v22 = vunpack.i.l.bf16 %v2966_v17 }
 0x20a   : > { %v1167_v38 = vsel %vm1165_vm14, %v2972_v12, %v2973_v23  ;;  %v1099_v19 = vsel %vm1095_vm15, %v2967_v22, %v2968_v14  ;;  %v1098_v26 = vsel %vm1095_vm15, %v2963_v15, %v2967_v22 }
 0x20b   : > { %v2976_v63 = vpop.permute.xlu1 %2975  ;;  %v1086_v27 = vpop.permute.xlu0 %1085  ;;  %v2714_v34 = vpack.c.bf16 %v1167_v38, %v1097_v53 }
 0x20c   : > { %v2978_v37 = vunpack.i.h.bf16 %v2976_v63  ;;  %v2977_v52 = vunpack.i.l.bf16 %v2976_v63  ;;  %v1096_v60 = vsel %vm1095_vm15, %v1086_v27, %v2962_v43 }
 0x20d   : > { %2715 = vmatprep.subr.bf16.mxu0 %v2714_v34 }
 0x20e   : > { %v1169_v11 = vsel %vm1165_vm14, %v2977_v52, %v2978_v37  ;;  %v1168_v48 = vsel %vm1165_vm14, %v2973_v23, %v2977_v52 }
 0x20f   : > { %v1156_v6 = vpop.permute.xlu1 %1155  ;;  %v2981_v41 = vpop.permute.xlu0 %2980  ;;  %v2766_v31 = vpack.c.bf16 %v1169_v11, %v1099_v19  ;;  %v2768_v44 = vpack.c.bf16 %v1168_v48, %v1098_v26 }
 0x210   : > { %v1166_v58 = vsel %vm1165_vm14, %v1156_v6, %v2972_v12  ;;  %v2983_v47 = vunpack.i.h.bf16 %v2981_v41  ;;  %v2982_v32 = vunpack.i.l.bf16 %v2981_v41 }
 0x211   : > { %v2716_v24 = vpack.c.bf16 %v1166_v58, %v1096_v60  ;;  %2767 = vmatprep.subr.bf16.mxu1 %v2766_v31 }
 0x212   : > { %2769 = vmatpush1.bf16.msra.mxu1 %v2768_v44  ;;  %v1237_v30 = vsel %vm1235_vm13, %v2982_v32, %v2983_v47 }
 0x213   : > { %v2986_v45 = vpop.permute.xlu1 %2985  ;;  %v1226_v20 = vpop.permute.xlu0 %1225  ;;  %2717 = vmatpush1.bf16.msra.mxu0 %v2716_v24  ;;  %v2718_v39 = vpack.c.bf16 %v1265_v51, %v1237_v30 }
 0x214   : > { %v2988_v13 = vunpack.i.h.bf16 %v2986_v45  ;;  %v2987_v46 = vunpack.i.l.bf16 %v2986_v45  ;;  %v1236_v61 = vsel %vm1235_vm13, %v1226_v20, %v2982_v32 }
 0x215   : > { %v2720_v35 = vpack.c.bf16 %v1264_v59, %v1236_v61  ;;  %2719 = vmatprep.subr.bf16.mxu0 %v2718_v39 }
 0x216   : > { %v1239_v56 = vsel %vm1235_vm13, %v2987_v46, %v2988_v13  ;;  %v1238_v33 = vsel %vm1235_vm13, %v2983_v47, %v2987_v46  ;;  %vm4701_vm13 = vmmov %vm4695_vm4 }
 0x217   : > { %v2991_v18 = vpop.permute.xlu1 %2990  ;;  %v2996_v3 = vpop.permute.xlu0 %2995  ;;  %2721 = vmatpush1.bf16.msra.mxu0 %v2720_v35  ;;  %v2770_v8 = vpack.c.bf16 %v1267_v0, %v1239_v56  ;;  %v2772_v21 = vpack.c.bf16 %v1266_v10, %v1238_v33 }
 0x218   : > { %v2993_v40 = vunpack.i.h.bf16 %v2991_v18  ;;  %v2992_v7 = vunpack.i.l.bf16 %v2991_v18  ;;  %v2998_v36 = vunpack.i.h.bf16 %v2996_v3  ;;  %v2997_v29 = vunpack.i.l.bf16 %v2996_v3 }
 0x219   : > { %2771 = vmatprep.subr.bf16.mxu1 %v2770_v8 }
 0x21a   : > { %2773 = vmatpush1.bf16.msra.mxu1 %v2772_v21  ;;  %v1329_v12 = vsel %vm1206_vm12, %v2992_v7, %v2993_v40  ;;  %v1331_v5 = vsel %vm1206_vm12, %v2997_v29, %v2998_v36  ;;  %v1330_v14 = vsel %vm1206_vm12, %v2993_v40, %v2997_v29 }
 0x21b   : > { %v3001_v9 = vpop.permute.xlu1 %3000  ;;  %v3006_v15 = vpop.permute.xlu0 %3005 }
 0x21c   : > { %v3003_v43 = vunpack.i.h.bf16 %v3001_v9  ;;  %v3002_v17 = vunpack.i.l.bf16 %v3001_v9  ;;  %v3008_v25 = vunpack.i.h.bf16 %v3006_v15  ;;  %v3007_v23 = vunpack.i.l.bf16 %v3006_v15 }
 0x21e   : > { %v1397_v62 = vsel %vm1136_vm11, %v3002_v17, %v3003_v43  ;;  %v1399_v57 = vsel %vm1136_vm11, %v3007_v23, %v3008_v25  ;;  %v1398_v22 = vsel %vm1136_vm11, %v3003_v43, %v3007_v23 }
 0x21f   : > { %v1319_v53 = vpop.permute.xlu1 %1318  ;;  %v1387_v38 = vpop.permute.xlu0 %1386  ;;  %v2722_v63 = vpack.c.bf16 %v1397_v62, %v1329_v12  ;;  %v2774_v27 = vpack.c.bf16 %v1399_v57, %v1331_v5  ;;  %v2776_v34 = vpack.c.bf16 %v1398_v22, %v1330_v14 }
 0x220   : > { %v1328_v37 = vsel %vm1206_vm12, %v1319_v53, %v2992_v7  ;;  %v1396_v52 = vsel %vm1136_vm11, %v1387_v38, %v3002_v17  ;;  %vm4699_vm11 = vmmov %vm4695_vm4 }
 0x221   : > { %v2724_v50 = vpack.c.bf16 %v1396_v52, %v1328_v37  ;;  %2723 = vmatprep.subr.bf16.mxu0 %v2722_v63  ;;  %2775 = vmatprep.subr.bf16.mxu1 %v2774_v27  ;;  %v2888_v52 = vunpack.i.h.bf16 %v4375_v1 }
 0x222   : > { %2777 = vmatpush1.bf16.msra.mxu1 %v2776_v34 }
 0x223   : > { %v3011_v55 = vpop.permute.xlu1 %3010  ;;  %v3016_v51 = vpop.permute.xlu0 %3015  ;;  %2725 = vmatpush1.bf16.msra.mxu0 %v2724_v50  ;;  %v2893_v50 = vunpack.i.h.bf16 %v4393_v16 }
 0x224   : > { %v3013_v19 = vunpack.i.h.bf16 %v3011_v55  ;;  %v3012_v11 = vunpack.i.l.bf16 %v3011_v55  ;;  %v3018_v26 = vunpack.i.h.bf16 %v3016_v51  ;;  %v3017_v48 = vunpack.i.l.bf16 %v3016_v51 }
 0x226   : > { %v1465_v42 = vsel %vm1066_vm10, %v3012_v11, %v3013_v19  ;;  %v1467_v4 = vsel %vm1066_vm10, %v3017_v48, %v3018_v26  ;;  %v1466_v47 = vsel %vm1066_vm10, %v3013_v19, %v3017_v48 }
 0x227   : > { %v3021_v6 = vpop.permute.xlu1 %3020  ;;  %v3026_v41 = vpop.permute.xlu0 %3025 }
 0x228   : > { %v3023_v31 = vunpack.i.h.bf16 %v3021_v6  ;;  %v3022_v44 = vunpack.i.l.bf16 %v3021_v6  ;;  %v3028_v2 = vunpack.i.h.bf16 %v3026_v41  ;;  %v3027_v54 = vunpack.i.l.bf16 %v3026_v41 }
 0x22a   : > { %v1533_v60 = vsel %vm996_vm9, %v3022_v44, %v3023_v31  ;;  %v1535_v58 = vsel %vm996_vm9, %v3027_v54, %v3028_v2  ;;  %v1534_v32 = vsel %vm996_vm9, %v3023_v31, %v3027_v54 }
 0x22b   : > { %v1455_v24 = vpop.permute.xlu1 %1454  ;;  %v1523_v59 = vpop.permute.xlu0 %1522  ;;  %v2726_v30 = vpack.c.bf16 %v1533_v60, %v1465_v42  ;;  %v2778_v45 = vpack.c.bf16 %v1535_v58, %v1467_v4  ;;  %v2780_v20 = vpack.c.bf16 %v1534_v32, %v1466_v47 }
 0x22c   : > { %v1464_v39 = vsel %vm1066_vm10, %v1455_v24, %v3012_v11  ;;  %v1532_v0 = vsel %vm996_vm9, %v1523_v59, %v3022_v44  ;;  %vm4697_vm9 = vcmask 588800  }
 0x22d   : > { %v2728_v10 = vpack.c.bf16 %v1532_v0, %v1464_v39  ;;  %2727 = vmatprep.subr.bf16.mxu0 %v2726_v30  ;;  %2779 = vmatprep.subr.bf16.mxu1 %v2778_v45  ;;  %vm4698_vm10 = vmmov %vm4697_vm9  ;;  %v2918_v45 = vunpack.i.h.bf16 %v4426_v28 }
 0x22e   : > { %2781 = vmatpush1.bf16.msra.mxu1 %v2780_v20  ;;  %vm4700_vm12 = vmmov %vm4697_vm9 }
 0x22f   : > { %v3031_v13 = vpop.permute.xlu1 %3030  ;;  %v3036_v46 = vpop.permute.xlu0 %3035  ;;  %2729 = vmatpush1.bf16.msra.mxu0 %v2728_v10  ;;  %vm4702_vm14 = vmmov %vm4697_vm9 }
 0x230   : > { %v3033_v61 = vunpack.i.h.bf16 %v3031_v13  ;;  %v3032_v35 = vunpack.i.l.bf16 %v3031_v13  ;;  %v3038_v56 = vunpack.i.h.bf16 %v3036_v46  ;;  %v3037_v33 = vunpack.i.l.bf16 %v3036_v46 }
 0x232   : > { %v1601_v36 = vsel %vm4695_vm4, %v3032_v35, %v3033_v61  ;;  %v1603_v29 = vsel %vm4696_vm5, %v3037_v33, %v3038_v56  ;;  %v1602_v43 = vsel %vm4699_vm11, %v3033_v61, %v3037_v33 }
 0x233   : > { %v3041_v18 = vpop.permute.xlu1 %3040  ;;  %v3046_v3 = vpop.permute.xlu0 %3045 }
 0x234   : > { %v3043_v8 = vunpack.i.h.bf16 %v3041_v18  ;;  %v3042_v21 = vunpack.i.l.bf16 %v3041_v18  ;;  %v3048_v40 = vunpack.i.h.bf16 %v3046_v3  ;;  %v3047_v7 = vunpack.i.l.bf16 %v3046_v3 }
 0x236   : > { %v1669_v9 = vsel %vm4697_vm9, %v3042_v21, %v3043_v8  ;;  %v1671_v15 = vsel %vm4698_vm10, %v3047_v7, %v3048_v40  ;;  %v1670_v17 = vsel %vm4700_vm12, %v3043_v8, %v3047_v7 }
 0x237   : > { %v1591_v25 = vpop.permute.xlu1 %1590  ;;  %v1659_v23 = vpop.permute.xlu0 %1658  ;;  %v2730_v12 = vpack.c.bf16 %v1669_v9, %v1601_v36  ;;  %v2782_v5 = vpack.c.bf16 %v1671_v15, %v1603_v29  ;;  %v2784_v62 = vpack.c.bf16 %v1670_v17, %v1602_v43 }
 0x238   : > { %v1600_v57 = vsel %vm4701_vm13, %v1591_v25, %v3032_v35  ;;  %v1668_v14 = vsel %vm4702_vm14, %v1659_v23, %v3042_v21 }
 0x239   : > { %v2732_v22 = vpack.c.bf16 %v1668_v14, %v1600_v57  ;;  %2731 = vmatprep.subr.bf16.mxu0 %v2730_v12  ;;  %2783 = vmatprep.subr.bf16.mxu1 %v2782_v5 }
 0x23a   : > { %2785 = vmatpush1.bf16.msra.mxu1 %v2784_v62 }
 0x23b   : > { %v3051_v53 = vpop.permute.xlu1 %3050  ;;  %v3056_v38 = vpop.permute.xlu0 %3055  ;;  %2733 = vmatpush1.bf16.msra.mxu0 %v2732_v22 }
 0x23c   : > { %v3053_v63 = vunpack.i.h.bf16 %v3051_v53  ;;  %v3052_v27 = vunpack.i.l.bf16 %v3051_v53  ;;  %v3058_v34 = vunpack.i.h.bf16 %v3056_v38  ;;  %v3057_v37 = vunpack.i.l.bf16 %v3056_v38 }
 0x23e   : > { %v1737_v6 = vsel %vm544_vm8, %v2888_v52, %v3052_v27  ;;  %v1739_v41 = vsel %vm544_vm8, %v3053_v63, %v3057_v37  ;;  %v1736_v31 = vsel %vm544_vm8, %v3058_v34, %v2888_v52  ;;  %v1738_v44 = vsel %vm544_vm8, %v3052_v27, %v3053_v63 }
 0x23f   : > { %v3061_v55 = vpop.permute.xlu1 %3060  ;;  %v3066_v51 = vpop.permute.xlu0 %3065 }
 0x240   : > { %v3063_v19 = vunpack.i.h.bf16 %v3061_v55  ;;  %v3062_v11 = vunpack.i.l.bf16 %v3061_v55  ;;  %v3068_v26 = vunpack.i.h.bf16 %v3066_v51  ;;  %v3067_v48 = vunpack.i.l.bf16 %v3066_v51 }
 0x242   : > { %v1805_v2 = vsel %vm614_vm7, %v2893_v50, %v3062_v11  ;;  %v1807_v1 = vsel %vm614_vm7, %v3063_v19, %v3067_v48  ;;  %v1804_v16 = vsel %vm614_vm7, %v3068_v26, %v2893_v50  ;;  %v1806_v54 = vsel %vm614_vm7, %v3062_v11, %v3063_v19 }
 0x243   : > { %v3071_v42 = vpop.permute.xlu1 %3070  ;;  %v3076_v4 = vpop.permute.xlu0 %3075  ;;  %v2734_v60 = vpack.c.bf16 %v1805_v2, %v1737_v6  ;;  %v2786_v58 = vpack.c.bf16 %v1807_v1, %v1739_v41  ;;  %v2736_v47 = vpack.c.bf16 %v1804_v16, %v1736_v31  ;;  %v2788_v32 = vpack.c.bf16 %v1806_v54, %v1738_v44 }
 0x244   : > { %v3073_v24 = vunpack.i.h.bf16 %v3071_v42  ;;  %v3072_v59 = vunpack.i.l.bf16 %v3071_v42  ;;  %v3077_v30 = vunpack.i.l.bf16 %v3076_v4  ;;  %v3078_v20 = vunpack.i.h.bf16 %v3076_v4 }
 0x245   : > { %2735 = vmatprep.subr.bf16.mxu0 %v2734_v60  ;;  %2787 = vmatprep.subr.bf16.mxu1 %v2786_v58  ;;  %v2416_v60 = vstv %s2415_s20  ;;  %v2440_v58 = vstv %s2681_s21 }
 0x246   : > { %2737 = vmatpush1.bf16.msra.mxu0 %v2736_v47  ;;  %2789 = vmatpush1.bf16.msra.mxu1 %v2788_v32  ;;  %v1873_v35 = vsel %vm655_vm6, %v2918_v45, %v3072_v59  ;;  %v1875_v56 = vsel %vm655_vm6, %v3073_v24, %v3077_v30  ;;  %v1874_v3 = vsel %vm655_vm6, %v3072_v59, %v3073_v24  ;;  %v2476_v47 = vstv %s2683_s22 }
 0x247   : > { %v3081_v39 = vpop.permute.xlu1 %3080  ;;  %v3086_v0 = vpop.permute.xlu0 %3085  ;;  %v1872_v29 = vsel %vm655_vm6, %v3078_v20, %v2918_v45  ;;  %v4547_v24 = vstv %s2412_s23  ;;  %v4549_v59 = vstv %s2429_s11  ;;  %v4551_v30 = vstv %s2682_s14 }
 0x248   : > { %v3083_v10 = vunpack.i.h.bf16 %v3081_v39  ;;  %v3082_v13 = vunpack.i.l.bf16 %v3081_v39  ;;  %v3088_v46 = vunpack.i.h.bf16 %v3086_v0  ;;  %v3087_v61 = vunpack.i.l.bf16 %v3086_v0 }
 0x249   : > { %v4553_v39 = vstv %s2684_s15 }
 0x24a   : > { %v1941_v33 = vsel %vm585_vm3, %v3082_v13, %v3083_v10  ;;  %v1943_v18 = vsel %vm585_vm3, %v3087_v61, %v3088_v46  ;;  %v1942_v8 = vsel %vm585_vm3, %v3083_v10, %v3087_v61 }
 0x24b   : > { %v1931_v28 = vpop.permute.xlu1 %1930  ;;  %v3091_v21 = vpop.permute.xlu0 %3090  ;;  %v2738_v40 = vpack.c.bf16 %v1941_v33, %v1873_v35  ;;  %v2790_v7 = vpack.c.bf16 %v1943_v18, %v1875_v56  ;;  %v2792_v36 = vpack.c.bf16 %v1942_v8, %v1874_v3 }
 0x24c   : > { %v1940_v9 = vsel %vm585_vm3, %v1931_v28, %v3082_v13  ;;  %v3093_v43 = vunpack.i.h.bf16 %v3091_v21  ;;  %v3092_v17 = vunpack.i.l.bf16 %v3091_v21 }
 0x24d   : > { %v2740_v15 = vpack.c.bf16 %v1940_v9, %v1872_v29  ;;  %2739 = vmatprep.subr.bf16.mxu0 %v2738_v40  ;;  %2791 = vmatprep.subr.bf16.mxu1 %v2790_v7 }
 0x24e   : > { %2793 = vmatpush1.bf16.msra.mxu1 %v2792_v36  ;;  %v2009_v14 = vsel %vm515_vm2, %v3092_v17, %v3093_v43 }
 0x24f   : > { %v3096_v25 = vpop.permute.xlu1 %3095  ;;  %v3101_v23 = vpop.permute.xlu0 %3100  ;;  %2741 = vmatpush1.bf16.msra.mxu0 %v2740_v15 }
 0x250   : > { %v3103_v12 = vunpack.i.h.bf16 %v3101_v23  ;;  %v3102_v5 = vunpack.i.l.bf16 %v3101_v23  ;;  %v3098_v62 = vunpack.i.h.bf16 %v3096_v25  ;;  %v3097_v57 = vunpack.i.l.bf16 %v3096_v25 }
 0x252   : > { %v2077_v22 = vsel %vm445_vm1, %v3102_v5, %v3103_v12  ;;  %v2011_v37 = vsel %vm515_vm2, %v3097_v57, %v3098_v62  ;;  %v2010_v50 = vsel %vm515_vm2, %v3093_v43, %v3097_v57 }
 0x253   : > { %v3106_v53 = vpop.permute.xlu1 %3105  ;;  %v1999_v38 = vpop.permute.xlu0 %1998  ;;  %v2742_v63 = vpack.c.bf16 %v2077_v22, %v2009_v14 }
 0x254   : > { %v3108_v27 = vunpack.i.h.bf16 %v3106_v53  ;;  %v3107_v34 = vunpack.i.l.bf16 %v3106_v53  ;;  %v2008_v48 = vsel %vm515_vm2, %v1999_v38, %v3092_v17 }
 0x255   : > { %2743 = vmatprep.subr.bf16.mxu0 %v2742_v63 }
 0x256   : > { %v2079_v52 = vsel %vm445_vm1, %v3107_v34, %v3108_v27  ;;  %v2078_v55 = vsel %vm445_vm1, %v3103_v12, %v3107_v34 }
 0x257   : > { %v2067_v51 = vpop.permute.xlu1 %2066  ;;  %v2137_v19 = vpop.permute.xlu0 %2136  ;;  %v2794_v11 = vpack.c.bf16 %v2079_v52, %v2011_v37  ;;  %v2796_v26 = vpack.c.bf16 %v2078_v55, %v2010_v50 }
 0x258   : > { %v2076_v6 = vsel %vm445_vm1, %v2067_v51, %v3102_v5 }
 0x259   : > { %v2744_v41 = vpack.c.bf16 %v2076_v6, %v2008_v48  ;;  %2795 = vmatprep.subr.bf16.mxu1 %v2794_v11 }
 0x25a   : > { %2797 = vmatpush1.bf16.msra.mxu1 %v2796_v26 }
 0x25b   : > { %v2139_v31 = vpop.permute.xlu1 %2138  ;;  %v2141_v44 = vpop.permute.xlu0 %2140  ;;  %2745 = vmatpush1.bf16.msra.mxu0 %v2744_v41 }
 0x25c   : > { %v2145_v2 = vsel %vm375_vm0, %v2137_v19, %v2139_v31  ;;  %v2146_v4 = vsel %vm375_vm0, %v2139_v31, %v2141_v44 }
 0x25d   : > { %2322 = vmatprep.subr.mxu0 %v2145_v2 }
 0x25f   : > { %v2143_v1 = vpop.permute.xlu1 %2142  ;;  %v2135_v16 = vpop.permute.xlu0 %2134 }
 0x260   : > { %v2144_v54 = vsel %vm375_vm0, %v2135_v16, %v2137_v19  ;;  %v2147_v42 = vsel %vm375_vm0, %v2141_v44, %v2143_v1 }
 0x261   : > { %2323 = vmatpush1.msra.mxu0 %v2144_v54  ;;  %2393 = vmatprep.subr.mxu1 %v2147_v42 }
 0x262   : > { %2335 = vmatmul.mubr.f32.vlgmr.msra.gmra.mrb[0].mxu0 %v4398_v49  ;;  %2394 = vmatpush1.msra.mxu1 %v2146_v4 }
 0x263   : > { %2406 = vmatmul.mubr.f32.vlgmr.msra.gmra.mrb[0].mxu1 %v4398_v49 }
 0x335   : > { %v2336_v32 = vpop.f32.mrb[0].mxu0 }
 0x336   : > { %v2417_v45 = vadd.f32 %v2416_v60, %v2336_v32  ;;  %v2441_v20 = vadd.f32 %v2440_v58, %v2336_v32  ;;  %v2477_v49 = vadd.f32 %v2476_v47, %v2336_v32  ;;  %v2338_v0 = vpop.f32.mrb[1].mxu0  ;;  %v2407_v10 = vpop.f32.mrb[0].mxu1 }
 0x337   : > { %v2418_v13 = vadd.f32 %v2416_v60, %v2338_v0  ;;  %v2442_v46 = vadd.f32 %v2440_v58, %v2338_v0  ;;  %v2478_v61 = vadd.f32 %v2476_v47, %v2338_v0  ;;  %v2419_v35 = vadd.f32 %v2416_v60, %v2407_v10  ;;  %v2409_v56 = vpop.f32.mrb[1].mxu1 }
 0x338   : > { %v2421_v33 = vmax.f32 %v2417_v45, 0.0  ;;  %v2445_v18 = vmax.f32 %v2441_v20, 0.0  ;;  %v2481_v3 = vmax.f32 %v2477_v49, 0.0  ;;  %v2443_v8 = vadd.f32 %v2440_v58, %v2407_v10 }
 0x339   : > { %v2422_v28 = vmax.f32 %v2418_v13, 0.0  ;;  %v2446_v21 = vmax.f32 %v2442_v46, 0.0  ;;  %v2482_v40 = vmax.f32 %v2478_v61, 0.0  ;;  %v2423_v7 = vmax.f32 %v2419_v35, 0.0 }
 0x33a   : > { %v2425_v36 = vmin.f32 %v2421_v33, 6.0  ;;  %v2449_v29 = vmin.f32 %v2445_v18, 6.0  ;;  %v2485_v9 = vmin.f32 %v2481_v3, 6.0  ;;  %v2447_v15 = vmax.f32 %v2443_v8, 0.0 }
 0x33b   : > { %v2426_v43 = vmin.f32 %v2422_v28, 6.0  ;;  %v2450_v17 = vmin.f32 %v2446_v21, 6.0  ;;  %v2486_v25 = vmin.f32 %v2482_v40, 6.0  ;;  %v2427_v23 = vmin.f32 %v2423_v7, 6.0 }
 0x33c   : > { %v2431_v12 = vmul.f32 %v4549_v59, %v2425_v36  ;;  %v2455_v5 = vmul.f32 %v4551_v30, %v2449_v29  ;;  %v2491_v62 = vmul.f32 %v4553_v39, %v2485_v9  ;;  %v2451_v57 = vmin.f32 %v2447_v15, 6.0  ;;  %v2535_v9 = vld [vmem:[%s321_s16] sm:$0xff] }
 0x33d   : > { %v2432_v14 = vmul.f32 %v4549_v59, %v2426_v43  ;;  %v2456_v22 = vmul.f32 %v4551_v30, %v2450_v17  ;;  %v2492_v53 = vmul.f32 %v4553_v39, %v2486_v25  ;;  %v2433_v38 = vmul.f32 %v4549_v59, %v2427_v23  ;;  %v2539_v15 = vld [vmem:[%s321_s16 + $0x20] sm:$0xff]  ;;  %v2536_v23 = vld [vmem:[%s321_s16 + $0x8] sm:$0xff] }
 0x33e   : > { %v2435_v63 = vadd.f32 %v2431_v12, %v4547_v24  ;;  %v2463_v27 = vrot.slane %v2455_v5, 1  ;;  %v2499_v34 = vrot.slane %v2491_v62, 2  ;;  %v2457_v37 = vmul.f32 %v4551_v30, %v2451_v57  ;;  %v4703_v17 = vld [vmem:[#allocation10_spill] sm:$0xff]  ;;  %v2540_v12 = vld [vmem:[%s321_s16 + $0x28] sm:$0xff] }
 0x33f   : > { %v2436_v52 = vadd.f32 %v2432_v14, %v4547_v24  ;;  %v2464_v50 = vrot.slane %v2456_v22, 1  ;;  %v2500_v51 = vrot.slane %v2492_v53, 2  ;;  %v2479_v19 = vadd.f32 %v2476_v47, %v2407_v10 }
 0x340   : > { %v2471_v55 = vadd.f32 %v2463_v27, %v2435_v63  ;;  %v2420_v11 = vadd.f32 %v2416_v60, %v2409_v56  ;;  %v2437_v48 = vadd.f32 %v2433_v38, %v4547_v24  ;;  %v2444_v6 = vadd.f32 %v2440_v58, %v2409_v56  ;;  %v2537_v38 = vld [vmem:[%s321_s16 + $0x10] sm:$0xff] }
 0x341   : > { %v2472_v26 = vadd.f32 %v2464_v50, %v2436_v52  ;;  %v2480_v41 = vadd.f32 %v2476_v47, %v2409_v56  ;;  %v2465_v44 = vrot.slane %v2457_v37, 1  ;;  %v2483_v2 = vmax.f32 %v2479_v19, 0.0  ;;  %v2541_v63 = vld [vmem:[%s321_s16 + $0x30] sm:$0xff]  ;;  %v2538_v50 = vld [vmem:[%s321_s16 + $0x18] sm:$0xff] }
 0x342   : > { %v2507_v31 = vadd.f32 %v2499_v34, %v2471_v55  ;;  %v2424_v1 = vmax.f32 %v2420_v11, 0.0  ;;  %v2448_v54 = vmax.f32 %v2444_v6, 0.0  ;;  %v2542_v55 = vld [vmem:[%s321_s16 + $0x38] sm:$0xff] }
 0x343   : > { %v2508_v16 = vadd.f32 %v2500_v51, %v2472_v26  ;;  %v2484_v42 = vmax.f32 %v2480_v41, 0.0  ;;  %v2487_v32 = vmin.f32 %v2483_v2, 6.0  ;;  %v2473_v60 = vadd.f32 %v2465_v44, %v2437_v48 }
 0x344   : > { %v2685_v4 = vmul.f32 -1.442695, %v2507_v31  ;;  %v2428_v45 = vmin.f32 %v2424_v1, 6.0  ;;  %v2452_v49 = vmin.f32 %v2448_v54, 6.0 }
 0x345   : > { %v2686_v20 = vmul.f32 -1.442695, %v2508_v16  ;;  %v2488_v0 = vmin.f32 %v2484_v42, 6.0  ;;  %v2493_v10 = vmul.f32 %v4553_v39, %v2487_v32 }
 0x346   : > { %3110 = vpow2.f32 %v2685_v4  ;;  %v2434_v58 = vmul.f32 %v4549_v59, %v2428_v45  ;;  %v2458_v47 = vmul.f32 %v4551_v30, %v2452_v49 }
 0x347   : > { %3112 = vpow2.f32 %v2686_v20  ;;  %v2494_v13 = vmul.f32 %v4553_v39, %v2488_v0  ;;  %v2501_v46 = vrot.slane %v2493_v10, 2 }
 0x348   : > { %v2438_v61 = vadd.f32 %v2434_v58, %v4547_v24  ;;  %v2466_v35 = vrot.slane %v2458_v47, 1 }
 0x349   : > { %v2509_v56 = vadd.f32 %v2501_v46, %v2473_v60  ;;  %v2502_v18 = vrot.slane %v2494_v13, 2 }
 0x34a   : > { %v2474_v33 = vadd.f32 %v2466_v35, %v2438_v61 }
 0x34b   : > { %v2687_v3 = vmul.f32 -1.442695, %v2509_v56 }
 0x34c   : > { %v2510_v8 = vadd.f32 %v2502_v18, %v2474_v33 }
 0x34d   : > { %3114 = vpow2.f32 %v2687_v3 }
 0x34e   : > { %v2688_v28 = vmul.f32 -1.442695, %v2510_v8 }
 0x350   : > { %v3111_v21 = vpop.eup %3110  ;;  %3116 = vpow2.f32 %v2688_v28 }
 0x351   : > { %v3113_v40 = vpop.eup %3112  ;;  %v2523_v59 = vadd.f32 1.0, %v3111_v21 }
 0x352   : > { %v2524_v7 = vadd.f32 1.0, %v3113_v40 }
 0x353   : > { %3118 = vrcp.f32 %v2523_v59 }
 0x354   : > { %3120 = vrcp.f32 %v2524_v7 }
 0x357   : > { %v3115_v30 = vpop.eup %3114 }
 0x358   : > { %v2525_v39 = vadd.f32 1.0, %v3115_v30 }
 0x35a   : > { %v3117_v24 = vpop.eup %3116  ;;  %3122 = vrcp.f32 %v2525_v39 }
 0x35b   : > { %v2526_v36 = vadd.f32 1.0, %v3117_v24 }
 0x35d   : > { %v3119_v29 = vpop.eup %3118  ;;  %3124 = vrcp.f32 %v2526_v36 }
 0x35e   : > { %v3121_v43 = vpop.eup %3120  ;;  %v2546_v25 = vrot.slane %v3119_v29, %v4703_v17 }
 0x35f   : > { %v2550_v5 = vrot.slane %v3121_v43, %v4703_v17 }
 0x360   : > { %v2559_v62 = vmul.f32 %v2546_v25, %v2535_v9  ;;  %v2563_v57 = vmul.f32 %v2546_v25, %v2539_v15 }
 0x361   : > { %v2560_v14 = vmul.f32 %v2550_v5, %v2536_v23  ;;  %v2564_v22 = vmul.f32 %v2550_v5, %v2540_v12 }
 0x362   : > { %2567 = vst [vmem:[%s326_s6] sm:$0xff] %v2559_v62  ;;  %2571 = vst [vmem:[%s326_s6 + $0x20] sm:$0xff] %v2563_v57 }
 0x363   : > { %2568 = vst [vmem:[%s326_s6 + $0x8] sm:$0xff] %v2560_v14  ;;  %2572 = vst [vmem:[%s326_s6 + $0x28] sm:$0xff] %v2564_v22 }
 0x364   : > { %v3123_v53 = vpop.eup %3122 }
 0x365   : > { %v2554_v27 = vrot.slane %v3123_v53, %v4703_v17 }
 0x367   : > { %v3125_v34 = vpop.eup %3124  ;;  %v2561_v37 = vmul.f32 %v2554_v27, %v2537_v38  ;;  %v2565_v52 = vmul.f32 %v2554_v27, %v2541_v63 }
 0x368   : > { %v2558_v51 = vrot.slane %v3125_v34, %v4703_v17 }
 0x369   : > { %2569 = vst [vmem:[%s326_s6 + $0x10] sm:$0xff] %v2561_v37  ;;  %2573 = vst [vmem:[%s326_s6 + $0x30] sm:$0xff] %v2565_v52 }
 0x36a   : > { %v2562_v19 = vmul.f32 %v2558_v51, %v2538_v50  ;;  %v2566_v11 = vmul.f32 %v2558_v51, %v2542_v55 }
 0x36c   : > { %2570 = vst [vmem:[%s326_s6 + $0x18] sm:$0xff] %v2562_v19  ;;  %2574 = vst [vmem:[%s326_s6 + $0x38] sm:$0xff] %v2566_v11 }
 0x36d PF: > { %s20_s26 = sadd.s32 1, %s3178_s26  }
 0x36e   : > { %p17_p5 = scmp.ge.s32.totalorder %s20_s26, 4  }
 0x370   :  { %19 = sbr.rel (!%p17_p5) target bundleno = 4 (0x4), region = 90 }
 0x377   :  { %2596 = vsyncpa [#allocation5], 1 }
 0x378   :  { %2598 = vsyncpa [#allocation5 + $0x1], 1 }
 0x379   :  { %2599 = vsyncpa [#allocation7], 1 }

</bundles_post_ra>
